<compile_context>
chip_gen: v5e
topology: v5e:2x2
jax: 0.10.0
libtpu: 0.0.40
codegen_flags: <defaults>
</compile_context>

<pallas_src>
import functools

import jax
import jax.numpy as jnp
from jax import lax
from jax.experimental import pallas as pl
from jax.experimental.pallas import tpu as pltpu


# ---------------- Pallas kernels ----------------

def _conv3x3_kernel(x_ref, w_ref, b_ref, o_ref, *, block_h, relu):
    """Fused 3x3 'same' conv (+bias, +ReLU) on one zero-padded image.

    x_ref: (1, H+2, W+2, Cin)  padded input (bf16)
    w_ref: (9*Cin, Cout)       tap-folded weights, k = (kh*3 + kw)*Cin + c (bf16)
    b_ref: (1, Cout)           bias (f32)
    o_ref: (1, H, W, Cout)     output
    """
    H, W, Cout = o_ref.shape[1], o_ref.shape[2], o_ref.shape[3]
    Cin = x_ref.shape[3]
    bias = b_ref[...]                      # (1, Cout) f32, loaded once
    n_blocks = H // block_h

    def row_block(blk, carry):
        h0 = blk * block_h
        # Build the (block_h*W, 9*Cin) patch: 9 shifted slabs concatenated along K.
        slabs = []
        for di in range(3):
            for dj in range(3):
                tap = x_ref[0, pl.ds(h0 + di, block_h), pl.ds(dj, W), :]
                slabs.append(tap.reshape(block_h * W, Cin))
        patch = jnp.concatenate(slabs, axis=-1)                 # (M, 9*Cin)
        acc = jnp.dot(patch, w_ref[...],
                      preferred_element_type=jnp.float32) + bias
        if relu:
            acc = jnp.maximum(acc, 0.0)
        o_ref[0, pl.ds(h0, block_h)] = (
            acc.reshape(block_h, W, Cout).astype(o_ref.dtype))
        return carry

    lax.fori_loop(0, n_blocks, row_block, 0, unroll=n_blocks <= 8)


def _sse_kernel(a_ref, b_ref, o_ref):
    """Sum of squared differences, accumulated across the grid into an SMEM scalar.

    NOTE: the read-modify-write on o_ref is only correct with
    dimension_semantics=('arbitrary',) (sequential grid on one core).
    """
    @pl.when(pl.program_id(0) == 0)
    def _():
        o_ref[0] = jnp.float32(0.0)
    d = a_ref[...].astype(jnp.float32) - b_ref[...].astype(jnp.float32)
    o_ref[0] += jnp.sum(d * d)


def _tv_kernel(x_ref, o_ref):
    """TV partial sums for one image in native NCHW layout (W = lane dim).

    SMEM accumulators -> requires ('arbitrary',) grid semantics.
    """
    @pl.when(pl.program_id(0) == 0)
    def _():
        o_ref[0] = jnp.float32(0.0)
        o_ref[1] = jnp.float32(0.0)
    x = x_ref[0].astype(jnp.float32)          # (C, H, W)
    hd = x[:, 1:, :] - x[:, :-1, :]           # H-direction differences
    wd = x[:, :, 1:] - x[:, :, :-1]           # W-direction differences
    o_ref[0] += jnp.sum(hd * hd)
    o_ref[1] += jnp.sum(wd * wd)


# ---------------- pallas_call wrappers ----------------

def _ceil_to(x, m):
    return -(-x // m) * m


def _pick_block_h(H, W, target_m=256):
    """Largest divisor of H such that block_h*W covers >= target_m MXU rows (capped at H)."""
    bh = min(H, max(1, -(-target_m // W)))
    while H % bh:
        bh -= 1
    return bh


def conv3x3(x_pad, w_folded, bias, out_dtype, relu=True):
    """x_pad: (N, H+2, W+2, Cin) bf16; w_folded: (9*Cin, Cout) bf16; bias: (1, Cout) f32."""
    N, Hp2, Wp2, Cin = x_pad.shape
    H, W = Hp2 - 2, Wp2 - 2
    K, Cout = w_folded.shape
    assert K == 9 * Cin
    block_h = _pick_block_h(H, W)
    return pl.pallas_call(
        functools.partial(_conv3x3_kernel, block_h=block_h, relu=relu),
        out_shape=jax.ShapeDtypeStruct((N, H, W, Cout), out_dtype),
        grid=(N,),
        in_specs=[
            pl.BlockSpec((1, Hp2, Wp2, Cin), lambda n: (n, 0, 0, 0)),
            pl.BlockSpec((K, Cout), lambda n: (0, 0)),
            pl.BlockSpec((1, Cout), lambda n: (0, 0)),
        ],
        out_specs=pl.BlockSpec((1, H, W, Cout), lambda n: (n, 0, 0, 0)),
        compiler_params=pltpu.CompilerParams(
            dimension_semantics=("parallel",),
        ),
    )(x_pad, w_folded, bias)


def _flatten_tiles(x, pad, rows_p, lanes):
    xf = x.reshape(-1)
    if pad:
        xf = jnp.concatenate([xf, jnp.zeros((pad,), x.dtype)])
    return xf.reshape(rows_p, lanes)


def mse_loss(a, b):
    """Mean squared error via a tiled, lane-dense reduction on native-dtype inputs."""
    assert a.shape == b.shape
    n = int(a.size)
    lanes = 128
    rows8 = _ceil_to(-(-n // lanes), 8)           # sublane-aligned row count
    max_tm = 2048
    grid = max(1, -(-rows8 // max_tm))
    tm = _ceil_to(-(-rows8 // grid), 8)           # tile rows chosen to minimize padding
    rows_p = grid * tm
    pad = rows_p * lanes - n                      # zero pad on both -> contributes 0
    a2 = _flatten_tiles(a, pad, rows_p, lanes)
    b2 = _flatten_tiles(b, pad, rows_p, lanes)

    s = pl.pallas_call(
        _sse_kernel,
        out_shape=jax.ShapeDtypeStruct((1,), jnp.float32),
        grid=(grid,),
        in_specs=[pl.BlockSpec((tm, lanes), lambda i: (i, 0)),
                  pl.BlockSpec((tm, lanes), lambda i: (i, 0))],
        out_specs=pl.BlockSpec(memory_space=pltpu.SMEM),
        compiler_params=pltpu.CompilerParams(dimension_semantics=("arbitrary",)),
    )(a2, b2)
    return s[0] / n


def tv_loss(x_nchw, weight=1.0):
    """Total-variation loss computed directly on the NCHW tensor (no transpose/copies)."""
    N, C, H, W = x_nchw.shape
    sums = pl.pallas_call(
        _tv_kernel,
        out_shape=jax.ShapeDtypeStruct((2,), jnp.float32),
        grid=(N,),
        in_specs=[pl.BlockSpec((1, C, H, W), lambda n: (n, 0, 0, 0))],
        out_specs=pl.BlockSpec(memory_space=pltpu.SMEM),
        compiler_params=pltpu.CompilerParams(dimension_semantics=("arbitrary",)),
    )(x_nchw)
    count_h = C * (H - 1) * W
    count_w = C * H * (W - 1)
    return weight * 2.0 * (sums[0] / count_h + sums[1] / count_w) / N


# ---------------- glue (padding / maxpool / network) ----------------

def _pad_hw(x, c_pad=0):
    # TODO(synk): fuse this zero padding into the producing conv's output window.
    return jnp.pad(x, ((0, 0), (1, 1), (1, 1), (0, c_pad)))


def vgg_features(x_ms_nhwc, p):
    """VGG19 features[:9]: conv-relu, conv-relu, maxpool2, conv-relu, conv-relu."""
    N, H, W, _ = x_ms_nhwc.shape
    # conv1: Cin padded 3->8 inside the same pad op (zero weight rows keep it exact).
    y = conv3x3(_pad_hw(x_ms_nhwc.astype(jnp.bfloat16), c_pad=5),
                p['w1'], p['b1'], jnp.bfloat16)
    y = conv3x3(_pad_hw(y), p['w2'], p['b2'], jnp.bfloat16)
    C = y.shape[-1]
    # MaxPool2d(2,2) kept as cheap plain-JAX glue.
    # TODO(synk): fuse the 2x2 maxpool into the conv2 epilogue to drop the full-res
    # activation round trip.
    y = y.reshape(N, H // 2, 2, W // 2, 2, C).max(axis=(2, 4))
    y = conv3x3(_pad_hw(y), p['w3'], p['b3'], jnp.bfloat16)
    y = conv3x3(_pad_hw(y), p['w4'], p['b4'], jnp.bfloat16)  # bf16 out; MSE upcasts in-kernel
    return y


def _fold_weight(w_oihw, cin_pad, cout_pad):
    """(Cout, Cin, 3, 3) torch layout -> (9*Cin_pad, Cout_pad) bf16, k=(kh*3+kw)*Cin_pad+c."""
    cout, cin, kh, kw = w_oihw.shape
    w = jnp.transpose(w_oihw, (2, 3, 1, 0))                       # (3, 3, Cin, Cout)
    w = jnp.pad(w, ((0, 0), (0, 0), (0, cin_pad - cin), (0, cout_pad - cout)))
    return w.reshape(kh * kw * cin_pad, cout_pad).astype(jnp.bfloat16)


def _pad_bias(b, cout_pad):
    return jnp.pad(b, (0, cout_pad - b.shape[0])).reshape(1, cout_pad).astype(jnp.float32)


class GeneratorLossPallas:
    def __init__(self, key):
        self.mean = jnp.array([0.485, 0.456, 0.406], jnp.float32)
        self.std = jnp.array([0.229, 0.224, 0.225], jnp.float32)
        # MeanShift: y = x/std - mean/std (exact elementwise affine, applied before the
        # zero padding exactly like the torch 1x1 conv).
        self.ms_scale = 1.0 / self.std
        self.ms_shift = -self.mean / self.std

        # Deterministic synthetic VGG19 features[:9] weights (no pretrained checkpoint).
        ks = jax.random.split(key, 8)

        def conv_w(k, cout, cin):
            return jax.random.normal(k, (cout, cin, 3, 3), jnp.float32) * 0.05

        def conv_b(k, cout):
            return jax.random.normal(k, (cout,), jnp.float32) * 0.05

        w1, w2 = conv_w(ks[0], 64, 3), conv_w(ks[2], 64, 64)
        w3, w4 = conv_w(ks[4], 128, 64), conv_w(ks[6], 128, 128)
        b1, b2 = conv_b(ks[1], 64), conv_b(ks[3], 64)
        b3, b4 = conv_b(ks[5], 128), conv_b(ks[7], 128)

        # Cout padded to 128 (lane-dense activations/stores); padded channels stay
        # exactly 0 through bias/ReLU/maxpool and contribute 0 downstream via zero
        # weight rows.  (relu=True on every conv matches torchvision features[:9],
        # which ends in a ReLU.)
        # TODO(synk): on v5e keeping Cout=64 for conv1/conv2 would halve their MXU/HBM work.
        self.params = {
            'w1': _fold_weight(w1, cin_pad=8, cout_pad=128),   'b1': _pad_bias(b1, 128),
            'w2': _fold_weight(w2, cin_pad=128, cout_pad=128), 'b2': _pad_bias(b2, 128),
            'w3': _fold_weight(w3, cin_pad=128, cout_pad=128), 'b3': _pad_bias(b3, 128),
            'w4': _fold_weight(w4, cin_pad=128, cout_pad=128), 'b4': _pad_bias(b4, 128),
        }

    def __call__(self, out_images, target_images, mse_or_vgg):
        if mse_or_vgg == 'mse':
            # MSE is permutation-invariant: skip the VGG/TV path and any layout changes.
            return mse_loss(out_images, target_images)
        elif mse_or_vgg == 'vgg':
            # NCHW -> NHWC only for the conv path (channels-last = lane dim).
            out_nhwc = jnp.transpose(out_images, (0, 2, 3, 1))
            tgt_nhwc = jnp.transpose(target_images, (0, 2, 3, 1))

            # Single VGG pass over [out; target] concatenated along the batch axis.
            x = jnp.concatenate([out_nhwc, tgt_nhwc], axis=0)
            x_ms = x * self.ms_scale + self.ms_shift     # MeanShift, fused XLA glue
            feats = vgg_features(x_ms, self.params)
            f_out, f_tgt = jnp.split(feats, 2, axis=0)

            vgg_features_loss = mse_loss(f_out, f_tgt)   # bf16 in, f32 accumulation
            tv = tv_loss(out_images)                     # directly on NCHW, no copies
            return 0.006 * vgg_features_loss + 2e-08 * tv
        else:
            print('Please specify using mse or vgg!')
            return None


if __name__ == "__main__":
    key = jax.random.PRNGKey(0)
    k1, k2, k3 = jax.random.split(key, 3)
    # NCHW inputs, 3 channels required by MeanShift / VGG front-end.
    out_images = jax.random.uniform(k1, (2, 3, 16, 16), jnp.float32)
    target_images = jax.random.uniform(k2, (2, 3, 16, 16), jnp.float32)

    loss_fn = GeneratorLossPallas(k3)
    vgg_total = jax.jit(lambda a, b: loss_fn(a, b, 'vgg'))(out_images, target_images)
    mse_total = jax.jit(lambda a, b: loss_fn(a, b, 'mse'))(out_images, target_images)
    jax.block_until_ready((vgg_total, mse_total))
    print("KERNEL_OK")
</pallas_src>

<mosaic_0001>
module attributes {stable_mosaic.version = 11 : i64} {
  func.func @_conv3x3_kernel(%arg0: i32, %arg1: memref<1x18x18x8xbf16, #tpu.memory_space<vmem>>, %arg2: memref<72x128xbf16, #tpu.memory_space<vmem>>, %arg3: memref<1x128xf32, #tpu.memory_space<vmem>>, %arg4: memref<1x16x16x128xbf16, #tpu.memory_space<vmem>>) attributes {dimension_semantics = [#tpu.dimension_semantics<parallel>], iteration_bounds = array<i64: 4>, scalar_prefetch = 0 : i64, scratch_operands = 0 : i64, tpu.core_type = #tpu.core_type<tc>, window_params = [{transform_indices = @transform_0, window_bounds = array<i64: 1, 18, 18, 8>}, {pipeline_mode = #tpu.pipeline_mode<synchronous>, transform_indices = @transform_1, window_bounds = array<i64: 72, 128>}, {pipeline_mode = #tpu.pipeline_mode<synchronous>, transform_indices = @transform_2, window_bounds = array<i64: 1, 128>}, {transform_indices = @transform_3, window_bounds = array<i64: 1, 16, 16, 128>}]} {
    %c0 = arith.constant 0 : index
    %c0_0 = arith.constant 0 : index
    %0 = vector.load %arg3[%c0, %c0_0] : memref<1x128xf32, #tpu.memory_space<vmem>>, vector<1x128xf32>
    %c0_i32 = arith.constant 0 : i32
    %c16_i32 = arith.constant 16 : i32
    %1 = arith.muli %c0_i32, %c16_i32 : i32
    %c0_i32_1 = arith.constant 0 : i32
    %2 = arith.addi %1, %c0_i32_1 : i32
    %c0_2 = arith.constant 0 : index
    %3 = arith.index_cast %2 : i32 to index
    %c0_3 = arith.constant 0 : index
    %c0_4 = arith.constant 0 : index
    %4 = vector.load %arg1[%c0_2, %3, %c0_3, %c0_4] : memref<1x18x18x8xbf16, #tpu.memory_space<vmem>>, vector<1x16x16x8xbf16>
    %5 = vector.shape_cast %4 : vector<1x16x16x8xbf16> to vector<16x16x8xbf16>
    %6 = vector.shape_cast %5 : vector<16x16x8xbf16> to vector<256x8xbf16>
    %c0_i32_5 = arith.constant 0 : i32
    %7 = arith.addi %1, %c0_i32_5 : i32
    %c0_6 = arith.constant 0 : index
    %8 = arith.index_cast %7 : i32 to index
    %c1 = arith.constant 1 : index
    %c0_7 = arith.constant 0 : index
    %9 = vector.load %arg1[%c0_6, %8, %c1, %c0_7] : memref<1x18x18x8xbf16, #tpu.memory_space<vmem>>, vector<1x16x16x8xbf16>
    %10 = vector.shape_cast %9 : vector<1x16x16x8xbf16> to vector<16x16x8xbf16>
    %11 = vector.shape_cast %10 : vector<16x16x8xbf16> to vector<256x8xbf16>
    %c0_i32_8 = arith.constant 0 : i32
    %12 = arith.addi %1, %c0_i32_8 : i32
    %c0_9 = arith.constant 0 : index
    %13 = arith.index_cast %12 : i32 to index
    %c2 = arith.constant 2 : index
    %c0_10 = arith.constant 0 : index
    %14 = vector.load %arg1[%c0_9, %13, %c2, %c0_10] : memref<1x18x18x8xbf16, #tpu.memory_space<vmem>>, vector<1x16x16x8xbf16>
    %15 = vector.shape_cast %14 : vector<1x16x16x8xbf16> to vector<16x16x8xbf16>
    %16 = vector.shape_cast %15 : vector<16x16x8xbf16> to vector<256x8xbf16>
    %c1_i32 = arith.constant 1 : i32
    %17 = arith.addi %1, %c1_i32 : i32
    %c0_11 = arith.constant 0 : index
    %18 = arith.index_cast %17 : i32 to index
    %c0_12 = arith.constant 0 : index
    %c0_13 = arith.constant 0 : index
    %19 = vector.load %arg1[%c0_11, %18, %c0_12, %c0_13] : memref<1x18x18x8xbf16, #tpu.memory_space<vmem>>, vector<1x16x16x8xbf16>
    %20 = vector.shape_cast %19 : vector<1x16x16x8xbf16> to vector<16x16x8xbf16>
    %21 = vector.shape_cast %20 : vector<16x16x8xbf16> to vector<256x8xbf16>
    %c1_i32_14 = arith.constant 1 : i32
    %22 = arith.addi %1, %c1_i32_14 : i32
    %c0_15 = arith.constant 0 : index
    %23 = arith.index_cast %22 : i32 to index
    %c1_16 = arith.constant 1 : index
    %c0_17 = arith.constant 0 : index
    %24 = vector.load %arg1[%c0_15, %23, %c1_16, %c0_17] : memref<1x18x18x8xbf16, #tpu.memory_space<vmem>>, vector<1x16x16x8xbf16>
    %25 = vector.shape_cast %24 : vector<1x16x16x8xbf16> to vector<16x16x8xbf16>
    %26 = vector.shape_cast %25 : vector<16x16x8xbf16> to vector<256x8xbf16>
    %c1_i32_18 = arith.constant 1 : i32
    %27 = arith.addi %1, %c1_i32_18 : i32
    %c0_19 = arith.constant 0 : index
    %28 = arith.index_cast %27 : i32 to index
    %c2_20 = arith.constant 2 : index
    %c0_21 = arith.constant 0 : index
    %29 = vector.load %arg1[%c0_19, %28, %c2_20, %c0_21] : memref<1x18x18x8xbf16, #tpu.memory_space<vmem>>, vector<1x16x16x8xbf16>
    %30 = vector.shape_cast %29 : vector<1x16x16x8xbf16> to vector<16x16x8xbf16>
    %31 = vector.shape_cast %30 : vector<16x16x8xbf16> to vector<256x8xbf16>
    %c2_i32 = arith.constant 2 : i32
    %32 = arith.addi %1, %c2_i32 : i32
    %c0_22 = arith.constant 0 : index
    %33 = arith.index_cast %32 : i32 to index
    %c0_23 = arith.constant 0 : index
    %c0_24 = arith.constant 0 : index
    %34 = vector.load %arg1[%c0_22, %33, %c0_23, %c0_24] : memref<1x18x18x8xbf16, #tpu.memory_space<vmem>>, vector<1x16x16x8xbf16>
    %35 = vector.shape_cast %34 : vector<1x16x16x8xbf16> to vector<16x16x8xbf16>
    %36 = vector.shape_cast %35 : vector<16x16x8xbf16> to vector<256x8xbf16>
    %c2_i32_25 = arith.constant 2 : i32
    %37 = arith.addi %1, %c2_i32_25 : i32
    %c0_26 = arith.constant 0 : index
    %38 = arith.index_cast %37 : i32 to index
    %c1_27 = arith.constant 1 : index
    %c0_28 = arith.constant 0 : index
    %39 = vector.load %arg1[%c0_26, %38, %c1_27, %c0_28] : memref<1x18x18x8xbf16, #tpu.memory_space<vmem>>, vector<1x16x16x8xbf16>
    %40 = vector.shape_cast %39 : vector<1x16x16x8xbf16> to vector<16x16x8xbf16>
    %41 = vector.shape_cast %40 : vector<16x16x8xbf16> to vector<256x8xbf16>
    %c2_i32_29 = arith.constant 2 : i32
    %42 = arith.addi %1, %c2_i32_29 : i32
    %c0_30 = arith.constant 0 : index
    %43 = arith.index_cast %42 : i32 to index
    %c2_31 = arith.constant 2 : index
    %c0_32 = arith.constant 0 : index
    %44 = vector.load %arg1[%c0_30, %43, %c2_31, %c0_32] : memref<1x18x18x8xbf16, #tpu.memory_space<vmem>>, vector<1x16x16x8xbf16>
    %45 = vector.shape_cast %44 : vector<1x16x16x8xbf16> to vector<16x16x8xbf16>
    %46 = vector.shape_cast %45 : vector<16x16x8xbf16> to vector<256x8xbf16>
    %47 = tpu.concatenate %6, %11, %16, %21, %26, %31, %36, %41, %46 in 1 : vector<256x8xbf16>, vector<256x8xbf16>, vector<256x8xbf16>, vector<256x8xbf16>, vector<256x8xbf16>, vector<256x8xbf16>, vector<256x8xbf16>, vector<256x8xbf16>, vector<256x8xbf16> -> vector<256x72xbf16>
    %c0_33 = arith.constant 0 : index
    %c0_34 = arith.constant 0 : index
    %48 = vector.load %arg2[%c0_33, %c0_34] : memref<72x128xbf16, #tpu.memory_space<vmem>>, vector<72x128xbf16>
    %cst = arith.constant dense<0.000000e+00> : vector<256x128xf32>
    %49 = tpu.matmul %47, %48, %cst {dimension_numbers = #tpu.dot_dimension_numbers<[1], [0], [0], [1], [0, 0, 1, 1], [], []>} : vector<256x72xbf16>, vector<72x128xbf16>, vector<256x128xf32> -> vector<256x128xf32>
    %50 = vector.broadcast %0 : vector<1x128xf32> to vector<256x128xf32>
    %51 = arith.addf %49, %50 : vector<256x128xf32>
    %cst_35 = arith.constant 0.000000e+00 : f32
    %52 = vector.broadcast %cst_35 : f32 to vector<256x128xf32>
    %53 = arith.maximumf %51, %52 : vector<256x128xf32>
    %54 = vector.shape_cast %53 : vector<256x128xf32> to vector<16x16x128xf32>
    %55 = arith.truncf %54 : vector<16x16x128xf32> to vector<16x16x128xbf16>
    %c0_36 = arith.constant 0 : index
    %56 = arith.index_cast %1 : i32 to index
    %c0_37 = arith.constant 0 : index
    %c0_38 = arith.constant 0 : index
    %57 = vector.load %arg4[%c0_36, %56, %c0_37, %c0_38] : memref<1x16x16x128xbf16, #tpu.memory_space<vmem>>, vector<1x16x16x128xbf16>
    %58 = vector.shape_cast %57 : vector<1x16x16x128xbf16> to vector<16x16x128xbf16>
    %59 = vector.shape_cast %55 : vector<16x16x128xbf16> to vector<1x16x16x128xbf16>
    tpu.vector_store %arg4[%c0_36, %56, %c0_37, %c0_38], %59 {strides = array<i32>} : memref<1x16x16x128xbf16, #tpu.memory_space<vmem>>, vector<1x16x16x128xbf16>,
    %c1_i32_39 = arith.constant 1 : i32
    return
  }
  func.func @transform_0(%arg0: i32) -> (i32, i32, i32, i32) {
    %c0_i32 = arith.constant 0 : i32
    %c0_i32_0 = arith.constant 0 : i32
    %c0_i32_1 = arith.constant 0 : i32
    %c0_i32_2 = arith.constant 0 : i32
    return %arg0, %c0_i32, %c0_i32_0, %c0_i32_1 : i32, i32, i32, i32
  }
  func.func @transform_1(%arg0: i32) -> (i32, i32) {
    %c0_i32 = arith.constant 0 : i32
    %c0_i32_0 = arith.constant 0 : i32
    %c0_i32_1 = arith.constant 0 : i32
    return %c0_i32, %c0_i32_0 : i32, i32
  }
  func.func @transform_2(%arg0: i32) -> (i32, i32) {
    %c0_i32 = arith.constant 0 : i32
    %c0_i32_0 = arith.constant 0 : i32
    %c0_i32_1 = arith.constant 0 : i32
    return %c0_i32, %c0_i32_0 : i32, i32
  }
  func.func @transform_3(%arg0: i32) -> (i32, i32, i32, i32) {
    %c0_i32 = arith.constant 0 : i32
    %c0_i32_0 = arith.constant 0 : i32
    %c0_i32_1 = arith.constant 0 : i32
    %c0_i32_2 = arith.constant 0 : i32
    return %arg0, %c0_i32, %c0_i32_0, %c0_i32_1 : i32, i32, i32, i32
  }
}

module attributes {stable_mosaic.version = 11 : i64} {
  func.func @_conv3x3_kernel(%arg0: i32, %arg1: memref<1x18x18x128xbf16, #tpu.memory_space<vmem>>, %arg2: memref<1152x128xbf16, #tpu.memory_space<vmem>>, %arg3: memref<1x128xf32, #tpu.memory_space<vmem>>, %arg4: memref<1x16x16x128xbf16, #tpu.memory_space<vmem>>) attributes {dimension_semantics = [#tpu.dimension_semantics<parallel>], iteration_bounds = array<i64: 4>, scalar_prefetch = 0 : i64, scratch_operands = 0 : i64, tpu.core_type = #tpu.core_type<tc>, window_params = [{transform_indices = @transform_0, window_bounds = array<i64: 1, 18, 18, 128>}, {pipeline_mode = #tpu.pipeline_mode<synchronous>, transform_indices = @transform_1, window_bounds = array<i64: 1152, 128>}, {pipeline_mode = #tpu.pipeline_mode<synchronous>, transform_indices = @transform_2, window_bounds = array<i64: 1, 128>}, {transform_indices = @transform_3, window_bounds = array<i64: 1, 16, 16, 128>}]} {
    %c0 = arith.constant 0 : index
    %c0_0 = arith.constant 0 : index
    %0 = vector.load %arg3[%c0, %c0_0] : memref<1x128xf32, #tpu.memory_space<vmem>>, vector<1x128xf32>
    %c0_i32 = arith.constant 0 : i32
    %c16_i32 = arith.constant 16 : i32
    %1 = arith.muli %c0_i32, %c16_i32 : i32
    %c0_i32_1 = arith.constant 0 : i32
    %2 = arith.addi %1, %c0_i32_1 : i32
    %c0_2 = arith.constant 0 : index
    %3 = arith.index_cast %2 : i32 to index
    %c0_3 = arith.constant 0 : index
    %c0_4 = arith.constant 0 : index
    %4 = vector.load %arg1[%c0_2, %3, %c0_3, %c0_4] : memref<1x18x18x128xbf16, #tpu.memory_space<vmem>>, vector<1x16x16x128xbf16>
    %5 = vector.shape_cast %4 : vector<1x16x16x128xbf16> to vector<16x16x128xbf16>
    %6 = vector.shape_cast %5 : vector<16x16x128xbf16> to vector<256x128xbf16>
    %c0_i32_5 = arith.constant 0 : i32
    %7 = arith.addi %1, %c0_i32_5 : i32
    %c0_6 = arith.constant 0 : index
    %8 = arith.index_cast %7 : i32 to index
    %c1 = arith.constant 1 : index
    %c0_7 = arith.constant 0 : index
    %9 = vector.load %arg1[%c0_6, %8, %c1, %c0_7] : memref<1x18x18x128xbf16, #tpu.memory_space<vmem>>, vector<1x16x16x128xbf16>
    %10 = vector.shape_cast %9 : vector<1x16x16x128xbf16> to vector<16x16x128xbf16>
    %11 = vector.shape_cast %10 : vector<16x16x128xbf16> to vector<256x128xbf16>
    %c0_i32_8 = arith.constant 0 : i32
    %12 = arith.addi %1, %c0_i32_8 : i32
    %c0_9 = arith.constant 0 : index
    %13 = arith.index_cast %12 : i32 to index
    %c2 = arith.constant 2 : index
    %c0_10 = arith.constant 0 : index
    %14 = vector.load %arg1[%c0_9, %13, %c2, %c0_10] : memref<1x18x18x128xbf16, #tpu.memory_space<vmem>>, vector<1x16x16x128xbf16>
    %15 = vector.shape_cast %14 : vector<1x16x16x128xbf16> to vector<16x16x128xbf16>
    %16 = vector.shape_cast %15 : vector<16x16x128xbf16> to vector<256x128xbf16>
    %c1_i32 = arith.constant 1 : i32
    %17 = arith.addi %1, %c1_i32 : i32
    %c0_11 = arith.constant 0 : index
    %18 = arith.index_cast %17 : i32 to index
    %c0_12 = arith.constant 0 : index
    %c0_13 = arith.constant 0 : index
    %19 = vector.load %arg1[%c0_11, %18, %c0_12, %c0_13] : memref<1x18x18x128xbf16, #tpu.memory_space<vmem>>, vector<1x16x16x128xbf16>
    %20 = vector.shape_cast %19 : vector<1x16x16x128xbf16> to vector<16x16x128xbf16>
    %21 = vector.shape_cast %20 : vector<16x16x128xbf16> to vector<256x128xbf16>
    %c1_i32_14 = arith.constant 1 : i32
    %22 = arith.addi %1, %c1_i32_14 : i32
    %c0_15 = arith.constant 0 : index
    %23 = arith.index_cast %22 : i32 to index
    %c1_16 = arith.constant 1 : index
    %c0_17 = arith.constant 0 : index
    %24 = vector.load %arg1[%c0_15, %23, %c1_16, %c0_17] : memref<1x18x18x128xbf16, #tpu.memory_space<vmem>>, vector<1x16x16x128xbf16>
    %25 = vector.shape_cast %24 : vector<1x16x16x128xbf16> to vector<16x16x128xbf16>
    %26 = vector.shape_cast %25 : vector<16x16x128xbf16> to vector<256x128xbf16>
    %c1_i32_18 = arith.constant 1 : i32
    %27 = arith.addi %1, %c1_i32_18 : i32
    %c0_19 = arith.constant 0 : index
    %28 = arith.index_cast %27 : i32 to index
    %c2_20 = arith.constant 2 : index
    %c0_21 = arith.constant 0 : index
    %29 = vector.load %arg1[%c0_19, %28, %c2_20, %c0_21] : memref<1x18x18x128xbf16, #tpu.memory_space<vmem>>, vector<1x16x16x128xbf16>
    %30 = vector.shape_cast %29 : vector<1x16x16x128xbf16> to vector<16x16x128xbf16>
    %31 = vector.shape_cast %30 : vector<16x16x128xbf16> to vector<256x128xbf16>
    %c2_i32 = arith.constant 2 : i32
    %32 = arith.addi %1, %c2_i32 : i32
    %c0_22 = arith.constant 0 : index
    %33 = arith.index_cast %32 : i32 to index
    %c0_23 = arith.constant 0 : index
    %c0_24 = arith.constant 0 : index
    %34 = vector.load %arg1[%c0_22, %33, %c0_23, %c0_24] : memref<1x18x18x128xbf16, #tpu.memory_space<vmem>>, vector<1x16x16x128xbf16>
    %35 = vector.shape_cast %34 : vector<1x16x16x128xbf16> to vector<16x16x128xbf16>
    %36 = vector.shape_cast %35 : vector<16x16x128xbf16> to vector<256x128xbf16>
    %c2_i32_25 = arith.constant 2 : i32
    %37 = arith.addi %1, %c2_i32_25 : i32
    %c0_26 = arith.constant 0 : index
    %38 = arith.index_cast %37 : i32 to index
    %c1_27 = arith.constant 1 : index
    %c0_28 = arith.constant 0 : index
    %39 = vector.load %arg1[%c0_26, %38, %c1_27, %c0_28] : memref<1x18x18x128xbf16, #tpu.memory_space<vmem>>, vector<1x16x16x128xbf16>
    %40 = vector.shape_cast %39 : vector<1x16x16x128xbf16> to vector<16x16x128xbf16>
    %41 = vector.shape_cast %40 : vector<16x16x128xbf16> to vector<256x128xbf16>
    %c2_i32_29 = arith.constant 2 : i32
    %42 = arith.addi %1, %c2_i32_29 : i32
    %c0_30 = arith.constant 0 : index
    %43 = arith.index_cast %42 : i32 to index
    %c2_31 = arith.constant 2 : index
    %c0_32 = arith.constant 0 : index
    %44 = vector.load %arg1[%c0_30, %43, %c2_31, %c0_32] : memref<1x18x18x128xbf16, #tpu.memory_space<vmem>>, vector<1x16x16x128xbf16>
    %45 = vector.shape_cast %44 : vector<1x16x16x128xbf16> to vector<16x16x128xbf16>
    %46 = vector.shape_cast %45 : vector<16x16x128xbf16> to vector<256x128xbf16>
    %47 = tpu.concatenate %6, %11, %16, %21, %26, %31, %36, %41, %46 in 1 : vector<256x128xbf16>, vector<256x128xbf16>, vector<256x128xbf16>, vector<256x128xbf16>, vector<256x128xbf16>, vector<256x128xbf16>, vector<256x128xbf16>, vector<256x128xbf16>, vector<256x128xbf16> -> vector<256x1152xbf16>
    %c0_33 = arith.constant 0 : index
    %c0_34 = arith.constant 0 : index
    %48 = vector.load %arg2[%c0_33, %c0_34] : memref<1152x128xbf16, #tpu.memory_space<vmem>>, vector<1152x128xbf16>
    %cst = arith.constant dense<0.000000e+00> : vector<256x128xf32>
    %49 = tpu.matmul %47, %48, %cst {dimension_numbers = #tpu.dot_dimension_numbers<[1], [0], [0], [1], [0, 0, 1, 1], [], []>} : vector<256x1152xbf16>, vector<1152x128xbf16>, vector<256x128xf32> -> vector<256x128xf32>
    %50 = vector.broadcast %0 : vector<1x128xf32> to vector<256x128xf32>
    %51 = arith.addf %49, %50 : vector<256x128xf32>
    %cst_35 = arith.constant 0.000000e+00 : f32
    %52 = vector.broadcast %cst_35 : f32 to vector<256x128xf32>
    %53 = arith.maximumf %51, %52 : vector<256x128xf32>
    %54 = vector.shape_cast %53 : vector<256x128xf32> to vector<16x16x128xf32>
    %55 = arith.truncf %54 : vector<16x16x128xf32> to vector<16x16x128xbf16>
    %c0_36 = arith.constant 0 : index
    %56 = arith.index_cast %1 : i32 to index
    %c0_37 = arith.constant 0 : index
    %c0_38 = arith.constant 0 : index
    %57 = vector.load %arg4[%c0_36, %56, %c0_37, %c0_38] : memref<1x16x16x128xbf16, #tpu.memory_space<vmem>>, vector<1x16x16x128xbf16>
    %58 = vector.shape_cast %57 : vector<1x16x16x128xbf16> to vector<16x16x128xbf16>
    %59 = vector.shape_cast %55 : vector<16x16x128xbf16> to vector<1x16x16x128xbf16>
    tpu.vector_store %arg4[%c0_36, %56, %c0_37, %c0_38], %59 {strides = array<i32>} : memref<1x16x16x128xbf16, #tpu.memory_space<vmem>>, vector<1x16x16x128xbf16>,
    %c1_i32_39 = arith.constant 1 : i32
    return
  }
  func.func @transform_0(%arg0: i32) -> (i32, i32, i32, i32) {
    %c0_i32 = arith.constant 0 : i32
    %c0_i32_0 = arith.constant 0 : i32
    %c0_i32_1 = arith.constant 0 : i32
    %c0_i32_2 = arith.constant 0 : i32
    return %arg0, %c0_i32, %c0_i32_0, %c0_i32_1 : i32, i32, i32, i32
  }
  func.func @transform_1(%arg0: i32) -> (i32, i32) {
    %c0_i32 = arith.constant 0 : i32
    %c0_i32_0 = arith.constant 0 : i32
    %c0_i32_1 = arith.constant 0 : i32
    return %c0_i32, %c0_i32_0 : i32, i32
  }
  func.func @transform_2(%arg0: i32) -> (i32, i32) {
    %c0_i32 = arith.constant 0 : i32
    %c0_i32_0 = arith.constant 0 : i32
    %c0_i32_1 = arith.constant 0 : i32
    return %c0_i32, %c0_i32_0 : i32, i32
  }
  func.func @transform_3(%arg0: i32) -> (i32, i32, i32, i32) {
    %c0_i32 = arith.constant 0 : i32
    %c0_i32_0 = arith.constant 0 : i32
    %c0_i32_1 = arith.constant 0 : i32
    %c0_i32_2 = arith.constant 0 : i32
    return %arg0, %c0_i32, %c0_i32_0, %c0_i32_1 : i32, i32, i32, i32
  }
}

module attributes {stable_mosaic.version = 11 : i64} {
  func.func @_conv3x3_kernel(%arg0: i32, %arg1: memref<1x10x10x128xbf16, #tpu.memory_space<vmem>>, %arg2: memref<1152x128xbf16, #tpu.memory_space<vmem>>, %arg3: memref<1x128xf32, #tpu.memory_space<vmem>>, %arg4: memref<1x8x8x128xbf16, #tpu.memory_space<vmem>>) attributes {dimension_semantics = [#tpu.dimension_semantics<parallel>], iteration_bounds = array<i64: 4>, scalar_prefetch = 0 : i64, scratch_operands = 0 : i64, tpu.core_type = #tpu.core_type<tc>, window_params = [{transform_indices = @transform_0, window_bounds = array<i64: 1, 10, 10, 128>}, {pipeline_mode = #tpu.pipeline_mode<synchronous>, transform_indices = @transform_1, window_bounds = array<i64: 1152, 128>}, {pipeline_mode = #tpu.pipeline_mode<synchronous>, transform_indices = @transform_2, window_bounds = array<i64: 1, 128>}, {transform_indices = @transform_3, window_bounds = array<i64: 1, 8, 8, 128>}]} {
    %c0 = arith.constant 0 : index
    %c0_0 = arith.constant 0 : index
    %0 = vector.load %arg3[%c0, %c0_0] : memref<1x128xf32, #tpu.memory_space<vmem>>, vector<1x128xf32>
    %c0_i32 = arith.constant 0 : i32
    %c8_i32 = arith.constant 8 : i32
    %1 = arith.muli %c0_i32, %c8_i32 : i32
    %c0_i32_1 = arith.constant 0 : i32
    %2 = arith.addi %1, %c0_i32_1 : i32
    %c0_2 = arith.constant 0 : index
    %3 = arith.index_cast %2 : i32 to index
    %c0_3 = arith.constant 0 : index
    %c0_4 = arith.constant 0 : index
    %4 = vector.load %arg1[%c0_2, %3, %c0_3, %c0_4] : memref<1x10x10x128xbf16, #tpu.memory_space<vmem>>, vector<1x8x8x128xbf16>
    %5 = vector.shape_cast %4 : vector<1x8x8x128xbf16> to vector<8x8x128xbf16>
    %6 = vector.shape_cast %5 : vector<8x8x128xbf16> to vector<64x128xbf16>
    %c0_i32_5 = arith.constant 0 : i32
    %7 = arith.addi %1, %c0_i32_5 : i32
    %c0_6 = arith.constant 0 : index
    %8 = arith.index_cast %7 : i32 to index
    %c1 = arith.constant 1 : index
    %c0_7 = arith.constant 0 : index
    %9 = vector.load %arg1[%c0_6, %8, %c1, %c0_7] : memref<1x10x10x128xbf16, #tpu.memory_space<vmem>>, vector<1x8x8x128xbf16>
    %10 = vector.shape_cast %9 : vector<1x8x8x128xbf16> to vector<8x8x128xbf16>
    %11 = vector.shape_cast %10 : vector<8x8x128xbf16> to vector<64x128xbf16>
    %c0_i32_8 = arith.constant 0 : i32
    %12 = arith.addi %1, %c0_i32_8 : i32
    %c0_9 = arith.constant 0 : index
    %13 = arith.index_cast %12 : i32 to index
    %c2 = arith.constant 2 : index
    %c0_10 = arith.constant 0 : index
    %14 = vector.load %arg1[%c0_9, %13, %c2, %c0_10] : memref<1x10x10x128xbf16, #tpu.memory_space<vmem>>, vector<1x8x8x128xbf16>
    %15 = vector.shape_cast %14 : vector<1x8x8x128xbf16> to vector<8x8x128xbf16>
    %16 = vector.shape_cast %15 : vector<8x8x128xbf16> to vector<64x128xbf16>
    %c1_i32 = arith.constant 1 : i32
    %17 = arith.addi %1, %c1_i32 : i32
    %c0_11 = arith.constant 0 : index
    %18 = arith.index_cast %17 : i32 to index
    %c0_12 = arith.constant 0 : index
    %c0_13 = arith.constant 0 : index
    %19 = vector.load %arg1[%c0_11, %18, %c0_12, %c0_13] : memref<1x10x10x128xbf16, #tpu.memory_space<vmem>>, vector<1x8x8x128xbf16>
    %20 = vector.shape_cast %19 : vector<1x8x8x128xbf16> to vector<8x8x128xbf16>
    %21 = vector.shape_cast %20 : vector<8x8x128xbf16> to vector<64x128xbf16>
    %c1_i32_14 = arith.constant 1 : i32
    %22 = arith.addi %1, %c1_i32_14 : i32
    %c0_15 = arith.constant 0 : index
    %23 = arith.index_cast %22 : i32 to index
    %c1_16 = arith.constant 1 : index
    %c0_17 = arith.constant 0 : index
    %24 = vector.load %arg1[%c0_15, %23, %c1_16, %c0_17] : memref<1x10x10x128xbf16, #tpu.memory_space<vmem>>, vector<1x8x8x128xbf16>
    %25 = vector.shape_cast %24 : vector<1x8x8x128xbf16> to vector<8x8x128xbf16>
    %26 = vector.shape_cast %25 : vector<8x8x128xbf16> to vector<64x128xbf16>
    %c1_i32_18 = arith.constant 1 : i32
    %27 = arith.addi %1, %c1_i32_18 : i32
    %c0_19 = arith.constant 0 : index
    %28 = arith.index_cast %27 : i32 to index
    %c2_20 = arith.constant 2 : index
    %c0_21 = arith.constant 0 : index
    %29 = vector.load %arg1[%c0_19, %28, %c2_20, %c0_21] : memref<1x10x10x128xbf16, #tpu.memory_space<vmem>>, vector<1x8x8x128xbf16>
    %30 = vector.shape_cast %29 : vector<1x8x8x128xbf16> to vector<8x8x128xbf16>
    %31 = vector.shape_cast %30 : vector<8x8x128xbf16> to vector<64x128xbf16>
    %c2_i32 = arith.constant 2 : i32
    %32 = arith.addi %1, %c2_i32 : i32
    %c0_22 = arith.constant 0 : index
    %33 = arith.index_cast %32 : i32 to index
    %c0_23 = arith.constant 0 : index
    %c0_24 = arith.constant 0 : index
    %34 = vector.load %arg1[%c0_22, %33, %c0_23, %c0_24] : memref<1x10x10x128xbf16, #tpu.memory_space<vmem>>, vector<1x8x8x128xbf16>
    %35 = vector.shape_cast %34 : vector<1x8x8x128xbf16> to vector<8x8x128xbf16>
    %36 = vector.shape_cast %35 : vector<8x8x128xbf16> to vector<64x128xbf16>
    %c2_i32_25 = arith.constant 2 : i32
    %37 = arith.addi %1, %c2_i32_25 : i32
    %c0_26 = arith.constant 0 : index
    %38 = arith.index_cast %37 : i32 to index
    %c1_27 = arith.constant 1 : index
    %c0_28 = arith.constant 0 : index
    %39 = vector.load %arg1[%c0_26, %38, %c1_27, %c0_28] : memref<1x10x10x128xbf16, #tpu.memory_space<vmem>>, vector<1x8x8x128xbf16>
    %40 = vector.shape_cast %39 : vector<1x8x8x128xbf16> to vector<8x8x128xbf16>
    %41 = vector.shape_cast %40 : vector<8x8x128xbf16> to vector<64x128xbf16>
    %c2_i32_29 = arith.constant 2 : i32
    %42 = arith.addi %1, %c2_i32_29 : i32
    %c0_30 = arith.constant 0 : index
    %43 = arith.index_cast %42 : i32 to index
    %c2_31 = arith.constant 2 : index
    %c0_32 = arith.constant 0 : index
    %44 = vector.load %arg1[%c0_30, %43, %c2_31, %c0_32] : memref<1x10x10x128xbf16, #tpu.memory_space<vmem>>, vector<1x8x8x128xbf16>
    %45 = vector.shape_cast %44 : vector<1x8x8x128xbf16> to vector<8x8x128xbf16>
    %46 = vector.shape_cast %45 : vector<8x8x128xbf16> to vector<64x128xbf16>
    %47 = tpu.concatenate %6, %11, %16, %21, %26, %31, %36, %41, %46 in 1 : vector<64x128xbf16>, vector<64x128xbf16>, vector<64x128xbf16>, vector<64x128xbf16>, vector<64x128xbf16>, vector<64x128xbf16>, vector<64x128xbf16>, vector<64x128xbf16>, vector<64x128xbf16> -> vector<64x1152xbf16>
    %c0_33 = arith.constant 0 : index
    %c0_34 = arith.constant 0 : index
    %48 = vector.load %arg2[%c0_33, %c0_34] : memref<1152x128xbf16, #tpu.memory_space<vmem>>, vector<1152x128xbf16>
    %cst = arith.constant dense<0.000000e+00> : vector<64x128xf32>
    %49 = tpu.matmul %47, %48, %cst {dimension_numbers = #tpu.dot_dimension_numbers<[1], [0], [0], [1], [0, 0, 1, 1], [], []>} : vector<64x1152xbf16>, vector<1152x128xbf16>, vector<64x128xf32> -> vector<64x128xf32>
    %50 = vector.broadcast %0 : vector<1x128xf32> to vector<64x128xf32>
    %51 = arith.addf %49, %50 : vector<64x128xf32>
    %cst_35 = arith.constant 0.000000e+00 : f32
    %52 = vector.broadcast %cst_35 : f32 to vector<64x128xf32>
    %53 = arith.maximumf %51, %52 : vector<64x128xf32>
    %54 = vector.shape_cast %53 : vector<64x128xf32> to vector<8x8x128xf32>
    %55 = arith.truncf %54 : vector<8x8x128xf32> to vector<8x8x128xbf16>
    %c0_36 = arith.constant 0 : index
    %56 = arith.index_cast %1 : i32 to index
    %c0_37 = arith.constant 0 : index
    %c0_38 = arith.constant 0 : index
    %57 = vector.load %arg4[%c0_36, %56, %c0_37, %c0_38] : memref<1x8x8x128xbf16, #tpu.memory_space<vmem>>, vector<1x8x8x128xbf16>
    %58 = vector.shape_cast %57 : vector<1x8x8x128xbf16> to vector<8x8x128xbf16>
    %59 = vector.shape_cast %55 : vector<8x8x128xbf16> to vector<1x8x8x128xbf16>
    tpu.vector_store %arg4[%c0_36, %56, %c0_37, %c0_38], %59 {strides = array<i32>} : memref<1x8x8x128xbf16, #tpu.memory_space<vmem>>, vector<1x8x8x128xbf16>,
    %c1_i32_39 = arith.constant 1 : i32
    return
  }
  func.func @transform_0(%arg0: i32) -> (i32, i32, i32, i32) {
    %c0_i32 = arith.constant 0 : i32
    %c0_i32_0 = arith.constant 0 : i32
    %c0_i32_1 = arith.constant 0 : i32
    %c0_i32_2 = arith.constant 0 : i32
    return %arg0, %c0_i32, %c0_i32_0, %c0_i32_1 : i32, i32, i32, i32
  }
  func.func @transform_1(%arg0: i32) -> (i32, i32) {
    %c0_i32 = arith.constant 0 : i32
    %c0_i32_0 = arith.constant 0 : i32
    %c0_i32_1 = arith.constant 0 : i32
    return %c0_i32, %c0_i32_0 : i32, i32
  }
  func.func @transform_2(%arg0: i32) -> (i32, i32) {
    %c0_i32 = arith.constant 0 : i32
    %c0_i32_0 = arith.constant 0 : i32
    %c0_i32_1 = arith.constant 0 : i32
    return %c0_i32, %c0_i32_0 : i32, i32
  }
  func.func @transform_3(%arg0: i32) -> (i32, i32, i32, i32) {
    %c0_i32 = arith.constant 0 : i32
    %c0_i32_0 = arith.constant 0 : i32
    %c0_i32_1 = arith.constant 0 : i32
    %c0_i32_2 = arith.constant 0 : i32
    return %arg0, %c0_i32, %c0_i32_0, %c0_i32_1 : i32, i32, i32, i32
  }
}

module attributes {stable_mosaic.version = 11 : i64} {
  func.func @_sse_kernel(%arg0: i32, %arg1: memref<128x128xbf16, #tpu.memory_space<vmem>>, %arg2: memref<128x128xbf16, #tpu.memory_space<vmem>>, %arg3: memref<1xf32, #tpu.memory_space<smem>>) attributes {dimension_semantics = [#tpu.dimension_semantics<arbitrary>], iteration_bounds = array<i64: 1>, scalar_prefetch = 0 : i64, scratch_operands = 0 : i64, tpu.core_type = #tpu.core_type<tc>, window_params = [{transform_indices = @transform_0, window_bounds = array<i64: 128, 128>}, {transform_indices = @transform_1, window_bounds = array<i64: 128, 128>}, {transform_indices = @transform_2, window_bounds = array<i64: 1>}]} {
    %c0_i32 = arith.constant 0 : i32
    %0 = arith.cmpi eq, %arg0, %c0_i32 : i32
    %1 = arith.extui %0 : i1 to i32
    %c0_i32_0 = arith.constant 0 : i32
    %2 = arith.cmpi ne, %1, %c0_i32_0 : i32
    scf.if %2 {
      %cst_6 = arith.constant 0.000000e+00 : f32
      %c0_7 = arith.constant 0 : index
      %16 = memref.load %arg3[%c0_7] : memref<1xf32, #tpu.memory_space<smem>>
      memref.store %cst_6, %arg3[%c0_7] : memref<1xf32, #tpu.memory_space<smem>>
    } else {
    }
    %c0 = arith.constant 0 : index
    %c0_1 = arith.constant 0 : index
    %3 = vector.load %arg1[%c0, %c0_1] : memref<128x128xbf16, #tpu.memory_space<vmem>>, vector<128x128xbf16>
    %4 = arith.extf %3 : vector<128x128xbf16> to vector<128x128xf32>
    %c0_2 = arith.constant 0 : index
    %c0_3 = arith.constant 0 : index
    %5 = vector.load %arg2[%c0_2, %c0_3] : memref<128x128xbf16, #tpu.memory_space<vmem>>, vector<128x128xbf16>
    %6 = arith.extf %5 : vector<128x128xbf16> to vector<128x128xf32>
    %7 = arith.subf %4, %6 : vector<128x128xf32>
    %c0_4 = arith.constant 0 : index
    %8 = memref.load %arg3[%c0_4] : memref<1xf32, #tpu.memory_space<smem>>
    %9 = arith.mulf %7, %7 : vector<128x128xf32>
    %10 = vector.shape_cast %9 : vector<128x128xf32> to vector<1x128x128xf32>
    %cst = arith.constant dense<0.000000e+00> : vector<1xf32>
    %11 = vector.multi_reduction <add>, %10, %cst [1, 2] : vector<1x128x128xf32> to vector<1xf32>
    %12 = vector.shape_cast %11 : vector<1xf32> to vector<1x1x1xf32>
    %13 = vector.extract %12[0, 0, 0] : f32 from vector<1x1x1xf32>
    %14 = arith.addf %8, %13 : f32
    %c0_5 = arith.constant 0 : index
    %15 = memref.load %arg3[%c0_5] : memref<1xf32, #tpu.memory_space<smem>>
    memref.store %14, %arg3[%c0_5] : memref<1xf32, #tpu.memory_space<smem>>
    return
  }
  func.func @transform_0(%arg0: i32) -> (i32, i32) {
    %c0_i32 = arith.constant 0 : i32
    %c0_i32_0 = arith.constant 0 : i32
    return %arg0, %c0_i32 : i32, i32
  }
  func.func @transform_1(%arg0: i32) -> (i32, i32) {
    %c0_i32 = arith.constant 0 : i32
    %c0_i32_0 = arith.constant 0 : i32
    return %arg0, %c0_i32 : i32, i32
  }
  func.func @transform_2(%arg0: i32) -> i32 {
    %c0_i32 = arith.constant 0 : i32
    %c0_i32_0 = arith.constant 0 : i32
    return %c0_i32 : i32
  }
}

module attributes {stable_mosaic.version = 11 : i64} {
  func.func @_tv_kernel(%arg0: i32, %arg1: memref<1x3x16x16xf32, #tpu.memory_space<vmem>>, %arg2: memref<2xf32, #tpu.memory_space<smem>>) attributes {dimension_semantics = [#tpu.dimension_semantics<arbitrary>], iteration_bounds = array<i64: 2>, scalar_prefetch = 0 : i64, scratch_operands = 0 : i64, tpu.core_type = #tpu.core_type<tc>, window_params = [{transform_indices = @transform_0, window_bounds = array<i64: 1, 3, 16, 16>}, {transform_indices = @transform_1, window_bounds = array<i64: 2>}]} {
    %c0_i32 = arith.constant 0 : i32
    %0 = arith.cmpi eq, %arg0, %c0_i32 : i32
    %1 = arith.extui %0 : i1 to i32
    %c0_i32_0 = arith.constant 0 : i32
    %2 = arith.cmpi ne, %1, %c0_i32_0 : i32
    scf.if %2 {
      %cst_8 = arith.constant 0.000000e+00 : f32
      %c0_9 = arith.constant 0 : index
      %27 = memref.load %arg2[%c0_9] : memref<2xf32, #tpu.memory_space<smem>>
      memref.store %cst_8, %arg2[%c0_9] : memref<2xf32, #tpu.memory_space<smem>>
      %cst_10 = arith.constant 0.000000e+00 : f32
      %c1_11 = arith.constant 1 : index
      %28 = memref.load %arg2[%c1_11] : memref<2xf32, #tpu.memory_space<smem>>
      memref.store %cst_10, %arg2[%c1_11] : memref<2xf32, #tpu.memory_space<smem>>
    } else {
    }
    %c0 = arith.constant 0 : index
    %c0_1 = arith.constant 0 : index
    %c0_2 = arith.constant 0 : index
    %c0_3 = arith.constant 0 : index
    %3 = vector.load %arg1[%c0, %c0_1, %c0_2, %c0_3] : memref<1x3x16x16xf32, #tpu.memory_space<vmem>>, vector<1x3x16x16xf32>
    %4 = vector.shape_cast %3 : vector<1x3x16x16xf32> to vector<3x16x16xf32>
    %5 = vector.extract_strided_slice %4 {offsets = [0, 1, 0], sizes = [3, 15, 16], strides = [1, 1, 1]} : vector<3x16x16xf32> to vector<3x15x16xf32>
    %6 = vector.extract_strided_slice %4 {offsets = [0, 0, 0], sizes = [3, 15, 16], strides = [1, 1, 1]} : vector<3x16x16xf32> to vector<3x15x16xf32>
    %7 = arith.subf %5, %6 : vector<3x15x16xf32>
    %8 = vector.extract_strided_slice %4 {offsets = [0, 0, 1], sizes = [3, 16, 15], strides = [1, 1, 1]} : vector<3x16x16xf32> to vector<3x16x15xf32>
    %9 = vector.extract_strided_slice %4 {offsets = [0, 0, 0], sizes = [3, 16, 15], strides = [1, 1, 1]} : vector<3x16x16xf32> to vector<3x16x15xf32>
    %10 = arith.subf %8, %9 : vector<3x16x15xf32>
    %c0_4 = arith.constant 0 : index
    %11 = memref.load %arg2[%c0_4] : memref<2xf32, #tpu.memory_space<smem>>
    %12 = arith.mulf %7, %7 : vector<3x15x16xf32>
    %13 = vector.shape_cast %12 : vector<3x15x16xf32> to vector<1x3x15x16xf32>
    %cst = arith.constant dense<0.000000e+00> : vector<1xf32>
    %14 = vector.multi_reduction <add>, %13, %cst [1, 2, 3] : vector<1x3x15x16xf32> to vector<1xf32>
    %15 = vector.shape_cast %14 : vector<1xf32> to vector<1x1x1x1xf32>
    %16 = vector.extract %15[0, 0, 0, 0] : f32 from vector<1x1x1x1xf32>
    %17 = arith.addf %11, %16 : f32
    %c0_5 = arith.constant 0 : index
    %18 = memref.load %arg2[%c0_5] : memref<2xf32, #tpu.memory_space<smem>>
    memref.store %17, %arg2[%c0_5] : memref<2xf32, #tpu.memory_space<smem>>
    %c1 = arith.constant 1 : index
    %19 = memref.load %arg2[%c1] : memref<2xf32, #tpu.memory_space<smem>>
    %20 = arith.mulf %10, %10 : vector<3x16x15xf32>
    %21 = vector.shape_cast %20 : vector<3x16x15xf32> to vector<1x3x16x15xf32>
    %cst_6 = arith.constant dense<0.000000e+00> : vector<1xf32>
    %22 = vector.multi_reduction <add>, %21, %cst_6 [1, 2, 3] : vector<1x3x16x15xf32> to vector<1xf32>
    %23 = vector.shape_cast %22 : vector<1xf32> to vector<1x1x1x1xf32>
    %24 = vector.extract %23[0, 0, 0, 0] : f32 from vector<1x1x1x1xf32>
    %25 = arith.addf %19, %24 : f32
    %c1_7 = arith.constant 1 : index
    %26 = memref.load %arg2[%c1_7] : memref<2xf32, #tpu.memory_space<smem>>
    memref.store %25, %arg2[%c1_7] : memref<2xf32, #tpu.memory_space<smem>>
    return
  }
  func.func @transform_0(%arg0: i32) -> (i32, i32, i32, i32) {
    %c0_i32 = arith.constant 0 : i32
    %c0_i32_0 = arith.constant 0 : i32
    %c0_i32_1 = arith.constant 0 : i32
    %c0_i32_2 = arith.constant 0 : i32
    return %arg0, %c0_i32, %c0_i32_0, %c0_i32_1 : i32, i32, i32, i32
  }
  func.func @transform_1(%arg0: i32) -> i32 {
    %c0_i32 = arith.constant 0 : i32
    %c0_i32_0 = arith.constant 0 : i32
    return %c0_i32 : i32
  }
}

</mosaic_0001>

<bundles_post_ra>
// kernel: _lambda_.8
= control target key start
LH: loop header
LB: loop body
LE: loop exit
PB: predicated region body
PF: predicated region fallthrough
CT: control target
= control target key end

     0   :  { %s2399_s12 = smov 0   ;;  %s3100_s0 = inlined_call_operand.vmem [shape: bf16[4,10,10,128], index: 0, kind: input, shape index: {}]   ;;  %s3101_s1 = inlined_call_operand.vmem [shape: bf16[1152,128], index: 1, kind: input, shape index: {}]   ;;  %s3102_s2 = inlined_call_operand.vmem [shape: f32[1,128], index: 2, kind: input, shape index: {}]   ;;  %s3103_s3 = inlined_call_operand.vmem [shape: bf16[4,8,8,128], index: 3, kind: output, shape index: {}]  }
   0x1 LB: > { %s1819_s13 = sadd.s32 4294967295, %s2377_s12   ;;  %p1823_p0 = scmp.ge.s32.totalorder %s2377_s12, 1  ;;  %s2377_s12 = sphi %s2399_s12, %s13_s12  }
   0x2   : > { %p137_p1 = scmp.lt.s32.totalorder %s2377_s12, 5 }
   0x4   : > { %p138_p2 = pnand %p1823_p0, %p137_p1 }
   0x5   : > { %p161_p3 = scmp.lt.s32.totalorder (!%p138_p2), %s1819_s13, 3 }
   0x6   : > { %141 = sbr.rel (%p138_p2) target bundleno = 334 (0x14e), region = 32 }
   0xb   : > { %v2257_v0 = vld [vmem:[%s3101_s1 + $0x38] sm:$0xff]  ;;  %v2256_v2 = vld [vmem:[%s3101_s1 + $0x30] sm:$0xff]  ;;  %v2255_v6 = vld [vmem:[%s3101_s1 + $0x28] sm:$0xff]  ;;  %s3109_s13 = smov (!%p161_p3, %s1819_s13), 3  ;;  %vm327_vm0 = vcmask 1042432   ;;  %vm328_vm1 = vcmask 1046532  }
   0xc   : > { %v2273_v1 = vld [vmem:[%s3101_s1 + $0xb8] sm:$0xff]  ;;  %2345 = vmatpush.bf16.msra.mxu1 %v2257_v0  ;;  %1479 = vmatpush.bf16.msra.mxu0 %v2257_v0  ;;  %v2272_v3 = vld [vmem:[%s3101_s1 + $0xb0] sm:$0xff]  ;;  %v2271_v7 = vld [vmem:[%s3101_s1 + $0xa8] sm:$0xff]  ;;  %s2361_s7 = smul.u32 80, %s3109_s13  ;;  %vm188_vm3 = vsmask.f32 3328 }
   0xd   : > { %1537 = vmatpush.bf16.msra.mxu2 %v2273_v1  ;;  %v2281_v4 = vld [vmem:[%s3101_s1 + $0xf8] sm:$0xff]  ;;  %v2280_v5 = vld [vmem:[%s3101_s1 + $0xf0] sm:$0xff]  ;;  %v2279_v8 = vld [vmem:[%s3101_s1 + $0xe8] sm:$0xff]  ;;  %vm189_vm4 = vsmask.f32 7440  ;;  %s2237_s17 = sshll.u32 %s3109_s13, 5 }
   0xe   : > { %1566 = vmatpush.bf16.msra.mxu3 %v2281_v4  ;;  %v2254_v9 = vld [vmem:[%s3101_s1 + $0x20] sm:$0xff]  ;;  %v2253_v12 = vld [vmem:[%s3101_s1 + $0x18] sm:$0xff]  ;;  %s2452_s18 = scalar_lea.vmem %s3100_s0, %s2361_s7  ;;  %v2252_v19 = vld [vmem:[%s3101_s1 + $0x10] sm:$0xff]  ;;  %s3081_s21 = scalar_lea.vmem %s3103_s3, %s2237_s17 }
   0xf   : > { %v2270_v10 = vld [vmem:[%s3101_s1 + $0xa0] sm:$0xff]  ;;  %v2269_v13 = vld [vmem:[%s3101_s1 + $0x98] sm:$0xff]  ;;  %v2461_v15 = vld [vmem:[%s2452_s18 + $0xc] sm:$0x1] }
  0x10   : > { %2346 = vmatpush.bf16.msra.mxu1 %v2256_v2  ;;  %1480 = vmatpush.bf16.msra.mxu0 %v2256_v2  ;;  %v2278_v11 = vld [vmem:[%s3101_s1 + $0xe0] sm:$0xff]  ;;  %v304_v17 = vld [vmem:[%s2452_s18 + $0x8] sm:$0xe]  ;;  %v2277_v18 = vld [vmem:[%s3101_s1 + $0xd8] sm:$0xff]  ;;  %v336_v24 = vrot.slane %v2461_v15, 5 }
  0x11   : > { %1538 = vmatpush.bf16.msra.mxu2 %v2272_v3  ;;  %v2458_v14 = vld [vmem:[%s2452_s18 + $0x4] sm:$0x1]  ;;  %v303_v16 = vld [vmem:[%s2452_s18] sm:$0xe]  ;;  %v2268_v20 = vld [vmem:[%s3101_s1 + $0x90] sm:$0xff]  ;;  %v1828_v23 = vrot.slane %v304_v17, 9 }
  0x12   : > { %1567 = vmatpush.bf16.msra.mxu3 %v2280_v5  ;;  %v1827_v21 = vrot.slane %v303_v16, 9  ;;  %v332_v22 = vrot.slane %v2458_v14, 5  ;;  %vm2476_vm2 = vmor %vm327_vm0, %vm328_vm1  ;;  %v2276_v26 = vld [vmem:[%s3101_s1 + $0xd0] sm:$0xff]  ;;  %v2251_v27 = vld [vmem:[%s3101_s1 + $0x8] sm:$0xff] }
  0x13   : > { %v2267_v28 = vld [vmem:[%s3101_s1 + $0x88] sm:$0xff]  ;;  %v337_v30 = vsel %vm2476_vm2, %v1828_v23, %v336_v24  ;;  %v2250_v31 = vld [vmem:[%s3101_s1] sm:$0xff]  ;;  %v2265_v34 = vld [vmem:[%s3101_s1 + $0x78] sm:$0xff]  ;;  %v215_v23 = vshll.u32 %v2461_v15, 16 }
  0x14   : > { %2347 = vmatpush.bf16.msra.mxu1 %v2255_v6  ;;  %1481 = vmatpush.bf16.msra.mxu0 %v2255_v6  ;;  %v333_v29 = vsel %vm2476_vm2, %v1827_v21, %v332_v22  ;;  %v1909_v32 = vld [vmem:[%s2452_s18 + $0x20] sm:$0xf]  ;;  %v2240_v33 = vld [vmem:[%s2452_s18 + $0x24] sm:$0xf0]  ;;  %v773_v40 = vunpack.c.l.b16 %v337_v30  ;;  %v2289_v41 = vld [vmem:[%s3101_s1 + $0x138] sm:$0xff]  ;;  %v201_v22 = vshll.u32 %v2458_v14, 16 }
  0x15   : > { %1539 = vmatpush.bf16.msra.mxu2 %v2271_v7  ;;  %v2275_v35 = vld [vmem:[%s3101_s1 + $0xc8] sm:$0xff]  ;;  %v2266_v36 = vld [vmem:[%s3101_s1 + $0x80] sm:$0xff]  ;;  %v772_v39 = vunpack.c.l.b16 %v333_v29  ;;  %v2305_v44 = vld [vmem:[%s3101_s1 + $0x1b8] sm:$0xff]  ;;  %v1910_v47 = vor.u32 %v2240_v33, %v1909_v32 }
  0x16   : > { %1568 = vmatpush.bf16.msra.mxu3 %v2279_v8  ;;  %v1901_v37 = vld [vmem:[%s2452_s18] sm:$0xf]  ;;  %v2238_v38 = vld [vmem:[%s2452_s18 + $0x4] sm:$0xf0]  ;;  %v2518_v45 = vld [vmem:[%s2452_s18 + $0x14] sm:$0x1] }
  0x17   : > { %v172_v42 = vld [vmem:[%s2452_s18] sm:$0xf]  ;;  %v173_v43 = vld [vmem:[%s2452_s18 + $0x8] sm:$0xf]  ;;  %v2521_v46 = vld [vmem:[%s2452_s18 + $0x1c] sm:$0x1]  ;;  %v1902_v49 = vor.u32 %v2238_v38, %v1901_v37  ;;  %v780_v53 = vpack.c.b16 %v773_v40, %v772_v39 }
  0x18   : > { %2348 = vmatpush.bf16.msra.mxu1 %v2254_v9  ;;  %1482 = vmatpush.bf16.msra.mxu0 %v2254_v9  ;;  %v2264_v48 = vld [vmem:[%s3101_s1 + $0x70] sm:$0xff]  ;;  %v1917_v50 = vld [vmem:[%s2452_s18 + $0x8] sm:$0xf]  ;;  %v2274_v54 = vld [vmem:[%s3101_s1 + $0xc0] sm:$0xff]  ;;  %v192_v56 = vshrl.u32 %v172_v42, 16  ;;  %v195_v57 = vshll.u32 %v172_v42, 16 }
  0x19   : > { %1540 = vmatpush.bf16.msra.mxu2 %v2270_v10  ;;  %v2242_v51 = vld [vmem:[%s2452_s18 + $0xc] sm:$0xf0]  ;;  %v306_v55 = vld [vmem:[%s2452_s18 + $0x18] sm:$0xe]  ;;  %v206_v58 = vshrl.u32 %v173_v43, 16  ;;  %v209_v60 = vshll.u32 %v173_v43, 16  ;;  %vm2617_vm5 = vmor %vm188_vm3, %vm189_vm4 }
  0x1a   : > { %1569 = vmatpush.bf16.msra.mxu3 %v2278_v11  ;;  %v305_v52 = vld [vmem:[%s2452_s18 + $0x10] sm:$0xe]  ;;  %v2313_v59 = vld [vmem:[%s3101_s1 + $0x1f8] sm:$0xff]  ;;  %v1835_v61 = vld [vmem:[%s2452_s18 + $0x8] sm:$0xf]  ;;  %v340_v0 = vrot.slane %v2518_v45, 5  ;;  %v1918_v2 = vor.u32 %v2242_v51, %v1917_v50 }
  0x1b   : > { %v1836_v62 = vld [vmem:[%s2452_s18 + $0x10] sm:$0xf]  ;;  %v1829_v3 = vrot.slane %v305_v52, 9  ;;  %v1830_v4 = vrot.slane %v306_v55, 9  ;;  %v344_v5 = vrot.slane %v2521_v46, 5  ;;  %v2263_v6 = vld [vmem:[%s3101_s1 + $0x68] sm:$0xff] }
  0x1c   : > { %2349 = vmatpush.bf16.msra.mxu1 %v2253_v12  ;;  %1483 = vmatpush.bf16.msra.mxu0 %v2253_v12  ;;  %v2288_v63 = vld [vmem:[%s3101_s1 + $0x130] sm:$0xff]  ;;  %v380_v7 = vshrl.u32 %v1835_v61, 16  ;;  %v383_v8 = vshll.u32 %v1835_v61, 16  ;;  %v394_v9 = vshrl.u32 %v1836_v62, 16  ;;  %v397_v10 = vshll.u32 %v1836_v62, 16  ;;  %v2287_v11 = vld [vmem:[%s3101_s1 + $0x128] sm:$0xff] }
  0x1d   : > { %1541 = vmatpush.bf16.msra.mxu2 %v2269_v13  ;;  %v2304_v1 = vld [vmem:[%s3101_s1 + $0x1b0] sm:$0xff]  ;;  %v194_v12 = vrot.slane %v192_v56, 4  ;;  %v197_v13 = vrot.slane %v195_v57, 5  ;;  %v208_v16 = vrot.slane %v206_v58, 4  ;;  %v211_v17 = vrot.slane %v209_v60, 5  ;;  %v2286_v32 = vld [vmem:[%s3101_s1 + $0x120] sm:$0xff] }
  0x1e   : > { %1570 = vmatpush.bf16.msra.mxu3 %v2277_v18  ;;  %v2312_v18 = vld [vmem:[%s3101_s1 + $0x1f0] sm:$0xff]  ;;  %v341_v24 = vsel %vm2476_vm2, %v1829_v3, %v340_v0  ;;  %v385_v29 = vrot.slane %v383_v8, 5  ;;  %v396_v30 = vrot.slane %v394_v9, 4  ;;  %v2577_v15 = vld [vmem:[%s2452_s18 + $0x34] sm:$0xf0]  ;;  %v2311_v37 = vld [vmem:[%s3101_s1 + $0x1e8] sm:$0xff] }
  0x1f   : > { %v2562_v21 = vld [vmem:[%s2452_s18 + $0x14] sm:$0x1]  ;;  %v2574_v14 = vld [vmem:[%s2452_s18 + $0x30] sm:$0xf]  ;;  %v198_v33 = vor.u32 %v197_v13, %v194_v12  ;;  %v2239_v39 = vld [vmem:[%s2452_s18 + $0x14] sm:$0xf0] }
  0x20   : > { %2350 = vmatpush.bf16.msra.mxu1 %v2252_v19  ;;  %1484 = vmatpush.bf16.msra.mxu0 %v2252_v19  ;;  %v2303_v19 = vld [vmem:[%s3101_s1 + $0x1a8] sm:$0xff]  ;;  %v1905_v38 = vld [vmem:[%s2452_s18 + $0x10] sm:$0xf]  ;;  %v2302_v40 = vld [vmem:[%s3101_s1 + $0x1a0] sm:$0xff]  ;;  %v1914_v58 = vor.u32 %v2577_v15, %v2574_v14 }
  0x21   : > { %1542 = vmatpush.bf16.msra.mxu2 %v2268_v20  ;;  %v2559_v20 = vld [vmem:[%s2452_s18 + $0xc] sm:$0x1]  ;;  %v174_v43 = vld [vmem:[%s2452_s18 + $0x10] sm:$0xf]  ;;  %v175_v52 = vld [vmem:[%s2452_s18 + $0x18] sm:$0xf] }
  0x22   : > { %1571 = vmatpush.bf16.msra.mxu3 %v2276_v26  ;;  %v345_v26 = vsel %vm2476_vm2, %v1830_v4, %v344_v5  ;;  %v1837_v57 = vld [vmem:[%s2452_s18 + $0x18] sm:$0xf]  ;;  %v2623_v61 = vld [vmem:[%s2452_s18 + $0x24] sm:$0x1]  ;;  %v307_v62 = vld [vmem:[%s2452_s18 + $0x20] sm:$0xe] }
  0x23   : > { %v775_v42 = vunpack.c.l.b16 %v345_v26  ;;  %v1921_v60 = vld [vmem:[%s2452_s18 + $0x18] sm:$0xf]  ;;  %v223_v0 = vshll.u32 %v174_v43, 16  ;;  %v2627_v3 = vld [vmem:[%s2452_s18 + $0x2c] sm:$0x1]  ;;  %v234_v5 = vshrl.u32 %v175_v52, 16 }
  0x24   : > { %2351 = vmatpush.bf16.msra.mxu1 %v2251_v27  ;;  %1485 = vmatpush.bf16.msra.mxu0 %v2251_v27  ;;  %v2262_v27 = vld [vmem:[%s3101_s1 + $0x60] sm:$0xff]  ;;  %v308_v4 = vld [vmem:[%s2452_s18 + $0x28] sm:$0xe]  ;;  %v2260_v12 = vld [vmem:[%s3101_s1 + $0x50] sm:$0xff] }
  0x25   : > { %1543 = vmatpush.bf16.msra.mxu2 %v2267_v28  ;;  %v382_v28 = vrot.slane %v380_v7, 4  ;;  %v2243_v7 = vld [vmem:[%s2452_s18 + $0x1c] sm:$0xf0]  ;;  %v2284_v13 = vld [vmem:[%s3101_s1 + $0x110] sm:$0xff] }
  0x26   : > { %1572 = vmatpush.bf16.msra.mxu3 %v2275_v35  ;;  %v389_v35 = vshll.u32 %v2559_v20, 16  ;;  %v1838_v26 = vld [vmem:[%s2452_s18 + $0x20] sm:$0xf] }
  0x27   : > { %v386_v50 = vor.u32 %v385_v29, %v382_v28  ;;  %v1922_v28 = vor.u32 %v2243_v7, %v1921_v60  ;;  %v236_v29 = vrot.slane %v234_v5, 4  ;;  %v2697_v60 = vld [vmem:[%s2452_s18 + $0x24] sm:$0x1] }
  0x28   : > { %2352 = vmatpush.bf16.msra.mxu1 %v2250_v31  ;;  %1486 = vmatpush.bf16.msra.mxu0 %v2250_v31  ;;  %v399_v31 = vrot.slane %v397_v10, 5  ;;  %v2608_v55 = vrot.slane %v389_v35, 5  ;;  %v408_v10 = vshrl.u32 %v1837_v57, 16  ;;  %v2259_v35 = vld [vmem:[%s3101_s1 + $0x48] sm:$0xff] }
  0x29   : > { %1544 = vmatpush.bf16.msra.mxu2 %v2266_v36  ;;  %v403_v36 = vshll.u32 %v2562_v21, 16  ;;  %v387_v8 = vrot.slane %v386_v50, 4 }
  0x2a   : > { %1573 = vmatpush.bf16.msra.mxu3 %v2274_v54  ;;  %v400_v51 = vor.u32 %v399_v31, %v396_v30  ;;  %v2301_v31 = vld [vmem:[%s3101_s1 + $0x198] sm:$0xff] }
  0x2b   : > { %1497 = vmatmul.bf16.vlgmr.msra.gmra.mxu1 %v1910_v47  ;;  %1487 = vmatmul.bf16.vlgmr.msra.gmra.mxu0 %v1902_v49  ;;  %v2285_v47 = vld [vmem:[%s3101_s1 + $0x118] sm:$0xff]  ;;  %v2601_v49 = vrot.slane %v215_v23, 5  ;;  %v2610_v56 = vrot.slane %v403_v36, 5  ;;  %v392_v14 = vsel %vm2617_vm5, %v387_v8, %v2608_v55  ;;  %v177_v55 = vld [vmem:[%s2452_s18 + $0x28] sm:$0xf] }
  0x2c   : > { %1508 = vmatpush.bf16.msrb.mxu1 %v2265_v34  ;;  %1595 = vmatpush.bf16.msrb.mxu0 %v2289_v41  ;;  %v212_v34 = vor.u32 %v211_v17, %v208_v16  ;;  %v774_v41 = vunpack.c.l.b16 %v341_v24  ;;  %v401_v9 = vrot.slane %v400_v51, 4  ;;  %v1831_v17 = vrot.slane %v307_v62, 9 }
  0x2d   : > { %1653 = vmatpush.bf16.msrb.mxu2 %v2305_v44  ;;  %1574 = vmatmul.bf16.vlgmr.msra.gmra.mxu3 %v1918_v2  ;;  %v2261_v44 = vld [vmem:[%s3101_s1 + $0x58] sm:$0xff]  ;;  %v225_v24 = vrot.slane %v223_v0, 5  ;;  %v2682_v50 = vunpack.c.l.b16 %v392_v14 }
  0x2e   : > { %1545 = vmatmul.bf16.vlgmr.msra.gmra.mxu2 %v780_v53  ;;  %1682 = vmatpush.bf16.msrb.mxu3 %v2313_v59  ;;  %v2604_v53 = vrot.slane %v198_v33, 4  ;;  %v2606_v54 = vrot.slane %v212_v34, 4  ;;  %v781_v2 = vpack.c.b16 %v775_v42, %v774_v41  ;;  %v406_v15 = vsel %vm2617_vm5, %v401_v9, %v2610_v56  ;;  %v2310_v34 = vld [vmem:[%s3101_s1 + $0x1e0] sm:$0xff]  ;;  %v2297_v0 = vld [vmem:[%s3101_s1 + $0x178] sm:$0xff] }
  0x2f   : > { %v2684_v51 = vunpack.c.l.b16 %v406_v15  ;;  %v2258_v56 = vld [vmem:[%s3101_s1 + $0x40] sm:$0xff]  ;;  %v2715_v9 = vld [vmem:[%s3101_s1 + $0x238] sm:$0xff] }
  0x30   : > { %1509 = vmatpush.bf16.msrb.mxu1 %v2264_v48  ;;  %1596 = vmatpush.bf16.msrb.mxu0 %v2288_v63  ;;  %v2599_v48 = vrot.slane %v201_v22, 5  ;;  %v220_v63 = vshrl.u32 %v174_v43, 16  ;;  %v352_v22 = vrot.slane %v2627_v3, 5  ;;  %v243_v43 = vshll.u32 %v2521_v46, 16 }
  0x31   : > { %1654 = vmatpush.bf16.msrb.mxu2 %v2304_v1  ;;  %v1906_v1 = vor.u32 %v2239_v39, %v1905_v38  ;;  %v422_v38 = vshrl.u32 %v1838_v26, 16  ;;  %v425_v39 = vshll.u32 %v1838_v26, 16  ;;  %v2734_v26 = vld [vmem:[%s2452_s18 + $0x3c] sm:$0x1] }
  0x32   : > { %1683 = vmatpush.bf16.msrb.mxu3 %v2312_v18  ;;  %v204_v16 = vsel %vm2617_vm5, %v2604_v53, %v2599_v48  ;;  %v348_v18 = vrot.slane %v2623_v61, 5  ;;  %v222_v23 = vrot.slane %v220_v63, 4  ;;  %v2300_v48 = vld [vmem:[%s3101_s1 + $0x190] sm:$0xff] }
  0x33   : > { %v424_v62 = vrot.slane %v422_v38, 4  ;;  %v427_v63 = vrot.slane %v425_v39, 5  ;;  %v2745_v38 = vld [vmem:[%s3101_s1 + $0x230] sm:$0xff]  ;;  %v257_v39 = vshll.u32 %v2623_v61, 16  ;;  %v2299_v61 = vld [vmem:[%s3101_s1 + $0x188] sm:$0xff] }
  0x34   : > { %1510 = vmatpush.bf16.msrb.mxu1 %v2263_v6  ;;  %1597 = vmatpush.bf16.msrb.mxu0 %v2287_v11  ;;  %v237_v6 = vshll.u32 %v175_v52, 16  ;;  %v411_v11 = vshll.u32 %v1837_v57, 16  ;;  %v349_v36 = vsel %vm2476_vm2, %v1831_v17, %v348_v18  ;;  %v226_v42 = vor.u32 %v225_v24, %v222_v23  ;;  %v2687_v52 = vld [vmem:[%s2452_s18 + $0x1c] sm:$0x1]  ;;  %v1839_v18 = vld [vmem:[%s2452_s18 + $0x28] sm:$0xf] }
  0x35   : > { %1655 = vmatpush.bf16.msrb.mxu2 %v2303_v19  ;;  %v1832_v19 = vrot.slane %v308_v4, 9  ;;  %v776_v46 = vunpack.c.l.b16 %v349_v36  ;;  %v2707_v4 = vrot.slane %v243_v43, 5  ;;  %v417_v8 = vshll.u32 %v2687_v52, 16  ;;  %v2731_v24 = vld [vmem:[%s2452_s18 + $0x34] sm:$0x1] }
  0x36   : > { %1684 = vmatpush.bf16.msrb.mxu3 %v2311_v37  ;;  %v239_v30 = vrot.slane %v237_v6, 5  ;;  %v413_v33 = vrot.slane %v411_v11, 5  ;;  %v229_v37 = vshll.u32 %v2518_v45, 16  ;;  %v265_v11 = vshll.u32 %v177_v55, 16 }
  0x37   : > { %v353_v41 = vsel %vm2476_vm2, %v1832_v19, %v352_v22  ;;  %v431_v17 = vshll.u32 %v2697_v60, 16  ;;  %v2244_v22 = vld [vmem:[%s2452_s18 + $0x2c] sm:$0xf0]  ;;  %v428_v23 = vor.u32 %v427_v63, %v424_v62  ;;  %v419_v36 = vrot.slane %v417_v8, 5  ;;  %v2776_v62 = vld [vmem:[%s3101_s1 + $0x228] sm:$0xff] }
  0x38   : > { %1511 = vmatpush.bf16.msrb.mxu1 %v2262_v27  ;;  %1598 = vmatpush.bf16.msrb.mxu0 %v2286_v32  ;;  %v218_v27 = vsel %vm2617_vm5, %v2606_v54, %v2601_v49  ;;  %v410_v32 = vrot.slane %v408_v10, 4  ;;  %v2309_v49 = vld [vmem:[%s3101_s1 + $0x1d8] sm:$0xff]  ;;  %v176_v54 = vld [vmem:[%s2452_s18 + $0x20] sm:$0xf]  ;;  %v777_v57 = vunpack.c.l.b16 %v353_v41  ;;  %v262_v10 = vshrl.u32 %v177_v55, 16 }
  0x39   : > { %1656 = vmatpush.bf16.msrb.mxu2 %v2302_v40  ;;  %v2283_v40 = vld [vmem:[%s3101_s1 + $0x108] sm:$0xff]  ;;  %v2674_v45 = vunpack.c.l.b16 %v218_v27  ;;  %v248_v5 = vshrl.u32 %v176_v54, 16  ;;  %v251_v6 = vshll.u32 %v176_v54, 16  ;;  %v820_v27 = vpack.c.b16 %v2684_v51, %v2682_v50 }
  0x3a   : > { %1685 = vmatpush.bf16.msrb.mxu3 %v2310_v34  ;;  %v414_v53 = vor.u32 %v413_v33, %v410_v32  ;;  %v264_v15 = vrot.slane %v262_v10, 4  ;;  %v267_v32 = vrot.slane %v265_v11, 5  ;;  %v1840_v33 = vld [vmem:[%s2452_s18 + $0x30] sm:$0xf]  ;;  %v436_v34 = vshrl.u32 %v1839_v18, 16  ;;  %v2307_v10 = vld [vmem:[%s3101_s1 + $0x1c8] sm:$0xff] }
  0x3b   : > { %1502 = vmatmul.bf16.gmra.mxu1 %v1914_v58  ;;  %1492 = vmatmul.bf16.gmra.mxu0 %v1906_v1  ;;  %v2694_v58 = vrot.slane %v229_v37, 5  ;;  %v2282_v1 = vld [vmem:[%s3101_s1 + $0x100] sm:$0xff]  ;;  %v253_v14 = vrot.slane %v251_v6, 5  ;;  %v433_v37 = vrot.slane %v431_v17, 5  ;;  %v356_v43 = vrot.slane %v2731_v24, 5 }
  0x3c   : > { %1512 = vmatpush.bf16.msrb.mxu1 %v2261_v44  ;;  %1599 = vmatpush.bf16.msrb.mxu0 %v2285_v47  ;;  %v2672_v44 = vunpack.c.l.b16 %v204_v16  ;;  %v240_v47 = vor.u32 %v239_v30, %v236_v29  ;;  %v2723_v16 = vrot.slane %v414_v53, 4  ;;  %v309_v29 = vld [vmem:[%s2452_s18 + $0x30] sm:$0xe]  ;;  %v310_v30 = vld [vmem:[%s2452_s18 + $0x38] sm:$0xe]  ;;  %v268_v50 = vor.u32 %v267_v32, %v264_v15  ;;  %v2294_v6 = vld [vmem:[%s3101_s1 + $0x160] sm:$0xff] }
  0x3d   : > { %1657 = vmatpush.bf16.msrb.mxu2 %v2301_v31  ;;  %1579 = vmatmul.bf16.gmra.mxu3 %v1922_v28  ;;  %v782_v28 = vpack.c.b16 %v777_v57, %v776_v46  ;;  %v250_v31 = vrot.slane %v248_v5, 4  ;;  %v438_v51 = vrot.slane %v436_v34, 4  ;;  %v453_v53 = vshll.u32 %v1840_v33, 16  ;;  %v2308_v57 = vld [vmem:[%s3101_s1 + $0x1d0] sm:$0xff] }
  0x3e   : > { %1550 = vmatmul.bf16.gmra.mxu2 %v781_v2  ;;  %v2705_v2 = vrot.slane %v226_v42, 4  ;;  %1686 = vmatpush.bf16.msrb.mxu3 %v2309_v49  ;;  %v2709_v7 = vrot.slane %v240_v47, 4  ;;  %v764_v19 = vpack.c.b16 %v2674_v45, %v2672_v44  ;;  %v429_v42 = vrot.slane %v428_v23, 4  ;;  %v2295_v45 = vld [vmem:[%s3101_s1 + $0x168] sm:$0xff]  ;;  %v178_v15 = vld [vmem:[%s2452_s18 + $0x30] sm:$0xf] }
  0x3f   : > { %v360_v44 = vrot.slane %v2734_v26, 5  ;;  %v1833_v47 = vrot.slane %v309_v29, 9  ;;  %v254_v49 = vor.u32 %v253_v14, %v250_v31  ;;  %v269_v11 = vrot.slane %v268_v50, 4  ;;  %v2293_v31 = vld [vmem:[%s3101_s1 + $0x158] sm:$0xff]  ;;  %v2292_v50 = vld [vmem:[%s3101_s1 + $0x150] sm:$0xff] }
  0x40   : > { %1513 = vmatpush.bf16.msrb.mxu1 %v2260_v12  ;;  %1600 = vmatpush.bf16.msrb.mxu0 %v2284_v13  ;;  %v2296_v12 = vld [vmem:[%s3101_s1 + $0x170] sm:$0xff]  ;;  %v2721_v13 = vld [vmem:[%s2452_s18 + $0x28] sm:$0xf]  ;;  %v232_v54 = vsel %vm2617_vm5, %v2705_v2, %v2694_v58  ;;  %v246_v55 = vsel %vm2617_vm5, %v2709_v7, %v2707_v4  ;;  %v420_v58 = vsel %vm2617_vm5, %v2723_v16, %v419_v36  ;;  %v2298_v2 = vld [vmem:[%s3101_s1 + $0x180] sm:$0xff]  ;;  %v455_v17 = vrot.slane %v453_v53, 5 }
  0x41   : > { %1658 = vmatpush.bf16.msrb.mxu2 %v2300_v48  ;;  %v1926_v41 = vor.u32 %v2244_v22, %v2721_v13  ;;  %v1834_v48 = vrot.slane %v310_v30, 9  ;;  %v434_v63 = vsel %vm2617_vm5, %v429_v42, %v433_v37  ;;  %v357_v4 = vsel %vm2476_vm2, %v1833_v47, %v356_v43  ;;  %v2804_v22 = vld [vmem:[%s3101_s1 + $0x220] sm:$0xff]  ;;  %v1867_v36 = vld [vmem:[%s2452_s18 + $0x10] sm:$0xf]  ;;  %v179_v43 = vld [vmem:[%s2452_s18 + $0x38] sm:$0xf] }
  0x42   : > { %v255_v7 = vrot.slane %v254_v49, 4  ;;  %1687 = vmatpush.bf16.msrb.mxu3 %v2308_v57  ;;  %v814_v23 = vunpack.c.l.b16 %v420_v58  ;;  %v517_v37 = vrot.slane %v2559_v20, 5  ;;  %v2823_v42 = vld [vmem:[%s2452_s18 + $0x3c] sm:$0xf0]  ;;  %v565_v47 = vshrl.u32 %v1867_v36, 16 }
  0x43   : > { %v361_v5 = vsel %vm2476_vm2, %v1834_v48, %v360_v44  ;;  %v276_v44 = vshrl.u32 %v178_v15, 16  ;;  %v568_v48 = vshll.u32 %v1867_v36, 16 }
  0x44   : > { %1514 = vmatpush.bf16.msrb.mxu1 %v2259_v35  ;;  %1601 = vmatpush.bf16.msrb.mxu0 %v2283_v40  ;;  %v439_v35 = vshll.u32 %v1839_v18, 16  ;;  %v271_v40 = vshll.u32 %v2627_v3, 16  ;;  %v450_v3 = vshrl.u32 %v1840_v33, 16  ;;  %v758_v18 = vunpack.c.l.b16 %v232_v54  ;;  %v1841_v54 = vld [vmem:[%s2452_s18 + $0x38] sm:$0xf] }
  0x45   : > { %1659 = vmatpush.bf16.msrb.mxu2 %v2299_v61  ;;  %v779_v29 = vunpack.c.l.b16 %v361_v5  ;;  %v567_v57 = vrot.slane %v565_v47, 4 }
  0x46   : > { %v441_v46 = vrot.slane %v439_v35, 5  ;;  %v452_v8 = vrot.slane %v450_v3, 4  ;;  %1688 = vmatpush.bf16.msrb.mxu3 %v2307_v10 }
  0x48   : > { %1515 = vmatpush.bf16.msrb.mxu1 %v2258_v56  ;;  %1602 = vmatpush.bf16.msrb.mxu0 %v2282_v1  ;;  %v2768_v56 = vld [vmem:[%s2452_s18 + $0x2c] sm:$0x1]  ;;  %v273_v1 = vrot.slane %v271_v40, 5  ;;  %v442_v13 = vor.u32 %v441_v46, %v438_v51  ;;  %v456_v35 = vor.u32 %v455_v17, %v452_v8  ;;  %v2306_v17 = vld [vmem:[%s3101_s1 + $0x1c0] sm:$0xff] }
  0x49   : > { %v445_v16 = vshll.u32 %v2768_v56, 16  ;;  %1660 = vmatpush.bf16.msrb.mxu2 %v2298_v2  ;;  %v2844_v2 = vld [vmem:[%s2452_s18 + $0x14] sm:$0x1] }
  0x4a   : > { %v274_v32 = vsel %vm2617_vm5, %v269_v11, %v273_v1  ;;  %v443_v33 = vrot.slane %v442_v13, 4  ;;  %v457_v53 = vrot.slane %v456_v35, 4  ;;  %v299_v1 = vshll.u32 %v2734_v26, 16  ;;  %v2852_v13 = vld [vmem:[%s2452_s18 + $0x1c] sm:$0x1]  ;;  %1689 = vmatpush.bf16.msrb.mxu3 %v2306_v17 }
  0x4b   : > { %1516 = vmatmul.bf16.vlgmr.msrb.gmra.mxu1 %v764_v19  ;;  %1603 = vmatmul.bf16.vlgmr.msrb.gmra.mxu0 %v820_v27  ;;  %v759_v19 = vunpack.c.l.b16 %v246_v55  ;;  %v815_v27 = vunpack.c.l.b16 %v434_v63  ;;  %v447_v34 = vrot.slane %v445_v16, 5  ;;  %v2829_v61 = vunpack.c.l.b16 %v274_v32  ;;  %v1868_v55 = vld [vmem:[%s2452_s18 + $0x18] sm:$0xf]  ;;  %v2291_v16 = vld [vmem:[%s3101_s1 + $0x148] sm:$0xff] }
  0x4c   : > { %1624 = vmatpush.bf16.msra.mxu1 %v2297_v0  ;;  %1711 = vmatpush.bf16.msra.mxu0 %v2715_v9  ;;  %v259_v0 = vrot.slane %v257_v39, 5  ;;  %v521_v39 = vrot.slane %v2562_v21, 5  ;;  %v285_v63 = vshll.u32 %v2731_v24, 16  ;;  %v464_v11 = vshrl.u32 %v1841_v54, 16  ;;  %v2246_v17 = vld [vmem:[%s2452_s18 + $0x14] sm:$0xf0] }
  0x4d   : > { %1584 = vmatmul.bf16.gmra.mxu3 %v1926_v41  ;;  %2353 = vmatpush.bf16.msra.mxu2 %v2715_v9  ;;  %v765_v40 = vpack.c.b16 %v759_v19, %v758_v18  ;;  %v2820_v41 = vld [vmem:[%s2452_s18 + $0x38] sm:$0xf]  ;;  %v821_v9 = vpack.c.b16 %v815_v27, %v814_v23  ;;  %v448_v46 = vsel %vm2617_vm5, %v443_v33, %v447_v34  ;;  %v579_v24 = vshrl.u32 %v1868_v55, 16  ;;  %v2875_v34 = vld [vmem:[%s3101_s1 + $0x210] sm:$0xff] }
  0x4e   : > { %1555 = vmatmul.bf16.gmra.mxu2 %v782_v28  ;;  %v778_v28 = vunpack.c.l.b16 %v357_v4  ;;  %v260_v30 = vsel %vm2617_vm5, %v255_v7, %v259_v0  ;;  %v1930_v58 = vor.u32 %v2823_v42, %v2820_v41  ;;  %v290_v0 = vshrl.u32 %v179_v43, 16  ;;  %v2866_v27 = vld [vmem:[%s3101_s1 + $0x218] sm:$0xff]  ;;  %v2290_v42 = vld [vmem:[%s3101_s1 + $0x140] sm:$0xff] }
  0x4f   : > { %v2827_v49 = vunpack.c.l.b16 %v260_v30  ;;  %v278_v4 = vrot.slane %v276_v44, 4  ;;  %v570_v7 = vrot.slane %v568_v48, 5  ;;  %v2848_v10 = vunpack.c.l.b16 %v448_v46  ;;  %v1852_v48 = vld [vmem:[%s2452_s18 + $0x10] sm:$0xe] }
  0x50   : > { %1625 = vmatpush.bf16.msra.mxu1 %v2296_v12  ;;  %1712 = vmatpush.bf16.msra.mxu0 %v2745_v38  ;;  %v2797_v12 = vld [vmem:[%s2452_s18 + $0x34] sm:$0x1]  ;;  %v783_v51 = vpack.c.b16 %v779_v29, %v778_v28  ;;  %v467_v18 = vshll.u32 %v1841_v54, 16  ;;  %v574_v23 = vshll.u32 %v2844_v2, 16  ;;  %v2868_v28 = vrot.slane %v285_v63, 5 }
  0x51   : > { %v459_v14 = vshll.u32 %v2797_v12, 16  ;;  %2354 = vmatpush.bf16.msra.mxu2 %v2745_v38  ;;  %v766_v8 = vpack.c.b16 %v2829_v61, %v2827_v49  ;;  %v1842_v38 = vld [vmem:[%s2452_s18 + $0x40] sm:$0xf]  ;;  %v571_v19 = vor.u32 %v570_v7, %v567_v57  ;;  %v292_v29 = vrot.slane %v290_v0, 4  ;;  %v2901_v0 = vld [vmem:[%s2452_s18 + $0x44] sm:$0x1] }
  0x52   : > { %v581_v30 = vrot.slane %v579_v24, 4  ;;  %v481_v32 = vshll.u32 %v1842_v38, 16  ;;  %v588_v33 = vshll.u32 %v2852_v13, 16  ;;  %v469_v44 = vrot.slane %v467_v18, 5 }
  0x53   : > { %v461_v3 = vrot.slane %v459_v14, 5  ;;  %v576_v47 = vrot.slane %v574_v23, 5  ;;  %v487_v18 = vshll.u32 %v2901_v0, 16 }
  0x54   : > { %1626 = vmatpush.bf16.msra.mxu1 %v2295_v45  ;;  %1713 = vmatpush.bf16.msra.mxu0 %v2776_v62  ;;  %v279_v45 = vshll.u32 %v178_v15, 16  ;;  %v478_v15 = vshrl.u32 %v1842_v38, 16  ;;  %v590_v46 = vrot.slane %v588_v33, 5  ;;  %v483_v57 = vrot.slane %v481_v32, 5  ;;  %v1869_v38 = vld [vmem:[%s2452_s18 + $0x20] sm:$0xf] }
  0x55   : > { %v462_v26 = vsel %vm2617_vm5, %v457_v53, %v461_v3  ;;  %2355 = vmatpush.bf16.msra.mxu2 %v2776_v62  ;;  %v2885_v3 = vrot.slane %v299_v1, 5  ;;  %v1860_v53 = vrot.slane %v1852_v48, 9  ;;  %v2894_v62 = vld [vmem:[%s3101_s1 + $0x208] sm:$0xff]  ;;  %v596_v21 = vshll.u32 %v1869_v38, 16  ;;  %v2925_v33 = vld [vmem:[%s2452_s18 + $0x24] sm:$0x1] }
  0x56   : > { %v281_v5 = vrot.slane %v279_v45, 5  ;;  %v2877_v35 = vunpack.c.l.b16 %v462_v26  ;;  %v572_v45 = vrot.slane %v571_v19, 4  ;;  %v593_v26 = vshrl.u32 %v1869_v38, 16 }
  0x57   : > { %v602_v48 = vshll.u32 %v2925_v33, 16 }
  0x58   : > { %1627 = vmatpush.bf16.msra.mxu1 %v2294_v6  ;;  %1714 = vmatpush.bf16.msra.mxu0 %v2804_v22  ;;  %v293_v6 = vshll.u32 %v179_v43, 16  ;;  %v282_v36 = vor.u32 %v281_v5, %v278_v4  ;;  %v1851_v43 = vld [vmem:[%s2452_s18 + $0x8] sm:$0xe]  ;;  %v522_v4 = vsel %vm2476_vm2, %v1860_v53, %v521_v39  ;;  %v1933_v39 = vld [vmem:[%s2452_s18 + $0x10] sm:$0xf] }
  0x59   : > { %2356 = vmatpush.bf16.msra.mxu2 %v2804_v22  ;;  %v829_v7 = vunpack.c.l.b16 %v522_v4  ;;  %v1854_v53 = vld [vmem:[%s2452_s18 + $0x20] sm:$0xe]  ;;  %v604_v61 = vrot.slane %v602_v48, 5 }
  0x5a   : > { %v295_v14 = vrot.slane %v293_v6, 5  ;;  %v283_v63 = vrot.slane %v282_v36, 4  ;;  %v2928_v36 = vld [vmem:[%s2452_s18 + $0x2c] sm:$0x1]  ;;  %v1862_v4 = vrot.slane %v1854_v53, 9 }
  0x5b   : > { %1521 = vmatmul.bf16.gmra.mxu1 %v765_v40  ;;  %1608 = vmatmul.bf16.gmra.mxu0 %v821_v9  ;;  %v466_v40 = vrot.slane %v464_v11, 4  ;;  %v1859_v9 = vrot.slane %v1851_v43, 9  ;;  %v1870_v11 = vld [vmem:[%s2452_s18 + $0x28] sm:$0xf] }
  0x5c   : > { %1628 = vmatpush.bf16.msra.mxu1 %v2293_v31  ;;  %v582_v31 = vshll.u32 %v1868_v55, 16  ;;  %1715 = vmatpush.bf16.msra.mxu0 %v2866_v27  ;;  %v296_v54 = vor.u32 %v295_v14, %v292_v29  ;;  %v480_v55 = vrot.slane %v478_v15, 4  ;;  %v610_v23 = vshll.u32 %v1870_v11, 16 }
  0x5d   : > { %1589 = vmatmul.bf16.gmra.mxu3 %v1930_v58  ;;  %v518_v58 = vsel %vm2476_vm2, %v1859_v9, %v517_v37  ;;  %v470_v6 = vor.u32 %v469_v44, %v466_v40  ;;  %v577_v37 = vsel %vm2617_vm5, %v572_v45, %v576_v47  ;;  %v822_v29 = vpack.c.b16 %v2877_v35, %v2848_v10 }
  0x5e   : > { %1560 = vmatmul.bf16.gmra.mxu2 %v783_v51  ;;  %v584_v41 = vrot.slane %v582_v31, 5  ;;  %v828_v5 = vunpack.c.l.b16 %v518_v58  ;;  %v484_v22 = vor.u32 %v483_v57, %v480_v55  ;;  %v595_v31 = vrot.slane %v593_v26, 4  ;;  %v1884_v26 = vld [vmem:[%s2452_s18 + $0x18] sm:$0xe] }
  0x5f   : > { %v598_v14 = vrot.slane %v596_v21, 5  ;;  %2357 = vmatpush.bf16.msra.mxu2 %v2866_v27  ;;  %v868_v15 = vunpack.c.l.b16 %v577_v37  ;;  %v288_v43 = vsel %vm2617_vm5, %v283_v63, %v2868_v28  ;;  %v471_v10 = vrot.slane %v470_v6, 4  ;;  %v1871_v21 = vld [vmem:[%s2452_s18 + $0x30] sm:$0xf] }
  0x60   : > { %1629 = vmatpush.bf16.msra.mxu1 %v2292_v50  ;;  %v2888_v50 = vld [vmem:[%s2452_s18 + $0x3c] sm:$0x1]  ;;  %v585_v51 = vor.u32 %v584_v41, %v581_v30  ;;  %1716 = vmatpush.bf16.msra.mxu0 %v2875_v34  ;;  %v2919_v19 = vpack.c.b16 %v829_v7, %v828_v5  ;;  %v297_v30 = vrot.slane %v296_v54, 4  ;;  %v612_v41 = vrot.slane %v610_v23, 5 }
  0x61   : > { %v473_v20 = vshll.u32 %v2888_v50, 16  ;;  %v485_v44 = vrot.slane %v484_v22, 4  ;;  %v489_v45 = vrot.slane %v487_v18, 5  ;;  %v599_v47 = vor.u32 %v598_v14, %v595_v31  ;;  %v2247_v14 = vld [vmem:[%s2452_s18 + $0x24] sm:$0xf0] }
  0x62   : > { %v586_v1 = vrot.slane %v585_v51, 4  ;;  %v302_v27 = vsel %vm2617_vm5, %v297_v30, %v2885_v3  ;;  %v616_v9 = vshll.u32 %v2928_v36, 16  ;;  %v2314_v51 = vld [vmem:[%s3101_s1 + $0x200] sm:$0xff]  ;;  %v1853_v3 = vld [vmem:[%s2452_s18 + $0x18] sm:$0xe]  ;;  %v762_v54 = vunpack.c.l.b16 %v288_v43 }
  0x63   : > { %v475_v35 = vrot.slane %v473_v20, 5  ;;  %2358 = vmatpush.bf16.msra.mxu2 %v2875_v34  ;;  %v763_v55 = vunpack.c.l.b16 %v302_v27  ;;  %v490_v34 = vsel %vm2617_vm5, %v485_v44, %v489_v45  ;;  %v600_v49 = vrot.slane %v599_v47, 4  ;;  %v2973_v27 = vld [vmem:[%s2452_s18 + $0x34] sm:$0x1]  ;;  %v2976_v47 = vld [vmem:[%s2452_s18 + $0x3c] sm:$0x1] }
  0x64   : > { %1630 = vmatpush.bf16.msra.mxu1 %v2291_v16  ;;  %v591_v24 = vsel %vm2617_vm5, %v586_v1, %v590_v46  ;;  %v607_v16 = vshrl.u32 %v1870_v11, 16  ;;  %1717 = vmatpush.bf16.msra.mxu0 %v2894_v62  ;;  %v1861_v58 = vrot.slane %v1853_v3, 9  ;;  %v525_v1 = vrot.slane %v2687_v52, 5 }
  0x65   : > { %v869_v32 = vunpack.c.l.b16 %v591_v24  ;;  %v476_v57 = vsel %vm2617_vm5, %v471_v10, %v475_v35  ;;  %v529_v5 = vrot.slane %v2697_v60, 5  ;;  %v819_v20 = vunpack.c.l.b16 %v490_v34 }
  0x66   : > { %v609_v40 = vrot.slane %v607_v16, 4  ;;  %v818_v6 = vunpack.c.l.b16 %v476_v57  ;;  %v526_v37 = vsel %vm2476_vm2, %v1861_v58, %v525_v1  ;;  %v767_v24 = vpack.c.b16 %v763_v55, %v762_v54  ;;  %v1872_v16 = vld [vmem:[%s2452_s18 + $0x38] sm:$0xf]  ;;  %v1856_v1 = vld [vmem:[%s2452_s18 + $0x30] sm:$0xe] }
  0x67   : > { %v876_v28 = vpack.c.b16 %v869_v32, %v868_v15  ;;  %2359 = vmatpush.bf16.msra.mxu2 %v2894_v62  ;;  %v530_v7 = vsel %vm2476_vm2, %v1862_v4, %v529_v5  ;;  %v1883_v62 = vld [vmem:[%s2452_s18 + $0x10] sm:$0xe]  ;;  %v830_v38 = vunpack.c.l.b16 %v526_v37  ;;  %v605_v52 = vsel %vm2617_vm5, %v600_v49, %v604_v61  ;;  %v1873_v4 = vld [vmem:[%s2452_s18 + $0x40] sm:$0xf] }
  0x68   : > { %1631 = vmatpush.bf16.msra.mxu1 %v2290_v42  ;;  %v1934_v42 = vor.u32 %v2246_v17, %v1933_v39  ;;  %v613_v46 = vor.u32 %v612_v41, %v609_v40  ;;  %1718 = vmatpush.bf16.msra.mxu0 %v2314_v51  ;;  %v831_v11 = vunpack.c.l.b16 %v530_v7  ;;  %v1937_v39 = vld [vmem:[%s2452_s18 + $0x20] sm:$0xf]  ;;  %v621_v22 = vshrl.u32 %v1871_v21, 16  ;;  %v1941_v61 = vld [vmem:[%s2452_s18 + $0x30] sm:$0xf] }
  0x69   : > { %v624_v18 = vshll.u32 %v1871_v21, 16  ;;  %v635_v23 = vshrl.u32 %v1872_v16, 16  ;;  %v702_v30 = vrot.slane %v2844_v2, 5  ;;  %v706_v31 = vrot.slane %v2852_v13, 5  ;;  %v1874_v7 = vld [vmem:[%s2452_s18 + $0x48] sm:$0xf] }
  0x6a   : > { %v614_v63 = vrot.slane %v613_v46, 4  ;;  %v2967_v17 = vpack.c.b16 %v831_v11, %v830_v38  ;;  %v638_v15 = vshll.u32 %v1872_v16, 16  ;;  %v870_v32 = vunpack.c.l.b16 %v605_v52  ;;  %v1885_v21 = vld [vmem:[%s2452_s18 + $0x20] sm:$0xe] }
  0x6b   : > { %1526 = vmatmul.bf16.gmra.mxu1 %v766_v8  ;;  %1613 = vmatmul.bf16.gmra.mxu0 %v822_v29  ;;  %v618_v8 = vrot.slane %v616_v9, 5  ;;  %v823_v29 = vpack.c.b16 %v819_v20, %v818_v6  ;;  %v1891_v41 = vrot.slane %v1883_v62, 9  ;;  %v623_v43 = vrot.slane %v621_v22, 4  ;;  %v2248_v62 = vld [vmem:[%s2452_s18 + $0x34] sm:$0xf0] }
  0x6c   : > { %2360 = vmatpush.bf16.msra.mxu2 %v2314_v51  ;;  %v626_v10 = vrot.slane %v624_v18, 5  ;;  %v637_v35 = vrot.slane %v635_v23, 4  ;;  %v640_v44 = vrot.slane %v638_v15, 5  ;;  %v1938_v45 = vor.u32 %v2247_v14, %v1937_v39  ;;  %v1886_v39 = vld [vmem:[%s2452_s18 + $0x28] sm:$0xe] }
  0x6d   : > { %1690 = vmatmul.bf16.vlgmr.msrb.gmra.mxu3 %v876_v28  ;;  %v619_v60 = vsel %vm2617_vm5, %v614_v63, %v618_v8  ;;  %v703_v2 = vsel %vm2476_vm2, %v1891_v41, %v702_v30  ;;  %v630_v28 = vshll.u32 %v2973_v27, 16  ;;  %v644_v46 = vshll.u32 %v2976_v47, 16  ;;  %v1855_v63 = vld [vmem:[%s2452_s18 + $0x28] sm:$0xe]  ;;  %v3003_v30 = vld [vmem:[%s2452_s18 + $0x44] sm:$0x1] }
  0x6e   : > { %1661 = vmatmul.bf16.vlgmr.msrb.gmra.mxu2 %v1934_v42  ;;  %v871_v40 = vunpack.c.l.b16 %v619_v60  ;;  %v1892_v42 = vrot.slane %v1884_v26, 9  ;;  %v627_v9 = vor.u32 %v626_v10, %v623_v43  ;;  %v641_v51 = vor.u32 %v640_v44, %v637_v35 }
  0x6f   : > { %v884_v3 = vunpack.c.l.b16 %v703_v2  ;;  %v632_v55 = vrot.slane %v630_v28, 5  ;;  %v646_v34 = vrot.slane %v644_v46, 5  ;;  %v1863_v5 = vrot.slane %v1855_v63, 9 }
  0x70   : > { %v877_v48 = vpack.c.b16 %v871_v40, %v870_v32  ;;  %v707_v13 = vsel %vm2476_vm2, %v1892_v42, %v706_v31  ;;  %v628_v54 = vrot.slane %v627_v9, 4  ;;  %v642_v57 = vrot.slane %v641_v51, 4  ;;  %v3006_v31 = vld [vmem:[%s2452_s18 + $0x4c] sm:$0x1] }
  0x71   : > { %v885_v53 = vunpack.c.l.b16 %v707_v13  ;;  %v533_v6 = vrot.slane %v2768_v56, 5  ;;  %v1864_v20 = vrot.slane %v1856_v1, 9  ;;  %v537_v37 = vrot.slane %v2797_v12, 5 }
  0x72   : > { %v633_v8 = vsel %vm2617_vm5, %v628_v54, %v632_v55  ;;  %v647_v58 = vsel %vm2617_vm5, %v642_v57, %v646_v34  ;;  %v649_v38 = vshrl.u32 %v1873_v4, 16  ;;  %v652_v11 = vshll.u32 %v1873_v4, 16  ;;  %v1858_v54 = vld [vmem:[%s2452_s18 + $0x40] sm:$0xe] }
  0x73   : > { %v892_v49 = vpack.c.b16 %v885_v53, %v884_v3  ;;  %v666_v52 = vshll.u32 %v1874_v7, 16  ;;  %v872_v60 = vunpack.c.l.b16 %v633_v8  ;;  %v873_v26 = vunpack.c.l.b16 %v647_v58  ;;  %v1857_v53 = vld [vmem:[%s2452_s18 + $0x38] sm:$0xe]  ;;  %v2249_v8 = vld [vmem:[%s2452_s18 + $0x44] sm:$0xf0] }
  0x74   : > { %v534_v16 = vsel %vm2476_vm2, %v1863_v5, %v533_v6  ;;  %v538_v56 = vsel %vm2476_vm2, %v1864_v20, %v537_v37  ;;  %v651_v18 = vrot.slane %v649_v38, 4  ;;  %v654_v23 = vrot.slane %v652_v11, 5  ;;  %v1888_v37 = vld [vmem:[%s2452_s18 + $0x38] sm:$0xe]  ;;  %v1890_v38 = vld [vmem:[%s2452_s18 + $0x48] sm:$0xe] }
  0x75   : > { %v832_v22 = vunpack.c.l.b16 %v534_v16  ;;  %v833_v12 = vunpack.c.l.b16 %v538_v56  ;;  %v668_v15 = vrot.slane %v666_v52, 5  ;;  %v1893_v32 = vrot.slane %v1885_v21, 9 }
  0x76   : > { %v878_v41 = vpack.c.b16 %v873_v26, %v872_v60  ;;  %v710_v42 = vrot.slane %v2925_v33, 5  ;;  %v1894_v43 = vrot.slane %v1886_v39, 9  ;;  %v714_v10 = vrot.slane %v2928_v36, 5 }
  0x77   : > { %v3008_v40 = vpack.c.b16 %v833_v12, %v832_v22  ;;  %v655_v35 = vor.u32 %v654_v23, %v651_v18  ;;  %v658_v44 = vshll.u32 %v3003_v30, 16  ;;  %v1865_v55 = vrot.slane %v1857_v53, 9 }
  0x78   : > { %v711_v2 = vsel %vm2476_vm2, %v1893_v32, %v710_v42  ;;  %v715_v33 = vsel %vm2476_vm2, %v1894_v43, %v714_v10  ;;  %v541_v57 = vrot.slane %v2888_v50, 5  ;;  %v1866_v34 = vrot.slane %v1858_v54, 9  ;;  %v1887_v50 = vld [vmem:[%s2452_s18 + $0x30] sm:$0xe] }
  0x79   : > { %v660_v36 = vrot.slane %v658_v44, 5  ;;  %v886_v28 = vunpack.c.l.b16 %v711_v2  ;;  %v887_v51 = vunpack.c.l.b16 %v715_v33  ;;  %v1895_v11 = vrot.slane %v1887_v50, 9 }
  0x7a   : > { %v542_v63 = vsel %vm2476_vm2, %v1865_v55, %v541_v57  ;;  %v1896_v52 = vrot.slane %v1888_v37, 9  ;;  %v722_v60 = vrot.slane %v2976_v47, 5  ;;  %v726_v26 = vrot.slane %v3003_v30, 5 }
  0x7b   : > { %1531 = vmatmul.bf16.gmra.mxu1 %v767_v24  ;;  %1618 = vmatmul.bf16.gmra.mxu0 %v823_v29  ;;  %v663_v24 = vshrl.u32 %v1874_v7, 16  ;;  %v1942_v29 = vor.u32 %v2248_v62, %v1941_v61  ;;  %v1945_v61 = vld [vmem:[%s2452_s18 + $0x40] sm:$0xf]  ;;  %v893_v58 = vpack.c.b16 %v887_v51, %v886_v28  ;;  %v834_v5 = vunpack.c.l.b16 %v542_v63 }
  0x7c   : > { %v1946_v20 = vor.u32 %v2249_v8, %v1945_v61  ;;  %v1889_v62 = vld [vmem:[%s2452_s18 + $0x40] sm:$0xe]  ;;  %v730_v21 = vrot.slane %v3006_v31, 5  ;;  %v1898_v56 = vrot.slane %v1890_v38, 9 }
  0x7d   : > { %1695 = vmatmul.bf16.gmra.mxu3 %v877_v48  ;;  %v665_v14 = vrot.slane %v663_v24, 4  ;;  %v672_v48 = vshll.u32 %v3006_v31, 16  ;;  %v718_v24 = vrot.slane %v2973_v27, 5  ;;  %v1897_v16 = vrot.slane %v1889_v62, 9 }
  0x7e   : > { %1666 = vmatmul.bf16.gmra.mxu2 %v1938_v45  ;;  %v731_v27 = vsel %vm2476_vm2, %v1898_v56, %v730_v21 }
  0x7f   : > { %v669_v45 = vor.u32 %v668_v15, %v665_v14  ;;  %v674_v9 = vrot.slane %v672_v48, 5  ;;  %v719_v39 = vsel %vm2476_vm2, %v1895_v11, %v718_v24  ;;  %v727_v22 = vsel %vm2476_vm2, %v1897_v16, %v726_v26 }
  0x80   : > { %v888_v47 = vunpack.c.l.b16 %v719_v39  ;;  %v890_v18 = vunpack.c.l.b16 %v727_v22  ;;  %v891_v23 = vunpack.c.l.b16 %v731_v27 }
  0x81   : > { %v670_v13 = vrot.slane %v669_v45, 4 }
  0x82   : > { %v895_v14 = vpack.c.b16 %v891_v23, %v890_v18 }
  0x83   : > { %v675_v3 = vsel %vm2617_vm5, %v670_v13, %v674_v9 }
  0x84   : > { %v875_v4 = vunpack.c.l.b16 %v675_v3 }
  0x8b   : > { %1632 = vmatmul.bf16.vlgmr.msra.gmra.mxu1 %v2919_v19  ;;  %1719 = vmatmul.bf16.vlgmr.msra.gmra.mxu0 %v892_v49  ;;  %v656_v19 = vrot.slane %v655_v35, 4  ;;  %v545_v49 = vrot.slane %v2901_v0, 5 }
  0x8d   : > { %1700 = vmatmul.bf16.gmra.mxu3 %v878_v41  ;;  %v661_v46 = vsel %vm2617_vm5, %v656_v19, %v660_v36  ;;  %v546_v59 = vsel %vm2476_vm2, %v1866_v34, %v545_v49 }
  0x8e   : > { %1671 = vmatmul.bf16.gmra.mxu2 %v1942_v29  ;;  %v874_v1 = vunpack.c.l.b16 %v661_v46  ;;  %v835_v6 = vunpack.c.l.b16 %v546_v59 }
  0x90   : > { %v839_v7 = vpack.c.b16 %v835_v6, %v834_v5  ;;  %v879_v0 = vpack.c.b16 %v875_v4, %v874_v1 }
  0x9b   : > { %1637 = vmatmul.bf16.gmra.mxu1 %v2967_v17  ;;  %1724 = vmatmul.bf16.gmra.mxu0 %v893_v58  ;;  %v723_v17 = vsel %vm2476_vm2, %v1896_v52, %v722_v60 }
  0x9c   : > { %v889_v12 = vunpack.c.l.b16 %v723_v17 }
  0x9d   : > { %1705 = vmatmul.bf16.gmra.mxu3 %v879_v0 }
  0x9e   : > { %1676 = vmatmul.bf16.gmra.mxu2 %v1946_v20  ;;  %v894_v29 = vpack.c.b16 %v889_v12, %v888_v47 }
  0xa8   : > { %v1498_v30 = vpop.f32.mrf.mxu1  ;;  %v1488_v31 = vpop.f32.mrf.mxu0 }
  0xab   : > { %1642 = vmatmul.bf16.gmra.mxu1 %v3008_v40  ;;  %1729 = vmatmul.bf16.gmra.mxu0 %v894_v29  ;;  %v2370_v40 = vld [vmem:[%s3102_s2] ss:$0 sm:$0xff] }
  0xac   : > { %v1489_v33 = vadd.f32 %v2370_v40, %v1488_v31  ;;  %v1499_v11 = vadd.f32 %v2370_v40, %v1498_v30 }
  0xae   : > { %1734 = vmatmul.bf16.vlgmr.msra.gmra.mxu2 %v895_v14 }
  0xb0   : > { %v1500_v32 = vpop.f32.mrf.mxu1  ;;  %v1490_v41 = vpop.f32.mrf.mxu0 }
  0xb1   : > { %v1546_v15 = vpop.f32.mrf.mxu2  ;;  %v1575_v42 = vpop.f32.mrf.mxu3  ;;  %v1491_v3 = vadd.f32 %v2370_v40, %v1490_v41  ;;  %v1501_v39 = vadd.f32 %v2370_v40, %v1500_v32 }
  0xb8   : > { %v1503_v10 = vpop.f32.mrf.mxu1  ;;  %v1493_v25 = vpop.f32.mrf.mxu0 }
  0xb9   : > { %v1548_v43 = vpop.f32.mrf.mxu2  ;;  %v3051_v35 = vpop.f32.mrf.mxu3  ;;  %v1494_v8 = vadd.f32 %v2370_v40, %v1493_v25  ;;  %v1504_v29 = vadd.f32 %v2370_v40, %v1503_v10 }
  0xbb   : > { %1647 = vmatmul.bf16.gmra.mxu1 %v839_v7 }
  0xc0   : > { %v1505_v45 = vpop.f32.mrf.mxu1  ;;  %v1495_v48 = vpop.f32.mrf.mxu0 }
  0xc1   : > { %v1551_v44 = vpop.f32.mrf.mxu2  ;;  %v1580_v2 = vpop.f32.mrf.mxu3  ;;  %v1496_v6 = vadd.f32 %v2370_v40, %v1495_v48  ;;  %v1506_v32 = vadd.f32 %v2370_v40, %v1505_v45 }
  0xc8   : > { %v1517_v36 = vpop.f32.mrf.mxu1  ;;  %v1604_v13 = vpop.f32.mrf.mxu0 }
  0xc9   : > { %v1553_v19 = vpop.f32.mrf.mxu2  ;;  %v1518_v9 = vadd.f32 %v1517_v36, %v1489_v33  ;;  %v3056_v51 = vpop.f32.mrf.mxu3 }
  0xcb   : > { %v1547_v28 = vadd.f32 %v1546_v15, %v1518_v9 }
  0xcd   : > { %v1576_v46 = vadd.f32 %v1575_v42, %v1547_v28 }
  0xcf   : > { %v1605_v53 = vadd.f32 %v1604_v13, %v1576_v46 }
  0xd0   : > { %v1519_v55 = vpop.f32.mrf.mxu1  ;;  %v1606_v57 = vpop.f32.mrf.mxu0 }
  0xd1   : > { %v1556_v54 = vpop.f32.mrf.mxu2  ;;  %v1520_v34 = vadd.f32 %v1519_v55, %v1491_v3  ;;  %v1585_v61 = vpop.f32.mrf.mxu3 }
  0xd3   : > { %v1549_v49 = vadd.f32 %v1548_v43, %v1520_v34 }
  0xd5   : > { %v1578_v46 = vadd.f32 %v3051_v35, %v1549_v49 }
  0xd8   : > { %v1522_v63 = vpop.f32.mrf.mxu1  ;;  %v1609_v59 = vpop.f32.mrf.mxu0 }
  0xd9   : > { %v1558_v58 = vpop.f32.mrf.mxu2  ;;  %v1523_v1 = vadd.f32 %v1522_v63, %v1494_v8  ;;  %v3058_v37 = vpop.f32.mrf.mxu3 }
  0xdb   : > { %v1552_v4 = vadd.f32 %v1551_v44, %v1523_v1 }
  0xdd   : > { %v1581_v5 = vadd.f32 %v1580_v2, %v1552_v4 }
  0xdf   : > { %v1610_v20 = vadd.f32 %v1609_v59, %v1581_v5 }
  0xe0   : > { %v1524_v7 = vpop.f32.mrf.mxu1  ;;  %v3060_v62 = vpop.f32.mrf.mxu0 }
  0xe1   : > { %v1561_v50 = vpop.f32.mrf.mxu2  ;;  %v1525_v38 = vadd.f32 %v1524_v7, %v1496_v6  ;;  %v1590_v21 = vpop.f32.mrf.mxu3 }
  0xe3   : > { %v1554_v0 = vadd.f32 %v1553_v19, %v1525_v38 }
  0xe5   : > { %v1583_v35 = vadd.f32 %v3056_v51, %v1554_v0 }
  0xe8   : > { %v1527_v52 = vpop.f32.mrf.mxu1  ;;  %v1614_v60 = vpop.f32.mrf.mxu0 }
  0xe9   : > { %v1563_v24 = vpop.f32.mrf.mxu2  ;;  %v1528_v26 = vadd.f32 %v1527_v52, %v1499_v11  ;;  %v3068_v23 = vpop.f32.mrf.mxu3  ;;  %v1612_v11 = vadd.f32 %v3060_v62, %v1583_v35 }
  0xeb   : > { %v1557_v16 = vadd.f32 %v1556_v54, %v1528_v26  ;;  %v1607_v54 = vadd.f32 %v1606_v57, %v1578_v46 }
  0xed   : > { %v1586_v56 = vadd.f32 %v1585_v61, %v1557_v16 }
  0xef   : > { %v3062_v17 = vadd.f32 %v1614_v60, %v1586_v56 }
  0xf0   : > { %v1529_v27 = vpop.f32.mrf.mxu1  ;;  %v3064_v47 = vpop.f32.mrf.mxu0 }
  0xf1   : > { %v1662_v22 = vpop.f32.mrf.mxu2  ;;  %v1530_v12 = vadd.f32 %v1529_v27, %v1501_v39  ;;  %v1691_v43 = vpop.f32.mrf.mxu3 }
  0xf3   : > { %v3066_v18 = vadd.f32 %v1558_v58, %v1530_v12 }
  0xf5   : > { %v1588_v62 = vadd.f32 %v3058_v37, %v3066_v18 }
  0xf8   : > { %v1532_v31 = vpop.f32.mrf.mxu1  ;;  %v1619_v14 = vpop.f32.mrf.mxu0 }
  0xf9   : > { %v1664_v30 = vpop.f32.mrf.mxu2  ;;  %v1533_v15 = vadd.f32 %v1532_v31, %v1504_v29  ;;  %v1693_v36 = vpop.f32.mrf.mxu3 }
  0xfb   : > { %v1562_v41 = vadd.f32 %v1561_v50, %v1533_v15 }
  0xfd   : > { %v1591_v42 = vadd.f32 %v1590_v21, %v1562_v41 }
  0xff   : > { %v3070_v25 = vadd.f32 %v1619_v14, %v1591_v42  ;;  %v1617_v14 = vadd.f32 %v3064_v47, %v1588_v62 }
 0x100   : > { %v1534_v48 = vpop.f32.mrf.mxu1  ;;  %v3072_v2 = vpop.f32.mrf.mxu0 }
 0x101   : > { %v1667_v44 = vpop.f32.mrf.mxu2  ;;  %v1535_v33 = vadd.f32 %v1534_v48, %v1506_v32  ;;  %v1696_v61 = vpop.f32.mrf.mxu3 }
 0x103   : > { %v3074_v19 = vadd.f32 %v1563_v24, %v1535_v33 }
 0x105   : > { %v1593_v47 = vadd.f32 %v3068_v23, %v3074_v19 }
 0x108   : > { %v1633_v13 = vpop.f32.mrf.mxu1  ;;  %v1720_v10 = vpop.f32.mrf.mxu0 }
 0x109   : > { %v1634_v9 = vadd.f32 %v1633_v13, %v1605_v53  ;;  %v1669_v28 = vpop.f32.mrf.mxu2  ;;  %v1698_v49 = vpop.f32.mrf.mxu3 }
 0x10b   : > { %v1663_v3 = vadd.f32 %v1662_v22, %v1634_v9 }
 0x10d   : > { %v1692_v55 = vadd.f32 %v1691_v43, %v1663_v3 }
 0x10f   : > { %v1721_v63 = vadd.f32 %v1720_v10, %v1692_v55 }
 0x110   : > { %v1635_v45 = vpop.f32.mrf.mxu1  ;;  %v1722_v40 = vpop.f32.mrf.mxu0 }
 0x111   : > { %v1636_v34 = vadd.f32 %v1635_v45, %v1607_v54  ;;  %v1672_v58 = vpop.f32.mrf.mxu2  ;;  %v1740_v6 = vmax.f32 %v1721_v63, 0.0  ;;  %v1701_v56 = vpop.f32.mrf.mxu3  ;;  %v1622_v54 = vadd.f32 %v3072_v2, %v1593_v47 }
 0x113   : > { %v1665_v8 = vadd.f32 %v1664_v30, %v1636_v34 }
 0x115   : > { %v1694_v59 = vadd.f32 %v1693_v36, %v1665_v8 }
 0x117   : > { %v1723_v1 = vadd.f32 %v1722_v40, %v1694_v59 }
 0x118   : > { %v1638_v4 = vpop.f32.mrf.mxu1  ;;  %v1725_v5 = vpop.f32.mrf.mxu0 }
 0x119   : > { %v1741_v53 = vmax.f32 %v1723_v1, 0.0  ;;  %v1639_v50 = vadd.f32 %v1638_v4, %v1610_v20  ;;  %v1674_v38 = vpop.f32.mrf.mxu2  ;;  %v1703_v15 = vpop.f32.mrf.mxu3 }
 0x11b   : > { %v2325_v57 = vpack.c.bf16 %v1741_v53, %v1740_v6  ;;  %v1668_v7 = vadd.f32 %v1667_v44, %v1639_v50 }
 0x11d   : > { %2326 = vst [vmem:[%s3081_s21] sm:$0xff] %v2325_v57   ;;  %v1697_v60 = vadd.f32 %v1696_v61, %v1668_v7 }
 0x11f   : > { %v1726_v21 = vadd.f32 %v1725_v5, %v1697_v60 }
 0x120   : > { %v1640_v24 = vpop.f32.mrf.mxu1  ;;  %v1727_v52 = vpop.f32.mrf.mxu0 }
 0x121   : > { %v1641_v20 = vadd.f32 %v1640_v24, %v1612_v11  ;;  %v1677_v22 = vpop.f32.mrf.mxu2  ;;  %v1742_v51 = vmax.f32 %v1726_v21, 0.0  ;;  %v1706_v18 = vpop.f32.mrf.mxu3 }
 0x123   : > { %v1670_v26 = vadd.f32 %v1669_v28, %v1641_v20 }
 0x125   : > { %v1699_v16 = vadd.f32 %v1698_v49, %v1670_v26 }
 0x127   : > { %v1728_v39 = vadd.f32 %v1727_v52, %v1699_v16 }
 0x128   : > { %v1643_v27 = vpop.f32.mrf.mxu1  ;;  %v1730_v29 = vpop.f32.mrf.mxu0 }
 0x129   : > { %v1743_v0 = vmax.f32 %v1728_v39, 0.0  ;;  %v1644_v12 = vadd.f32 %v1643_v27, %v3062_v17  ;;  %v1679_v32 = vpop.f32.mrf.mxu2  ;;  %v1708_v61 = vpop.f32.mrf.mxu3 }
 0x12b   : > { %v2330_v30 = vpack.c.bf16 %v1743_v0, %v1742_v51  ;;  %v1673_v31 = vadd.f32 %v1672_v58, %v1644_v12 }
 0x12d   : > { %2342 = vst [vmem:[%s3081_s21 + $0x8] sm:$0xff] %v2330_v30   ;;  %v1702_v42 = vadd.f32 %v1701_v56, %v1673_v31 }
 0x12f   : > { %v1731_v33 = vadd.f32 %v1730_v29, %v1702_v42 }
 0x130   : > { %v1645_v41 = vpop.f32.mrf.mxu1  ;;  %v1732_v48 = vpop.f32.mrf.mxu0 }
 0x131   : > { %v1646_v43 = vadd.f32 %v1645_v41, %v1617_v14  ;;  %v1744_v10 = vmax.f32 %v1731_v33, 0.0  ;;  %v1735_v46 = vpop.f32.mrf.mxu2 }
 0x133   : > { %v1675_v44 = vadd.f32 %v1674_v38, %v1646_v43 }
 0x135   : > { %v1704_v36 = vadd.f32 %v1703_v15, %v1675_v44 }
 0x137   : > { %v1733_v17 = vadd.f32 %v1732_v48, %v1704_v36 }
 0x138   : > { %v1648_v13 = vpop.f32.mrf.mxu1 }
 0x139   : > { %v1745_v9 = vmax.f32 %v1733_v17, 0.0  ;;  %v1649_v37 = vadd.f32 %v1648_v13, %v3070_v25  ;;  %v1737_v63 = vpop.f32.mrf.mxu2 }
 0x13b   : > { %v2335_v28 = vpack.c.bf16 %v1745_v9, %v1744_v10  ;;  %v1678_v3 = vadd.f32 %v1677_v22, %v1649_v37 }
 0x13d   : > { %2343 = vst [vmem:[%s3081_s21 + $0x10] sm:$0xff] %v2335_v28   ;;  %v1707_v40 = vadd.f32 %v1706_v18, %v1678_v3 }
 0x13f   : > { %v1736_v8 = vadd.f32 %v1735_v46, %v1707_v40 }
 0x140   : > { %v1650_v45 = vpop.f32.mrf.mxu1 }
 0x141   : > { %v1651_v55 = vadd.f32 %v1650_v45, %v1622_v54  ;;  %v1746_v59 = vmax.f32 %v1736_v8, 0.0 }
 0x143   : > { %v1680_v34 = vadd.f32 %v1679_v32, %v1651_v55 }
 0x145   : > { %v1709_v58 = vadd.f32 %v1708_v61, %v1680_v34 }
 0x147   : > { %v1738_v25 = vadd.f32 %v1737_v63, %v1709_v58 }
 0x149   : > { %v1747_v1 = vmax.f32 %v1738_v25, 0.0 }
 0x14b   : > { %v2340_v4 = vpack.c.bf16 %v1747_v1, %v1746_v59 }
 0x14d   : > { %2344 = vst [vmem:[%s3081_s21 + $0x18] sm:$0xff] %v2340_v4  }
 0x14e PF: > { %s13_s12 = sadd.s32 1, %s2377_s12  }
 0x14f   : > { %p10_p4 = scmp.ge.s32.totalorder %s13_s12, 6  }
 0x151   :  { %12 = sbr.rel (!%p10_p4) target bundleno = 1 (0x1), region = 64 }

// kernel: _lambda_.6
= control target key start
LH: loop header
LB: loop body
LE: loop exit
PB: predicated region body
PF: predicated region fallthrough
CT: control target
= control target key end

     0   :  { %s3964_s12 = smov 0   ;;  %s5765_s0 = inlined_call_operand.vmem [shape: bf16[4,18,18,8], index: 0, kind: input, shape index: {}]   ;;  %s5766_s1 = inlined_call_operand.vmem [shape: bf16[72,128], index: 1, kind: input, shape index: {}]   ;;  %s5767_s2 = inlined_call_operand.vmem [shape: f32[1,128], index: 2, kind: input, shape index: {}]   ;;  %s5768_s3 = inlined_call_operand.vmem [shape: bf16[4,16,16,128], index: 3, kind: output, shape index: {}]  }
   0x1 LB: > { %s3337_s13 = sadd.s32 4294967295, %s3934_s12   ;;  %p3341_p0 = scmp.ge.s32.totalorder %s3934_s12, 1  ;;  %s3934_s12 = sphi %s3964_s12, %s13_s12  }
   0x2   : > { %p137_p1 = scmp.lt.s32.totalorder %s3934_s12, 5 }
   0x4   : > { %p138_p2 = pnand %p3341_p0, %p137_p1 }
   0x5   : > { %p161_p3 = scmp.lt.s32.totalorder (!%p138_p2), %s3337_s13, 3  ;;  %s3936_s18 = smov (!%p138_p2), 8  }
   0x6   : > { %141 = sbr.rel (%p138_p2) target bundleno = 658 (0x292), region = 32  ;;  %s3937_s19 = smov (!%p138_p2), 16  }
   0x7   : > { %s3938_s20 = smov (!%p138_p2), 24   ;;  %s3939_s21 = smov (!%p138_p2), 32  }
   0x8   : > { %s3940_s22 = smov (!%p138_p2), 48   ;;  %s3941_s23 = smov (!%p138_p2), 40  }
   0x9   : > { %s3942_s24 = smov (!%p138_p2), 56   ;;  %s3943_s25 = smov (!%p138_p2), 64  }
   0xb   : > { %s5774_s13 = smov (!%p161_p3, %s3337_s13), 3  ;;  %vm221_vm0 = vsmask.f32 3328  ;;  %vm222_vm1 = vsmask.f32 7440  ;;  %vm672_vm3 = vcmask 1042432  }
   0xc   : > { %s3910_s14 = smul.u32 216, %s5774_s13  ;;  %vm4006_vm2 = vmor %vm221_vm0, %vm222_vm1  ;;  %vm673_vm4 = vcmask 1046532   ;;  %vm2741_vm6 = vcmask 64512   ;;  %vm2790_vm7 = vcmask 130048   ;;  %vm2823_vm8 = vcmask 195584   ;;  %s3747_s11 = sshll.u32 %s5774_s13, 7 }
   0xd   : > { %vm4208_vm5 = vmor %vm672_vm3, %vm673_vm4  ;;  %vm2856_vm9 = vcmask 261120   ;;  %vm3093_vm10 = vcmask 1043456   ;;  %vm2889_vm11 = vcmask 326656   ;;  %vm2922_vm12 = vcmask 392192   ;;  %s5686_s16 = scalar_lea.vmem %s5768_s3, %s3747_s11 }
   0xe   : > { %s3978_s17 = scalar_lea.vmem %s5765_s0, %s3910_s14  ;;  %vm2955_vm13 = vcmask 457728   ;;  %vm2988_vm14 = vcmask 523264   ;;  %vm3060_vm15 = vcmask 588800  }
   0xf   : > { %v181_v0 = vld [vmem:[%s3978_s17 + $0x30] sm:$0xf]  ;;  %v3982_v1 = vld [vmem:[%s3978_s17 + $0x34] sm:$0xf]  ;;  %v3985_v2 = vld [vmem:[%s3978_s17 + $0x38] sm:$0x1] }
  0x10   : > { %v321_v3 = vshrl.u32 %v181_v0, 16  ;;  %v324_v4 = vshll.u32 %v181_v0, 16  ;;  %v330_v5 = vshll.u32 %v3982_v1, 16  ;;  %v334_v6 = vshrl.u32 %v3982_v1, 16  ;;  %v177_v7 = vld [vmem:[%s3978_s17 + $0x18] sm:$0xf] }
  0x11   : > { %v340_v8 = vshll.u32 %v3985_v2, 16  ;;  %v3992_v9 = vld [vmem:[%s3978_s17 + $0x1c] sm:$0xf]  ;;  %v3995_v10 = vld [vmem:[%s3978_s17 + $0x20] sm:$0x1]  ;;  %v273_v11 = vshrl.u32 %v177_v7, 16 }
  0x12   : > { %v323_v12 = vrot.slane %v321_v3, 4  ;;  %v326_v13 = vrot.slane %v324_v4, 5  ;;  %v332_v14 = vrot.slane %v330_v5, 5  ;;  %v336_v15 = vrot.slane %v334_v6, 4  ;;  %v173_v16 = vld [vmem:[%s3978_s17] sm:$0xf] }
  0x13   : > { %v342_v17 = vrot.slane %v340_v8, 5  ;;  %v275_v18 = vrot.slane %v273_v11, 4  ;;  %v276_v19 = vshll.u32 %v177_v7, 16  ;;  %v282_v20 = vshll.u32 %v3992_v9, 16  ;;  %v4002_v25 = vld [vmem:[%s3978_s17 + $0x4] sm:$0xf] }
  0x14   : > { %v327_v21 = vor.u32 %v326_v13, %v323_v12  ;;  %v337_v22 = vor.u32 %v336_v15, %v332_v14  ;;  %v286_v23 = vshrl.u32 %v3992_v9, 16  ;;  %v292_v24 = vshll.u32 %v3995_v10, 16  ;;  %v4011_v36 = vld [vmem:[%s3978_s17 + $0x8] sm:$0x1]  ;;  %v183_v44 = vld [vmem:[%s3978_s17 + $0x3c] sm:$0xf] }
  0x15   : > { %v278_v27 = vrot.slane %v276_v19, 5  ;;  %v284_v28 = vrot.slane %v282_v20, 5  ;;  %v225_v29 = vshrl.u32 %v173_v16, 16  ;;  %v228_v30 = vshll.u32 %v173_v16, 16  ;;  %v4024_v56 = vld [vmem:[%s3978_s17 + $0x40] sm:$0xf] }
  0x16   : > { %v328_v31 = vrot.slane %v327_v21, 4  ;;  %v338_v32 = vrot.slane %v337_v22, 4  ;;  %v288_v33 = vrot.slane %v286_v23, 4  ;;  %v294_v34 = vrot.slane %v292_v24, 5  ;;  %v4029_v62 = vld [vmem:[%s3978_s17 + $0x44] sm:$0x1] }
  0x17   : > { %v279_v35 = vor.u32 %v278_v27, %v275_v18  ;;  %v227_v37 = vrot.slane %v225_v29, 4  ;;  %v230_v38 = vrot.slane %v228_v30, 5  ;;  %v234_v39 = vshll.u32 %v4002_v25, 16  ;;  %v179_v63 = vld [vmem:[%s3978_s17 + $0x24] sm:$0xf] }
  0x18   : > { %v333_v40 = vsel %vm4006_vm2, %v328_v31, %v332_v14  ;;  %v343_v41 = vsel %vm4006_vm2, %v338_v32, %v342_v17  ;;  %v289_v42 = vor.u32 %v288_v33, %v284_v28  ;;  %v238_v43 = vshrl.u32 %v4002_v25, 16  ;;  %v4038_v12 = vld [vmem:[%s3978_s17 + $0x28] sm:$0xf]  ;;  %v4042_v16 = vld [vmem:[%s3978_s17 + $0x2c] sm:$0x1] }
  0x19   : > { %v2077_v45 = vunpack.c.l.b16 %v333_v40  ;;  %v2078_v46 = vunpack.c.l.b16 %v343_v41  ;;  %v280_v47 = vrot.slane %v279_v35, 4  ;;  %v231_v48 = vor.u32 %v230_v38, %v227_v37  ;;  %v175_v22 = vld [vmem:[%s3978_s17 + $0xc] sm:$0xf]  ;;  %v4052_v37 = vld [vmem:[%s3978_s17 + $0x10] sm:$0xf] }
  0x1a   : > { %v290_v49 = vrot.slane %v289_v42, 4  ;;  %v236_v50 = vrot.slane %v234_v39, 5  ;;  %v240_v51 = vrot.slane %v238_v43, 4  ;;  %v244_v52 = vshll.u32 %v4011_v36, 16  ;;  %v4055_v43 = vld [vmem:[%s3978_s17 + $0x14] sm:$0x1] }
  0x1b   : > { %v2105_v53 = vpack.c.b16 %v2078_v46, %v2077_v45  ;;  %v285_v54 = vsel %vm4006_vm2, %v280_v47, %v284_v28  ;;  %v232_v55 = vrot.slane %v231_v48, 4  ;;  %v345_v57 = vshrl.u32 %v183_v44, 16  ;;  %v189_v48 = vld [vmem:[%s3978_s17 + $0x60] sm:$0xf] }
  0x1c   : > { %v295_v58 = vsel %vm4006_vm2, %v290_v49, %v294_v34  ;;  %v2073_v59 = vunpack.c.l.b16 %v285_v54  ;;  %v241_v60 = vor.u32 %v240_v51, %v236_v50  ;;  %v246_v61 = vrot.slane %v244_v52, 5 }
  0x1d   : > { %2125 = vrot.lane.b32.xlu2 %v2105_v53, %s3936_s18  ;;  %v2074_v0 = vunpack.c.l.b16 %v295_v58  ;;  %v237_v3 = vsel %vm4006_vm2, %v232_v55, %v236_v50  ;;  %v347_v4 = vrot.slane %v345_v57, 4  ;;  %v348_v5 = vshll.u32 %v183_v44, 16 }
  0x1e   : > { %v242_v6 = vrot.slane %v241_v60, 4  ;;  %v2069_v7 = vunpack.c.l.b16 %v237_v3  ;;  %v354_v8 = vshll.u32 %v4024_v56, 16  ;;  %v358_v11 = vshrl.u32 %v4024_v56, 16 }
  0x1f   : > { %v2103_v13 = vpack.c.b16 %v2074_v0, %v2073_v59  ;;  %v350_v14 = vrot.slane %v348_v5, 5  ;;  %v364_v15 = vshll.u32 %v4029_v62, 16  ;;  %v297_v17 = vshrl.u32 %v179_v63, 16 }
  0x20   : > { %v247_v18 = vsel %vm4006_vm2, %v242_v6, %v246_v61  ;;  %v356_v19 = vrot.slane %v354_v8, 5  ;;  %v360_v20 = vrot.slane %v358_v11, 4  ;;  %v300_v21 = vshll.u32 %v179_v63, 16  ;;  %v4069_v61 = vld [vmem:[%s3978_s17 + $0x64] sm:$0xf] }
  0x21   : > { %2121 = vrot.lane.b32.xlu1 %v2103_v13, %s3936_s18  ;;  %v2070_v23 = vunpack.c.l.b16 %v247_v18  ;;  %v351_v24 = vor.u32 %v350_v14, %v347_v4  ;;  %v366_v27 = vrot.slane %v364_v15, 5  ;;  %v299_v28 = vrot.slane %v297_v17, 4  ;;  %v4072_v6 = vld [vmem:[%s3978_s17 + $0x68] sm:$0x1] }
  0x22   : > { %v361_v29 = vor.u32 %v360_v20, %v356_v19  ;;  %v302_v30 = vrot.slane %v300_v21, 5  ;;  %v306_v31 = vshll.u32 %v4038_v12, 16  ;;  %v310_v32 = vshrl.u32 %v4038_v12, 16 }
  0x23   : > { %v2101_v33 = vpack.c.b16 %v2070_v23, %v2069_v7  ;;  %v352_v34 = vrot.slane %v351_v24, 4  ;;  %v316_v35 = vshll.u32 %v4042_v16, 16  ;;  %v249_v38 = vshrl.u32 %v175_v22, 16  ;;  %v187_v7 = vld [vmem:[%s3978_s17 + $0x54] sm:$0xf] }
  0x24   : > { %v362_v39 = vrot.slane %v361_v29, 4  ;;  %v303_v40 = vor.u32 %v302_v30, %v299_v28  ;;  %v308_v41 = vrot.slane %v306_v31, 5  ;;  %v312_v42 = vrot.slane %v310_v32, 4  ;;  %v4082_v23 = vld [vmem:[%s3978_s17 + $0x58] sm:$0xf] }
  0x25   : > { %2117 = vrot.lane.b32.xlu0 %v2101_v33, %s3936_s18  ;;  %v357_v44 = vsel %vm4006_vm2, %v352_v34, %v356_v19  ;;  %v318_v45 = vrot.slane %v316_v35, 5  ;;  %v251_v46 = vrot.slane %v249_v38, 4  ;;  %v252_v47 = vshll.u32 %v175_v22, 16  ;;  %v4087_v31 = vld [vmem:[%s3978_s17 + $0x5c] sm:$0x1] }
  0x26   : > { %v367_v49 = vsel %vm4006_vm2, %v362_v39, %v366_v27  ;;  %v2079_v50 = vunpack.c.l.b16 %v357_v44  ;;  %v304_v51 = vrot.slane %v303_v40, 4  ;;  %v313_v52 = vor.u32 %v312_v42, %v308_v41  ;;  %v185_v42 = vld [vmem:[%s3978_s17 + $0x48] sm:$0xf] }
  0x27   : > { %v2080_v53 = vunpack.c.l.b16 %v367_v49  ;;  %v254_v54 = vrot.slane %v252_v47, 5  ;;  %v258_v55 = vshll.u32 %v4052_v37, 16  ;;  %v262_v57 = vshrl.u32 %v4052_v37, 16 }
  0x28   : > { %v309_v58 = vsel %vm4006_vm2, %v304_v51, %v308_v41  ;;  %v314_v59 = vrot.slane %v313_v52, 4  ;;  %v268_v60 = vshll.u32 %v4055_v43, 16  ;;  %v417_v63 = vshrl.u32 %v189_v48, 16 }
  0x29   : > { %v2106_v0 = vpack.c.b16 %v2080_v53, %v2079_v50  ;;  %v2075_v3 = vunpack.c.l.b16 %v309_v58  ;;  %v255_v4 = vor.u32 %v254_v54, %v251_v46  ;;  %v260_v5 = vrot.slane %v258_v55, 5  ;;  %v4097_v55 = vld [vmem:[%s3978_s17 + $0x4c] sm:$0xf] }
  0x2a   : > { %v319_v8 = vsel %vm4006_vm2, %v314_v59, %v318_v45  ;;  %v264_v11 = vrot.slane %v262_v57, 4  ;;  %v270_v13 = vrot.slane %v268_v60, 5  ;;  %v419_v14 = vrot.slane %v417_v63, 4  ;;  %v4102_v63 = vld [vmem:[%s3978_s17 + $0x50] sm:$0x1] }
  0x2b   : > { %2127 = vrot.lane.b32.xlu2 %v2106_v0, %s3936_s18  ;;  %v2076_v15 = vunpack.c.l.b16 %v319_v8  ;;  %v256_v17 = vrot.slane %v255_v4, 4  ;;  %v420_v18 = vshll.u32 %v189_v48, 16  ;;  %v426_v19 = vshll.u32 %v4069_v61, 16 }
  0x2c   : > { %v265_v20 = vor.u32 %v264_v11, %v260_v5  ;;  %v430_v21 = vshrl.u32 %v4069_v61, 16  ;;  %v436_v22 = vshll.u32 %v4072_v6, 16  ;;  %v393_v24 = vshrl.u32 %v187_v7, 16 }
  0x2d   : > { %v2104_v27 = vpack.c.b16 %v2076_v15, %v2075_v3  ;;  %v261_v28 = vsel %vm4006_vm2, %v256_v17, %v260_v5  ;;  %v422_v29 = vrot.slane %v420_v18, 5  ;;  %v428_v30 = vrot.slane %v426_v19, 5  ;;  %v195_v3 = vld [vmem:[%s3978_s17 + $0x84] sm:$0xf] }
  0x2e   : > { %v266_v32 = vrot.slane %v265_v20, 4  ;;  %v2071_v33 = vunpack.c.l.b16 %v261_v28  ;;  %v432_v34 = vrot.slane %v430_v21, 4  ;;  %v438_v35 = vrot.slane %v436_v22, 5  ;;  %v4114_v28 = vld [vmem:[%s3978_s17 + $0x88] sm:$0xf] }
  0x2f   : > { %2123 = vrot.lane.b32.xlu1 %v2104_v27, %s3936_s18  ;;  %v423_v38 = vor.u32 %v422_v29, %v419_v14  ;;  %v395_v39 = vrot.slane %v393_v24, 4  ;;  %v396_v40 = vshll.u32 %v187_v7, 16  ;;  %v402_v41 = vshll.u32 %v4082_v23, 16  ;;  %v4117_v29 = vld [vmem:[%s3978_s17 + $0x8c] sm:$0x1] }
  0x30   : > { %v271_v44 = vsel %vm4006_vm2, %v266_v32, %v270_v13  ;;  %v433_v45 = vor.u32 %v432_v34, %v428_v30  ;;  %v406_v46 = vshrl.u32 %v4082_v23, 16  ;;  %v412_v47 = vshll.u32 %v4087_v31, 16 }
  0x31   : > { %v2072_v48 = vunpack.c.l.b16 %v271_v44  ;;  %v424_v49 = vrot.slane %v423_v38, 4  ;;  %v398_v50 = vrot.slane %v396_v40, 5  ;;  %v404_v51 = vrot.slane %v402_v41, 5 }
  0x32   : > { %v434_v52 = vrot.slane %v433_v45, 4  ;;  %v408_v53 = vrot.slane %v406_v46, 4  ;;  %v414_v54 = vrot.slane %v412_v47, 5  ;;  %v369_v57 = vshrl.u32 %v185_v42, 16 }
  0x33   : > { %v2102_v58 = vpack.c.b16 %v2072_v48, %v2071_v33  ;;  %v429_v59 = vsel %vm4006_vm2, %v424_v49, %v428_v30  ;;  %v399_v60 = vor.u32 %v398_v50, %v395_v39  ;;  %v372_v0 = vshll.u32 %v185_v42, 16  ;;  %v4129_v50 = vld [vmem:[%s3978_s17 + $0x7c] sm:$0xf] }
  0x34   : > { %v439_v4 = vsel %vm4006_vm2, %v434_v52, %v438_v35  ;;  %v2085_v5 = vunpack.c.l.b16 %v429_v59  ;;  %v409_v7 = vor.u32 %v408_v53, %v404_v51  ;;  %v371_v8 = vrot.slane %v369_v57, 4  ;;  %v193_v35 = vld [vmem:[%s3978_s17 + $0x78] sm:$0xf] }
  0x35   : > { %2119 = vrot.lane.b32.xlu0 %v2102_v58, %s3936_s18  ;;  %v2086_v11 = vunpack.c.l.b16 %v439_v4  ;;  %v400_v13 = vrot.slane %v399_v60, 4  ;;  %v374_v14 = vrot.slane %v372_v0, 5  ;;  %v378_v15 = vshll.u32 %v4097_v55, 16  ;;  %v4132_v58 = vld [vmem:[%s3978_s17 + $0x80] sm:$0x1] }
  0x36   : > { %v410_v17 = vrot.slane %v409_v7, 4  ;;  %v382_v18 = vshrl.u32 %v4097_v55, 16  ;;  %v388_v19 = vshll.u32 %v4102_v63, 16  ;;  %v489_v20 = vshrl.u32 %v195_v3, 16  ;;  %v191_v4 = vld [vmem:[%s3978_s17 + $0x6c] sm:$0xf] }
  0x37   : > { %v2109_v21 = vpack.c.b16 %v2086_v11, %v2085_v5  ;;  %v405_v22 = vsel %vm4006_vm2, %v400_v13, %v404_v51  ;;  %v375_v24 = vor.u32 %v374_v14, %v371_v8  ;;  %v380_v27 = vrot.slane %v378_v15, 5 }
  0x38   : > { %v415_v30 = vsel %vm4006_vm2, %v410_v17, %v414_v54  ;;  %v2083_v32 = vunpack.c.l.b16 %v405_v22  ;;  %v384_v33 = vrot.slane %v382_v18, 4  ;;  %v390_v34 = vrot.slane %v388_v19, 5 }
  0x39   : > { %2133 = vrot.lane.b32.xlu2 %v2109_v21, %s3936_s18  ;;  %v2084_v38 = vunpack.c.l.b16 %v415_v30  ;;  %v376_v39 = vrot.slane %v375_v24, 4  ;;  %v491_v40 = vrot.slane %v489_v20, 4  ;;  %v492_v41 = vshll.u32 %v195_v3, 16  ;;  %v4142_v21 = vld [vmem:[%s3978_s17 + $0x70] sm:$0xf] }
  0x3a   : > { %v385_v42 = vor.u32 %v384_v33, %v380_v27  ;;  %v498_v44 = vshll.u32 %v4114_v28, 16  ;;  %v502_v45 = vshrl.u32 %v4114_v28, 16  ;;  %v508_v46 = vshll.u32 %v4117_v29, 16  ;;  %v4147_v33 = vld [vmem:[%s3978_s17 + $0x74] sm:$0x1] }
  0x3b   : > { %v2108_v47 = vpack.c.b16 %v2084_v38, %v2083_v32  ;;  %v381_v48 = vsel %vm4006_vm2, %v376_v39, %v380_v27  ;;  %v494_v49 = vrot.slane %v492_v41, 5  ;;  %v465_v51 = vshrl.u32 %v193_v35, 16 }
  0x3c   : > { %v386_v52 = vrot.slane %v385_v42, 4  ;;  %v2081_v53 = vunpack.c.l.b16 %v381_v48  ;;  %v500_v54 = vrot.slane %v498_v44, 5  ;;  %v504_v57 = vrot.slane %v502_v45, 4 }
  0x3d   : > { %2131 = vrot.lane.b32.xlu1 %v2108_v47, %s3936_s18  ;;  %v495_v59 = vor.u32 %v494_v49, %v491_v40  ;;  %v510_v60 = vrot.slane %v508_v46, 5  ;;  %v467_v0 = vrot.slane %v465_v51, 4  ;;  %v468_v3 = vshll.u32 %v193_v35, 16 }
  0x3e   : > { %v391_v5 = vsel %vm4006_vm2, %v386_v52, %v390_v34  ;;  %v505_v7 = vor.u32 %v504_v57, %v500_v54  ;;  %v474_v8 = vshll.u32 %v4129_v50, 16  ;;  %v478_v11 = vshrl.u32 %v4129_v50, 16  ;;  %v201_v34 = vld [vmem:[%s3978_s17 + $0xa8] sm:$0xf]  ;;  %v4159_v57 = vld [vmem:[%s3978_s17 + $0xac] sm:$0xf] }
  0x3f   : > { %v2082_v13 = vunpack.c.l.b16 %v391_v5  ;;  %v496_v14 = vrot.slane %v495_v59, 4  ;;  %v470_v15 = vrot.slane %v468_v3, 5  ;;  %v484_v17 = vshll.u32 %v4132_v58, 16  ;;  %v4162_v59 = vld [vmem:[%s3978_s17 + $0xb0] sm:$0x1] }
  0x40   : > { %v506_v18 = vrot.slane %v505_v7, 4  ;;  %v476_v19 = vrot.slane %v474_v8, 5  ;;  %v480_v20 = vrot.slane %v478_v11, 4  ;;  %v441_v22 = vshrl.u32 %v191_v4, 16  ;;  %v199_v5 = vld [vmem:[%s3978_s17 + $0x9c] sm:$0xf] }
  0x41   : > { %v2107_v24 = vpack.c.b16 %v2082_v13, %v2081_v53  ;;  %v501_v27 = vsel %vm4006_vm2, %v496_v14, %v500_v54  ;;  %v471_v30 = vor.u32 %v470_v15, %v467_v0  ;;  %v486_v32 = vrot.slane %v484_v17, 5 }
  0x42   : > { %v511_v35 = vsel %vm4006_vm2, %v506_v18, %v510_v60  ;;  %v2091_v38 = vunpack.c.l.b16 %v501_v27  ;;  %v481_v39 = vor.u32 %v480_v20, %v476_v19  ;;  %v443_v40 = vrot.slane %v441_v22, 4 }
  0x43   : > { %2129 = vrot.lane.b32.xlu0 %v2107_v24, %s3936_s18  ;;  %v2092_v41 = vunpack.c.l.b16 %v511_v35  ;;  %v472_v42 = vrot.slane %v471_v30, 4  ;;  %v444_v44 = vshll.u32 %v191_v4, 16  ;;  %v450_v45 = vshll.u32 %v4142_v21, 16  ;;  %v4172_v24 = vld [vmem:[%s3978_s17 + $0xa0] sm:$0xf] }
  0x44   : > { %v482_v46 = vrot.slane %v481_v39, 4  ;;  %v454_v47 = vshrl.u32 %v4142_v21, 16  ;;  %v460_v48 = vshll.u32 %v4147_v33, 16  ;;  %v561_v49 = vshrl.u32 %v201_v34, 16 }
  0x45   : > { %v2112_v51 = vpack.c.b16 %v2092_v41, %v2091_v38  ;;  %v477_v52 = vsel %vm4006_vm2, %v472_v42, %v476_v19  ;;  %v446_v53 = vrot.slane %v444_v44, 5  ;;  %v452_v54 = vrot.slane %v450_v45, 5  ;;  %v197_v44 = vld [vmem:[%s3978_s17 + $0x90] sm:$0xf] }
  0x46   : > { %v487_v60 = vsel %vm4006_vm2, %v482_v46, %v486_v32  ;;  %v2089_v0 = vunpack.c.l.b16 %v477_v52  ;;  %v456_v3 = vrot.slane %v454_v47, 4  ;;  %v462_v4 = vrot.slane %v460_v48, 5 }
  0x47   : > { %2139 = vrot.lane.b32.xlu2 %v2112_v51, %s3936_s18  ;;  %v2090_v7 = vunpack.c.l.b16 %v487_v60  ;;  %v447_v8 = vor.u32 %v446_v53, %v443_v40  ;;  %v563_v11 = vrot.slane %v561_v49, 4  ;;  %v564_v13 = vshll.u32 %v201_v34, 16  ;;  %v4178_v40 = vld [vmem:[%s3978_s17 + $0xa4] sm:$0x1] }
  0x48   : > { %v457_v14 = vor.u32 %v456_v3, %v452_v54  ;;  %v570_v15 = vshll.u32 %v4159_v57, 16  ;;  %v574_v17 = vshrl.u32 %v4159_v57, 16  ;;  %v580_v18 = vshll.u32 %v4162_v59, 16 }
  0x49   : > { %v2111_v19 = vpack.c.b16 %v2090_v7, %v2089_v0  ;;  %v448_v20 = vrot.slane %v447_v8, 4  ;;  %v566_v22 = vrot.slane %v564_v13, 5  ;;  %v537_v27 = vshrl.u32 %v199_v5, 16  ;;  %v4192_v13 = vld [vmem:[%s3978_s17 + $0x98] sm:$0x1] }
  0x4a   : > { %v458_v30 = vrot.slane %v457_v14, 4  ;;  %v572_v32 = vrot.slane %v570_v15, 5  ;;  %v576_v35 = vrot.slane %v574_v17, 4  ;;  %v582_v38 = vrot.slane %v580_v18, 5 }
  0x4b   : > { %2137 = vrot.lane.b32.xlu1 %v2111_v19, %s3936_s18  ;;  %v453_v34 = vsel %vm4006_vm2, %v448_v20, %v452_v54  ;;  %v567_v39 = vor.u32 %v566_v22, %v563_v11  ;;  %v539_v41 = vrot.slane %v537_v27, 4  ;;  %v540_v42 = vshll.u32 %v199_v5, 16  ;;  %v4189_v11 = vld [vmem:[%s3978_s17 + $0x94] sm:$0xf] }
  0x4c   : > { %v463_v45 = vsel %vm4006_vm2, %v458_v30, %v462_v4  ;;  %v2087_v46 = vunpack.c.l.b16 %v453_v34  ;;  %v577_v47 = vor.u32 %v576_v35, %v572_v32  ;;  %v546_v48 = vshll.u32 %v4172_v24, 16  ;;  %v609_v34 = vld [vmem:[%s3978_s17 + $0xc] sm:$0xe] }
  0x4d   : > { %v2088_v49 = vunpack.c.l.b16 %v463_v45  ;;  %v568_v51 = vrot.slane %v567_v39, 4  ;;  %v542_v52 = vrot.slane %v540_v42, 5  ;;  %v550_v53 = vshrl.u32 %v4172_v24, 16 }
  0x4e   : > { %v578_v54 = vrot.slane %v577_v47, 4  ;;  %v548_v60 = vrot.slane %v546_v48, 5  ;;  %v556_v0 = vshll.u32 %v4178_v40, 16  ;;  %v513_v3 = vshrl.u32 %v197_v44, 16 }
  0x4f   : > { %v2110_v5 = vpack.c.b16 %v2088_v49, %v2087_v46  ;;  %v573_v4 = vsel %vm4006_vm2, %v568_v51, %v572_v32  ;;  %v543_v7 = vor.u32 %v542_v52, %v539_v41  ;;  %v552_v8 = vrot.slane %v550_v53, 4  ;;  %v608_v49 = vld [vmem:[%s3978_s17] sm:$0xe] }
  0x50   : > { %v583_v14 = vsel %vm4006_vm2, %v578_v54, %v582_v38  ;;  %v2097_v15 = vunpack.c.l.b16 %v573_v4  ;;  %v558_v17 = vrot.slane %v556_v0, 5  ;;  %v515_v18 = vrot.slane %v513_v3, 4 }
  0x51   : > { %2135 = vrot.lane.b32.xlu0 %v2110_v5, %s3936_s18  ;;  %v2098_v19 = vunpack.c.l.b16 %v583_v14  ;;  %v544_v20 = vrot.slane %v543_v7, 4  ;;  %v553_v22 = vor.u32 %v552_v8, %v548_v60  ;;  %v516_v27 = vshll.u32 %v197_v44, 16 }
  0x52   : > { %v522_v30 = vshll.u32 %v4189_v11, 16  ;;  %v526_v32 = vshrl.u32 %v4189_v11, 16  ;;  %v532_v35 = vshll.u32 %v4192_v13, 16  ;;  %v3346_v52 = vrot.slane %v609_v34, 9 }
  0x53   : > { %v2115_v39 = vpack.c.b16 %v2098_v19, %v2097_v15  ;;  %v549_v38 = vsel %vm4006_vm2, %v544_v20, %v548_v60  ;;  %v554_v41 = vrot.slane %v553_v22, 4  ;;  %v518_v42 = vrot.slane %v516_v27, 5  ;;  %v203_v19 = vld [vmem:[%s3978_s17 + $0xb4] sm:$0xf] }
  0x54   : > { %v2095_v45 = vunpack.c.l.b16 %v549_v38  ;;  %v524_v46 = vrot.slane %v522_v30, 5  ;;  %v528_v47 = vrot.slane %v526_v32, 4  ;;  %v534_v48 = vrot.slane %v532_v35, 5  ;;  %v4232_v35 = vld [vmem:[%s3978_s17 + $0xbc] sm:$0x1] }
  0x55   : > { %2145 = vrot.lane.b32.xlu2 %v2115_v39, %s3936_s18  ;;  %v559_v44 = vsel %vm4006_vm2, %v554_v41, %v558_v17  ;;  %v519_v51 = vor.u32 %v518_v42, %v515_v18  ;;  %v684_v0 = vrot.slane %v4052_v37, 5  ;;  %v687_v3 = vrot.slane %v4055_v43, 5 }
  0x56   : > { %v2096_v53 = vunpack.c.l.b16 %v559_v44  ;;  %v529_v54 = vor.u32 %v528_v47, %v524_v46  ;;  %v3345_v4 = vrot.slane %v608_v49, 9  ;;  %v677_v7 = vrot.slane %v4002_v25, 5  ;;  %v4224_v25 = vld [vmem:[%s3978_s17 + $0xb8] sm:$0xf] }
  0x57   : > { %v520_v5 = vrot.slane %v519_v51, 4  ;;  %v680_v8 = vrot.slane %v4011_v36, 5  ;;  %v685_v17 = vsel %vm4208_vm5, %v3346_v52, %v684_v0  ;;  %v686_v18 = vrot.slane %v684_v0, 4 }
  0x58   : > { %v2114_v14 = vpack.c.b16 %v2096_v53, %v2095_v45  ;;  %v530_v15 = vrot.slane %v529_v54, 4  ;;  %v2151_v37 = vunpack.c.l.b16 %v685_v17  ;;  %v678_v43 = vsel %vm4208_vm5, %v3345_v4, %v677_v7  ;;  %v611_v53 = vld [vmem:[%s3978_s17 + $0x24] sm:$0xe]  ;;  %v610_v4 = vld [vmem:[%s3978_s17 + $0x18] sm:$0xe] }
  0x59   : > { %v525_v20 = vsel %vm4006_vm2, %v520_v5, %v524_v46  ;;  %v679_v22 = vrot.slane %v677_v7, 4  ;;  %v688_v30 = vsel %vm4208_vm5, %v686_v18, %v687_v3  ;;  %v2149_v32 = vunpack.c.l.b16 %v678_v43 }
  0x5a   : > { %2143 = vrot.lane.b32.xlu1 %v2114_v14, %s3936_s18  ;;  %v535_v36 = vsel %vm4006_vm2, %v530_v15, %v534_v48  ;;  %v2093_v27 = vunpack.c.l.b16 %v525_v20  ;;  %v2152_v39 = vunpack.c.l.b16 %v688_v30  ;;  %v585_v41 = vshrl.u32 %v203_v19, 16  ;;  %v612_v48 = vld [vmem:[%s3978_s17 + $0x30] sm:$0xe] }
  0x5b   : > { %v2094_v34 = vunpack.c.l.b16 %v535_v36  ;;  %v681_v38 = vsel %vm4208_vm5, %v679_v22, %v680_v8  ;;  %v588_v45 = vshll.u32 %v203_v19, 16  ;;  %v594_v46 = vshll.u32 %v4224_v25, 16 }
  0x5c   : > { %v2150_v42 = vunpack.c.l.b16 %v681_v38  ;;  %v598_v47 = vshrl.u32 %v4224_v25, 16  ;;  %v2182_v44 = vpack.c.b16 %v2152_v39, %v2151_v37  ;;  %v587_v51 = vrot.slane %v585_v41, 4 }
  0x5d   : > { %v2113_v49 = vpack.c.b16 %v2094_v34, %v2093_v27  ;;  %v604_v52 = vshll.u32 %v4232_v35, 16  ;;  %v590_v0 = vrot.slane %v588_v45, 5  ;;  %v596_v3 = vrot.slane %v594_v46, 5  ;;  %v615_v45 = vld [vmem:[%s3978_s17 + $0x54] sm:$0xe] }
  0x5e   : > { %v2181_v54 = vpack.c.b16 %v2150_v42, %v2149_v32  ;;  %v600_v5 = vrot.slane %v598_v47, 4  ;;  %2199 = vrot.lane.b32.xlu2 %v2182_v44, %s3937_s19  ;;  %v3349_v8 = vrot.slane %v612_v48, 9  ;;  %v705_v14 = vrot.slane %v3982_v1, 5 }
  0x5f   : > { %2141 = vrot.lane.b32.xlu0 %v2113_v49, %s3936_s18  ;;  %v606_v7 = vrot.slane %v604_v52, 5  ;;  %v708_v15 = vrot.slane %v3985_v2, 5  ;;  %v591_v17 = vor.u32 %v590_v0, %v587_v51  ;;  %v3348_v19 = vrot.slane %v611_v53, 9 }
  0x60   : > { %v601_v18 = vor.u32 %v600_v5, %v596_v3  ;;  %v698_v20 = vrot.slane %v4038_v12, 5  ;;  %v706_v37 = vsel %vm4208_vm5, %v3349_v8, %v705_v14  ;;  %v707_v43 = vrot.slane %v705_v14, 4  ;;  %v613_v5 = vld [vmem:[%s3978_s17 + $0x3c] sm:$0xe] }
  0x61   : > { %v701_v22 = vrot.slane %v4042_v16, 5  ;;  %v3347_v36 = vrot.slane %v610_v4, 9  ;;  %v592_v27 = vrot.slane %v591_v17, 4  ;;  %v2157_v1 = vunpack.c.l.b16 %v706_v37 }
  0x62   : > { %2197 = vrot.lane.b32.xlu1 %v2181_v54, %s3937_s19  ;;  %v602_v30 = vrot.slane %v601_v18, 4  ;;  %v699_v2 = vsel %vm4208_vm5, %v3348_v19, %v698_v20  ;;  %v709_v12 = vsel %vm4208_vm5, %v707_v43, %v708_v15  ;;  %v700_v32 = vrot.slane %v698_v20, 4  ;;  %v618_v18 = vld [vmem:[%s3978_s17 + $0x78] sm:$0xe] }
  0x63   : > { %v2155_v34 = vunpack.c.l.b16 %v699_v2  ;;  %v691_v39 = vrot.slane %v3992_v9, 5  ;;  %v597_v16 = vsel %vm4006_vm2, %v592_v27, %v596_v3  ;;  %v2158_v41 = vunpack.c.l.b16 %v709_v12  ;;  %v614_v9 = vld [vmem:[%s3978_s17 + $0x48] sm:$0xe] }
  0x64   : > { %v607_v38 = vsel %vm4006_vm2, %v602_v30, %v606_v7  ;;  %v694_v42 = vrot.slane %v3995_v10, 5  ;;  %v2099_v46 = vunpack.c.l.b16 %v597_v16  ;;  %v702_v48 = vsel %vm4208_vm5, %v700_v32, %v701_v22  ;;  %v617_v30 = vld [vmem:[%s3978_s17 + $0x6c] sm:$0xe] }
  0x65   : > { %v2100_v47 = vunpack.c.l.b16 %v607_v38  ;;  %v692_v49 = vsel %vm4208_vm5, %v3347_v36, %v691_v39  ;;  %v2185_v44 = vpack.c.b16 %v2158_v41, %v2157_v1  ;;  %v2156_v51 = vunpack.c.l.b16 %v702_v48 }
  0x66   : > { %v693_v52 = vrot.slane %v691_v39, 4  ;;  %v2153_v53 = vunpack.c.l.b16 %v692_v49  ;;  %v3352_v0 = vrot.slane %v615_v45, 9  ;;  %v726_v3 = vrot.slane %v4082_v23, 5 }
  0x67   : > { %v2116_v54 = vpack.c.b16 %v2100_v47, %v2099_v46  ;;  %v729_v10 = vrot.slane %v4087_v31, 5  ;;  %2205 = vrot.lane.b32.xlu2 %v2185_v44, %s3937_s19  ;;  %v2184_v4 = vpack.c.b16 %v2156_v51, %v2155_v34  ;;  %v3351_v8 = vrot.slane %v614_v9, 9 }
  0x68   : > { %v695_v7 = vsel %vm4208_vm5, %v693_v52, %v694_v42  ;;  %v719_v14 = vrot.slane %v4097_v55, 5  ;;  %v727_v17 = vsel %vm4208_vm5, %v3352_v0, %v726_v3  ;;  %v728_v23 = vrot.slane %v726_v3, 4  ;;  %v616_v42 = vld [vmem:[%s3978_s17 + $0x60] sm:$0xe]  ;;  %v620_v3 = vld [vmem:[%s3978_s17 + $0x90] sm:$0xe] }
  0x69   : > { %2147 = vrot.lane.b32.xlu0 %v2116_v54, %s3936_s18  ;;  %v2154_v15 = vunpack.c.l.b16 %v695_v7  ;;  %v722_v31 = vrot.slane %v4102_v63, 5  ;;  %v2163_v19 = vunpack.c.l.b16 %v727_v17  ;;  %v3350_v43 = vrot.slane %v613_v5, 9 }
  0x6a   : > { %2203 = vrot.lane.b32.xlu1 %v2184_v4, %s3937_s19  ;;  %v720_v20 = vsel %vm4208_vm5, %v3351_v8, %v719_v14  ;;  %v721_v37 = vrot.slane %v719_v14, 4  ;;  %v730_v22 = vsel %vm4208_vm5, %v728_v23, %v729_v10  ;;  %v712_v27 = vrot.slane %v4024_v56, 5 }
  0x6b   : > { %v2183_v55 = vpack.c.b16 %v2154_v15, %v2153_v53  ;;  %v2161_v36 = vunpack.c.l.b16 %v720_v20  ;;  %v2164_v1 = vunpack.c.l.b16 %v730_v22  ;;  %v715_v2 = vrot.slane %v4029_v62, 5  ;;  %v619_v15 = vld [vmem:[%s3978_s17 + $0x84] sm:$0xe] }
  0x6c   : > { %v723_v63 = vsel %vm4208_vm5, %v721_v37, %v722_v31  ;;  %v3355_v12 = vrot.slane %v618_v18, 9  ;;  %v713_v34 = vsel %vm4208_vm5, %v3350_v43, %v712_v27  ;;  %v714_v39 = vrot.slane %v712_v27, 4 }
  0x6d   : > { %v2162_v32 = vunpack.c.l.b16 %v723_v63  ;;  %v747_v16 = vrot.slane %v4129_v50, 5  ;;  %v2188_v38 = vpack.c.b16 %v2164_v1, %v2163_v19  ;;  %v750_v41 = vrot.slane %v4132_v58, 5  ;;  %v621_v58 = vld [vmem:[%s3978_s17 + $0x9c] sm:$0xe] }
  0x6e   : > { %v3354_v56 = vrot.slane %v617_v30, 9  ;;  %v716_v46 = vsel %vm4208_vm5, %v714_v39, %v715_v2  ;;  %v2159_v48 = vunpack.c.l.b16 %v713_v34  ;;  %v740_v50 = vrot.slane %v4142_v21, 5 }
  0x6f   : > { %v2187_v45 = vpack.c.b16 %v2162_v32, %v2161_v36  ;;  %v748_v62 = vsel %vm4208_vm5, %v3355_v12, %v747_v16  ;;  %v749_v47 = vrot.slane %v747_v16, 4  ;;  %2211 = vrot.lane.b32.xlu2 %v2188_v38, %s3937_s19  ;;  %v743_v9 = vrot.slane %v4147_v33, 5  ;;  %v623_v36 = vld [vmem:[%s3978_s17 + $0xb4] sm:$0xe] }
  0x70   : > { %v2169_v49 = vunpack.c.l.b16 %v748_v62  ;;  %v2160_v44 = vunpack.c.l.b16 %v716_v46  ;;  %v3353_v52 = vrot.slane %v616_v42, 9  ;;  %v733_v53 = vrot.slane %v4069_v61, 5 }
  0x71   : > { %2201 = vrot.lane.b32.xlu0 %v2183_v55, %s3937_s19  ;;  %v751_v51 = vsel %vm4208_vm5, %v749_v47, %v750_v41  ;;  %v741_v0 = vsel %vm4208_vm5, %v3354_v56, %v740_v50  ;;  %v742_v21 = vrot.slane %v740_v50, 4  ;;  %v736_v33 = vrot.slane %v4072_v6, 5 }
  0x72   : > { %2209 = vrot.lane.b32.xlu1 %v2187_v45, %s3937_s19  ;;  %v2170_v54 = vunpack.c.l.b16 %v751_v51  ;;  %v2167_v10 = vunpack.c.l.b16 %v741_v0  ;;  %v735_v5 = vrot.slane %v733_v53, 4  ;;  %v3358_v4 = vrot.slane %v621_v58, 9 }
  0x73   : > { %v744_v8 = vsel %vm4208_vm5, %v742_v21, %v743_v9  ;;  %v734_v61 = vsel %vm4208_vm5, %v3353_v52, %v733_v53  ;;  %v768_v14 = vrot.slane %v4172_v24, 5  ;;  %v2186_v17 = vpack.c.b16 %v2160_v44, %v2159_v48  ;;  %v622_v48 = vld [vmem:[%s3978_s17 + $0xa8] sm:$0xe]  ;;  %v3764_v52 = vld [vmem:[%s3978_s17 + $0xc] sm:$0xff] }
  0x74   : > { %v2191_v7 = vpack.c.b16 %v2170_v54, %v2169_v49  ;;  %v2168_v23 = vunpack.c.l.b16 %v744_v8  ;;  %v771_v31 = vrot.slane %v4178_v40, 5  ;;  %v3357_v6 = vrot.slane %v620_v3, 9  ;;  %v3767_v3 = vld [vmem:[%s3978_s17 + $0x30] sm:$0xff]  ;;  %v4371_v8 = vld [vmem:[%s3978_s17 + $0xa0] sm:$0xf] }
  0x75   : > { %v737_v18 = vsel %vm4208_vm5, %v735_v5, %v736_v33  ;;  %v769_v19 = vsel %vm4208_vm5, %v3358_v4, %v768_v14  ;;  %v770_v20 = vrot.slane %v768_v14, 4  ;;  %v761_v37 = vrot.slane %v4189_v11, 5  ;;  %v3766_v5 = vld [vmem:[%s3978_s17 + $0x24] sm:$0xff]  ;;  %v3770_v14 = vld [vmem:[%s3978_s17 + $0x54] sm:$0xff] }
  0x76   : > { %v2190_v43 = vpack.c.b16 %v2168_v23, %v2167_v10  ;;  %v2165_v55 = vunpack.c.l.b16 %v734_v61  ;;  %v764_v22 = vrot.slane %v4192_v13, 5  ;;  %v3356_v24 = vrot.slane %v619_v15, 9  ;;  %v3377_v61 = vld [vmem:[%s3978_s17 + $0x6c] sm:$0xf]  ;;  %v4376_v23 = vld [vmem:[%s3978_s17 + $0x70] sm:$0xf] }
  0x77   : > { %2217 = vrot.lane.b32.xlu2 %v2191_v7, %s3937_s19  ;;  %v772_v40 = vsel %vm4208_vm5, %v770_v20, %v771_v31  ;;  %v2175_v27 = vunpack.c.l.b16 %v769_v19  ;;  %v762_v30 = vsel %vm4208_vm5, %v3357_v6, %v761_v37  ;;  %v763_v1 = vrot.slane %v761_v37, 4  ;;  %v4357_v21 = vpop.permute.xlu2 %2125  ;;  %v3385_v7 = vld [vmem:[%s3978_s17 + $0x9c] sm:$0xf]  ;;  %v3769_v6 = vld [vmem:[%s3978_s17 + $0x48] sm:$0xff] }
  0x78   : > { %v2166_v63 = vunpack.c.l.b16 %v737_v18  ;;  %v2176_v11 = vunpack.c.l.b16 %v772_v40  ;;  %v754_v2 = vrot.slane %v4114_v28, 5  ;;  %v757_v13 = vrot.slane %v4117_v29, 5  ;;  %v3765_v31 = vld [vmem:[%s3978_s17 + $0x18] sm:$0xff]  ;;  %v4386_v40 = vld [vmem:[%s3978_s17 + $0xa4] sm:$0x1] }
  0x79   : > { %2207 = vrot.lane.b32.xlu0 %v2186_v17, %s3937_s19  ;;  %v765_v12 = vsel %vm4208_vm5, %v763_v1, %v764_v22  ;;  %v2173_v32 = vunpack.c.l.b16 %v762_v30  ;;  %v3360_v34 = vrot.slane %v623_v36, 9  ;;  %v782_v39 = vrot.slane %v4224_v25, 5  ;;  %v3361_v36 = vld [vmem:[%s3978_s17 + $0xc] sm:$0xf]  ;;  %v4389_v1 = vld [vmem:[%s3978_s17 + $0x74] sm:$0x1] }
  0x7a   : > { %2215 = vrot.lane.b32.xlu1 %v2190_v43, %s3937_s19  ;;  %v2174_v16 = vunpack.c.l.b16 %v765_v12  ;;  %v755_v38 = vsel %vm4208_vm5, %v3356_v24, %v754_v2  ;;  %v756_v41 = vrot.slane %v754_v2, 4  ;;  %v785_v56 = vrot.slane %v4232_v35, 5 }
  0x7b   : > { %v2194_v28 = vpack.c.b16 %v2176_v11, %v2175_v27  ;;  %v2171_v42 = vunpack.c.l.b16 %v755_v38  ;;  %v784_v29 = vrot.slane %v782_v39, 4  ;;  %v2189_v45 = vpack.c.b16 %v2166_v63, %v2165_v55 }
  0x7c   : > { %v758_v46 = vsel %vm4208_vm5, %v756_v41, %v757_v13  ;;  %v2193_v62 = vpack.c.b16 %v2174_v16, %v2173_v32  ;;  %v775_v25 = vrot.slane %v4159_v57, 5  ;;  %v783_v49 = vsel %vm4208_vm5, %v3360_v34, %v782_v39  ;;  %v4395_v39 = vld [vmem:[%s3978_s17 + $0x10] sm:$0xf] }
  0x7d   : > { %v2172_v47 = vunpack.c.l.b16 %v758_v46  ;;  %v786_v50 = vsel %vm4208_vm5, %v784_v29, %v785_v56  ;;  %v3359_v9 = vrot.slane %v622_v48, 9  ;;  %v2179_v58 = vunpack.c.l.b16 %v783_v49  ;;  %v3753_v29 = vld [vmem:[%s3978_s17 + $0x3c] sm:$0xff] }
  0x7e   : > { %v2180_v44 = vunpack.c.l.b16 %v786_v50  ;;  %v777_v51 = vrot.slane %v775_v25, 4  ;;  %v778_v57 = vrot.slane %v4162_v59, 5  ;;  %v1125_v15 = vshrl.u32 %v3385_v7, 16  ;;  %v3756_v49 = vld [vmem:[%s3978_s17 + $0x60] sm:$0xff] }
  0x7f   : > { %2223 = vrot.lane.b32.xlu2 %v2194_v28, %s3937_s19  ;;  %v2192_v35 = vpack.c.b16 %v2172_v47, %v2171_v42  ;;  %v776_v54 = vsel %vm4208_vm5, %v3359_v9, %v775_v25  ;;  %v1128_v17 = vshll.u32 %v3385_v7, 16  ;;  %v1134_v18 = vshll.u32 %v4371_v8, 16  ;;  %v3752_v42 = vld [vmem:[%s3978_s17 + $0x30] sm:$0xff]  ;;  %v3773_v25 = vld [vmem:[%s3978_s17 + $0x78] sm:$0xff] }
  0x80   : > { %v2196_v53 = vpack.c.b16 %v2180_v44, %v2179_v58  ;;  %v779_v0 = vsel %vm4208_vm5, %v777_v51, %v778_v57  ;;  %v2177_v59 = vunpack.c.l.b16 %v776_v54  ;;  %v1138_v19 = vshrl.u32 %v4371_v8, 16  ;;  %v3768_v44 = vld [vmem:[%s3978_s17 + $0x3c] sm:$0xff] }
  0x81   : > { %2213 = vrot.lane.b32.xlu0 %v2189_v45, %s3937_s19  ;;  %v2178_v33 = vunpack.c.l.b16 %v779_v0  ;;  %v1029_v20 = vshrl.u32 %v3377_v61, 16  ;;  %v1032_v37 = vshll.u32 %v3377_v61, 16  ;;  %v1127_v43 = vrot.slane %v1125_v15, 4  ;;  %v3750_v51 = vld [vmem:[%s3978_s17 + $0x18] sm:$0xff]  ;;  %v3748_v57 = vld [vmem:[%s3978_s17] sm:$0xff] }
  0x82   : > { %2221 = vrot.lane.b32.xlu1 %v2193_v62, %s3937_s19  ;;  %v1130_v55 = vrot.slane %v1128_v17, 5  ;;  %v1038_v22 = vshll.u32 %v4376_v23, 16  ;;  %v1042_v24 = vshrl.u32 %v4376_v23, 16  ;;  %v1136_v27 = vrot.slane %v1134_v18, 5 }
  0x83   : > { %v2195_v10 = vpack.c.b16 %v2178_v33, %v2177_v59  ;;  %v1140_v30 = vrot.slane %v1138_v19, 4  ;;  %v1144_v11 = vshll.u32 %v4386_v40, 16  ;;  %v1031_v2 = vrot.slane %v1029_v20, 4  ;;  %v3772_v33 = vld [vmem:[%s3978_s17 + $0x6c] sm:$0xff]  ;;  %v3759_v19 = vld [vmem:[%s3978_s17 + $0x84] sm:$0xff] }
  0x84   : > { %v1131_v63 = vor.u32 %v1130_v55, %v1127_v43  ;;  %v1034_v12 = vrot.slane %v1032_v37, 5  ;;  %v1040_v32 = vrot.slane %v1038_v22, 5  ;;  %v1044_v34 = vrot.slane %v1042_v24, 4 }
  0x85   : > { %v4366_v4 = vpop.permute.xlu2 %2127  ;;  %v1141_v13 = vor.u32 %v1140_v30, %v1136_v27  ;;  %v1146_v41 = vrot.slane %v1144_v11, 5  ;;  %v1048_v56 = vshll.u32 %v4389_v1, 16  ;;  %v837_v28 = vshrl.u32 %v3361_v36, 16  ;;  %v3751_v30 = vld [vmem:[%s3978_s17 + $0x24] sm:$0xff] }
  0x86   : > { %v1132_v38 = vrot.slane %v1131_v63, 4  ;;  %v1035_v62 = vor.u32 %v1034_v12, %v1031_v2  ;;  %v1045_v47 = vor.u32 %v1044_v34, %v1040_v32  ;;  %v840_v48 = vshll.u32 %v3361_v36, 16  ;;  %v3421_v36 = vld [vmem:[%s3978_s17 + $0x9c] sm:$0xe]  ;;  %v3465_v12 = vld [vmem:[%s3978_s17 + $0xa8] sm:$0xf] }
  0x87   : > { %2293 = vrot.lane.b32.xlu2 %v3764_v52, %s3938_s20  ;;  %v1142_v46 = vrot.slane %v1141_v13, 4  ;;  %v839_v9 = vrot.slane %v837_v28, 4  ;;  %v846_v58 = vshll.u32 %v4395_v39, 16  ;;  %v1050_v59 = vrot.slane %v1048_v56, 5  ;;  %v3771_v28 = vld [vmem:[%s3978_s17 + $0x60] sm:$0xff] }
  0x88   : > { %v1137_v50 = vsel %vm4006_vm2, %v1132_v38, %v1136_v27  ;;  %v1036_v54 = vrot.slane %v1035_v62, 4  ;;  %v1046_v0 = vrot.slane %v1045_v47, 4  ;;  %v850_v7 = vshrl.u32 %v4395_v39, 16  ;;  %v3417_v27 = vld [vmem:[%s3978_s17 + $0x6c] sm:$0xe] }
  0x89   : > { %2219 = vrot.lane.b32.xlu0 %v2192_v35, %s3937_s19  ;;  %v4406_v35 = vld [vmem:[%s3978_s17 + $0x14] sm:$0x1]  ;;  %v4425_v17 = vsel %vm2741_vm6, %v3752_v42, %v4357_v21  ;;  %v3437_v11 = vrot.slane %v3421_v36, 9  ;;  %v1370_v2 = vrot.slane %v4371_v8, 5  ;;  %v1373_v13 = vrot.slane %v4386_v40, 5  ;;  %v3749_v47 = vld [vmem:[%s3978_s17 + $0xc] sm:$0xff] }
  0x8a   : > { %2227 = vrot.lane.b32.xlu1 %v2196_v53, %s3937_s19  ;;  %v1147_v53 = vsel %vm4006_vm2, %v1142_v46, %v1146_v41  ;;  %v1041_v61 = vsel %vm4006_vm2, %v1036_v54, %v1040_v32  ;;  %v856_v15 = vshll.u32 %v4406_v35, 16  ;;  %v852_v37 = vrot.slane %v850_v7, 4  ;;  %v3776_v32 = vld [vmem:[%s3978_s17 + $0x9c] sm:$0xff]  ;;  %v3775_v46 = vld [vmem:[%s3978_s17 + $0x90] sm:$0xff] }
  0x8b   : > { %v4448_v55 = vunpack.c.l.b16 %v1041_v61  ;;  %v3433_v41 = vrot.slane %v3417_v27, 9  ;;  %v1342_v56 = vrot.slane %v4376_v23, 5  ;;  %v4465_v8 = vsel %vm4208_vm5, %v3437_v11, %v1370_v2  ;;  %v4492_v54 = vld [vmem:[%s3978_s17 + $0xb0] sm:$0x1]  ;;  %v4500_v61 = vld [vmem:[%s3978_s17 + $0x7c] sm:$0xf] }
  0x8c   : > { %v858_v24 = vrot.slane %v856_v15, 5  ;;  %v1372_v40 = vrot.slane %v1370_v2, 4  ;;  %v3369_v27 = vld [vmem:[%s3978_s17 + $0x3c] sm:$0xf] }
  0x8d   : > { %v1343_v23 = vsel %vm4208_vm5, %v3433_v41, %v1342_v56 }
  0x8f   : > { %2299 = vrot.lane.b32.xlu2 %v3767_v3, %s3938_s20  ;;  %v4415_v3 = vunpack.c.l.b16 %v1137_v50 }
  0x91   : > { %2225 = vrot.lane.b32.xlu0 %v2195_v10, %s3937_s19  ;;  %v4417_v10 = vunpack.c.l.b16 %v1147_v53  ;;  %v2421_v53 = vunpack.c.l.b16 %v1343_v23 }
  0x92   : > { %2297 = vrot.lane.b32.xlu1 %v3766_v5, %s3938_s20  ;;  %v842_v5 = vrot.slane %v840_v48, 5  ;;  %v1344_v48 = vrot.slane %v1342_v56, 4  ;;  %v3778_v56 = vld [vmem:[%s3978_s17 + $0xb4] sm:$0xff] }
  0x93   : > { %v2122_v16 = vpop.permute.xlu1 %2121  ;;  %v2134_v45 = vpop.permute.xlu2 %2133  ;;  %v2369_v43 = vpack.c.b16 %v4417_v10, %v4415_v3  ;;  %v3413_v3 = vld [vmem:[%s3978_s17 + $0x3c] sm:$0xe] }
  0x94   : > { %v843_v18 = vor.u32 %v842_v5, %v839_v9  ;;  %v4438_v20 = vsel %vm2741_vm6, %v3750_v51, %v2122_v16 }
  0x96   : > { %v844_v22 = vrot.slane %v843_v18, 4 }
  0x97   : > { %2305 = vrot.lane.b32.xlu2 %v3770_v14, %s3938_s20  ;;  %v2118_v52 = vpop.permute.xlu0 %2117  ;;  %v848_v14 = vrot.slane %v846_v58, 5  ;;  %v1374_v58 = vsel %vm4208_vm5, %v1372_v40, %v1373_v13  ;;  %v1647_v13 = vshll.u32 %v4500_v61, 16  ;;  %v933_v40 = vshrl.u32 %v3369_v27, 16 }
  0x98   : > { %v4441_v21 = vsel %vm2741_vm6, %v3748_v57, %v2118_v52  ;;  %v2429_v52 = vunpack.c.l.b16 %v4465_v8  ;;  %v2430_v18 = vunpack.c.l.b16 %v1374_v58  ;;  %v4521_v8 = vld [vmem:[%s3978_s17 + $0x40] sm:$0xf] }
  0x99   : > { %2295 = vrot.lane.b32.xlu0 %v3765_v31, %s3938_s20  ;;  %v4429_v31 = vsel %vm2741_vm6, %v3753_v29, %v4366_v4  ;;  %v1051_v4 = vsel %vm4006_vm2, %v1046_v0, %v1050_v59  ;;  %v853_v63 = vor.u32 %v852_v37, %v848_v14  ;;  %v849_v38 = vsel %vm4006_vm2, %v844_v22, %v848_v14  ;;  %v3457_v0 = vld [vmem:[%s3978_s17 + $0x78] sm:$0xf] }
  0x9a   : > { %2303 = vrot.lane.b32.xlu1 %v3769_v6, %s3938_s20  ;;  %v4433_v6 = vsel %vm2741_vm6, %v3756_v49, %v2134_v45  ;;  %v4457_v16 = vunpack.c.l.b16 %v1051_v4  ;;  %v1345_v45 = vrot.slane %v4389_v1, 5  ;;  %v1734_v49 = vshrl.u32 %v3465_v12, 16  ;;  %v4510_v4 = vld [vmem:[%s3978_s17 + $0x80] sm:$0x1] }
  0x9b   : > { %v854_v29 = vrot.slane %v853_v63, 4  ;;  %v4488_v57 = vunpack.c.l.b16 %v849_v38  ;;  %v1638_v36 = vshrl.u32 %v3457_v0, 16  ;;  %v1641_v2 = vshll.u32 %v3457_v0, 16 }
  0x9c   : > { %v2365_v51 = vpack.c.b16 %v4457_v16, %v4448_v55  ;;  %v1346_v59 = vsel %vm4208_vm5, %v1344_v48, %v1345_v45  ;;  %v1651_v38 = vshrl.u32 %v4500_v61, 16  ;;  %v1657_v41 = vshll.u32 %v4510_v4, 16  ;;  %v4526_v48 = vld [vmem:[%s3978_s17 + $0x44] sm:$0x1] }
  0x9d   : > { %v859_v1 = vsel %vm4006_vm2, %v854_v29, %v858_v24  ;;  %v1753_v24 = vshll.u32 %v4492_v54, 16  ;;  %v2422_v63 = vunpack.c.l.b16 %v1346_v59  ;;  %v1649_v29 = vrot.slane %v1647_v13, 5 }
  0x9e   : > { %v4506_v15 = vunpack.c.l.b16 %v859_v1  ;;  %v1653_v23 = vrot.slane %v1651_v38, 4  ;;  %v3755_v1 = vld [vmem:[%s3978_s17 + $0x54] sm:$0xff]  ;;  %v4531_v58 = vpack.c.b16 %v2430_v18, %v2429_v52  ;;  %v1659_v59 = vrot.slane %v1657_v41, 5 }
  0x9f   : > { %2311 = vrot.lane.b32.xlu2 %v3773_v25, %s3938_s20  ;;  %v4476_v25 = vld [vmem:[%s3978_s17 + $0xac] sm:$0xf]  ;;  %v942_v52 = vshll.u32 %v4521_v8, 16  ;;  %v952_v18 = vshll.u32 %v4526_v48, 16  ;;  %v1314_v10 = vrot.slane %v4521_v8, 5 }
  0xa0   : > { %v1743_v7 = vshll.u32 %v4476_v25, 16 }
  0xa1   : > { %2301 = vrot.lane.b32.xlu0 %v3768_v44, %s3938_s20  ;;  %v2124_v34 = vpop.permute.xlu1 %2123  ;;  %v2140_v42 = vpop.permute.xlu2 %2139  ;;  %v1737_v44 = vshll.u32 %v3465_v12, 16  ;;  %v3774_v12 = vld [vmem:[%s3978_s17 + $0x84] sm:$0xff] }
  0xa2   : > { %2309 = vrot.lane.b32.xlu1 %v3772_v33, %s3938_s20  ;;  %v4470_v62 = vsel %vm2741_vm6, %v3759_v19, %v2140_v42  ;;  %v4479_v50 = vsel %vm2741_vm6, %v3751_v30, %v2124_v34  ;;  %v1736_v33 = vrot.slane %v1734_v49, 4  ;;  %v1747_v19 = vshrl.u32 %v4476_v25, 16  ;;  %v3779_v30 = vld [vmem:[%s3978_s17 + $0xc0] sm:$0xff] }
  0xa3   : > { %v1739_v5 = vrot.slane %v1737_v44, 5  ;;  %v1745_v22 = vrot.slane %v1743_v7, 5  ;;  %v1640_v34 = vrot.slane %v1638_v36, 4  ;;  %v1643_v42 = vrot.slane %v1641_v2, 5  ;;  %v3501_v36 = vld [vmem:[%s3978_s17 + $0xa8] sm:$0xe] }
  0xa4   : > { %v1749_v11 = vrot.slane %v1747_v19, 4  ;;  %v936_v49 = vshll.u32 %v3369_v27, 16  ;;  %v4533_v44 = vpack.c.b16 %v2422_v63, %v2421_v53  ;;  %v1654_v7 = vor.u32 %v1653_v23, %v1649_v29 }
  0xa5   : > { %v1740_v37 = vor.u32 %v1739_v5, %v1736_v33  ;;  %v1644_v5 = vor.u32 %v1643_v42, %v1640_v34  ;;  %v935_v19 = vrot.slane %v933_v40, 4  ;;  %v946_v53 = vshrl.u32 %v4521_v8, 16  ;;  %v3777_v34 = vld [vmem:[%s3978_s17 + $0xa8] sm:$0xff] }
  0xa6   : > { %v1655_v63 = vrot.slane %v1654_v7, 4  ;;  %v1954_v7 = vrot.slane %v4510_v4, 5 }
  0xa7   : > { %v2120_v9 = vpop.permute.xlu0 %2119  ;;  %2317 = vrot.lane.b32.xlu2 %v3776_v32, %s3938_s20  ;;  %v1741_v32 = vrot.slane %v1740_v37, 4  ;;  %v938_v37 = vrot.slane %v936_v49, 5  ;;  %v1979_v49 = vrot.slane %v4476_v25, 5 }
  0xa8   : > { %v4504_v14 = vsel %vm2741_vm6, %v3749_v47, %v2120_v9  ;;  %v1755_v47 = vrot.slane %v1753_v24, 5  ;;  %v3762_v9 = vld [vmem:[%s3978_s17 + $0xa8] sm:$0xff]  ;;  %v1660_v41 = vsel %vm4006_vm2, %v1655_v63, %v1659_v59 }
  0xa9   : > { %2307 = vrot.lane.b32.xlu0 %v3771_v28, %s3938_s20  ;;  %v1750_v28 = vor.u32 %v1749_v11, %v1745_v22  ;;  %v1746_v24 = vsel %vm4006_vm2, %v1741_v32, %v1745_v22  ;;  %v939_v11 = vor.u32 %v938_v37, %v935_v19  ;;  %v944_v22 = vrot.slane %v942_v52, 5  ;;  %v3497_v32 = vld [vmem:[%s3978_s17 + $0x78] sm:$0xe] }
  0xaa   : > { %2315 = vrot.lane.b32.xlu1 %v3775_v46, %s3938_s20  ;;  %v2357_v46 = vpack.c.b16 %v4506_v15, %v4488_v57  ;;  %v4557_v42 = vunpack.c.l.b16 %v1746_v24  ;;  %v3409_v24 = vld [vmem:[%s3978_s17 + $0xc] sm:$0xe] }
  0xab   : > { %v1751_v0 = vrot.slane %v1750_v28, 4  ;;  %v3517_v28 = vrot.slane %v3501_v36, 9  ;;  %v3429_v36 = vrot.slane %v3413_v3, 9 }
  0xad   : > { %v1756_v27 = vsel %vm4006_vm2, %v1751_v0, %v1755_v47  ;;  %v954_v47 = vrot.slane %v952_v18, 5  ;;  %v4571_v0 = vunpack.c.l.b16 %v1660_v41 }
  0xae   : > { %v4559_v40 = vunpack.c.l.b16 %v1756_v27  ;;  %v1316_v27 = vrot.slane %v1314_v10, 4 }
  0xaf   : > { %v2146_v45 = vpop.permute.xlu2 %2145  ;;  %2323 = vrot.lane.b32.xlu2 %v3779_v30, %s3938_s20  ;;  %v2132_v33 = vpop.permute.xlu1 %2131  ;;  %v1645_v30 = vrot.slane %v1644_v5, 4  ;;  %v1981_v5 = vrot.slane %v1979_v49, 4 }
  0xb0   : > { %v4546_v2 = vsel %vm2741_vm6, %v3762_v9, %v2146_v45  ;;  %v4549_v13 = vsel %vm2741_vm6, %v3755_v1, %v2132_v33  ;;  %v1982_v9 = vrot.slane %v4492_v54, 5  ;;  %v1951_v33 = vrot.slane %v4500_v61, 5  ;;  %v3754_v61 = vld [vmem:[%s3978_s17 + $0x48] sm:$0xff] }
  0xb1   : > { %2313 = vrot.lane.b32.xlu0 %v3774_v12, %s3938_s20  ;;  %v948_v12 = vrot.slane %v946_v53, 4  ;;  %v1650_v38 = vsel %vm4006_vm2, %v1645_v30, %v1649_v29  ;;  %v3513_v29 = vrot.slane %v3497_v32, 9  ;;  %v1980_v54 = vsel %vm4208_vm5, %v3517_v28, %v1979_v49  ;;  %v3758_v53 = vld [vmem:[%s3978_s17 + $0x78] sm:$0xff]  ;;  %v4615_v28 = vld [vmem:[%s3978_s17 + $0x4c] sm:$0xf] }
  0xb2   : > { %2321 = vrot.lane.b32.xlu1 %v3778_v56, %s3938_s20  ;;  %v940_v56 = vrot.slane %v939_v11, 4  ;;  %v4569_v1 = vunpack.c.l.b16 %v1650_v38  ;;  %v2685_v4 = vunpack.c.l.b16 %v1980_v54  ;;  %v1983_v55 = vsel %vm4208_vm5, %v1981_v5, %v1982_v9 }
  0xb3   : > { %v949_v45 = vor.u32 %v948_v12, %v944_v22  ;;  %v1952_v16 = vsel %vm4208_vm5, %v3513_v29, %v1951_v33  ;;  %v2686_v18 = vunpack.c.l.b16 %v1983_v55  ;;  %v1317_v30 = vrot.slane %v4526_v48, 5 }
  0xb4   : > { %v945_v23 = vsel %vm4006_vm2, %v940_v56, %v944_v22  ;;  %v2625_v11 = vpack.c.b16 %v4559_v40, %v4557_v42  ;;  %v3425_v12 = vrot.slane %v3409_v24, 9  ;;  %v1286_v32 = vrot.slane %v4395_v39, 5  ;;  %v3449_v56 = vld [vmem:[%s3978_s17 + $0x48] sm:$0xf]  ;;  %v4657_v24 = vld [vmem:[%s3978_s17 + $0x20] sm:$0x1] }
  0xb5   : > { %v950_v59 = vrot.slane %v949_v45, 4  ;;  %v4591_v37 = vunpack.c.l.b16 %v945_v23  ;;  %v2130_v52 = vpop.permute.xlu0 %2129  ;;  %v2621_v38 = vpack.c.b16 %v4571_v0, %v4569_v1  ;;  %v2677_v41 = vunpack.c.l.b16 %v1952_v16  ;;  %v3441_v23 = vld [vmem:[%s3978_s17 + $0x18] sm:$0xf] }
  0xb6   : > { %v4622_v40 = vpack.c.b16 %v2686_v18, %v2685_v4  ;;  %v1315_v39 = vsel %vm4208_vm5, %v3429_v36, %v1314_v10  ;;  %v1318_v49 = vsel %vm4208_vm5, %v1316_v27, %v1317_v30  ;;  %v4635_v9 = vsel %vm4208_vm5, %v3425_v12, %v1286_v32  ;;  %v4654_v4 = vld [vmem:[%s3978_s17 + $0x1c] sm:$0xf]  ;;  %v3379_v16 = vld [vmem:[%s3978_s17 + $0x78] sm:$0xf] }
  0xb7   : > { %2397 = vrot.lane.b32.xlu2 %v2369_v43, %s3939_s21  ;;  %v955_v19 = vsel %vm4006_vm2, %v950_v59, %v954_v47  ;;  %v4627_v47 = vld [vmem:[%s3978_s17 + $0x50] sm:$0x1]  ;;  %v1288_v29 = vrot.slane %v1286_v32, 4  ;;  %v1289_v59 = vrot.slane %v4406_v35, 5  ;;  %v1551_v54 = vshll.u32 %v4615_v28, 16 }
  0xb8   : > { %v2200_v25 = vpop.permute.xlu2 %2199  ;;  %v4595_v8 = vunpack.c.l.b16 %v955_v19  ;;  %v1555_v5 = vshrl.u32 %v4615_v28, 16  ;;  %v2413_v3 = vunpack.c.l.b16 %v1315_v39  ;;  %v1561_v57 = vshll.u32 %v4627_v47, 16 }
  0xb9   : > { %2319 = vrot.lane.b32.xlu0 %v3777_v34, %s3938_s20  ;;  %v4586_v43 = vsel %vm2790_vm7, %v4504_v14, %v2200_v25  ;;  %v3788_v14 = vld [vmem:[%s3978_s17 + $0x78] sm:$0xff]  ;;  %v4609_v34 = vsel %vm2741_vm6, %v3754_v61, %v2130_v52  ;;  %v1545_v25 = vshll.u32 %v3449_v56, 16  ;;  %v1446_v15 = vshrl.u32 %v3441_v23, 16 }
  0xba   : > { %2389 = vrot.lane.b32.xlu1 %v2365_v51, %s3939_s21  ;;  %v1953_v51 = vrot.slane %v1951_v33, 4  ;;  %v2361_v42 = vpack.c.b16 %v4595_v8, %v4591_v37  ;;  %v1542_v33 = vshrl.u32 %v3449_v56, 16  ;;  %v2414_v10 = vunpack.c.l.b16 %v1318_v49 }
  0xbb   : > { %v1547_v19 = vrot.slane %v1545_v25, 5  ;;  %v2405_v52 = vunpack.c.l.b16 %v4635_v9  ;;  %v1557_v55 = vrot.slane %v1555_v5, 4  ;;  %v1449_v18 = vshll.u32 %v3441_v23, 16  ;;  %v4679_v5 = vld [vmem:[%s3978_s17 + $0x80] sm:$0x1] }
  0xbc   : > { %v1955_v22 = vsel %vm4208_vm5, %v1953_v51, %v1954_v7  ;;  %v1544_v61 = vrot.slane %v1542_v33, 4  ;;  %v1455_v27 = vshll.u32 %v4654_v4, 16  ;;  %v1459_v30 = vshrl.u32 %v4654_v4, 16 }
  0xbd   : > { %v2138_v63 = vpop.permute.xlu1 %2137  ;;  %v2678_v48 = vunpack.c.l.b16 %v1955_v22  ;;  %v3757_v22 = vld [vmem:[%s3978_s17 + $0x6c] sm:$0xff]  ;;  %v1056_v56 = vshll.u32 %v3379_v16, 16  ;;  %v4670_v39 = vpack.c.b16 %v2414_v10, %v2413_v3 }
  0xbe   : > { %v4618_v45 = vsel %vm2741_vm6, %v3758_v53, %v2138_v63  ;;  %v1553_v53 = vrot.slane %v1551_v54, 5  ;;  %v1548_v51 = vor.u32 %v1547_v19, %v1544_v61  ;;  %v1465_v63 = vshll.u32 %v4657_v24, 16 }
  0xbf   : > { %2565 = vrot.lane.b32.xlu2 %v3788_v14, %s3940_s22  ;;  %v4646_v35 = vpack.c.b16 %v2678_v48, %v2677_v41  ;;  %v1448_v14 = vrot.slane %v1446_v15, 4  ;;  %v1451_v41 = vrot.slane %v1449_v18, 5  ;;  %v1053_v48 = vshrl.u32 %v3379_v16, 16  ;;  %v3493_v16 = vld [vmem:[%s3978_s17 + $0x48] sm:$0xe] }
  0xc0   : > { %v1558_v36 = vor.u32 %v1557_v55, %v1553_v53  ;;  %v1549_v32 = vrot.slane %v1548_v51, 4  ;;  %v1457_v49 = vrot.slane %v1455_v27, 5  ;;  %v1467_v54 = vrot.slane %v1465_v63, 5  ;;  %v3792_v51 = vld [vmem:[%s3978_s17 + $0xa8] sm:$0xff]  ;;  %v3489_v27 = vld [vmem:[%s3978_s17 + $0x18] sm:$0xe] }
  0xc1   : > { %2373 = vrot.lane.b32.xlu0 %v2357_v46, %s3939_s21  ;;  %v2206_v7 = vpop.permute.xlu2 %2205  ;;  %v1452_v25 = vor.u32 %v1451_v41, %v1448_v14  ;;  %v1058_v15 = vrot.slane %v1056_v56, 5  ;;  %v1072_v55 = vshll.u32 %v4679_v5, 16  ;;  %v1923_v56 = vrot.slane %v4615_v28, 5 }
  0xc2   : > { %2477 = vrot.lane.b32.xlu1 %v4531_v58, %s3941_s23  ;;  %v4651_v46 = vsel %vm2790_vm7, %v4425_v17, %v2206_v7  ;;  %v4661_v58 = vsel %vm4208_vm5, %v1288_v29, %v1289_v59  ;;  %v1563_v17 = vrot.slane %v1561_v57, 5  ;;  %v1559_v23 = vrot.slane %v1558_v36, 4  ;;  %v4673_v59 = vld [vmem:[%s3978_s17 + $0x7c] sm:$0xf] }
  0xc3   : > { %v2136_v12 = vpop.permute.xlu0 %2135  ;;  %v1461_v29 = vrot.slane %v1459_v30, 4  ;;  %v2406_v33 = vunpack.c.l.b16 %v4661_v58  ;;  %v1055_v7 = vrot.slane %v1053_v48, 4  ;;  %v1554_v3 = vsel %vm4006_vm2, %v1549_v32, %v1553_v53 }
  0xc4   : > { %v4690_v10 = vsel %vm2741_vm6, %v3757_v22, %v2136_v12  ;;  %v1453_v0 = vrot.slane %v1452_v25, 4  ;;  %v1066_v53 = vshrl.u32 %v4673_v59, 16  ;;  %v4702_v14 = vunpack.c.l.b16 %v1554_v3 }
  0xc5   : > { %v1462_v57 = vor.u32 %v1461_v29, %v1457_v49  ;;  %v1059_v58 = vor.u32 %v1058_v15, %v1055_v7  ;;  %v1074_v41 = vrot.slane %v1072_v55, 5  ;;  %v3509_v48 = vrot.slane %v3493_v16, 9 }
  0xc6   : > { %v1068_v12 = vrot.slane %v1066_v53, 4  ;;  %v1926_v29 = vrot.slane %v4627_v47, 5  ;;  %v3505_v25 = vrot.slane %v3489_v27, 9  ;;  %v4727_v28 = vpack.c.b16 %v2406_v33, %v2405_v52  ;;  %v3760_v33 = vld [vmem:[%s3978_s17 + $0x90] sm:$0xff] }
  0xc7   : > { %2653 = vrot.lane.b32.xlu2 %v2625_v11, %s3942_s24  ;;  %v1463_v19 = vrot.slane %v1462_v57, 4  ;;  %v1060_v22 = vrot.slane %v1059_v58, 4  ;;  %v1925_v8 = vrot.slane %v1923_v56, 4  ;;  %v1924_v9 = vsel %vm4208_vm5, %v3509_v48, %v1923_v56 }
  0xc8   : > { %v1895_v52 = vrot.slane %v4654_v4, 5  ;;  %v1898_v15 = vrot.slane %v4657_v24, 5  ;;  %v2669_v16 = vunpack.c.l.b16 %v1924_v9 }
  0xc9   : > { %2469 = vrot.lane.b32.xlu0 %v4533_v44, %s3941_s23  ;;  %v2212_v11 = vpop.permute.xlu2 %2211  ;;  %v1564_v44 = vsel %vm4006_vm2, %v1559_v23, %v1563_v17  ;;  %v3761_v17 = vld [vmem:[%s3978_s17 + $0x9c] sm:$0xff]  ;;  %v1468_v30 = vsel %vm4006_vm2, %v1463_v19, %v1467_v54 }
  0xca   : > { %2645 = vrot.lane.b32.xlu1 %v2621_v38, %s3942_s24  ;;  %v4694_v1 = vsel %vm2790_vm7, %v4549_v13, %v2212_v11  ;;  %v1062_v38 = vshll.u32 %v4673_v59, 16  ;;  %v4704_v18 = vunpack.c.l.b16 %v1564_v44  ;;  %v1458_v13 = vsel %vm4006_vm2, %v1453_v0, %v1457_v49  ;;  %v3418_v0 = vld [vmem:[%s3978_s17 + $0x78] sm:$0xe] }
  0xcb   : > { %v4711_v63 = vunpack.c.l.b16 %v1458_v13  ;;  %v4713_v32 = vunpack.c.l.b16 %v1468_v30  ;;  %v1896_v19 = vsel %vm4208_vm5, %v3505_v25, %v1895_v52  ;;  %v1897_v58 = vrot.slane %v1895_v52, 4  ;;  %v3387_v13 = vld [vmem:[%s3978_s17 + $0xa8] sm:$0xf] }
  0xcc   : > { %v2144_v61 = vpop.permute.xlu1 %2143  ;;  %v1064_v36 = vrot.slane %v1062_v38, 5  ;;  %v2617_v37 = vpack.c.b16 %v4704_v18, %v4702_v14  ;;  %v3763_v18 = vld [vmem:[%s3978_s17 + $0xb4] sm:$0xff] }
  0xcd   : > { %v2783_v54 = vsel %vm2741_vm6, %v3761_v17, %v2144_v61  ;;  %v2613_v11 = vpack.c.b16 %v4713_v32, %v4711_v63  ;;  %v3780_v61 = vld [vmem:[%s3978_s17 + $0x18] sm:$0xff]  ;;  %v3406_v17 = vld [vmem:[%s3978_s17 + $0xb0] sm:$0x1]  ;;  %v1899_v27 = vsel %vm4208_vm5, %v1897_v58, %v1898_v15  ;;  %v3459_v15 = vld [vmem:[%s3978_s17 + $0x84] sm:$0xf] }
  0xce   : > { %v1065_v23 = vsel %vm4006_vm2, %v1060_v22, %v1064_v36  ;;  %v1069_v49 = vor.u32 %v1068_v12, %v1064_v36  ;;  %v1380_v30 = vrot.slane %v3406_v17, 5  ;;  %v3434_v22 = vrot.slane %v3418_v0, 9  ;;  %v4800_v0 = vld [vmem:[%s3978_s17 + $0x88] sm:$0xf] }
  0xcf   : > { %2381 = vrot.lane.b32.xlu2 %v2361_v42, %s3939_s21  ;;  %v3422_v42 = vld [vmem:[%s3978_s17 + $0xa8] sm:$0xe]  ;;  %v4744_v57 = vunpack.c.l.b16 %v1065_v23  ;;  %v2662_v48 = vunpack.c.l.b16 %v1899_v27  ;;  %v1349_v23 = vrot.slane %v4673_v59, 5  ;;  %v1662_v27 = vshrl.u32 %v3459_v15, 16 }
  0xd0   : > { %v1070_v3 = vrot.slane %v1069_v49, 4  ;;  %v3438_v53 = vrot.slane %v3422_v42, 9  ;;  %v1352_v49 = vrot.slane %v4679_v5, 5 }
  0xd1   : > { %2573 = vrot.lane.b32.xlu0 %v3792_v51, %s3940_s22  ;;  %v2142_v7 = vpop.permute.xlu0 %2141  ;;  %v2218_v47 = vpop.permute.xlu2 %2217 }
  0xd2   : > { %2733 = vrot.lane.b32.xlu1 %v4622_v40, %s3943_s25  ;;  %v4742_v44 = vsel %vm2790_vm7, %v4618_v45, %v2218_v47  ;;  %v1927_v40 = vsel %vm4208_vm5, %v1925_v8, %v1926_v29  ;;  %v1075_v4 = vsel %vm4006_vm2, %v1070_v3, %v1074_v41  ;;  %v3388_v45 = vld [vmem:[%s3978_s17 + $0xac] sm:$0xf]  ;;  %v4767_v12 = vsel %vm2741_vm6, %v3760_v33, %v2142_v7 }
  0xd3   : > { %v2670_v51 = vunpack.c.l.b16 %v1927_v40  ;;  %v1377_v24 = vrot.slane %v3388_v45, 5  ;;  %v4762_v36 = vunpack.c.l.b16 %v1075_v4  ;;  %v2661_v41 = vunpack.c.l.b16 %v1896_v19 }
  0xd4   : > { %v2198_v38 = vpop.permute.xlu1 %2197  ;;  %v1149_v29 = vshrl.u32 %v3387_v13, 16  ;;  %v1152_v8 = vshll.u32 %v3387_v13, 16  ;;  %v1158_v42 = vshll.u32 %v3388_v45, 16  ;;  %v1351_v47 = vrot.slane %v1349_v23, 4  ;;  %v4811_v13 = vld [vmem:[%s3978_s17 + $0x8c] sm:$0x1] }
  0xd5   : > { %v4758_v55 = vsel %vm2790_vm7, %v4441_v21, %v2198_v38  ;;  %v1379_v56 = vrot.slane %v1377_v24, 4  ;;  %v4772_v21 = vsel %vm4208_vm5, %v3438_v53, %v1377_v24  ;;  %v4778_v25 = vpack.c.b16 %v2670_v51, %v2669_v16 }
  0xd6   : > { %v2366_v5 = vpack.c.b16 %v4762_v36, %v4744_v57  ;;  %v1151_v3 = vrot.slane %v1149_v29, 4  ;;  %v4795_v33 = vpack.c.b16 %v2662_v48, %v2661_v41  ;;  %v2431_v40 = vunpack.c.l.b16 %v4772_v21  ;;  %v4820_v29 = vld [vmem:[%s3978_s17 + $0xb8] sm:$0xf] }
  0xd7   : > { %2549 = vrot.lane.b32.xlu2 %v3780_v61, %s3940_s22  ;;  %v4782_v7 = vsel %vm4208_vm5, %v1379_v56, %v1380_v30  ;;  %v1353_v4 = vsel %vm4208_vm5, %v1351_v47, %v1352_v49  ;;  %v1160_v19 = vrot.slane %v1158_v42, 5  ;;  %v1162_v58 = vshrl.u32 %v3388_v45, 16 }
  0xd8   : > { %v2432_v61 = vunpack.c.l.b16 %v4782_v7  ;;  %v1168_v51 = vshll.u32 %v3406_v17, 16  ;;  %v1665_v30 = vshll.u32 %v3459_v15, 16  ;;  %v2424_v41 = vunpack.c.l.b16 %v1353_v4 }
  0xd9   : > { %2725 = vrot.lane.b32.xlu0 %v4646_v35, %s3943_s25  ;;  %v2224_v59 = vpop.permute.xlu2 %2223  ;;  %v4790_v35 = vsel %vm4208_vm5, %v3434_v22, %v1349_v23  ;;  %v1164_v24 = vrot.slane %v1162_v58, 4  ;;  %v1671_v22 = vshll.u32 %v4800_v0, 16  ;;  %v1664_v56 = vrot.slane %v1662_v27, 4  ;;  %v3498_v58 = vld [vmem:[%s3978_s17 + $0x84] sm:$0xe] }
  0xda   : > { %2461 = vrot.lane.b32.xlu1 %v4670_v39, %s3941_s23  ;;  %v4793_v52 = vsel %vm2790_vm7, %v2783_v54, %v2224_v59  ;;  %v1154_v39 = vrot.slane %v1152_v8, 5  ;;  %v2423_v53 = vunpack.c.l.b16 %v4790_v35  ;;  %v1170_v48 = vrot.slane %v1168_v51, 5  ;;  %v3502_v59 = vld [vmem:[%s3978_s17 + $0xb4] sm:$0xe]  ;;  %v3486_v51 = vld [vmem:[%s3978_s17 + $0xbc] sm:$0x1] }
  0xdb   : > { %v2148_v9 = vpop.permute.xlu0 %2147  ;;  %v1165_v17 = vor.u32 %v1164_v24, %v1160_v19  ;;  %v1667_v23 = vrot.slane %v1665_v30, 5  ;;  %v1673_v49 = vrot.slane %v1671_v22, 5  ;;  %v1681_v42 = vshll.u32 %v4811_v13, 16 }
  0xdc   : > { %v2204_v38 = vpop.permute.xlu1 %2203  ;;  %v1155_v16 = vor.u32 %v1154_v39, %v1151_v3  ;;  %v1986_v14 = vrot.slane %v4820_v29, 5  ;;  %v3518_v3 = vrot.slane %v3502_v59, 9  ;;  %v1771_v59 = vshrl.u32 %v4820_v29, 16 }
  0xdd   : > { %v4807_v54 = vsel %vm2790_vm7, %v4479_v50, %v2204_v38  ;;  %v1675_v50 = vshrl.u32 %v4800_v0, 16  ;;  %v1166_v35 = vrot.slane %v1165_v17, 4  ;;  %v1668_v47 = vor.u32 %v1667_v23, %v1664_v56  ;;  %v3467_v56 = vld [vmem:[%s3978_s17 + $0xb4] sm:$0xf] }
  0xde   : > { %v1156_v45 = vrot.slane %v1155_v16, 4  ;;  %v1683_v4 = vrot.slane %v1681_v42, 5  ;;  %v4850_v24 = vsel %vm4208_vm5, %v3518_v3, %v1986_v14  ;;  %v1958_v17 = vrot.slane %v4800_v0, 5 }
  0xdf   : > { %2637 = vrot.lane.b32.xlu2 %v2617_v37, %s3942_s24  ;;  %v1677_v8 = vrot.slane %v1675_v50, 4  ;;  %v1669_v16 = vrot.slane %v1668_v47, 4  ;;  %v3514_v50 = vrot.slane %v3498_v58, 9  ;;  %v2450_v23 = vpack.c.b16 %v2432_v61, %v2431_v40 }
  0xe0   : > { %v1161_v7 = vsel %vm4006_vm2, %v1156_v45, %v1160_v19  ;;  %v1988_v19 = vrot.slane %v1986_v14, 4  ;;  %v4860_v45 = vsel %vm2741_vm6, %v3763_v18, %v2148_v9  ;;  %v2687_v21 = vunpack.c.l.b16 %v4850_v24  ;;  %v3410_v14 = vld [vmem:[%s3978_s17 + $0x18] sm:$0xe]  ;;  %v4914_v24 = vld [vmem:[%s3978_s17 + $0x4c] sm:$0xf] }
  0xe1   : > { %2453 = vrot.lane.b32.xlu0 %v4727_v28, %s3941_s23  ;;  %v2294_v37 = vpop.permute.xlu2 %2293  ;;  %v4834_v28 = vunpack.c.l.b16 %v1161_v7  ;;  %v1678_v38 = vor.u32 %v1677_v8, %v1673_v49  ;;  %v2446_v7 = vpack.c.b16 %v2424_v41, %v2423_v53  ;;  %v1960_v40 = vrot.slane %v1958_v17, 4 }
  0xe2   : > { %2629 = vrot.lane.b32.xlu1 %v2613_v11, %s3942_s24  ;;  %v4838_v15 = vsel %vm2823_vm8, %v4758_v55, %v2294_v37  ;;  %v1171_v11 = vsel %vm4006_vm2, %v1166_v35, %v1170_v48  ;;  %v3784_v55 = vld [vmem:[%s3978_s17 + $0x48] sm:$0xff]  ;;  %v1674_v48 = vsel %vm4006_vm2, %v1669_v16, %v1673_v49  ;;  %v1959_v61 = vsel %vm4208_vm5, %v3514_v50, %v1958_v17 }
  0xe3   : > { %v2202_v39 = vpop.permute.xlu0 %2201  ;;  %v4857_v30 = vunpack.c.l.b16 %v1171_v11  ;;  %v1679_v22 = vrot.slane %v1678_v38, 4  ;;  %v4878_v0 = vunpack.c.l.b16 %v1674_v48  ;;  %v1961_v53 = vrot.slane %v4811_v13, 5  ;;  %v4911_v11 = vld [vmem:[%s3978_s17 + $0x20] sm:$0x1] }
  0xe4   : > { %v4843_v63 = vsel %vm2790_vm7, %v4438_v20, %v2202_v39  ;;  %v2210_v32 = vpop.permute.xlu1 %2209  ;;  %v1989_v20 = vrot.slane %v3486_v51, 5  ;;  %v1758_v41 = vshrl.u32 %v3467_v56, 16  ;;  %v1761_v49 = vshll.u32 %v3467_v56, 16 }
  0xe5   : > { %v4855_v27 = vsel %vm2790_vm7, %v4609_v34, %v2210_v32  ;;  %v1684_v34 = vsel %vm4006_vm2, %v1679_v22, %v1683_v4  ;;  %v2370_v9 = vpack.c.b16 %v4857_v30, %v4834_v28  ;;  %v1767_v42 = vshll.u32 %v4820_v29, 16  ;;  %v4903_v4 = vld [vmem:[%s3978_s17 + $0x1c] sm:$0xf] }
  0xe6   : > { %v1990_v8 = vsel %vm4208_vm5, %v1988_v19, %v1989_v20  ;;  %v4887_v36 = vunpack.c.l.b16 %v1684_v34  ;;  %v1760_v37 = vrot.slane %v1758_v41, 4  ;;  %v1763_v35 = vrot.slane %v1761_v49, 5  ;;  %v3371_v19 = vld [vmem:[%s3978_s17 + $0x48] sm:$0xf]  ;;  %v3363_v49 = vld [vmem:[%s3978_s17 + $0x18] sm:$0xf] }
  0xe7   : > { %2391 = vrot.lane.b32.xlu2 %v2366_v5, %s3939_s21  ;;  %v2688_v5 = vunpack.c.l.b16 %v1990_v8  ;;  %v2679_v39 = vunpack.c.l.b16 %v1959_v61  ;;  %v1769_v29 = vrot.slane %v1767_v42, 5  ;;  %v1773_v38 = vrot.slane %v1771_v59, 4 }
  0xe8   : > { %v1764_v58 = vor.u32 %v1763_v35, %v1760_v37  ;;  %v1777_v32 = vshll.u32 %v3486_v51, 16  ;;  %v3426_v16 = vrot.slane %v3410_v14, 9  ;;  %v1293_v22 = vrot.slane %v4903_v4, 5 }
  0xe9   : > { %2557 = vrot.lane.b32.xlu0 %v3784_v55, %s3940_s22  ;;  %v2300_v57 = vpop.permute.xlu2 %2299  ;;  %v1774_v55 = vor.u32 %v1773_v38, %v1769_v29  ;;  %v1296_v20 = vrot.slane %v4911_v11, 5  ;;  %v957_v17 = vshrl.u32 %v3371_v19, 16  ;;  %v966_v8 = vshll.u32 %v4914_v24, 16 }
  0xea   : > { %2717 = vrot.lane.b32.xlu1 %v4778_v25, %s3943_s25  ;;  %v4894_v13 = vsel %vm2823_vm8, %v4807_v54, %v2300_v57  ;;  %v1962_v25 = vsel %vm4208_vm5, %v1960_v40, %v1961_v53  ;;  %v1765_v48 = vrot.slane %v1764_v58, 4  ;;  %v1779_v50 = vrot.slane %v1777_v32, 5  ;;  %v4931_v53 = vld [vmem:[%s3978_s17 + $0x50] sm:$0x1]  ;;  %v3793_v58 = vld [vmem:[%s3978_s17 + $0xb4] sm:$0xff] }
  0xeb   : > { %v2208_v18 = vpop.permute.xlu0 %2207  ;;  %v1775_v51 = vrot.slane %v1774_v55, 4  ;;  %v4921_v56 = vsel %vm4208_vm5, %v3426_v16, %v1293_v22  ;;  %v1295_v34 = vrot.slane %v1293_v22, 4  ;;  %v2622_v40 = vpack.c.b16 %v4887_v36, %v4878_v0 }
  0xec   : > { %v4900_v47 = vsel %vm2790_vm7, %v4429_v31, %v2208_v18  ;;  %v2216_v3 = vpop.permute.xlu1 %2215  ;;  %v2680_v31 = vunpack.c.l.b16 %v1962_v25  ;;  %v4928_v61 = vpack.c.b16 %v2688_v5, %v2687_v21  ;;  %v959_v41 = vrot.slane %v957_v17, 4 }
  0xed   : > { %v4908_v54 = vsel %vm2790_vm7, %v4690_v10, %v2216_v3  ;;  %v960_v10 = vshll.u32 %v3371_v19, 16  ;;  %v1770_v59 = vsel %vm4006_vm2, %v1765_v48, %v1769_v29  ;;  %v2407_v0 = vunpack.c.l.b16 %v4921_v56  ;;  %v3414_v19 = vld [vmem:[%s3978_s17 + $0x48] sm:$0xe] }
  0xee   : > { %v4935_v42 = vpack.c.b16 %v2680_v31, %v2679_v39  ;;  %v968_v14 = vrot.slane %v966_v8, 5  ;;  %v970_v37 = vshrl.u32 %v4914_v24, 16  ;;  %v976_v35 = vshll.u32 %v4931_v53, 16 }
  0xef   : > { %2479 = vrot.lane.b32.xlu2 %v2450_v23, %s3941_s23  ;;  %v962_v23 = vrot.slane %v960_v10, 5  ;;  %v861_v3 = vshrl.u32 %v3363_v49, 16  ;;  %v4960_v39 = vunpack.c.l.b16 %v1770_v59  ;;  %v864_v31 = vshll.u32 %v3363_v49, 16  ;;  %v3490_v59 = vld [vmem:[%s3978_s17 + $0x24] sm:$0xe] }
  0xf0   : > { %v972_v32 = vrot.slane %v970_v37, 4  ;;  %v870_v22 = vshll.u32 %v4903_v4, 16  ;;  %v3430_v10 = vrot.slane %v3414_v19, 9  ;;  %v1324_v49 = vrot.slane %v4931_v53, 5 }
  0xf1   : > { %2709 = vrot.lane.b32.xlu0 %v4795_v33, %s3943_s25  ;;  %v2306_v57 = vpop.permute.xlu2 %2305  ;;  %v1780_v33 = vsel %vm4006_vm2, %v1775_v51, %v1779_v50  ;;  %v963_v5 = vor.u32 %v962_v23, %v959_v41  ;;  %v863_v16 = vrot.slane %v861_v3, 4  ;;  %v978_v50 = vrot.slane %v976_v35, 5  ;;  %v3444_v35 = vld [vmem:[%s3978_s17 + $0x28] sm:$0xf]  ;;  %v3451_v3 = vld [vmem:[%s3978_s17 + $0x54] sm:$0xf] }
  0xf2   : > { %2471 = vrot.lane.b32.xlu1 %v2446_v7, %s3941_s23  ;;  %v4944_v36 = vsel %vm2823_vm8, %v4855_v27, %v2306_v57  ;;  %v4948_v7 = vsel %vm4208_vm5, %v1295_v34, %v1296_v20  ;;  %v4962_v29 = vunpack.c.l.b16 %v1780_v33  ;;  %v880_v20 = vshll.u32 %v4911_v11, 16 }
  0xf3   : > { %v2214_v21 = vpop.permute.xlu0 %2213  ;;  %v964_v38 = vrot.slane %v963_v5, 4  ;;  %v973_v48 = vor.u32 %v972_v32, %v968_v14  ;;  %v866_v17 = vrot.slane %v864_v31, 5  ;;  %v872_v34 = vrot.slane %v870_v22, 5  ;;  %v3789_v5 = vld [vmem:[%s3978_s17 + $0x84] sm:$0xff]  ;;  %v5012_v31 = vld [vmem:[%s3978_s17 + $0x58] sm:$0xf] }
  0xf4   : > { %v4952_v18 = vsel %vm2790_vm7, %v4433_v6, %v2214_v21  ;;  %v2222_v25 = vpop.permute.xlu1 %2221  ;;  %v2408_v6 = vunpack.c.l.b16 %v4948_v7  ;;  %v882_v23 = vrot.slane %v880_v20, 5  ;;  %v3506_v32 = vrot.slane %v3490_v59, 9  ;;  %v5022_v20 = vld [vmem:[%s3978_s17 + $0x5c] sm:$0x1]  ;;  %v3389_v59 = vld [vmem:[%s3978_s17 + $0xb4] sm:$0xf] }
  0xf5   : > { %v4958_v27 = vsel %vm2790_vm7, %v4767_v12, %v2222_v25  ;;  %v969_v55 = vsel %vm4006_vm2, %v964_v38, %v968_v14  ;;  %v874_v12 = vshrl.u32 %v4903_v4, 16  ;;  %v1321_v4 = vrot.slane %v4914_v24, 5 }
  0xf6   : > { %v4977_v51 = vunpack.c.l.b16 %v969_v55  ;;  %v867_v41 = vor.u32 %v866_v17, %v863_v16  ;;  %v1902_v16 = vrot.slane %v3444_v35, 5 }
  0xf7   : > { %2647 = vrot.lane.b32.xlu2 %v2622_v40, %s3942_s24  ;;  %v876_v8 = vrot.slane %v874_v12, 4  ;;  %v974_v40 = vrot.slane %v973_v48, 4  ;;  %v1323_v24 = vrot.slane %v1321_v4, 4  ;;  %v2438_v48 = vpack.c.b16 %v2408_v6, %v2407_v0 }
  0xf8   : > { %v868_v7 = vrot.slane %v867_v41, 4 }
  0xf9   : > { %2399 = vrot.lane.b32.xlu0 %v2370_v9, %s3939_s21  ;;  %v2312_v11 = vpop.permute.xlu2 %2311  ;;  %v877_v30 = vor.u32 %v876_v8, %v872_v34  ;;  %v1322_v9 = vsel %vm4208_vm5, %v3430_v10, %v1321_v4  ;;  %v979_v53 = vsel %vm4006_vm2, %v974_v40, %v978_v50  ;;  %v1566_v10 = vshrl.u32 %v3451_v3, 16 }
  0xfa   : > { %2575 = vrot.lane.b32.xlu1 %v3793_v58, %s3940_s22  ;;  %v4984_v28 = vsel %vm2823_vm8, %v4908_v54, %v2312_v11  ;;  %v2415_v54 = vunpack.c.l.b16 %v1322_v9  ;;  %v5000_v25 = vunpack.c.l.b16 %v979_v53  ;;  %v873_v38 = vsel %vm4006_vm2, %v868_v7, %v872_v34  ;;  %v5009_v58 = vld [vmem:[%s3978_s17 + $0x2c] sm:$0x1]  ;;  %v3443_v11 = vld [vmem:[%s3978_s17 + $0x24] sm:$0xf] }
  0xfb   : > { %v2220_v57 = vpop.permute.xlu0 %2219  ;;  %v878_v37 = vrot.slane %v877_v30, 4  ;;  %v5018_v22 = vunpack.c.l.b16 %v873_v38  ;;  %v1905_v12 = vrot.slane %v5009_v58, 5  ;;  %v1569_v34 = vshll.u32 %v3451_v3, 16 }
  0xfc   : > { %v4991_v33 = vsel %vm2790_vm7, %v4470_v62, %v2220_v57  ;;  %v2228_v21 = vpop.permute.xlu1 %2227  ;;  %v1325_v62 = vsel %vm4208_vm5, %v1323_v24, %v1324_v49  ;;  %v2362_v17 = vpack.c.b16 %v5000_v25, %v4977_v51  ;;  %v1579_v8 = vshrl.u32 %v5012_v31, 16 }
  0xfd   : > { %v4998_v14 = vsel %vm2790_vm7, %v4860_v45, %v2228_v21  ;;  %v2416_v19 = vunpack.c.l.b16 %v1325_v62  ;;  %v2626_v45 = vpack.c.b16 %v4962_v29, %v4960_v39  ;;  %v883_v55 = vsel %vm4006_vm2, %v878_v37, %v882_v23 }
  0xfe   : > { %v5028_v50 = vunpack.c.l.b16 %v883_v55  ;;  %v5032_v39 = vsel %vm4208_vm5, %v3506_v32, %v1902_v16  ;;  %v1904_v29 = vrot.slane %v1902_v16, 4  ;;  %v1585_v4 = vshll.u32 %v5022_v20, 16  ;;  %v5068_v55 = vld [vmem:[%s3978_s17 + $0xb8] sm:$0xf] }
  0xff   : > { %2735 = vrot.lane.b32.xlu2 %v4928_v61, %s3943_s25  ;;  %v1575_v61 = vshll.u32 %v5012_v31, 16  ;;  %v5040_v0 = vpack.c.b16 %v2416_v19, %v2415_v54  ;;  %v2663_v6 = vunpack.c.l.b16 %v5032_v39  ;;  %v1571_v23 = vrot.slane %v1569_v34, 5 }
 0x100   : > { %v2358_v51 = vpack.c.b16 %v5028_v50, %v5018_v22  ;;  %v5050_v41 = vsel %vm4208_vm5, %v1904_v29, %v1905_v12  ;;  %v1581_v24 = vrot.slane %v1579_v8, 4  ;;  %v1587_v7 = vrot.slane %v1585_v4, 5 }
 0x101   : > { %2567 = vrot.lane.b32.xlu0 %v3789_v5, %s3940_s22  ;;  %v2318_v56 = vpop.permute.xlu2 %2317  ;;  %v1577_v9 = vrot.slane %v1575_v61, 5  ;;  %v1470_v54 = vshrl.u32 %v3443_v11, 16  ;;  %v1473_v25 = vshll.u32 %v3443_v11, 16  ;;  %v1483_v37 = vshrl.u32 %v3444_v35, 16  ;;  %v5084_v11 = vld [vmem:[%s3978_s17 + $0xbc] sm:$0x1] }
 0x102   : > { %2727 = vrot.lane.b32.xlu1 %v4935_v42, %s3943_s25  ;;  %v1568_v42 = vrot.slane %v1566_v10, 4  ;;  %v5058_v57 = vsel %vm2823_vm8, %v4958_v27, %v2318_v56  ;;  %v1489_v27 = vshll.u32 %v5009_v58, 16  ;;  %v1173_v38 = vshrl.u32 %v3389_v59, 16 }
 0x103   : > { %v2226_v40 = vpop.permute.xlu0 %2225  ;;  %v1582_v5 = vor.u32 %v1581_v24, %v1577_v9  ;;  %v1472_v3 = vrot.slane %v1470_v54, 4  ;;  %v1475_v32 = vrot.slane %v1473_v25, 5  ;;  %v2664_v12 = vunpack.c.l.b16 %v5050_v41  ;;  %v3381_v24 = vld [vmem:[%s3978_s17 + $0x84] sm:$0xf] }
 0x104   : > { %v5054_v49 = vsel %vm2790_vm7, %v4546_v2, %v2226_v40  ;;  %v2298_v30 = vpop.permute.xlu1 %2297  ;;  %v1572_v53 = vor.u32 %v1571_v23, %v1568_v42  ;;  %v1479_v2 = vshll.u32 %v3444_v35, 16  ;;  %v1175_v29 = vrot.slane %v1173_v38, 4  ;;  %v3785_v23 = vld [vmem:[%s3978_s17 + $0x54] sm:$0xff]  ;;  %v5114_v38 = vld [vmem:[%s3978_s17 + $0x8c] sm:$0x1] }
 0x105   : > { %v5063_v21 = vsel %vm2823_vm8, %v4843_v63, %v2298_v30  ;;  %v1583_v19 = vrot.slane %v1582_v5, 4  ;;  %v1485_v63 = vrot.slane %v1483_v37, 4  ;;  %v1176_v10 = vshll.u32 %v3389_v59, 16  ;;  %v5101_v5 = vld [vmem:[%s3978_s17 + $0x88] sm:$0xf] }
 0x106   : > { %v1573_v62 = vrot.slane %v1572_v53, 4  ;;  %v1481_v16 = vrot.slane %v1479_v2, 5  ;;  %v1476_v34 = vor.u32 %v1475_v32, %v1472_v3  ;;  %v1491_v56 = vrot.slane %v1489_v27, 5 }
 0x107   : > { %2455 = vrot.lane.b32.xlu2 %v2438_v48, %s3941_s23  ;;  %v1588_v48 = vsel %vm4006_vm2, %v1583_v19, %v1587_v7  ;;  %v1182_v40 = vshll.u32 %v5068_v55, 16  ;;  %v1077_v19 = vshrl.u32 %v3381_v24, 16 }
 0x108   : > { %v1578_v35 = vsel %vm4006_vm2, %v1573_v62, %v1577_v9  ;;  %v1486_v61 = vor.u32 %v1485_v63, %v1481_v16  ;;  %v1477_v30 = vrot.slane %v1476_v34, 4  ;;  %v5098_v53 = vunpack.c.l.b16 %v1588_v48 }
 0x109   : > { %2655 = vrot.lane.b32.xlu0 %v2626_v45, %s3942_s24  ;;  %v2324_v58 = vpop.permute.xlu2 %2323  ;;  %v5081_v4 = vunpack.c.l.b16 %v1578_v35  ;;  %v1184_v54 = vrot.slane %v1182_v40, 5  ;;  %v1192_v62 = vshll.u32 %v5084_v11, 16  ;;  %v1080_v35 = vshll.u32 %v3381_v24, 16 }
 0x10a   : > { %2383 = vrot.lane.b32.xlu1 %v2362_v17, %s3939_s21  ;;  %v5079_v8 = vsel %vm2823_vm8, %v4998_v14, %v2324_v58  ;;  %v1178_v17 = vrot.slane %v1176_v10, 5  ;;  %v1487_v9 = vrot.slane %v1486_v61, 4  ;;  %v1186_v14 = vshrl.u32 %v5068_v55, 16 }
 0x10b   : > { %v2296_v45 = vpop.permute.xlu0 %2295  ;;  %v1482_v25 = vsel %vm4006_vm2, %v1477_v30, %v1481_v16  ;;  %v1194_v63 = vrot.slane %v1192_v62, 5  ;;  %v1086_v16 = vshll.u32 %v5101_v5, 16  ;;  %v2694_v10 = vpack.c.b16 %v2664_v12, %v2663_v6 }
 0x10c   : > { %v5089_v41 = vsel %vm2823_vm8, %v4586_v43, %v2296_v45  ;;  %v2304_v42 = vpop.permute.xlu1 %2303  ;;  %v1179_v7 = vor.u32 %v1178_v17, %v1175_v29  ;;  %v3781_v43 = vld [vmem:[%s3978_s17 + $0x24] sm:$0xff]  ;;  %v1492_v2 = vsel %vm4006_vm2, %v1487_v9, %v1491_v56  ;;  %v1188_v37 = vrot.slane %v1186_v14, 4  ;;  %v3494_v29 = vld [vmem:[%s3978_s17 + $0x54] sm:$0xe] }
 0x10d   : > { %v5096_v59 = vsel %vm2823_vm8, %v4900_v47, %v2304_v42  ;;  %v5109_v3 = vunpack.c.l.b16 %v1482_v25  ;;  %v5111_v47 = vunpack.c.l.b16 %v1492_v2  ;;  %v2618_v58 = vpack.c.b16 %v5098_v53, %v5081_v4  ;;  %v3423_v9 = vld [vmem:[%s3978_s17 + $0xb4] sm:$0xe]  ;;  %v3419_v2 = vld [vmem:[%s3978_s17 + $0x84] sm:$0xe] }
 0x10e   : > { %v1180_v27 = vrot.slane %v1179_v7, 4  ;;  %v1189_v32 = vor.u32 %v1188_v37, %v1184_v54  ;;  %v1079_v48 = vrot.slane %v1077_v19, 4  ;;  %v1090_v34 = vshrl.u32 %v5101_v5, 16 }
 0x10f   : > { %2559 = vrot.lane.b32.xlu2 %v3785_v23, %s3940_s22  ;;  %v1082_v17 = vrot.slane %v1080_v35, 5  ;;  %v1088_v22 = vrot.slane %v1086_v16, 5  ;;  %v2614_v39 = vpack.c.b16 %v5111_v47, %v5109_v3  ;;  %v3510_v12 = vrot.slane %v3494_v29, 9  ;;  %v3469_v35 = vld [vmem:[%s3978_s17 + $0xc0] sm:$0xf] }
 0x110   : > { %v1185_v56 = vsel %vm4006_vm2, %v1180_v27, %v1184_v54  ;;  %v1190_v45 = vrot.slane %v1189_v32, 4  ;;  %v1092_v6 = vrot.slane %v1090_v34, 4  ;;  %v1930_v30 = vrot.slane %v5012_v31, 5 }
 0x111   : > { %2375 = vrot.lane.b32.xlu0 %v2358_v51, %s3939_s21  ;;  %v2398_v61 = vpop.permute.xlu2 %2397  ;;  %v1096_v51 = vshll.u32 %v5114_v38, 16  ;;  %v1083_v23 = vor.u32 %v1082_v17, %v1079_v48  ;;  %v2353_v24 = vunpack.c.l.b16 %v1185_v56  ;;  %v1933_v25 = vrot.slane %v5022_v20, 5 }
 0x112   : > { %2551 = vrot.lane.b32.xlu1 %v3781_v43, %s3940_s22  ;;  %v1195_v42 = vsel %vm4006_vm2, %v1190_v45, %v1194_v63  ;;  %v5146_v14 = vsel %vm2856_vm9, %v5058_v57, %v2398_v61  ;;  %v1093_v53 = vor.u32 %v1092_v6, %v1088_v22  ;;  %v1932_v43 = vrot.slane %v1930_v30, 4 }
 0x113   : > { %v2302_v50 = vpop.permute.xlu0 %2301  ;;  %v1098_v7 = vrot.slane %v1096_v51, 5  ;;  %v1084_v54 = vrot.slane %v1083_v23, 4  ;;  %v2354_v37 = vunpack.c.l.b16 %v1195_v42  ;;  %v3439_v27 = vrot.slane %v3423_v9, 9  ;;  %v5187_v42 = vld [vmem:[%s3978_s17 + $0xc8] sm:$0x1] }
 0x114   : > { %v5136_v4 = vsel %vm2823_vm8, %v4651_v46, %v2302_v50  ;;  %v5138_v40 = vpop.permute.xlu1 %2309  ;;  %v1931_v46 = vsel %vm4208_vm5, %v3510_v12, %v1930_v30  ;;  %v1094_v62 = vrot.slane %v1093_v53, 4  ;;  %v1934_v19 = vsel %vm4208_vm5, %v1932_v43, %v1933_v25 }
 0x115   : > { %v2671_v31 = vunpack.c.l.b16 %v1931_v46  ;;  %v1089_v57 = vsel %vm4006_vm2, %v1084_v54, %v1088_v22  ;;  %v1384_v32 = vrot.slane %v5068_v55, 5  ;;  %v1387_v63 = vrot.slane %v5084_v11, 5  ;;  %v5174_v22 = vld [vmem:[%s3978_s17 + $0xc4] sm:$0xf]  ;;  %v5197_v46 = vld [vmem:[%s3978_s17 + $0x94] sm:$0xf] }
 0x116   : > { %v1099_v20 = vsel %vm4006_vm2, %v1094_v62, %v1098_v7  ;;  %v2345_v16 = vunpack.c.l.b16 %v1089_v57  ;;  %v2672_v29 = vunpack.c.l.b16 %v1934_v19  ;;  %v1356_v61 = vrot.slane %v5101_v5, 5  ;;  %v3029_v19 = vld [vmem:[%s5766_s1 + $0x20] sm:$0xf] }
 0x117   : > { %2711 = vrot.lane.b32.xlu2 %v2694_v10, %s3943_s25  ;;  %v3435_v10 = vrot.slane %v3419_v2, 9  ;;  %v2346_v34 = vunpack.c.l.b16 %v1099_v20  ;;  %v1385_v55 = vsel %vm4208_vm5, %v3439_v27, %v1384_v32  ;;  %v1386_v11 = vrot.slane %v1384_v32, 4 }
 0x118   : > { %v2371_v56 = vpack.c.b16 %v2354_v37, %v2353_v24  ;;  %v5170_v45 = vpack.c.b16 %v2672_v29, %v2671_v31  ;;  %v1359_v17 = vrot.slane %v5114_v38, 5  ;;  %v2433_v12 = vunpack.c.l.b16 %v1385_v55  ;;  %v3461_v38 = vld [vmem:[%s3978_s17 + $0x90] sm:$0xf] }
 0x119   : > { %2463 = vrot.lane.b32.xlu0 %v5040_v0, %s3941_s23  ;;  %v5165_v48 = vpop.permute.xlu2 %2565  ;;  %v1388_v51 = vsel %vm4208_vm5, %v1386_v11, %v1387_v63  ;;  %v5184_v5 = vsel %vm4208_vm5, %v3435_v10, %v1356_v61  ;;  %v2367_v30 = vpack.c.b16 %v2346_v34, %v2345_v16  ;;  %v1358_v9 = vrot.slane %v1356_v61, 4 }
 0x11a   : > { %2639 = vrot.lane.b32.xlu1 %v2618_v58, %s3942_s24  ;;  %v1782_v58 = vshrl.u32 %v3469_v35, 16  ;;  %v1785_v53 = vshll.u32 %v3469_v35, 16  ;;  %v1791_v7 = vshll.u32 %v5174_v22, 16  ;;  %v1795_v54 = vshrl.u32 %v5174_v22, 16 }
 0x11b   : > { %v2308_v0 = vpop.permute.xlu0 %2307  ;;  %v1360_v43 = vsel %vm4208_vm5, %v1358_v9, %v1359_v17  ;;  %v2425_v25 = vunpack.c.l.b16 %v5184_v5  ;;  %v1801_v2 = vshll.u32 %v5187_v42, 16  ;;  %v1686_v37 = vshrl.u32 %v3461_v38, 16  ;;  %v3790_v17 = vld [vmem:[%s3978_s17 + $0x90] sm:$0xff] }
 0x11c   : > { %v5178_v50 = vsel %vm2823_vm8, %v4694_v1, %v2308_v0  ;;  %v2316_v6 = vpop.permute.xlu1 %2315  ;;  %v2434_v1 = vunpack.c.l.b16 %v1388_v51  ;;  %v1784_v24 = vrot.slane %v1782_v58, 4  ;;  %v1787_v31 = vrot.slane %v1785_v53, 5  ;;  %v5235_v53 = vld [vmem:[%s3978_s17 + $0x28] sm:$0xf] }
 0x11d   : > { %v5192_v23 = vsel %vm2823_vm8, %v4991_v33, %v2316_v6  ;;  %v5204_v33 = vld [vmem:[%s3978_s17 + $0x98] sm:$0x1]  ;;  %v1793_v27 = vrot.slane %v1791_v7, 5  ;;  %v1797_v57 = vrot.slane %v1795_v54, 4  ;;  %v2426_v32 = vunpack.c.l.b16 %v1360_v43 }
 0x11e   : > { %v2451_v62 = vpack.c.b16 %v2434_v1, %v2433_v12  ;;  %v1688_v63 = vrot.slane %v1686_v37, 4  ;;  %v1689_v35 = vshll.u32 %v3461_v38, 16  ;;  %v1695_v20 = vshll.u32 %v5197_v46, 16  ;;  %v3365_v1 = vld [vmem:[%s3978_s17 + $0x24] sm:$0xf] }
 0x11f   : > { %2401 = vrot.lane.b32.xlu2 %v2371_v56, %s3939_s21  ;;  %v1788_v29 = vor.u32 %v1787_v31, %v1784_v24  ;;  %v1798_v10 = vor.u32 %v1797_v57, %v1793_v27  ;;  %v1803_v34 = vrot.slane %v1801_v2, 5  ;;  %v1699_v55 = vshrl.u32 %v5197_v46, 16  ;;  %v3799_v31 = vld [vmem:[%s5766_s1 + $0x18] sm:$0xff] }
 0x120   : > { %v1691_v61 = vrot.slane %v1689_v35, 5  ;;  %v1697_v3 = vrot.slane %v1695_v20, 5  ;;  %v1705_v47 = vshll.u32 %v5204_v33, 16  ;;  %v5240_v2 = vsel %vm2823_vm8, %v4952_v18, %v5138_v40  ;;  %v5251_v18 = vld [vmem:[%s3978_s17 + $0x2c] sm:$0x1] }
 0x121   : > { %2631 = vrot.lane.b32.xlu0 %v2614_v39, %s3942_s24  ;;  %v5216_v16 = vpop.permute.xlu2 %2653  ;;  %v3050_v39 = vunpack.c.l.b16 %v3029_v19  ;;  %v1789_v58 = vrot.slane %v1788_v29, 4  ;;  %v1799_v6 = vrot.slane %v1798_v10, 4  ;;  %v1701_v51 = vrot.slane %v1699_v55, 4  ;;  %v3503_v20 = vld [vmem:[%s3978_s17 + $0xc0] sm:$0xe] }
 0x122   : > { %2393 = vrot.lane.b32.xlu1 %v2367_v30, %s3939_s21  ;;  %v1692_v5 = vor.u32 %v1691_v61, %v1688_v63  ;;  %v1707_v38 = vrot.slane %v1705_v47, 5  ;;  %v888_v57 = vshll.u32 %v3365_v1, 16  ;;  %v2447_v19 = vpack.c.b16 %v2426_v32, %v2425_v25  ;;  %v3499_v47 = vld [vmem:[%s3978_s17 + $0x90] sm:$0xe] }
 0x123   : > { %v2314_v11 = vpop.permute.xlu0 %2313  ;;  %v3055_v30 = vpack.c.b16 %v3050_v39, %v3050_v39  ;;  %v1794_v9 = vsel %vm4006_vm2, %v1789_v58, %v1793_v27  ;;  %v1702_v24 = vor.u32 %v1701_v51, %v1697_v3  ;;  %v885_v27 = vshrl.u32 %v3365_v1, 16 }
 0x124   : > { %v5222_v0 = vsel %vm2823_vm8, %v4742_v44, %v2314_v11  ;;  %v2322_v56 = vpop.permute.xlu1 %2321  ;;  %v1804_v44 = vsel %vm4006_vm2, %v1799_v6, %v1803_v34  ;;  %v2609_v7 = vunpack.c.l.b16 %v1794_v9  ;;  %v1693_v43 = vrot.slane %v1692_v5, 4  ;;  %v3798_v6 = vld [vmem:[%s5766_s1 + $0x10] sm:$0xff] }
 0x125   : > { %v5227_v12 = vsel %vm2823_vm8, %v5054_v49, %v2322_v56  ;;  %v2610_v54 = vunpack.c.l.b16 %v1804_v44  ;;  %v3095_v49 = vsel %vm3093_vm10, %v3055_v30, 0  ;;  %v1703_v37 = vrot.slane %v1702_v24, 4 }
 0x126   : > { %3896 = vmatpush.bf16.msra.mxu2 %v3095_v49  ;;  %v1698_v63 = vsel %vm4006_vm2, %v1693_v43, %v1697_v3  ;;  %3897 = vmatpush.bf16.msra.mxu3 %v3095_v49  ;;  %v894_v40 = vshll.u32 %v5235_v53, 16  ;;  %v898_v35 = vshrl.u32 %v5235_v53, 16  ;;  %v887_v25 = vrot.slane %v885_v27, 4 }
 0x127   : > { %2569 = vrot.lane.b32.xlu2 %v3790_v17, %s3940_s22  ;;  %v1708_v10 = vsel %vm4006_vm2, %v1703_v37, %v1707_v38  ;;  %v890_v32 = vrot.slane %v888_v57, 5  ;;  %3100 = vmatpush.bf16.msra.mxu0 %v3095_v49  ;;  %v2627_v55 = vpack.c.b16 %v2610_v54, %v2609_v7  ;;  %v904_v17 = vshll.u32 %v5251_v18, 16  ;;  %v3415_v37 = vld [vmem:[%s3978_s17 + $0x54] sm:$0xe] }
 0x128   : > { %v2602_v11 = vunpack.c.l.b16 %v1708_v10  ;;  %v896_v61 = vrot.slane %v894_v40, 5  ;;  %v900_v3 = vrot.slane %v898_v35, 4  ;;  %3895 = vmatpush.bf16.msra.mxu1 %v3095_v49  ;;  %v3519_v58 = vrot.slane %v3503_v20, 9  ;;  %v3374_v20 = vld [vmem:[%s3978_s17 + $0x58] sm:$0xf] }
 0x129   : > { %2719 = vrot.lane.b32.xlu0 %v5170_v45, %s3943_s25  ;;  %v2382_v29 = vpop.permute.xlu2 %2381  ;;  %v2601_v45 = vunpack.c.l.b16 %v1698_v63  ;;  %v891_v56 = vor.u32 %v890_v32, %v887_v25  ;;  %v1993_v38 = vrot.slane %v5174_v22, 5  ;;  %v906_v1 = vrot.slane %v904_v17, 5  ;;  %v3411_v32 = vld [vmem:[%s3978_s17 + $0x24] sm:$0xe] }
 0x12a   : > { %2481 = vrot.lane.b32.xlu1 %v2451_v62, %s3941_s23  ;;  %3899 = vmatpush.bf16.msra.mxu2 %v3799_v31  ;;  %v901_v5 = vor.u32 %v900_v3, %v896_v61  ;;  %v3515_v9 = vrot.slane %v3499_v47, 9  ;;  %v1965_v54 = vrot.slane %v5197_v46, 5  ;;  %v5275_v43 = vsel %vm2856_vm9, %v5136_v4, %v2382_v29  ;;  %v3797_v46 = vld [vmem:[%s5766_s1 + $0x8] sm:$0xff]  ;;  %v5301_v29 = vld [vmem:[%s3978_s17 + $0x5c] sm:$0x1] }
 0x12b   : > { %v2320_v34 = vpop.permute.xlu0 %2319  ;;  %v2623_v51 = vpack.c.b16 %v2602_v11, %v2601_v45  ;;  %3900 = vmatpush.bf16.msra.mxu3 %v3799_v31  ;;  %v892_v30 = vrot.slane %v891_v56, 4  ;;  %3101 = vmatpush.bf16.msra.mxu0 %v3799_v31  ;;  %v1994_v24 = vsel %vm4208_vm5, %v3519_v58, %v1993_v38  ;;  %v1995_v7 = vrot.slane %v1993_v38, 4  ;;  %v3373_v47 = vld [vmem:[%s3978_s17 + $0x54] sm:$0xf]  ;;  %v3794_v56 = vld [vmem:[%s3978_s17 + $0xc0] sm:$0xff] }
 0x12c   : > { %v5262_v39 = vsel %vm2823_vm8, %v4793_v52, %v2320_v34  ;;  %v2390_v62 = vpop.permute.xlu1 %2389  ;;  %v1996_v52 = vrot.slane %v5187_v42, 5  ;;  %v902_v44 = vrot.slane %v901_v5, 4  ;;  %3898 = vmatpush.bf16.msra.mxu1 %v3799_v31  ;;  %v2689_v42 = vunpack.c.l.b16 %v1994_v24 }
 0x12d   : > { %v897_v22 = vsel %vm4006_vm2, %v892_v30, %v896_v61  ;;  %v1968_v49 = vrot.slane %v5204_v33, 5  ;;  %v1966_v33 = vsel %vm4208_vm5, %v3515_v9, %v1965_v54  ;;  %v5294_v57 = vsel %vm2856_vm9, %v5240_v2, %v2390_v62  ;;  %v3796_v62 = vld [vmem:[%s5766_s1] sm:$0xff] }
 0x12e   : > { %3902 = vmatpush.bf16.msra.mxu2 %v3798_v6  ;;  %v907_v4 = vsel %vm4006_vm2, %v902_v44, %v906_v1  ;;  %v2329_v31 = vunpack.c.l.b16 %v897_v22  ;;  %v1997_v27 = vsel %vm4208_vm5, %v1995_v7, %v1996_v52  ;;  %v1967_v35 = vrot.slane %v1965_v54, 4 }
 0x12f   : > { %2657 = vrot.lane.b32.xlu2 %v2627_v55, %s3942_s24  ;;  %3903 = vmatpush.bf16.msra.mxu3 %v3798_v6  ;;  %v2690_v40 = vunpack.c.l.b16 %v1997_v27  ;;  %v3431_v45 = vrot.slane %v3415_v37, 9  ;;  %v1328_v25 = vrot.slane %v3374_v20, 5  ;;  %v1331_v2 = vrot.slane %v5301_v29, 5 }
 0x130   : > { %3102 = vmatpush.bf16.msra.mxu0 %v3798_v6  ;;  %3901 = vmatpush.bf16.msra.mxu1 %v3798_v6  ;;  %v1969_v61 = vsel %vm4208_vm5, %v1967_v35, %v1968_v49  ;;  %v2681_v3 = vunpack.c.l.b16 %v1966_v33  ;;  %v3427_v5 = vrot.slane %v3411_v32, 9  ;;  %v1300_v38 = vrot.slane %v5235_v53, 5  ;;  %v3445_v49 = vld [vmem:[%s3978_s17 + $0x30] sm:$0xf]  ;;  %v5343_v32 = vld [vmem:[%s3978_s17 + $0x38] sm:$0x1] }
 0x131   : > { %2473 = vrot.lane.b32.xlu0 %v2447_v19, %s3941_s23  ;;  %v5297_v63 = vpop.permute.xlu2 %2549  ;;  %v2330_v19 = vunpack.c.l.b16 %v907_v4  ;;  %v2707_v17 = vpack.c.b16 %v2690_v40, %v2689_v42  ;;  %v2682_v58 = vunpack.c.l.b16 %v1969_v61  ;;  %v1330_v6 = vrot.slane %v1328_v25, 4 }
 0x132   : > { %2649 = vrot.lane.b32.xlu1 %v2623_v51, %s3942_s24  ;;  %3905 = vmatpush.bf16.msra.mxu2 %v3797_v46  ;;  %v1303_v30 = vrot.slane %v5251_v18, 5  ;;  %v981_v9 = vshrl.u32 %v3373_v47, 16  ;;  %v984_v44 = vshll.u32 %v3373_v47, 16  ;;  %v1302_v7 = vrot.slane %v1300_v38, 4 }
 0x133   : > { %v2374_v10 = vpop.permute.xlu0 %2373  ;;  %v2359_v11 = vpack.c.b16 %v2330_v19, %v2329_v31  ;;  %3906 = vmatpush.bf16.msra.mxu3 %v3797_v46  ;;  %v1332_v1 = vsel %vm4208_vm5, %v1330_v6, %v1331_v2  ;;  %v990_v54 = vshll.u32 %v3374_v20, 16  ;;  %v2703_v53 = vpack.c.b16 %v2682_v58, %v2681_v3  ;;  %v3495_v3 = vld [vmem:[%s3978_s17 + $0x60] sm:$0xe] }
 0x134   : > { %v5307_v34 = vsel %vm2856_vm9, %v4838_v15, %v2374_v10  ;;  %v2478_v55 = vpop.permute.xlu1 %2477  ;;  %v1329_v15 = vsel %vm4208_vm5, %v3431_v45, %v1328_v25  ;;  %3103 = vmatpush.bf16.msra.mxu0 %v3797_v46  ;;  %3904 = vmatpush.bf16.msra.mxu1 %v3797_v46  ;;  %v2418_v24 = vunpack.c.l.b16 %v1332_v1  ;;  %v983_v18 = vrot.slane %v981_v9, 4  ;;  %v5338_v10 = vld [vmem:[%s3978_s17 + $0x34] sm:$0xf] }
 0x135   : > { %v5320_v51 = vsel %vm2889_vm11, %v5146_v14, %v2478_v55  ;;  %v2417_v52 = vunpack.c.l.b16 %v1329_v15  ;;  %v1301_v14 = vsel %vm4208_vm5, %v3427_v5, %v1300_v38  ;;  %v986_v22 = vrot.slane %v984_v44, 5 }
 0x136   : > { %3908 = vmatpush.bf16.msra.mxu2 %v3796_v62  ;;  %v994_v42 = vshrl.u32 %v3374_v20, 16  ;;  %v1304_v37 = vsel %vm4208_vm5, %v1302_v7, %v1303_v30  ;;  %v2409_v4 = vunpack.c.l.b16 %v1301_v14  ;;  %v992_v31 = vrot.slane %v990_v54, 5  ;;  %v5363_v14 = vld [vmem:[%s3978_s17 + $0x68] sm:$0x1] }
 0x137   : > { %2377 = vrot.lane.b32.xlu2 %v2359_v11, %s3939_s21  ;;  %3909 = vmatpush.bf16.msra.mxu3 %v3796_v62  ;;  %v1000_v27 = vshll.u32 %v5301_v29, 16  ;;  %v2443_v19 = vpack.c.b16 %v2418_v24, %v2417_v52  ;;  %v2410_v40 = vunpack.c.l.b16 %v1304_v37  ;;  %v987_v35 = vor.u32 %v986_v22, %v983_v18  ;;  %v3491_v52 = vld [vmem:[%s3978_s17 + $0x30] sm:$0xe] }
 0x138   : > { %3104 = vmatpush.bf16.msra.mxu0 %v3796_v62  ;;  %v996_v20 = vrot.slane %v994_v42, 4  ;;  %3907 = vmatpush.bf16.msra.mxu1 %v3796_v62  ;;  %v1494_v29 = vshrl.u32 %v3445_v49, 16  ;;  %v1507_v15 = vshrl.u32 %v5338_v10, 16  ;;  %v1513_v6 = vshll.u32 %v5343_v32, 16 }
 0x139   : > { %2577 = vrot.lane.b32.xlu0 %v3794_v56, %s3940_s22  ;;  %v5332_v46 = vpop.permute.xlu2 %2637  ;;  %v1002_v2 = vrot.slane %v1000_v27, 5  ;;  %v988_v11 = vrot.slane %v987_v35, 4  ;;  %v2439_v47 = vpack.c.b16 %v2410_v40, %v2409_v4  ;;  %v1497_v56 = vshll.u32 %v3445_v49, 16 }
 0x13a   : > { %2737 = vrot.lane.b32.xlu1 %v2707_v17, %s3943_s25  ;;  %v997_v61 = vor.u32 %v996_v20, %v992_v31  ;;  %v1496_v62 = vrot.slane %v1494_v29, 4  ;;  %v3511_v1 = vrot.slane %v3495_v3, 9  ;;  %v1509_v24 = vrot.slane %v1507_v15, 4  ;;  %v3420_v15 = vld [vmem:[%s3978_s17 + $0x90] sm:$0xe] }
 0x13b   : > { %v2470_v33 = vpop.permute.xlu0 %2469  ;;  %v993_v17 = vsel %vm4006_vm2, %v988_v11, %v992_v31  ;;  %v1499_v38 = vrot.slane %v1497_v56, 5  ;;  %v1515_v42 = vrot.slane %v1513_v6, 5  ;;  %v1940_v49 = vrot.slane %v5363_v14, 5 }
 0x13c   : > { %v2907_v45 = vsel %vm2889_vm11, %v5294_v57, %v2470_v33  ;;  %v2646_v25 = vpop.permute.xlu1 %2645  ;;  %v1503_v57 = vshll.u32 %v5338_v10, 16  ;;  %v998_v58 = vrot.slane %v997_v61, 4  ;;  %v2337_v5 = vunpack.c.l.b16 %v993_v17 }
 0x13d   : > { %v2940_v55 = vsel %vm2922_vm12, %v2907_v45, %v5165_v48  ;;  %v5354_v48 = vld [vmem:[%s3978_s17 + $0x64] sm:$0xf]  ;;  %v1500_v22 = vor.u32 %v1499_v38, %v1496_v62  ;;  %v3507_v27 = vrot.slane %v3491_v52, 9  ;;  %v1909_v29 = vrot.slane %v5338_v10, 5 }
 0x13e   : > { %v1505_v30 = vrot.slane %v1503_v57, 5  ;;  %v2973_v9 = vsel %vm2955_vm13, %v2940_v55, %v2646_v25  ;;  %v1003_v44 = vsel %vm4006_vm2, %v998_v58, %v1002_v2  ;;  %v1937_v7 = vrot.slane %v5354_v48, 5  ;;  %v3453_v55 = vld [vmem:[%s3978_s17 + $0x60] sm:$0xf] }
 0x13f   : > { %2465 = vrot.lane.b32.xlu2 %v2443_v19, %s3941_s23  ;;  %v2338_v54 = vunpack.c.l.b16 %v1003_v44  ;;  %v1501_v20 = vrot.slane %v1500_v22, 4  ;;  %v1912_v3 = vrot.slane %v5343_v32, 5  ;;  %v1910_v10 = vsel %vm4208_vm5, %v3507_v27, %v1909_v29  ;;  %v5411_v27 = vld [vmem:[%s3978_s17 + $0xc4] sm:$0xf] }
 0x140   : > { %v1510_v37 = vor.u32 %v1509_v24, %v1505_v30  ;;  %v1938_v4 = vsel %vm4208_vm5, %v3511_v1, %v1937_v7  ;;  %v1939_v31 = vrot.slane %v1937_v7, 4  ;;  %v1911_v62 = vrot.slane %v1909_v29, 4  ;;  %v5401_v24 = vld [vmem:[%s3978_s17 + $0x94] sm:$0xf] }
 0x141   : > { %2729 = vrot.lane.b32.xlu0 %v2703_v53, %s3943_s25  ;;  %v2392_v18 = vpop.permute.xlu2 %2391  ;;  %v2363_v19 = vpack.c.b16 %v2338_v54, %v2337_v5  ;;  %v1506_v11 = vsel %vm4006_vm2, %v1501_v20, %v1505_v30  ;;  %v2673_v61 = vunpack.c.l.b16 %v1938_v4  ;;  %v2665_v17 = vunpack.c.l.b16 %v1910_v10 }
 0x142   : > { %2457 = vrot.lane.b32.xlu1 %v2439_v47, %s3941_s23  ;;  %v5374_v40 = vsel %vm2856_vm9, %v4984_v28, %v2392_v18  ;;  %v1511_v25 = vrot.slane %v1510_v37, 4  ;;  %v1941_v2 = vsel %vm4208_vm5, %v1939_v31, %v1940_v49  ;;  %v3786_v28 = vld [vmem:[%s3978_s17 + $0x60] sm:$0xff]  ;;  %v2585_v47 = vunpack.c.l.b16 %v1506_v11  ;;  %v5407_v31 = vld [vmem:[%s3978_s17 + $0x98] sm:$0x1] }
 0x143   : > { %v2574_v53 = vpop.permute.xlu0 %2573  ;;  %v2674_v57 = vunpack.c.l.b16 %v1941_v2  ;;  %v1590_v58 = vshrl.u32 %v3453_v55, 16  ;;  %v1913_v32 = vsel %vm4208_vm5, %v1911_v62, %v1912_v3  ;;  %v1593_v6 = vshll.u32 %v3453_v55, 16  ;;  %v3391_v49 = vld [vmem:[%s3978_s17 + $0xc0] sm:$0xf] }
 0x144   : > { %v2948_v33 = vsel %vm2922_vm12, %v5320_v51, %v2574_v53  ;;  %v2734_v35 = vpop.permute.xlu1 %2733  ;;  %v1599_v5 = vshll.u32 %v5354_v48, 16  ;;  %v1603_v38 = vshrl.u32 %v5354_v48, 16  ;;  %v2666_v1 = vunpack.c.l.b16 %v1913_v32 }
 0x145   : > { %v2981_v45 = vsel %vm2955_vm13, %v2948_v33, %v5216_v16  ;;  %v1516_v16 = vsel %vm4006_vm2, %v1511_v25, %v1515_v42  ;;  %v1592_v52 = vrot.slane %v1590_v58, 4  ;;  %v1609_v44 = vshll.u32 %v5363_v14, 16  ;;  %v3782_v33 = vld [vmem:[%s3978_s17 + $0x30] sm:$0xff] }
 0x146   : > { %v3014_v51 = vsel %vm2988_vm14, %v2981_v45, %v2734_v35  ;;  %v2586_v56 = vunpack.c.l.b16 %v1516_v16  ;;  %v1595_v54 = vrot.slane %v1593_v6, 5  ;;  %v1601_v18 = vrot.slane %v1599_v5, 5  ;;  %v5423_v16 = vld [vmem:[%s3978_s17 + $0xc8] sm:$0x1] }
 0x147   : > { %3741 = vmatmul.msk.bf16.vlgmr.msra.gmra.mxu3 %vm3060_vm15, %v3014_v51  ;;  %v1605_v22 = vrot.slane %v1603_v38, 4  ;;  %v3436_v42 = vrot.slane %v3420_v15, 9  ;;  %v2699_v37 = vpack.c.b16 %v2674_v57, %v2673_v61  ;;  %v2695_v4 = vpack.c.b16 %v2666_v1, %v2665_v17  ;;  %v3383_v61 = vld [vmem:[%s3978_s17 + $0x90] sm:$0xf] }
 0x148   : > { %v2615_v30 = vpack.c.b16 %v2586_v56, %v2585_v47  ;;  %v1363_v14 = vrot.slane %v5401_v24, 5  ;;  %v1611_v20 = vrot.slane %v1609_v44, 5  ;;  %v1197_v2 = vshrl.u32 %v3391_v49, 16 }
 0x149   : > { %2385 = vrot.lane.b32.xlu0 %v2363_v19, %s3939_s21  ;;  %v1596_v19 = vor.u32 %v1595_v54, %v1592_v52  ;;  %v1606_v35 = vor.u32 %v1605_v22, %v1601_v18  ;;  %v1200_v29 = vshll.u32 %v3391_v49, 16  ;;  %v1210_v62 = vshrl.u32 %v5411_v27, 16  ;;  %v5427_v56 = vpop.permute.xlu2 %2479 }
 0x14a   : > { %2561 = vrot.lane.b32.xlu1 %v3786_v28, %s3940_s22  ;;  %2633 = vrot.lane.b32.xlu2 %v2615_v30, %s3942_s24  ;;  %v1364_v45 = vsel %vm4208_vm5, %v3436_v42, %v1363_v14  ;;  %v1365_v25 = vrot.slane %v1363_v14, 4  ;;  %v1206_v28 = vshll.u32 %v5411_v27, 16  ;;  %v1199_v47 = vrot.slane %v1197_v2, 4 }
 0x14b   : > { %v2726_v7 = vpop.permute.xlu0 %2725  ;;  %v1597_v55 = vrot.slane %v1596_v19, 4  ;;  %v1607_v51 = vrot.slane %v1606_v35, 4  ;;  %v2427_v11 = vunpack.c.l.b16 %v1364_v45  ;;  %v1202_v10 = vrot.slane %v1200_v29, 5 }
 0x14c   : > { %v3006_v48 = vsel %vm2988_vm14, %v2973_v9, %v2726_v7  ;;  %v2462_v53 = vpop.permute.xlu1 %2461  ;;  %v1366_v9 = vrot.slane %v5407_v31, 5  ;;  %v1208_v15 = vrot.slane %v1206_v28, 5  ;;  %v1212_v38 = vrot.slane %v1210_v62, 4 }
 0x14d   : > { %3737 = vmatmul.msk.bf16.vlgmr.msra.gmra.mxu2 %vm3060_vm15, %v3006_v48  ;;  %v1602_v57 = vsel %vm4006_vm2, %v1597_v55, %v1601_v18  ;;  %v1612_v17 = vsel %vm4006_vm2, %v1607_v51, %v1611_v20  ;;  %v1203_v5 = vor.u32 %v1202_v10, %v1199_v47  ;;  %v2899_v30 = vsel %vm2889_vm11, %v5275_v43, %v2462_v53  ;;  %v3424_v43 = vld [vmem:[%s3978_s17 + $0xc0] sm:$0xe] }
 0x14e   : > { %v1367_v3 = vsel %vm4208_vm5, %v1365_v25, %v1366_v9  ;;  %v2593_v32 = vunpack.c.l.b16 %v1602_v57  ;;  %v2594_v6 = vunpack.c.l.b16 %v1612_v17  ;;  %v1216_v52 = vshll.u32 %v5423_v16, 16  ;;  %v3500_v25 = vld [vmem:[%s3978_s17 + $0x9c] sm:$0xe] }
 0x14f   : > { %v2428_v58 = vunpack.c.l.b16 %v1367_v3  ;;  %v1101_v44 = vshrl.u32 %v3383_v61, 16  ;;  %v1104_v7 = vshll.u32 %v3383_v61, 16  ;;  %v1204_v42 = vrot.slane %v1203_v5, 4 }
 0x150   : > { %v1213_v49 = vor.u32 %v1212_v38, %v1208_v15  ;;  %v2619_v48 = vpack.c.b16 %v2594_v6, %v2593_v32  ;;  %v1114_v9 = vshrl.u32 %v5401_v24, 16  ;;  %v1120_v45 = vshll.u32 %v5407_v31, 16  ;;  %v3471_v32 = vld [vmem:[%s3978_s17 + $0xcc] sm:$0xf] }
 0x151   : > { %2553 = vrot.lane.b32.xlu0 %v3782_v33, %s3940_s22  ;;  %v2448_v22 = vpack.c.b16 %v2428_v58, %v2427_v11  ;;  %v1103_v14 = vrot.slane %v1101_v44, 4  ;;  %v1106_v33 = vrot.slane %v1104_v7, 5  ;;  %v1209_v19 = vsel %vm4006_vm2, %v1204_v42, %v1208_v15  ;;  %v5457_v10 = vpop.permute.xlu2 %2647  ;;  %v5462_v15 = vld [vmem:[%s3978_s17 + $0xa0] sm:$0xf] }
 0x152   : > { %2713 = vrot.lane.b32.xlu1 %v2695_v4, %s3943_s25  ;;  %2721 = vrot.lane.b32.xlu2 %v2699_v37, %s3943_s25  ;;  %v1218_v4 = vrot.slane %v1216_v52, 5  ;;  %v1214_v35 = vrot.slane %v1213_v49, 4  ;;  %v2355_v37 = vunpack.c.l.b16 %v1209_v19  ;;  %v3440_v55 = vrot.slane %v3424_v43, 9 }
 0x153   : > { %v2454_v1 = vpop.permute.xlu0 %2453  ;;  %v1107_v20 = vor.u32 %v1106_v33, %v1103_v14  ;;  %v1116_v61 = vrot.slane %v1114_v9, 4  ;;  %v1394_v3 = vrot.slane %v5423_v16, 5  ;;  %v3516_v47 = vrot.slane %v3500_v25, 9  ;;  %v3791_v9 = vld [vmem:[%s3978_s17 + $0x9c] sm:$0xff] }
 0x154   : > { %v2891_v54 = vsel %vm2889_vm11, %v5307_v34, %v2454_v1  ;;  %v2630_v18 = vpop.permute.xlu1 %2629  ;;  %v1110_v34 = vshll.u32 %v5401_v24, 16  ;;  %v1219_v2 = vsel %vm4006_vm2, %v1214_v35, %v1218_v4  ;;  %v1122_v58 = vrot.slane %v1120_v45, 5  ;;  %v5470_v1 = vld [vmem:[%s3978_s17 + $0xa4] sm:$0x1]  ;;  %v3795_v35 = vld [vmem:[%s3978_s17 + $0xcc] sm:$0xff] }
 0x155   : > { %v2924_v53 = vsel %vm2922_vm12, %v2891_v54, %v5297_v63  ;;  %v1391_v63 = vrot.slane %v5411_v27, 5  ;;  %v2356_v11 = vunpack.c.l.b16 %v1219_v2  ;;  %v1108_v28 = vrot.slane %v1107_v20, 4 }
 0x156   : > { %v1112_v29 = vrot.slane %v1110_v34, 5  ;;  %v2957_v51 = vsel %vm2955_vm13, %v2924_v53, %v2630_v18  ;;  %v1972_v52 = vrot.slane %v5462_v15, 5  ;;  %v1975_v54 = vrot.slane %v5470_v1, 5  ;;  %v5478_v18 = vld [vmem:[%s3978_s17 + $0xd0] sm:$0xf] }
 0x157   : > { %v1392_v24 = vsel %vm4208_vm5, %v3440_v55, %v1391_v63  ;;  %v1393_v31 = vrot.slane %v1391_v63, 4  ;;  %v2372_v62 = vpack.c.b16 %v2356_v11, %v2355_v37  ;;  %v1806_v4 = vshrl.u32 %v3471_v32, 16  ;;  %v3463_v53 = vld [vmem:[%s3978_s17 + $0x9c] sm:$0xf] }
 0x158   : > { %v1113_v57 = vsel %vm4006_vm2, %v1108_v28, %v1112_v29  ;;  %v1117_v17 = vor.u32 %v1116_v61, %v1112_v29  ;;  %v2435_v38 = vunpack.c.l.b16 %v1392_v24  ;;  %v1973_v42 = vsel %vm4208_vm5, %v3516_v47, %v1972_v52 }
 0x159   : > { %2641 = vrot.lane.b32.xlu0 %v2619_v48, %s3942_s24  ;;  %v1395_v5 = vsel %vm4208_vm5, %v1393_v31, %v1394_v3  ;;  %v2347_v7 = vunpack.c.l.b16 %v1113_v57  ;;  %v1974_v49 = vrot.slane %v1972_v52, 4  ;;  %v5484_v48 = vld [vmem:[%s3978_s17 + $0xd4] sm:$0x1]  ;;  %v2683_v33 = vunpack.c.l.b16 %v1973_v42 }
 0x15a   : > { %2475 = vrot.lane.b32.xlu2 %v2448_v22, %s3941_s23  ;;  %2403 = vrot.lane.b32.xlu1 %v2372_v62, %s3939_s21  ;;  %v1118_v44 = vrot.slane %v1117_v17, 4  ;;  %v1809_v43 = vshll.u32 %v3471_v32, 16  ;;  %v1808_v37 = vrot.slane %v1806_v4, 4  ;;  %v1815_v20 = vshll.u32 %v5478_v18, 16  ;;  %v5514_v4 = vld [vmem:[%s3978_s17 + $0x68] sm:$0x1] }
 0x15b   : > { %v2558_v27 = vpop.permute.xlu0 %2557  ;;  %v1976_v34 = vsel %vm4208_vm5, %v1974_v49, %v1975_v54  ;;  %v1819_v2 = vshrl.u32 %v5478_v18, 16  ;;  %v1825_v29 = vshll.u32 %v5484_v48, 16  ;;  %v1710_v11 = vshrl.u32 %v3463_v53, 16 }
 0x15c   : > { %v2932_v6 = vsel %vm2922_vm12, %v2899_v30, %v2558_v27  ;;  %v2718_v16 = vpop.permute.xlu1 %2717  ;;  %v1123_v14 = vsel %vm4006_vm2, %v1118_v44, %v1122_v58  ;;  %v2684_v45 = vunpack.c.l.b16 %v1976_v34  ;;  %v1811_v25 = vrot.slane %v1809_v43, 5  ;;  %v3375_v27 = vld [vmem:[%s3978_s17 + $0x60] sm:$0xf] }
 0x15d   : > { %v2965_v30 = vsel %vm2955_vm13, %v2932_v6, %v5332_v46  ;;  %v2436_v46 = vunpack.c.l.b16 %v1395_v5  ;;  %v2348_v19 = vunpack.c.l.b16 %v1123_v14  ;;  %v1817_v63 = vrot.slane %v1815_v20, 5  ;;  %v5502_v6 = vpop.permute.xlu2 %2735 }
 0x15e   : > { %v2998_v22 = vsel %vm2988_vm14, %v2965_v30, %v2718_v16  ;;  %v1713_v28 = vshll.u32 %v3463_v53, 16  ;;  %v2704_v31 = vpack.c.b16 %v2684_v45, %v2683_v33  ;;  %v1812_v3 = vor.u32 %v1811_v25, %v1808_v37  ;;  %v5509_v30 = vld [vmem:[%s3978_s17 + $0x64] sm:$0xf]  ;;  %v3367_v45 = vld [vmem:[%s3978_s17 + $0x30] sm:$0xf] }
 0x15f   : > { %3733 = vmatmul.msk.bf16.vlgmr.msra.gmra.mxu1 %vm3060_vm15, %v2998_v22  ;;  %v2368_v55 = vpack.c.b16 %v2348_v19, %v2347_v7  ;;  %v2452_v24 = vpack.c.b16 %v2436_v46, %v2435_v38  ;;  %v1821_v47 = vrot.slane %v1819_v2, 4  ;;  %v1712_v17 = vrot.slane %v1710_v11, 4 }
 0x160   : > { %v1715_v58 = vrot.slane %v1713_v28, 5  ;;  %v1719_v32 = vshll.u32 %v5462_v15, 16  ;;  %v1813_v16 = vrot.slane %v1812_v3, 4  ;;  %v1827_v38 = vrot.slane %v1825_v29, 5 }
 0x161   : > { %2395 = vrot.lane.b32.xlu0 %v2368_v55, %s3939_s21  ;;  %v1822_v5 = vor.u32 %v1821_v47, %v1817_v63  ;;  %v1729_v7 = vshll.u32 %v5470_v1, 16  ;;  %v1005_v54 = vshrl.u32 %v3375_v27, 16  ;;  %v1008_v14 = vshll.u32 %v3375_v27, 16  ;;  %v5533_v27 = vld [vmem:[%s3978_s17 + $0x34] sm:$0xf] }
 0x162   : > { %2579 = vrot.lane.b32.xlu2 %v3795_v35, %s3940_s22  ;;  %2571 = vrot.lane.b32.xlu1 %v3791_v9, %s3940_s22  ;;  %v1716_v52 = vor.u32 %v1715_v58, %v1712_v17  ;;  %v1721_v44 = vrot.slane %v1719_v32, 5  ;;  %v1818_v22 = vsel %vm4006_vm2, %v1813_v16, %v1817_v63  ;;  %v1014_v35 = vshll.u32 %v5509_v30, 16  ;;  %v5541_v58 = vld [vmem:[%s3978_s17 + $0x38] sm:$0x1]  ;;  %v3504_v16 = vld [vmem:[%s3978_s17 + $0xcc] sm:$0xe] }
 0x163   : > { %v2710_v61 = vpop.permute.xlu0 %2709  ;;  %v1823_v42 = vrot.slane %v1822_v5, 4  ;;  %v2611_v46 = vunpack.c.l.b16 %v1818_v22  ;;  %v1731_v43 = vrot.slane %v1729_v7, 5  ;;  %v1010_v19 = vrot.slane %v1008_v14, 5 }
 0x164   : > { %v2990_v62 = vsel %vm2988_vm14, %v2957_v51, %v2710_v61  ;;  %v2472_v57 = vpop.permute.xlu1 %2471  ;;  %v1723_v51 = vshrl.u32 %v5462_v15, 16  ;;  %v1717_v33 = vrot.slane %v1716_v52, 4  ;;  %v1007_v15 = vrot.slane %v1005_v54, 4 }
 0x165   : > { %3729 = vmatmul.msk.bf16.vlgmr.msra.gmra.mxu0 %vm3060_vm15, %v2990_v62  ;;  %v1828_v53 = vsel %vm4006_vm2, %v1823_v42, %v1827_v38  ;;  %v1018_v20 = vshrl.u32 %v5509_v30, 16  ;;  %v1024_v9 = vshll.u32 %v5514_v4, 16  ;;  %v2909_v25 = vsel %vm2889_vm11, %v5374_v40, %v2472_v57  ;;  %v5544_v5 = vpop.permute.xlu2 %2455 }
 0x166   : > { %v1725_v49 = vrot.slane %v1723_v51, 4  ;;  %v2612_v34 = vunpack.c.l.b16 %v1828_v53  ;;  %v1722_v37 = vsel %vm4006_vm2, %v1717_v33, %v1721_v44  ;;  %v1011_v55 = vor.u32 %v1010_v19, %v1007_v15 }
 0x167   : > { %v1016_v63 = vrot.slane %v1014_v35, 5  ;;  %v2603_v61 = vunpack.c.l.b16 %v1722_v37  ;;  %v1020_v47 = vrot.slane %v1018_v20, 4  ;;  %v1026_v57 = vrot.slane %v1024_v9, 5 }
 0x168   : > { %v1726_v1 = vor.u32 %v1725_v49, %v1721_v44  ;;  %v2628_v28 = vpack.c.b16 %v2612_v34, %v2611_v46  ;;  %v1012_v62 = vrot.slane %v1011_v55, 4  ;;  %v912_v32 = vshll.u32 %v3367_v45, 16 }
 0x169   : > { %2483 = vrot.lane.b32.xlu0 %v2452_v24, %s3941_s23  ;;  %v909_v24 = vshrl.u32 %v3367_v45, 16  ;;  %v1021_v17 = vor.u32 %v1020_v47, %v1016_v63  ;;  %v918_v52 = vshll.u32 %v5533_v27, 16  ;;  %v922_v44 = vshrl.u32 %v5533_v27, 16 }
 0x16a   : > { %v1727_v29 = vrot.slane %v1726_v1, 4  ;;  %2731 = vrot.lane.b32.xlu2 %v2704_v31, %s3943_s25  ;;  %2659 = vrot.lane.b32.xlu1 %v2628_v28, %s3942_s24  ;;  %v1017_v38 = vsel %vm4006_vm2, %v1012_v62, %v1016_v63  ;;  %v914_v42 = vrot.slane %v912_v32, 5  ;;  %v928_v46 = vshll.u32 %v5541_v58, 16  ;;  %v3412_v28 = vld [vmem:[%s3978_s17 + $0x30] sm:$0xe] }
 0x16b   : > { %v2400_v2 = vpop.permute.xlu0 %2399  ;;  %v911_v51 = vrot.slane %v909_v24, 4  ;;  %v1022_v54 = vrot.slane %v1021_v17, 4  ;;  %v2339_v22 = vunpack.c.l.b16 %v1017_v38  ;;  %v920_v49 = vrot.slane %v918_v52, 5 }
 0x16c   : > { %v2884_v11 = vsel %vm2856_vm9, %v5262_v39, %v2400_v2  ;;  %v5530_v3 = vpop.permute.xlu1 %2575  ;;  %v1732_v40 = vsel %vm4006_vm2, %v1727_v29, %v1731_v43  ;;  %v924_v14 = vrot.slane %v922_v44, 4  ;;  %v3520_v33 = vrot.slane %v3504_v16, 9 }
 0x16d   : > { %v2604_v39 = vunpack.c.l.b16 %v1732_v40  ;;  %v2917_v31 = vsel %vm2889_vm11, %v2884_v11, %v5427_v56  ;;  %v3416_v56 = vld [vmem:[%s3978_s17 + $0x60] sm:$0xe]  ;;  %v1027_v43 = vsel %vm4006_vm2, %v1022_v54, %v1026_v57  ;;  %v915_v15 = vor.u32 %v914_v42, %v911_v51 }
 0x16e   : > { %v2000_v53 = vrot.slane %v5478_v18, 5  ;;  %v2003_v1 = vrot.slane %v5484_v48, 5  ;;  %v2340_v35 = vunpack.c.l.b16 %v1027_v43  ;;  %v925_v34 = vor.u32 %v924_v14, %v920_v49 }
 0x16f   : > { %v2624_v7 = vpack.c.b16 %v2604_v39, %v2603_v61  ;;  %v930_v37 = vrot.slane %v928_v46, 5  ;;  %v3432_v20 = vrot.slane %v3416_v56, 9  ;;  %v916_v45 = vrot.slane %v915_v15, 4  ;;  %v3447_v39 = vld [vmem:[%s3978_s17 + $0x3c] sm:$0xf] }
 0x170   : > { %v2001_v2 = vsel %vm4208_vm5, %v3520_v33, %v2000_v53  ;;  %v2002_v29 = vrot.slane %v2000_v53, 4  ;;  %v2364_v18 = vpack.c.b16 %v2340_v35, %v2339_v22  ;;  %v926_v63 = vrot.slane %v925_v34, 4  ;;  %v3783_v33 = vld [vmem:[%s3978_s17 + $0x3c] sm:$0xff]  ;;  %v3476_v15 = vld [vmem:[%s3978_s17 + $0x44] sm:$0x1] }
 0x171   : > { %2651 = vrot.lane.b32.xlu0 %v2624_v7, %s3942_s24  ;;  %v2691_v48 = vunpack.c.l.b16 %v2001_v2  ;;  %v921_v61 = vsel %vm4006_vm2, %v916_v45, %v920_v49  ;;  %v1335_v40 = vrot.slane %v5509_v30, 5  ;;  %v3428_v38 = vrot.slane %v3412_v28, 9  ;;  %v5577_v30 = vpop.permute.xlu2 %2559  ;;  %v3455_v28 = vld [vmem:[%s3978_s17 + $0x6c] sm:$0xf] }
 0x172   : > { %2387 = vrot.lane.b32.xlu2 %v2364_v18, %s3939_s21  ;;  %v931_v62 = vsel %vm4006_vm2, %v926_v63, %v930_v37  ;;  %v2331_v57 = vunpack.c.l.b16 %v921_v61  ;;  %v2950_v51 = vsel %vm2922_vm12, %v2917_v31, %v5530_v3  ;;  %v1307_v44 = vrot.slane %v5533_v27, 5  ;;  %v3448_v31 = vld [vmem:[%s3978_s17 + $0x40] sm:$0xf]  ;;  %v3480_v61 = vld [vmem:[%s3978_s17 + $0x74] sm:$0x1] }
 0x173   : > { %v2568_v19 = vpop.permute.xlu0 %2567  ;;  %v2332_v17 = vunpack.c.l.b16 %v931_v62  ;;  %v1336_v32 = vsel %vm4208_vm5, %v3432_v20, %v1335_v40  ;;  %v1337_v16 = vrot.slane %v1335_v40, 4  ;;  %v1310_v7 = vrot.slane %v5541_v58, 5 }
 0x174   : > { %v2942_v9 = vsel %vm2922_vm12, %v2909_v25, %v2568_v19  ;;  %v2728_v55 = vpop.permute.xlu1 %2727  ;;  %v2004_v25 = vsel %vm4208_vm5, %v2002_v29, %v2003_v1  ;;  %v1518_v22 = vshrl.u32 %v3447_v39, 16  ;;  %v1521_v42 = vshll.u32 %v3447_v39, 16  ;;  %v3456_v19 = vld [vmem:[%s3978_s17 + $0x70] sm:$0xf] }
 0x175   : > { %v2975_v11 = vsel %vm2955_vm13, %v2942_v9, %v5457_v10  ;;  %v2692_v24 = vunpack.c.l.b16 %v2004_v25  ;;  %v1338_v10 = vrot.slane %v5514_v4, 5  ;;  %v2360_v4 = vpack.c.b16 %v2332_v17, %v2331_v57  ;;  %v3492_v25 = vld [vmem:[%s3978_s17 + $0x3c] sm:$0xe] }
 0x176   : > { %v3008_v47 = vsel %vm2988_vm14, %v2975_v11, %v2728_v55  ;;  %v2419_v49 = vunpack.c.l.b16 %v1336_v32  ;;  %v1308_v46 = vsel %vm4208_vm5, %v3428_v38, %v1307_v44  ;;  %v1309_v3 = vrot.slane %v1307_v44, 4  ;;  %v3496_v55 = vld [vmem:[%s3978_s17 + $0x6c] sm:$0xe] }
 0x177   : > { %3738 = vmatmul.msk.bf16.gmra.mxu2 %vm3060_vm15, %v3008_v47  ;;  %v2708_v52 = vpack.c.b16 %v2692_v24, %v2691_v48  ;;  %v1339_v54 = vsel %vm4208_vm5, %v1337_v16, %v1338_v10  ;;  %2379 = vrot.lane.b32.xlu1 %v2360_v4, %s3939_s21  ;;  %v2411_v58 = vunpack.c.l.b16 %v1308_v46  ;;  %v1520_v53 = vrot.slane %v1518_v22, 4 }
 0x178   : > { %v2420_v14 = vunpack.c.l.b16 %v1339_v54  ;;  %v1523_v1 = vrot.slane %v1521_v42, 5  ;;  %v1311_v34 = vsel %vm4208_vm5, %v1309_v3, %v1310_v7  ;;  %v1527_v9 = vshll.u32 %v3448_v31, 16  ;;  %v3787_v3 = vld [vmem:[%s3978_s17 + $0x6c] sm:$0xff] }
 0x179   : > { %2739 = vrot.lane.b32.xlu0 %v2708_v52, %s3943_s25  ;;  %v2412_v37 = vunpack.c.l.b16 %v1311_v34  ;;  %v1531_v45 = vshrl.u32 %v3448_v31, 16  ;;  %v1537_v29 = vshll.u32 %v3476_v15, 16  ;;  %v1944_v18 = vrot.slane %v3456_v19, 5  ;;  %v2712_v24 = vpop.permute.xlu2 %2711 }
 0x17a   : > { %v1524_v20 = vor.u32 %v1523_v1, %v1520_v53  ;;  %v2444_v2 = vpack.c.b16 %v2420_v14, %v2419_v49  ;;  %2555 = vrot.lane.b32.xlu2 %v3783_v33, %s3940_s22  ;;  %v1529_v48 = vrot.slane %v1527_v9, 5  ;;  %v1916_v57 = vrot.slane %v3448_v31, 5 }
 0x17b   : > { %v2656_v56 = vpop.permute.xlu0 %2655  ;;  %v2440_v63 = vpack.c.b16 %v2412_v37, %v2411_v58  ;;  %v1533_v11 = vrot.slane %v1531_v45, 4  ;;  %v1539_v62 = vrot.slane %v1537_v29, 5  ;;  %v3512_v39 = vrot.slane %v3496_v55, 9 }
 0x17c   : > { %v2983_v27 = vsel %vm2955_vm13, %v2950_v51, %v2656_v56  ;;  %v5592_v43 = vpop.permute.xlu1 %2383  ;;  %v1614_v17 = vshrl.u32 %v3455_v28, 16  ;;  %v1946_v38 = vrot.slane %v1944_v18, 4  ;;  %v1947_v51 = vrot.slane %v3480_v61, 5 }
 0x17d   : > { %v3016_v35 = vsel %vm2988_vm14, %v2983_v27, %v5502_v6  ;;  %v1525_v6 = vrot.slane %v1524_v20, 4  ;;  %v1534_v40 = vor.u32 %v1533_v11, %v1529_v48  ;;  %v3508_v52 = vrot.slane %v3492_v25, 9 }
 0x17e   : > { %3742 = vmatmul.msk.bf16.gmra.mxu3 %vm3060_vm15, %v3016_v35  ;;  %v1918_v7 = vrot.slane %v1916_v57, 4  ;;  %v1919_v4 = vrot.slane %v3476_v15, 5  ;;  %v1616_v22 = vrot.slane %v1614_v17, 4  ;;  %v1617_v42 = vshll.u32 %v3455_v28, 16 }
 0x17f   : > { %v1530_v47 = vsel %vm4006_vm2, %v1525_v6, %v1529_v48  ;;  %2467 = vrot.lane.b32.xlu1 %v2444_v2, %s3941_s23  ;;  %v1535_v32 = vrot.slane %v1534_v40, 4  ;;  %v1945_v49 = vsel %vm4208_vm5, %v3512_v39, %v1944_v18  ;;  %v1623_v14 = vshll.u32 %v3456_v19, 16 }
 0x180   : > { %v2587_v44 = vunpack.c.l.b16 %v1530_v47  ;;  %v1627_v46 = vshrl.u32 %v3456_v19, 16  ;;  %v1948_v31 = vsel %vm4208_vm5, %v1946_v38, %v1947_v51  ;;  %v1917_v33 = vsel %vm4208_vm5, %v3508_v52, %v1916_v57 }
 0x181   : > { %2459 = vrot.lane.b32.xlu0 %v2440_v63, %s3941_s23  ;;  %v1540_v54 = vsel %vm4006_vm2, %v1535_v32, %v1539_v62  ;;  %v1619_v27 = vrot.slane %v1617_v42, 5  ;;  %v1633_v58 = vshll.u32 %v3480_v61, 16  ;;  %v1920_v53 = vsel %vm4208_vm5, %v1918_v7, %v1919_v4  ;;  %v2402_v63 = vpop.permute.xlu2 %2401 }
 0x182   : > { %v2588_v56 = vunpack.c.l.b16 %v1540_v54  ;;  %v1625_v1 = vrot.slane %v1623_v14, 5  ;;  %v1629_v35 = vrot.slane %v1627_v46, 4  ;;  %v2675_v20 = vunpack.c.l.b16 %v1945_v49 }
 0x183   : > { %v2376_v10 = vpop.permute.xlu0 %2375  ;;  %v1620_v34 = vor.u32 %v1619_v27, %v1616_v22  ;;  %v1635_v19 = vrot.slane %v1633_v58, 5  ;;  %v2676_v45 = vunpack.c.l.b16 %v1948_v31  ;;  %v2667_v2 = vunpack.c.l.b16 %v1917_v33 }
 0x184   : > { %v2552_v16 = vpop.permute.xlu1 %2551  ;;  %v2616_v15 = vpack.c.b16 %v2588_v56, %v2587_v44  ;;  %v1630_v9 = vor.u32 %v1629_v35, %v1625_v1  ;;  %v2668_v29 = vunpack.c.l.b16 %v1920_v53  ;;  %v2860_v48 = vsel %vm2856_vm9, %v5089_v41, %v2376_v10 }
 0x185   : > { %v1621_v18 = vrot.slane %v1620_v34, 4  ;;  %v2700_v61 = vpack.c.b16 %v2676_v45, %v2675_v20  ;;  %v2893_v40 = vsel %vm2889_vm11, %v2860_v48, %v5544_v5  ;;  %v2868_v17 = vsel %vm2856_vm9, %v5096_v59, %v5592_v43 }
 0x186   : > { %v1631_v6 = vrot.slane %v1630_v9, 4  ;;  %v2696_v25 = vpack.c.b16 %v2668_v29, %v2667_v2  ;;  %v2926_v57 = vsel %vm2922_vm12, %v2893_v40, %v2552_v16  ;;  %v2886_v59 = vsel %vm2856_vm9, %v5227_v12, %v2402_v63 }
 0x187   : > { %2635 = vrot.lane.b32.xlu1 %v2616_v15, %s3942_s24  ;;  %v1626_v60 = vsel %vm4006_vm2, %v1621_v18, %v1625_v1 }
 0x188   : > { %v1636_v11 = vsel %vm4006_vm2, %v1631_v6, %v1635_v19  ;;  %v2595_v28 = vunpack.c.l.b16 %v1626_v60  ;;  %v5677_v60 = vld [vmem:[%s5767_s2] ss:$0 sm:$0xff] }
 0x189   : > { %2563 = vrot.lane.b32.xlu0 %v3787_v3, %s3940_s22  ;;  %v2596_v47 = vunpack.c.l.b16 %v1636_v11  ;;  %v2570_v5 = vpop.permute.xlu2 %2569 }
 0x18b   : > { %v2464_v37 = vpop.permute.xlu0 %2463  ;;  %v2620_v62 = vpack.c.b16 %v2596_v47, %v2595_v28 }
 0x18c   : > { %v2640_v55 = vpop.permute.xlu1 %2639  ;;  %v2901_v32 = vsel %vm2889_vm11, %v2868_v17, %v2464_v37 }
 0x18d   : > { %2643 = vrot.lane.b32.xlu2 %v2620_v62, %s3942_s24  ;;  %v2934_v16 = vsel %vm2922_vm12, %v2901_v32, %v5577_v30 }
 0x18e   : > { %v2967_v38 = vsel %vm2955_vm13, %v2934_v16, %v2640_v55 }
 0x18f   : > { %2723 = vrot.lane.b32.xlu1 %v2700_v61, %s3943_s25 }
 0x191   : > { %2715 = vrot.lane.b32.xlu0 %v2696_v25, %s3943_s25  ;;  %v2658_v44 = vpop.permute.xlu2 %2657 }
 0x193   : > { %v2632_v39 = vpop.permute.xlu0 %2631 }
 0x194   : > { %v2959_v41 = vsel %vm2955_vm13, %v2926_v57, %v2632_v39  ;;  %v2394_v10 = vpop.permute.xlu1 %2393 }
 0x195   : > { %v2992_v26 = vsel %vm2988_vm14, %v2959_v41, %v2712_v24  ;;  %v2878_v49 = vsel %vm2856_vm9, %v5222_v0, %v2394_v10 }
 0x196   : > { %3730 = vmatmul.msk.bf16.gmra.mxu0 %vm3060_vm15, %v2992_v26 }
 0x199   : > { %v2378_v43 = vpop.permute.xlu2 %2377 }
 0x19a   : > { %v2862_v1 = vsel %vm2856_vm9, %v5063_v21, %v2378_v43 }
 0x19b   : > { %v2720_v51 = vpop.permute.xlu0 %2719 }
 0x19c   : > { %v3000_v52 = vsel %vm2988_vm14, %v2967_v38, %v2720_v51  ;;  %v2482_v24 = vpop.permute.xlu1 %2481 }
 0x19d   : > { %3734 = vmatmul.msk.bf16.gmra.mxu1 %vm3060_vm15, %v3000_v52  ;;  %v2919_v54 = vsel %vm2889_vm11, %v2886_v59, %v2482_v24 }
 0x1a1   : > { %v2466_v58 = vpop.permute.xlu2 %2465 }
 0x1a3   : > { %v2474_v7 = vpop.permute.xlu0 %2473 }
 0x1a4   : > { %v2650_v4 = vpop.permute.xlu1 %2649  ;;  %v2911_v46 = vsel %vm2889_vm11, %v2878_v49, %v2474_v7 }
 0x1a5   : > { %v2944_v12 = vsel %vm2922_vm12, %v2911_v46, %v2570_v5 }
 0x1a6   : > { %v2977_v3 = vsel %vm2955_vm13, %v2944_v12, %v2650_v4 }
 0x1a9   : > { %v2634_v0 = vpop.permute.xlu2 %2633 }
 0x1ab   : > { %v2578_v22 = vpop.permute.xlu0 %2577 }
 0x1ac   : > { %v2952_v30 = vsel %vm2922_vm12, %v2919_v54, %v2578_v22  ;;  %v2738_v42 = vpop.permute.xlu1 %2737 }
 0x1ad   : > { %v2985_v56 = vsel %vm2955_vm13, %v2952_v30, %v2658_v44 }
 0x1ae   : > { %v3018_v14 = vsel %vm2988_vm14, %v2985_v56, %v2738_v42 }
 0x1af   : > { %3743 = vmatmul.msk.bf16.gmra.mxu3 %vm3060_vm15, %v3018_v14 }
 0x1b1   : > { %v2722_v2 = vpop.permute.xlu2 %2721 }
 0x1b3   : > { %v2730_v31 = vpop.permute.xlu0 %2729 }
 0x1b4   : > { %v3010_v33 = vsel %vm2988_vm14, %v2977_v3, %v2730_v31  ;;  %v2458_v27 = vpop.permute.xlu1 %2457 }
 0x1b5   : > { %3739 = vmatmul.msk.bf16.gmra.mxu2 %vm3060_vm15, %v3010_v33  ;;  %v2895_v35 = vsel %vm2889_vm11, %v2862_v1, %v2458_v27 }
 0x1b9   : > { %v2476_v61 = vpop.permute.xlu2 %2475 }
 0x1bb   : > { %v2386_v15 = vpop.permute.xlu0 %2385 }
 0x1bc   : > { %v2562_v53 = vpop.permute.xlu1 %2561  ;;  %v2870_v45 = vsel %vm2856_vm9, %v4944_v36, %v2386_v15 }
 0x1bd   : > { %v2903_v29 = vsel %vm2889_vm11, %v2870_v45, %v2466_v58 }
 0x1be   : > { %v2936_v55 = vsel %vm2922_vm12, %v2903_v29, %v2562_v53 }
 0x1c1   : > { %v2580_v16 = vpop.permute.xlu2 %2579 }
 0x1c3   : > { %v2554_v34 = vpop.permute.xlu0 %2553 }
 0x1c4   : > { %v2928_v37 = vsel %vm2922_vm12, %v2895_v35, %v2554_v34  ;;  %v2714_v20 = vpop.permute.xlu1 %2713 }
 0x1c5   : > { %v2961_v9 = vsel %vm2955_vm13, %v2928_v37, %v2634_v0 }
 0x1c6   : > { %v2994_v19 = vsel %vm2988_vm14, %v2961_v9, %v2714_v20 }
 0x1c7   : > { %3731 = vmatmul.msk.bf16.gmra.mxu0 %vm3060_vm15, %v2994_v19 }
 0x1c9   : > { %v2732_v30 = vpop.permute.xlu2 %2731 }
 0x1ca   : > { %v3166_v21 = vpop.f32.mrf.mxu3 }
 0x1cb   : > { %v2642_v18 = vpop.permute.xlu0 %2641  ;;  %v3167_v11 = vadd.f32 %v5677_v60, %v3166_v21 }
 0x1cc   : > { %v2969_v63 = vsel %vm2955_vm13, %v2936_v55, %v2642_v18  ;;  %v2404_v48 = vpop.permute.xlu1 %2403 }
 0x1cd   : > { %v3002_v6 = vsel %vm2988_vm14, %v2969_v63, %v2722_v2  ;;  %v3210_v47 = vmax.f32 %v3167_v11, 0.0  ;;  %v2888_v14 = vsel %vm2856_vm9, %v5079_v8, %v2404_v48 }
 0x1ce   : > { %3735 = vmatmul.msk.bf16.gmra.mxu1 %vm3060_vm15, %v3002_v6 }
 0x1d0   : > { %v3146_v36 = vpop.f32.mrf.mxu2 }
 0x1d1   : > { %v3147_v57 = vadd.f32 %v5677_v60, %v3146_v36  ;;  %v2388_v34 = vpop.permute.xlu2 %2387 }
 0x1d2   : > { %v3168_v28 = vpop.f32.mrf.mxu3  ;;  %v2872_v29 = vsel %vm2856_vm9, %v5178_v50, %v2388_v34 }
 0x1d3   : > { %v3169_v25 = vadd.f32 %v5677_v60, %v3168_v28  ;;  %v2396_v62 = vpop.permute.xlu0 %2395  ;;  %v3202_v17 = vmax.f32 %v3147_v57, 0.0 }
 0x1d4   : > { %v2572_v26 = vpop.permute.xlu1 %2571  ;;  %v2880_v52 = vsel %vm2856_vm9, %v5192_v23, %v2396_v62 }
 0x1d5   : > { %v3211_v40 = vmax.f32 %v3169_v25, 0.0  ;;  %v2913_v59 = vsel %vm2889_vm11, %v2880_v52, %v2476_v61 }
 0x1d6   : > { %v2946_v54 = vsel %vm2922_vm12, %v2913_v59, %v2572_v26 }
 0x1d7   : > { %v3863_v39 = vpack.c.bf16 %v3211_v40, %v3210_v47 }
 0x1d8   : > { %v3148_v41 = vpop.f32.mrf.mxu2 }
 0x1d9   : > { %v3149_v10 = vadd.f32 %v5677_v60, %v3148_v41  ;;  %3891 = vst [vmem:[%s5686_s16 + $0x60] sm:$0xff] %v3863_v39   ;;  %v2556_v9 = vpop.permute.xlu2 %2555 }
 0x1db   : > { %v3203_v5 = vmax.f32 %v3149_v10, 0.0  ;;  %v2484_v51 = vpop.permute.xlu0 %2483 }
 0x1dc   : > { %v3126_v32 = vpop.f32.mrf.mxu1  ;;  %v2660_v7 = vpop.permute.xlu1 %2659  ;;  %v2921_v3 = vsel %vm2889_vm11, %v2888_v14, %v2484_v51 }
 0x1dd   : > { %v3843_v38 = vpack.c.bf16 %v3203_v5, %v3202_v17  ;;  %v3127_v44 = vadd.f32 %v5677_v60, %v3126_v32  ;;  %v2954_v58 = vsel %vm2922_vm12, %v2921_v3, %v2580_v16 }
 0x1de   : > { %v2987_v53 = vsel %vm2955_vm13, %v2954_v58, %v2660_v7 }
 0x1df   : > { %3887 = vst [vmem:[%s5686_s16 + $0x40] sm:$0xff] %v3843_v38   ;;  %v3194_v42 = vmax.f32 %v3127_v44, 0.0 }
 0x1e2   : > { %v3106_v24 = vpop.f32.mrf.mxu0 }
 0x1e3   : > { %v2652_v22 = vpop.permute.xlu0 %2651  ;;  %v3107_v46 = vadd.f32 %v5677_v60, %v3106_v24 }
 0x1e4   : > { %v3128_v4 = vpop.f32.mrf.mxu1  ;;  %v2979_v56 = vsel %vm2955_vm13, %v2946_v54, %v2652_v22 }
 0x1e5   : > { %v3129_v43 = vadd.f32 %v5677_v60, %v3128_v4  ;;  %v3012_v23 = vsel %vm2988_vm14, %v2979_v56, %v2732_v30  ;;  %v3186_v27 = vmax.f32 %v3107_v46, 0.0 }
 0x1e6   : > { %3740 = vmatmul.msk.bf16.gmra.mxu2 %vm3060_vm15, %v3012_v23 }
 0x1e7   : > { %v3195_v49 = vmax.f32 %v3129_v43, 0.0  ;;  %v2644_v11 = vpop.permute.xlu2 %2643 }
 0x1e9   : > { %v3823_v12 = vpack.c.bf16 %v3195_v49, %v3194_v42  ;;  %v2380_v0 = vpop.permute.xlu1 %2379 }
 0x1ea   : > { %v3108_v31 = vpop.f32.mrf.mxu0  ;;  %v2864_v21 = vsel %vm2856_vm9, %v4894_v13, %v2380_v0 }
 0x1eb   : > { %v3109_v33 = vadd.f32 %v5677_v60, %v3108_v31  ;;  %3883 = vst [vmem:[%s5686_s16 + $0x20] sm:$0xff] %v3823_v12   ;;  %v2740_v8 = vpop.permute.xlu0 %2739 }
 0x1ec   : > { %v3020_v35 = vsel %vm2988_vm14, %v2987_v53, %v2740_v8 }
 0x1ed   : > { %v3187_v15 = vmax.f32 %v3109_v33, 0.0  ;;  %3744 = vmatmul.msk.bf16.gmra.mxu3 %vm3060_vm15, %v3020_v35 }
 0x1ef   : > { %v3803_v1 = vpack.c.bf16 %v3187_v15, %v3186_v27 }
 0x1f1   : > { %3804 = vst [vmem:[%s5686_s16] sm:$0xff] %v3803_v1   ;;  %v2468_v37 = vpop.permute.xlu1 %2467 }
 0x1f2   : > { %v2905_v63 = vsel %vm2889_vm11, %v2872_v29, %v2468_v37 }
 0x1f3   : > { %v2460_v20 = vpop.permute.xlu0 %2459 }
 0x1f4   : > { %v2897_v6 = vsel %vm2889_vm11, %v2864_v21, %v2460_v20 }
 0x1f5   : > { %v2930_v61 = vsel %vm2922_vm12, %v2897_v6, %v2556_v9 }
 0x1f9   : > { %v2636_v45 = vpop.permute.xlu1 %2635 }
 0x1fa   : > { %v3151_v19 = vpop.f32.mrf.mxu2  ;;  %v2963_v13 = vsel %vm2955_vm13, %v2930_v61, %v2636_v45 }
 0x1fb   : > { %v2564_v2 = vpop.permute.xlu0 %2563  ;;  %v3152_v55 = vadd.f32 %v5677_v60, %v3151_v19 }
 0x1fc   : > { %v2938_v48 = vsel %vm2922_vm12, %v2905_v63, %v2564_v2 }
 0x1fd   : > { %v3204_v50 = vmax.f32 %v3152_v55, 0.0  ;;  %v2971_v47 = vsel %vm2955_vm13, %v2938_v48, %v2644_v11 }
 0x201   : > { %v3171_v18 = vpop.f32.mrf.mxu3  ;;  %v2724_v40 = vpop.permute.xlu1 %2723 }
 0x202   : > { %v3153_v36 = vpop.f32.mrf.mxu2  ;;  %v3004_v39 = vsel %vm2988_vm14, %v2971_v47, %v2724_v40  ;;  %v3172_v10 = vadd.f32 %v5677_v60, %v3171_v18 }
 0x203   : > { %v3154_v28 = vadd.f32 %v5677_v60, %v3153_v36  ;;  %v2716_v62 = vpop.permute.xlu0 %2715  ;;  %3736 = vmatmul.msk.bf16.gmra.mxu1 %vm3060_vm15, %v3004_v39 }
 0x204   : > { %v2996_v57 = vsel %vm2988_vm14, %v2963_v13, %v2716_v62  ;;  %v3212_v5 = vmax.f32 %v3172_v10, 0.0 }
 0x205   : > { %v3205_v25 = vmax.f32 %v3154_v28, 0.0  ;;  %3732 = vmatmul.msk.bf16.gmra.mxu0 %vm3060_vm15, %v2996_v57 }
 0x207   : > { %v3848_v41 = vpack.c.bf16 %v3205_v25, %v3204_v50 }
 0x209   : > { %3888 = vst [vmem:[%s5686_s16 + $0x48] sm:$0xff] %v3848_v41   ;;  %v3173_v26 = vpop.f32.mrf.mxu3 }
 0x20a   : > { %v3174_v17 = vadd.f32 %v5677_v60, %v3173_v26 }
 0x20c   : > { %v3213_v32 = vmax.f32 %v3174_v17, 0.0 }
 0x20e   : > { %v3868_v16 = vpack.c.bf16 %v3213_v32, %v3212_v5 }
 0x210   : > { %3892 = vst [vmem:[%s5686_s16 + $0x68] sm:$0xff] %v3868_v16  }
 0x213   : > { %v3111_v38 = vpop.f32.mrf.mxu0 }
 0x214   : > { %v3112_v51 = vadd.f32 %v5677_v60, %v3111_v38 }
 0x216   : > { %v3188_v7 = vmax.f32 %v3112_v51, 0.0 }
 0x21a   : > { %v3131_v52 = vpop.f32.mrf.mxu1 }
 0x21b   : > { %v3113_v24 = vpop.f32.mrf.mxu0  ;;  %v3132_v43 = vadd.f32 %v5677_v60, %v3131_v52 }
 0x21c   : > { %v3114_v44 = vadd.f32 %v5677_v60, %v3113_v24 }
 0x21d   : > { %v3196_v30 = vmax.f32 %v3132_v43, 0.0 }
 0x21e   : > { %v3189_v4 = vmax.f32 %v3114_v44, 0.0 }
 0x220   : > { %v3808_v59 = vpack.c.bf16 %v3189_v4, %v3188_v7 }
 0x222   : > { %3880 = vst [vmem:[%s5686_s16 + $0x8] sm:$0xff] %v3808_v59   ;;  %v3133_v54 = vpop.f32.mrf.mxu1 }
 0x223   : > { %v3134_v22 = vadd.f32 %v5677_v60, %v3133_v54 }
 0x225   : > { %v3197_v42 = vmax.f32 %v3134_v22, 0.0 }
 0x227   : > { %v3828_v56 = vpack.c.bf16 %v3197_v42, %v3196_v30 }
 0x229   : > { %3884 = vst [vmem:[%s5686_s16 + $0x28] sm:$0xff] %v3828_v56  }
 0x232   : > { %v3176_v49 = vpop.f32.mrf.mxu3 }
 0x233   : > { %v3177_v14 = vadd.f32 %v5677_v60, %v3176_v49 }
 0x235   : > { %v3214_v3 = vmax.f32 %v3177_v14, 0.0 }
 0x238   : > { %v3156_v23 = vpop.f32.mrf.mxu2 }
 0x239   : > { %v3157_v33 = vadd.f32 %v5677_v60, %v3156_v23 }
 0x23a   : > { %v3178_v46 = vpop.f32.mrf.mxu3 }
 0x23b   : > { %v3179_v12 = vadd.f32 %v5677_v60, %v3178_v46  ;;  %v3206_v53 = vmax.f32 %v3157_v33, 0.0 }
 0x23d   : > { %v3215_v31 = vmax.f32 %v3179_v12, 0.0 }
 0x23f   : > { %v3873_v27 = vpack.c.bf16 %v3215_v31, %v3214_v3 }
 0x240   : > { %v3158_v58 = vpop.f32.mrf.mxu2 }
 0x241   : > { %v3159_v15 = vadd.f32 %v5677_v60, %v3158_v58  ;;  %3893 = vst [vmem:[%s5686_s16 + $0x70] sm:$0xff] %v3873_v27  }
 0x243   : > { %v3207_v0 = vmax.f32 %v3159_v15, 0.0 }
 0x244   : > { %v3116_v8 = vpop.f32.mrf.mxu0 }
 0x245   : > { %v3853_v1 = vpack.c.bf16 %v3207_v0, %v3206_v53  ;;  %v3117_v35 = vadd.f32 %v5677_v60, %v3116_v8 }
 0x247   : > { %3889 = vst [vmem:[%s5686_s16 + $0x50] sm:$0xff] %v3853_v1   ;;  %v3190_v9 = vmax.f32 %v3117_v35, 0.0 }
 0x24b   : > { %v3136_v34 = vpop.f32.mrf.mxu1 }
 0x24c   : > { %v3118_v37 = vpop.f32.mrf.mxu0  ;;  %v3137_v2 = vadd.f32 %v5677_v60, %v3136_v34 }
 0x24d   : > { %v3119_v20 = vadd.f32 %v5677_v60, %v3118_v37 }
 0x24e   : > { %v3198_v55 = vmax.f32 %v3137_v2, 0.0 }
 0x24f   : > { %v3191_v19 = vmax.f32 %v3119_v20, 0.0 }
 0x251   : > { %v3813_v45 = vpack.c.bf16 %v3191_v19, %v3190_v9 }
 0x253   : > { %3881 = vst [vmem:[%s5686_s16 + $0x10] sm:$0xff] %v3813_v45   ;;  %v3138_v29 = vpop.f32.mrf.mxu1 }
 0x254   : > { %v3139_v21 = vadd.f32 %v5677_v60, %v3138_v29 }
 0x256   : > { %v3199_v18 = vmax.f32 %v3139_v21, 0.0 }
 0x258   : > { %v3833_v63 = vpack.c.bf16 %v3199_v18, %v3198_v55 }
 0x25a   : > { %3885 = vst [vmem:[%s5686_s16 + $0x30] sm:$0xff] %v3833_v63  }
 0x269   : > { %v3161_v6 = vpop.f32.mrf.mxu2 }
 0x26a   : > { %v3162_v36 = vadd.f32 %v5677_v60, %v3161_v6 }
 0x26c   : > { %v3208_v61 = vmax.f32 %v3162_v36, 0.0 }
 0x270   : > { %v3181_v48 = vpop.f32.mrf.mxu3 }
 0x271   : > { %v3163_v11 = vpop.f32.mrf.mxu2  ;;  %v3182_v13 = vadd.f32 %v5677_v60, %v3181_v48 }
 0x272   : > { %v3164_v28 = vadd.f32 %v5677_v60, %v3163_v11 }
 0x273   : > { %v3216_v62 = vmax.f32 %v3182_v13, 0.0 }
 0x274   : > { %v3209_v50 = vmax.f32 %v3164_v28, 0.0 }
 0x276   : > { %v3858_v25 = vpack.c.bf16 %v3209_v50, %v3208_v61 }
 0x278   : > { %3890 = vst [vmem:[%s5686_s16 + $0x58] sm:$0xff] %v3858_v25   ;;  %v3183_v47 = vpop.f32.mrf.mxu3 }
 0x279   : > { %v3184_v40 = vadd.f32 %v5677_v60, %v3183_v47 }
 0x27b   : > { %v3217_v57 = vmax.f32 %v3184_v40, 0.0 }
 0x27d   : > { %v3878_v39 = vpack.c.bf16 %v3217_v57, %v3216_v62 }
 0x27f   : > { %3894 = vst [vmem:[%s5686_s16 + $0x78] sm:$0xff] %v3878_v39  }
 0x280   : > { %v3141_v10 = vpop.f32.mrf.mxu1 }
 0x281   : > { %v3142_v17 = vadd.f32 %v5677_v60, %v3141_v10 }
 0x282   : > { %v3121_v41 = vpop.f32.mrf.mxu0 }
 0x283   : > { %v3122_v26 = vadd.f32 %v5677_v60, %v3121_v41  ;;  %v3200_v52 = vmax.f32 %v3142_v17, 0.0 }
 0x285   : > { %v3192_v51 = vmax.f32 %v3122_v26, 0.0 }
 0x288   : > { %v3143_v32 = vpop.f32.mrf.mxu1 }
 0x289   : > { %v3144_v38 = vadd.f32 %v5677_v60, %v3143_v32 }
 0x28a   : > { %v3123_v5 = vpop.f32.mrf.mxu0 }
 0x28b   : > { %v3124_v16 = vadd.f32 %v5677_v60, %v3123_v5  ;;  %v3201_v44 = vmax.f32 %v3144_v38, 0.0 }
 0x28d   : > { %v3193_v24 = vmax.f32 %v3124_v16, 0.0  ;;  %v3838_v4 = vpack.c.bf16 %v3201_v44, %v3200_v52 }
 0x28f   : > { %v3818_v7 = vpack.c.bf16 %v3193_v24, %v3192_v51  ;;  %3886 = vst [vmem:[%s5686_s16 + $0x38] sm:$0xff] %v3838_v4  }
 0x291   : > { %3882 = vst [vmem:[%s5686_s16 + $0x18] sm:$0xff] %v3818_v7  }
 0x292 PF: > { %s13_s12 = sadd.s32 1, %s3934_s12  }
 0x293   : > { %p10_p4 = scmp.ge.s32.totalorder %s13_s12, 6  }
 0x295   :  { %12 = sbr.rel (!%p10_p4) target bundleno = 1 (0x1), region = 64 }

// kernel: _lambda_.7
= control target key start
LH: loop header
LB: loop body
LE: loop exit
PB: predicated region body
PF: predicated region fallthrough
CT: control target
= control target key end

     0   :  { %s5136_s12 = smov 0   ;;  %s6671_s0 = inlined_call_operand.vmem [shape: bf16[4,18,18,128], index: 0, kind: input, shape index: {}]   ;;  %s6672_s1 = inlined_call_operand.vmem [shape: bf16[1152,128], index: 1, kind: input, shape index: {}]   ;;  %s6673_s2 = inlined_call_operand.vmem [shape: f32[1,128], index: 2, kind: input, shape index: {}]   ;;  %s6674_s3 = inlined_call_operand.vmem [shape: bf16[4,16,16,128], index: 3, kind: output, shape index: {}]  }
   0x1 LB: > { %s4159_s13 = sadd.s32 4294967295, %s5114_s12   ;;  %p4163_p0 = scmp.ge.s32.totalorder %s5114_s12, 1  ;;  %s5114_s12 = sphi %s5136_s12, %s13_s12  }
   0x2   : > { %p137_p1 = scmp.lt.s32.totalorder %s5114_s12, 5 }
   0x4   : > { %p138_p2 = pnand %p4163_p0, %p137_p1 }
   0x6   : > { %141 = sbr.rel (%p138_p2) target bundleno = 754 (0x2f2), region = 32 }
   0xb   : > { %v4881_v0 = vld [vmem:[%s6672_s1 + $0x38] sm:$0xff]  ;;  %v4880_v1 = vld [vmem:[%s6672_s1 + $0x30] sm:$0xff]  ;;  %v4879_v2 = vld [vmem:[%s6672_s1 + $0x28] sm:$0xff]  ;;  %p161_p3 = scmp.lt.s32.totalorder %s4159_s13, 3  ;;  %vm220_vm0 = vsmask.f32 3328 }
   0xc   : > { %5041 = vmatpush.bf16.msra.mxu1 %v4881_v0  ;;  %5042 = vmatpush.bf16.msra.mxu2 %v4881_v0  ;;  %v4878_v3 = vld [vmem:[%s6672_s1 + $0x20] sm:$0xff]  ;;  %v4877_v4 = vld [vmem:[%s6672_s1 + $0x18] sm:$0xff]  ;;  %v4876_v5 = vld [vmem:[%s6672_s1 + $0x10] sm:$0xff]  ;;  %vm221_vm1 = vsmask.f32 7440  ;;  %vm671_vm2 = vcmask 1042432  }
   0xd   : > { %5043 = vmatpush.bf16.msra.mxu3 %v4881_v0  ;;  %3207 = vmatpush.bf16.msra.mxu0 %v4881_v0  ;;  %s6700_s13 = smov (!%p161_p3, %s4159_s13), 3  ;;  %v4875_v6 = vld [vmem:[%s6672_s1 + $0x8] sm:$0xff]  ;;  %v4874_v7 = vld [vmem:[%s6672_s1] sm:$0xff]  ;;  %v4897_v8 = vld [vmem:[%s6672_s1 + $0xb8] sm:$0xff]  ;;  %vm672_vm3 = vcmask 1046532  }
   0xe   : > { %s5065_s28 = smul.u32 216, %s6700_s13  ;;  %v4905_v9 = vld [vmem:[%s6672_s1 + $0xf8] sm:$0xff]  ;;  %v4896_v16 = vld [vmem:[%s6672_s1 + $0xb0] sm:$0xff]  ;;  %v4895_v20 = vld [vmem:[%s6672_s1 + $0xa8] sm:$0xff]  ;;  %s4825_s21 = sshll.u32 %s6700_s13, 7 }
   0xf   : > { %v4889_v14 = vld [vmem:[%s6672_s1 + $0x78] sm:$0xff]  ;;  %v4904_v17 = vld [vmem:[%s6672_s1 + $0xf0] sm:$0xff]  ;;  %v4903_v21 = vld [vmem:[%s6672_s1 + $0xe8] sm:$0xff]  ;;  %s6456_s24 = scalar_lea.vmem %s6674_s3, %s4825_s21 }
  0x10   : > { %5044 = vmatpush.bf16.msra.mxu1 %v4880_v1  ;;  %5045 = vmatpush.bf16.msra.mxu2 %v4880_v1  ;;  %s5178_s6 = scalar_lea.vmem %s6671_s0, %s5065_s28  ;;  %v4913_v15 = vld [vmem:[%s6672_s1 + $0x138] sm:$0xff]  ;;  %v4888_v18 = vld [vmem:[%s6672_s1 + $0x70] sm:$0xff]  ;;  %v4887_v22 = vld [vmem:[%s6672_s1 + $0x68] sm:$0xff] }
  0x11   : > { %5046 = vmatpush.bf16.msra.mxu3 %v4880_v1  ;;  %3208 = vmatpush.bf16.msra.mxu0 %v4880_v1  ;;  %v4830_v10 = vld [vmem:[%s5178_s6 + $0x30] sm:$0xff]  ;;  %v4834_v11 = vld [vmem:[%s5178_s6 + $0x60] sm:$0xff]  ;;  %v4911_v23 = vld [vmem:[%s6672_s1 + $0x128] sm:$0xff] }
  0x12   : > { %v4838_v12 = vld [vmem:[%s5178_s6 + $0x90] sm:$0xff]  ;;  %v4826_v13 = vld [vmem:[%s5178_s6] sm:$0xff]  ;;  %v4893_v28 = vld [vmem:[%s6672_s1 + $0x98] sm:$0xff] }
  0x13   : > { %v4912_v19 = vld [vmem:[%s6672_s1 + $0x130] sm:$0xff]  ;;  %v4894_v24 = vld [vmem:[%s6672_s1 + $0xa0] sm:$0xff]  ;;  %v4901_v29 = vld [vmem:[%s6672_s1 + $0xd8] sm:$0xff] }
  0x14   : > { %5047 = vmatpush.bf16.msra.mxu1 %v4879_v2  ;;  %5048 = vmatpush.bf16.msra.mxu2 %v4879_v2  ;;  %v4902_v25 = vld [vmem:[%s6672_s1 + $0xe0] sm:$0xff]  ;;  %v4835_v31 = vld [vmem:[%s5178_s6 + $0x6c] sm:$0xff]  ;;  %v4885_v34 = vld [vmem:[%s6672_s1 + $0x58] sm:$0xff] }
  0x15   : > { %5049 = vmatpush.bf16.msra.mxu3 %v4879_v2  ;;  %3209 = vmatpush.bf16.msra.mxu0 %v4879_v2  ;;  %v4886_v26 = vld [vmem:[%s6672_s1 + $0x60] sm:$0xff]  ;;  %v4827_v33 = vld [vmem:[%s5178_s6 + $0xc] sm:$0xff]  ;;  %v4909_v35 = vld [vmem:[%s6672_s1 + $0x118] sm:$0xff] }
  0x16   : > { %v4910_v27 = vld [vmem:[%s6672_s1 + $0x120] sm:$0xff]  ;;  %v4892_v36 = vld [vmem:[%s6672_s1 + $0x90] sm:$0xff]  ;;  %v4891_v40 = vld [vmem:[%s6672_s1 + $0x88] sm:$0xff] }
  0x17   : > { %v4831_v30 = vld [vmem:[%s5178_s6 + $0x3c] sm:$0xff]  ;;  %v4900_v37 = vld [vmem:[%s6672_s1 + $0xd0] sm:$0xff]  ;;  %v4899_v41 = vld [vmem:[%s6672_s1 + $0xc8] sm:$0xff] }
  0x18   : > { %5050 = vmatpush.bf16.msra.mxu1 %v4878_v3  ;;  %5051 = vmatpush.bf16.msra.mxu2 %v4878_v3  ;;  %v4839_v32 = vld [vmem:[%s5178_s6 + $0x9c] sm:$0xff]  ;;  %v4884_v38 = vld [vmem:[%s6672_s1 + $0x50] sm:$0xff]  ;;  %v4883_v42 = vld [vmem:[%s6672_s1 + $0x48] sm:$0xff] }
  0x19   : > { %5052 = vmatpush.bf16.msra.mxu3 %v4878_v3  ;;  %3210 = vmatpush.bf16.msra.mxu0 %v4878_v3  ;;  %v4908_v39 = vld [vmem:[%s6672_s1 + $0x110] sm:$0xff]  ;;  %v4907_v43 = vld [vmem:[%s6672_s1 + $0x108] sm:$0xff]  ;;  %v4890_v44 = vld [vmem:[%s6672_s1 + $0x80] sm:$0xff] }
  0x1a   : > { %v4898_v45 = vld [vmem:[%s6672_s1 + $0xc0] sm:$0xff]  ;;  %v4832_v48 = vld [vmem:[%s5178_s6 + $0x48] sm:$0xff]  ;;  %v4836_v49 = vld [vmem:[%s5178_s6 + $0x78] sm:$0xff] }
  0x1b   : > { %v4882_v46 = vld [vmem:[%s6672_s1 + $0x40] sm:$0xff]  ;;  %v4840_v50 = vld [vmem:[%s5178_s6 + $0xa8] sm:$0xff]  ;;  %v4828_v51 = vld [vmem:[%s5178_s6 + $0x18] sm:$0xff] }
  0x1c   : > { %5053 = vmatpush.bf16.msra.mxu1 %v4877_v4  ;;  %5054 = vmatpush.bf16.msra.mxu2 %v4877_v4  ;;  %v4906_v47 = vld [vmem:[%s6672_s1 + $0x100] sm:$0xff]  ;;  %v4929_v56 = vld [vmem:[%s6672_s1 + $0x1b8] sm:$0xff]  ;;  %v4183_v58 = vld [vmem:[%s5178_s6 + $0xc] sm:$0xf] }
  0x1d   : > { %5055 = vmatpush.bf16.msra.mxu3 %v4877_v4  ;;  %3211 = vmatpush.bf16.msra.mxu0 %v4877_v4  ;;  %v172_v52 = vld [vmem:[%s5178_s6] sm:$0xf]  ;;  %v5290_v53 = vld [vmem:[%s5178_s6 + $0x4] sm:$0xf]  ;;  %v4937_v57 = vld [vmem:[%s6672_s1 + $0x1f8] sm:$0xff]  ;;  %v836_v2 = vshrl.u32 %v4183_v58, 16 }
  0x1e   : > { %v224_v54 = vshrl.u32 %v172_v52, 16  ;;  %v227_v55 = vshll.u32 %v172_v52, 16  ;;  %v4921_v59 = vld [vmem:[%s6672_s1 + $0x178] sm:$0xff]  ;;  %v233_v61 = vshll.u32 %v5290_v53, 16  ;;  %v237_v62 = vshrl.u32 %v5290_v53, 16  ;;  %vm5318_vm4 = vmor %vm220_vm0, %vm221_vm1 }
  0x1f   : > { %v4945_v60 = vld [vmem:[%s6672_s1 + $0x238] sm:$0xff]  ;;  %v4184_v63 = vld [vmem:[%s5178_s6 + $0x10] sm:$0xf]  ;;  %v839_v3 = vshll.u32 %v4183_v58, 16  ;;  %vm5322_vm5 = vmor %vm671_vm2, %vm672_vm3 }
  0x20   : > { %5056 = vmatpush.bf16.msra.mxu1 %v4876_v5  ;;  %5057 = vmatpush.bf16.msra.mxu2 %v4876_v5  ;;  %v226_v0 = vrot.slane %v224_v54, 4  ;;  %v229_v1 = vrot.slane %v227_v55, 5  ;;  %v845_v4 = vshll.u32 %v4184_v63, 16 }
  0x21   : > { %5058 = vmatpush.bf16.msra.mxu3 %v4876_v5  ;;  %3212 = vmatpush.bf16.msra.mxu0 %v4876_v5  ;;  %v849_v5 = vshrl.u32 %v4184_v63, 16 }
  0x24   : > { %5059 = vmatpush.bf16.msra.mxu1 %v4875_v6  ;;  %5060 = vmatpush.bf16.msra.mxu2 %v4875_v6 }
  0x25   : > { %5061 = vmatpush.bf16.msra.mxu3 %v4875_v6  ;;  %3213 = vmatpush.bf16.msra.mxu0 %v4875_v6  ;;  %v204_v6 = vld [vmem:[%s5178_s6 + $0x8] sm:$0x1] }
  0x28   : > { %5062 = vmatpush.bf16.msra.mxu1 %v4874_v7  ;;  %5063 = vmatpush.bf16.msra.mxu2 %v4874_v7 }
  0x29   : > { %5064 = vmatpush.bf16.msra.mxu3 %v4874_v7  ;;  %3214 = vmatpush.bf16.msra.mxu0 %v4874_v7  ;;  %v235_v7 = vrot.slane %v233_v61, 5  ;;  %v205_v61 = vld [vmem:[%s5178_s6 + $0x14] sm:$0x1] }
  0x2b   : > { %3235 = vmatmul.bf16.vlgmr.msra.gmra.mxu1 %v4830_v10  ;;  %3255 = vmatmul.bf16.vlgmr.msra.gmra.mxu2 %v4834_v11  ;;  %v838_v10 = vrot.slane %v836_v2, 4  ;;  %v841_v11 = vrot.slane %v839_v3, 5 }
  0x2c   : > { %3385 = vmatpush.bf16.msrb.mxu2 %v4897_v8  ;;  %3275 = vmatmul.bf16.vlgmr.msra.gmra.mxu3 %v4838_v12  ;;  %v239_v8 = vrot.slane %v237_v62, 4  ;;  %v243_v12 = vshll.u32 %v204_v6, 16 }
  0x2d   : > { %3474 = vmatpush.bf16.msrb.mxu3 %v4905_v9  ;;  %3215 = vmatmul.bf16.vlgmr.msra.gmra.mxu0 %v4826_v13  ;;  %v230_v9 = vor.u32 %v229_v1, %v226_v0  ;;  %v607_v13 = vld [vmem:[%s5178_s6] sm:$0xe] }
  0x2e   : > { %3296 = vmatpush.bf16.msrb.mxu1 %v4889_v14  ;;  %3563 = vmatpush.bf16.msrb.mxu0 %v4913_v15  ;;  %v847_v14 = vrot.slane %v845_v4, 5  ;;  %v851_v15 = vrot.slane %v849_v5, 4 }
  0x30   : > { %3386 = vmatpush.bf16.msrb.mxu2 %v4896_v16  ;;  %v240_v16 = vor.u32 %v239_v8, %v235_v7  ;;  %v267_v8 = vshll.u32 %v205_v61, 16 }
  0x31   : > { %3475 = vmatpush.bf16.msrb.mxu3 %v4904_v17  ;;  %v676_v17 = vrot.slane %v5290_v53, 5 }
  0x32   : > { %3297 = vmatpush.bf16.msrb.mxu1 %v4888_v18  ;;  %3564 = vmatpush.bf16.msrb.mxu0 %v4912_v19  ;;  %v4215_v18 = vld [vmem:[%s5178_s6 + $0x14] sm:$0x1] }
  0x33   : > { %v4833_v19 = vld [vmem:[%s5178_s6 + $0x54] sm:$0xff] }
  0x34   : > { %3387 = vmatpush.bf16.msrb.mxu2 %v4895_v20  ;;  %v4837_v20 = vld [vmem:[%s5178_s6 + $0x84] sm:$0xff] }
  0x35   : > { %3476 = vmatpush.bf16.msrb.mxu3 %v4903_v21  ;;  %v4841_v21 = vld [vmem:[%s5178_s6 + $0xb4] sm:$0xff] }
  0x36   : > { %3298 = vmatpush.bf16.msrb.mxu1 %v4887_v22  ;;  %3565 = vmatpush.bf16.msrb.mxu0 %v4911_v23  ;;  %v4829_v22 = vld [vmem:[%s5178_s6 + $0x24] sm:$0xff] }
  0x38   : > { %3388 = vmatpush.bf16.msrb.mxu2 %v4894_v24  ;;  %v231_v24 = vrot.slane %v230_v9, 4 }
  0x39   : > { %3477 = vmatpush.bf16.msrb.mxu3 %v4902_v25  ;;  %v4167_v25 = vrot.slane %v607_v13, 9  ;;  %v608_v13 = vld [vmem:[%s5178_s6 + $0xc] sm:$0xe] }
  0x3a   : > { %3299 = vmatpush.bf16.msrb.mxu1 %v4886_v26  ;;  %3566 = vmatpush.bf16.msrb.mxu0 %v4910_v27  ;;  %v842_v26 = vor.u32 %v841_v11, %v838_v10 }
  0x3b   : > { %3240 = vmatmul.bf16.gmra.mxu1 %v4831_v30  ;;  %3260 = vmatmul.bf16.gmra.mxu2 %v4835_v31  ;;  %v241_v30 = vrot.slane %v240_v16, 4  ;;  %v245_v31 = vrot.slane %v243_v12, 5 }
  0x3c   : > { %3389 = vmatpush.bf16.msrb.mxu2 %v4893_v28  ;;  %3280 = vmatmul.bf16.gmra.mxu3 %v4839_v32  ;;  %v852_v28 = vor.u32 %v851_v15, %v847_v14  ;;  %v678_v32 = vrot.slane %v676_v17, 4 }
  0x3d   : > { %3478 = vmatpush.bf16.msrb.mxu3 %v4901_v29  ;;  %3220 = vmatmul.bf16.gmra.mxu0 %v4827_v33  ;;  %v855_v29 = vshll.u32 %v4215_v18, 16  ;;  %v679_v33 = vrot.slane %v204_v6, 5  ;;  %v4216_v6 = vld [vmem:[%s5178_s6 + $0x20] sm:$0x1] }
  0x3e   : > { %3300 = vmatpush.bf16.msrb.mxu1 %v4885_v34  ;;  %3567 = vmatpush.bf16.msrb.mxu0 %v4909_v35  ;;  %v174_v34 = vld [vmem:[%s5178_s6 + $0xc] sm:$0xf]  ;;  %v5328_v35 = vld [vmem:[%s5178_s6 + $0x10] sm:$0xf]  ;;  %v879_v16 = vshll.u32 %v4216_v6, 16 }
  0x3f   : > { %v683_v11 = vrot.slane %v5328_v35, 5  ;;  %v4217_v6 = vld [vmem:[%s5178_s6 + $0x2c] sm:$0x1] }
  0x40   : > { %3390 = vmatpush.bf16.msrb.mxu2 %v4892_v36  ;;  %v236_v36 = vsel %vm5318_vm4, %v231_v24, %v235_v7 }
  0x41   : > { %3479 = vmatpush.bf16.msrb.mxu3 %v4900_v37  ;;  %v677_v37 = vsel %vm5322_vm5, %v4167_v25, %v676_v17  ;;  %v2084_v53 = vunpack.c.l.b16 %v236_v36  ;;  %v4842_v17 = vld [vmem:[%s5178_s6 + $0xc] sm:$0xff]  ;;  %v4168_v25 = vrot.slane %v608_v13, 9 }
  0x42   : > { %3301 = vmatpush.bf16.msrb.mxu1 %v4884_v38  ;;  %3568 = vmatpush.bf16.msrb.mxu0 %v4908_v39  ;;  %v843_v38 = vrot.slane %v842_v26, 4  ;;  %v4185_v39 = vld [vmem:[%s5178_s6 + $0x18] sm:$0xf]  ;;  %v2148_v54 = vunpack.c.l.b16 %v677_v37  ;;  %v685_v26 = vrot.slane %v683_v11, 4  ;;  %v4928_v36 = vld [vmem:[%s6672_s1 + $0x1b0] sm:$0xff] }
  0x43   : > { %v4936_v37 = vld [vmem:[%s6672_s1 + $0x1f0] sm:$0xff] }
  0x44   : > { %3391 = vmatpush.bf16.msrb.mxu2 %v4891_v40  ;;  %v4186_v40 = vld [vmem:[%s5178_s6 + $0x1c] sm:$0xf]  ;;  %v848_v55 = vsel %vm5318_vm4, %v843_v38, %v847_v14  ;;  %v4920_v38 = vld [vmem:[%s6672_s1 + $0x170] sm:$0xff] }
  0x45   : > { %3480 = vmatpush.bf16.msrb.mxu3 %v4899_v41  ;;  %v853_v41 = vrot.slane %v852_v28, 4  ;;  %v873_v52 = vshrl.u32 %v4186_v40, 16  ;;  %v2292_v4 = vunpack.c.l.b16 %v848_v55  ;;  %v686_v28 = vrot.slane %v205_v61, 5 }
  0x46   : > { %3302 = vmatpush.bf16.msrb.mxu1 %v4883_v42  ;;  %3569 = vmatpush.bf16.msrb.mxu0 %v4907_v43  ;;  %v857_v42 = vrot.slane %v855_v29, 5  ;;  %v248_v43 = vshrl.u32 %v174_v34, 16 }
  0x47   : > { %v875_v3 = vrot.slane %v873_v52, 4  ;;  %v206_v52 = vld [vmem:[%s5178_s6 + $0x20] sm:$0x1] }
  0x48   : > { %3392 = vmatpush.bf16.msrb.mxu2 %v4890_v44  ;;  %v251_v44 = vshll.u32 %v174_v34, 16 }
  0x49   : > { %3481 = vmatpush.bf16.msrb.mxu3 %v4898_v45  ;;  %v246_v45 = vsel %vm5318_vm4, %v241_v30, %v245_v31  ;;  %v881_v31 = vrot.slane %v879_v16, 5 }
  0x4a   : > { %3303 = vmatpush.bf16.msrb.mxu1 %v4882_v46  ;;  %3570 = vmatpush.bf16.msrb.mxu0 %v4906_v47  ;;  %v680_v46 = vsel %vm5322_vm5, %v678_v32, %v679_v33  ;;  %v257_v47 = vshll.u32 %v5328_v35, 16  ;;  %v253_v58 = vrot.slane %v251_v44, 5  ;;  %v4188_v44 = vld [vmem:[%s5178_s6 + $0x28] sm:$0xf] }
  0x4b   : > { %3245 = vmatmul.bf16.gmra.mxu1 %v4832_v48  ;;  %3265 = vmatmul.bf16.gmra.mxu2 %v4836_v49  ;;  %v261_v48 = vshrl.u32 %v5328_v35, 16  ;;  %v860_v49 = vshrl.u32 %v4185_v39, 16  ;;  %v893_v55 = vshll.u32 %v4188_v44, 16 }
  0x4c   : > { %3285 = vmatmul.bf16.gmra.mxu3 %v4840_v50  ;;  %3741 = vmatpush.bf16.msra.mxu2 %v4929_v56  ;;  %v863_v50 = vshll.u32 %v4185_v39, 16  ;;  %v858_v56 = vsel %vm5318_vm4, %v853_v41, %v857_v42  ;;  %v5347_v62 = vrot.slane %v257_v47, 5  ;;  %v4944_v39 = vld [vmem:[%s6672_s1 + $0x230] sm:$0xff]  ;;  %v684_v42 = vsel %vm5322_vm5, %v4168_v25, %v683_v11 }
  0x4d   : > { %3225 = vmatmul.bf16.gmra.mxu0 %v4828_v51  ;;  %3830 = vmatpush.bf16.msra.mxu3 %v4937_v57  ;;  %v869_v51 = vshll.u32 %v4186_v40, 16  ;;  %v250_v57 = vrot.slane %v248_v43, 4  ;;  %v263_v63 = vrot.slane %v261_v48, 4  ;;  %v862_v0 = vrot.slane %v860_v49, 4  ;;  %v4187_v43 = vld [vmem:[%s5178_s6 + $0x24] sm:$0xf] }
  0x4e   : > { %3652 = vmatpush.bf16.msra.mxu1 %v4921_v59  ;;  %3919 = vmatpush.bf16.msra.mxu0 %v4945_v60  ;;  %v2085_v59 = vunpack.c.l.b16 %v246_v45  ;;  %v2149_v60 = vunpack.c.l.b16 %v680_v46  ;;  %v865_v1 = vrot.slane %v863_v50, 5  ;;  %v2293_v5 = vunpack.c.l.b16 %v858_v56 }
  0x4f   : > { %v5349_v2 = vrot.slane %v869_v51, 5  ;;  %v254_v7 = vor.u32 %v253_v58, %v250_v57  ;;  %v264_v10 = vor.u32 %v263_v63, %v5347_v62  ;;  %v687_v45 = vsel %vm5322_vm5, %v685_v26, %v686_v28  ;;  %v4189_v26 = vld [vmem:[%s5178_s6 + $0x30] sm:$0xf] }
  0x50   : > { %v2116_v9 = vpack.c.b16 %v2085_v59, %v2084_v53  ;;  %v2180_v12 = vpack.c.b16 %v2149_v60, %v2148_v54  ;;  %v866_v14 = vor.u32 %v865_v1, %v862_v0  ;;  %v2324_v18 = vpack.c.b16 %v2293_v5, %v2292_v4  ;;  %3742 = vmatpush.bf16.msra.mxu2 %v4928_v36 }
  0x51   : > { %v876_v15 = vor.u32 %v875_v3, %v5349_v2  ;;  %v265_v24 = vrot.slane %v264_v10, 4  ;;  %3831 = vmatpush.bf16.msra.mxu3 %v4936_v37  ;;  %v884_v53 = vshrl.u32 %v4187_v43, 16  ;;  %v887_v54 = vshll.u32 %v4187_v43, 16 }
  0x52   : > { %v867_v29 = vrot.slane %v866_v14, 4  ;;  %3653 = vmatpush.bf16.msra.mxu1 %v4920_v38  ;;  %3920 = vmatpush.bf16.msra.mxu0 %v4944_v39  ;;  %v897_v56 = vshrl.u32 %v4188_v44, 16  ;;  %v2150_v59 = vunpack.c.l.b16 %v684_v42  ;;  %v2151_v60 = vunpack.c.l.b16 %v687_v45 }
  0x53   : > { %v877_v30 = vrot.slane %v876_v15, 4  ;;  %v291_v1 = vshll.u32 %v206_v52, 16  ;;  %v889_v3 = vrot.slane %v887_v54, 5  ;;  %v895_v4 = vrot.slane %v893_v55, 5  ;;  %v609_v15 = vld [vmem:[%s5178_s6 + $0x18] sm:$0xe] }
  0x54   : > { %v872_v46 = vsel %vm5318_vm4, %v867_v29, %v5349_v2  ;;  %v886_v2 = vrot.slane %v884_v53, 4  ;;  %v899_v5 = vrot.slane %v897_v56, 4  ;;  %v908_v37 = vshrl.u32 %v4189_v26, 16 }
  0x55   : > { %v882_v47 = vsel %vm5318_vm4, %v877_v30, %v881_v31  ;;  %v2294_v61 = vunpack.c.l.b16 %v872_v46  ;;  %v911_v38 = vshll.u32 %v4189_v26, 16 }
  0x56   : > { %v890_v16 = vor.u32 %v889_v3, %v886_v2  ;;  %v910_v54 = vrot.slane %v908_v37, 4 }
  0x57   : > { %v913_v55 = vrot.slane %v911_v38, 5 }
  0x58   : > { %v891_v29 = vrot.slane %v890_v16, 4 }
  0x59   : > { %v914_v3 = vor.u32 %v913_v55, %v910_v54 }
  0x5a   : > { %v896_v45 = vsel %vm5318_vm4, %v891_v29, %v895_v4 }
  0x5b   : > { %3250 = vmatmul.bf16.gmra.mxu1 %v4833_v19  ;;  %3270 = vmatmul.bf16.gmra.mxu2 %v4837_v20  ;;  %v176_v19 = vld [vmem:[%s5178_s6 + $0x18] sm:$0xf]  ;;  %v255_v20 = vrot.slane %v254_v7, 4  ;;  %v2296_v56 = vunpack.c.l.b16 %v896_v45 }
  0x5c   : > { %3290 = vmatmul.bf16.gmra.mxu3 %v4841_v21  ;;  %v269_v21 = vrot.slane %v267_v8, 5  ;;  %v272_v32 = vshrl.u32 %v176_v19, 16  ;;  %v275_v33 = vshll.u32 %v176_v19, 16  ;;  %v2181_v8 = vpack.c.b16 %v2151_v60, %v2150_v59  ;;  %v178_v19 = vld [vmem:[%s5178_s6 + $0x24] sm:$0xf] }
  0x5d   : > { %3230 = vmatmul.bf16.gmra.mxu0 %v4829_v22  ;;  %v5359_v22 = vld [vmem:[%s5178_s6 + $0x1c] sm:$0xf]  ;;  %v260_v40 = vsel %vm5318_vm4, %v255_v20, %v5347_v62  ;;  %v2295_v62 = vunpack.c.l.b16 %v882_v47  ;;  %v5398_v20 = vld [vmem:[%s5178_s6 + $0x28] sm:$0xf]  ;;  %v207_v47 = vld [vmem:[%s5178_s6 + $0x2c] sm:$0x1] }
  0x5e   : > { %v281_v34 = vshll.u32 %v5359_v22, 16  ;;  %v285_v35 = vshrl.u32 %v5359_v22, 16  ;;  %v270_v41 = vsel %vm5318_vm4, %v265_v24, %v269_v21  ;;  %v274_v48 = vrot.slane %v272_v32, 4  ;;  %v4190_v32 = vld [vmem:[%s5178_s6 + $0x34] sm:$0xf] }
  0x5f   : > { %v277_v49 = vrot.slane %v275_v33, 5  ;;  %v2086_v57 = vunpack.c.l.b16 %v260_v40  ;;  %v2087_v58 = vunpack.c.l.b16 %v270_v41  ;;  %v2325_v10 = vpack.c.b16 %v2295_v62, %v2294_v61  ;;  %v4218_v61 = vld [vmem:[%s5178_s6 + $0x38] sm:$0x1] }
  0x60   : > { %v283_v50 = vrot.slane %v281_v34, 5  ;;  %v287_v51 = vrot.slane %v285_v35, 4  ;;  %v690_v13 = vrot.slane %v5359_v22, 5  ;;  %v4169_v24 = vrot.slane %v609_v15, 9 }
  0x61   : > { %v278_v63 = vor.u32 %v277_v49, %v274_v48  ;;  %v2117_v7 = vpack.c.b16 %v2087_v58, %v2086_v57  ;;  %v693_v22 = vrot.slane %v206_v52, 5  ;;  %v296_v33 = vshrl.u32 %v178_v19, 16 }
  0x62   : > { %v288_v0 = vor.u32 %v287_v51, %v283_v50  ;;  %v692_v25 = vrot.slane %v690_v13, 4  ;;  %v299_v34 = vshll.u32 %v178_v19, 16  ;;  %v305_v35 = vshll.u32 %v5398_v20, 16 }
  0x63   : > { %v279_v11 = vrot.slane %v278_v63, 4  ;;  %v309_v36 = vshrl.u32 %v5398_v20, 16  ;;  %v691_v39 = vsel %vm5322_vm5, %v4169_v24, %v690_v13  ;;  %v917_v41 = vshll.u32 %v4190_v32, 16  ;;  %v5429_v13 = vld [vmem:[%s5178_s6 + $0x34] sm:$0xf] }
  0x64   : > { %v289_v14 = vrot.slane %v288_v0, 4  ;;  %v694_v40 = vsel %vm5322_vm5, %v692_v25, %v693_v22  ;;  %v921_v42 = vshrl.u32 %v4190_v32, 16  ;;  %v298_v48 = vrot.slane %v296_v33, 4  ;;  %v4192_v24 = vld [vmem:[%s5178_s6 + $0x40] sm:$0xf]  ;;  %v4935_v25 = vld [vmem:[%s6672_s1 + $0x1e8] sm:$0xff] }
  0x65   : > { %v284_v21 = vsel %vm5318_vm4, %v279_v11, %v283_v50  ;;  %v301_v49 = vrot.slane %v299_v34, 5  ;;  %v5417_v50 = vrot.slane %v305_v35, 5  ;;  %v311_v51 = vrot.slane %v309_v36, 4  ;;  %3832 = vmatpush.bf16.msra.mxu3 %v4935_v25 }
  0x66   : > { %v2088_v43 = vunpack.c.l.b16 %v284_v21  ;;  %v2152_v52 = vunpack.c.l.b16 %v691_v39  ;;  %v2153_v53 = vunpack.c.l.b16 %v694_v40  ;;  %v5419_v58 = vrot.slane %v917_v41, 5  ;;  %v4927_v21 = vld [vmem:[%s6672_s1 + $0x1a8] sm:$0xff] }
  0x67   : > { %v923_v59 = vrot.slane %v921_v42, 4  ;;  %v315_v60 = vshll.u32 %v207_v47, 16  ;;  %v302_v62 = vor.u32 %v301_v49, %v298_v48  ;;  %v312_v63 = vor.u32 %v311_v51, %v5417_v50  ;;  %3743 = vmatpush.bf16.msra.mxu2 %v4927_v21  ;;  %v4919_v40 = vld [vmem:[%s6672_s1 + $0x168] sm:$0xff] }
  0x68   : > { %v697_v2 = vrot.slane %v5398_v20, 5  ;;  %v700_v16 = vrot.slane %v207_v47, 5  ;;  %v333_v29 = vshrl.u32 %v5429_v13, 16  ;;  %v941_v34 = vshll.u32 %v4192_v24, 16  ;;  %v208_v47 = vld [vmem:[%s5178_s6 + $0x38] sm:$0x1]  ;;  %3654 = vmatpush.bf16.msra.mxu1 %v4919_v40 }
  0x69   : > { %v313_v11 = vrot.slane %v312_v63, 4  ;;  %v945_v35 = vshrl.u32 %v4192_v24, 16  ;;  %v4193_v21 = vld [vmem:[%s5178_s6 + $0x48] sm:$0xf] }
  0x6a   : > { %v699_v15 = vrot.slane %v697_v2, 4 }
  0x6b   : > { %3304 = vmatmul.bf16.vlgmr.msrb.gmra.mxu1 %v2116_v9  ;;  %3393 = vmatmul.bf16.vlgmr.msrb.gmra.mxu2 %v2180_v12  ;;  %v4843_v9 = vld [vmem:[%s5178_s6 + $0x18] sm:$0xff]  ;;  %v293_v12 = vrot.slane %v291_v1, 5  ;;  %v2182_v1 = vpack.c.b16 %v2153_v53, %v2152_v52  ;;  %v943_v53 = vrot.slane %v941_v34, 5  ;;  %v947_v54 = vrot.slane %v945_v35, 4 }
  0x6c   : > { %3482 = vmatmul.bf16.vlgmr.msrb.gmra.mxu3 %v4842_v17  ;;  %v900_v17 = vor.u32 %v899_v5, %v895_v4  ;;  %v4844_v4 = vld [vmem:[%s5178_s6 + $0x24] sm:$0xff]  ;;  %v701_v37 = vsel %vm5322_vm5, %v699_v15, %v700_v16  ;;  %v956_v35 = vshrl.u32 %v4193_v21, 16 }
  0x6d   : > { %3571 = vmatmul.bf16.vlgmr.msrb.gmra.mxu0 %v2324_v18  ;;  %v903_v18 = vshll.u32 %v4217_v6, 16  ;;  %v294_v28 = vsel %vm5318_vm4, %v289_v14, %v293_v12  ;;  %v610_v6 = vld [vmem:[%s5178_s6 + $0x24] sm:$0xe]  ;;  %v180_v12 = vld [vmem:[%s5178_s6 + $0x30] sm:$0xf]  ;;  %v2155_v52 = vunpack.c.l.b16 %v701_v37 }
  0x6e   : > { %v901_v30 = vrot.slane %v900_v17, 4  ;;  %v2089_v44 = vunpack.c.l.b16 %v294_v28  ;;  %v4170_v14 = vrot.slane %v610_v6, 9  ;;  %v915_v17 = vrot.slane %v914_v3, 4  ;;  %v182_v6 = vld [vmem:[%s5178_s6 + $0x3c] sm:$0xf] }
  0x6f   : > { %v905_v31 = vrot.slane %v903_v18, 5  ;;  %v4191_v18 = vld [vmem:[%s5178_s6 + $0x3c] sm:$0xf]  ;;  %v320_v22 = vshrl.u32 %v180_v12, 16  ;;  %v323_v26 = vshll.u32 %v180_v12, 16  ;;  %v329_v28 = vshll.u32 %v5429_v13, 16 }
  0x70   : > { %v2118_v0 = vpack.c.b16 %v2089_v44, %v2088_v43  ;;  %v698_v36 = vsel %vm5322_vm5, %v4170_v14, %v697_v2  ;;  %v920_v38 = vsel %vm5318_vm4, %v915_v17, %v5419_v58  ;;  %v335_v44 = vrot.slane %v333_v29, 4  ;;  %v5493_v37 = vld [vmem:[%s5178_s6 + $0x44] sm:$0x1] }
  0x71   : > { %v906_v46 = vsel %vm5318_vm4, %v901_v30, %v905_v31  ;;  %v932_v30 = vshrl.u32 %v4191_v18, 16  ;;  %v935_v31 = vshll.u32 %v4191_v18, 16  ;;  %v322_v41 = vrot.slane %v320_v22, 4 }
  0x72   : > { %v2297_v57 = vunpack.c.l.b16 %v906_v46  ;;  %v325_v42 = vrot.slane %v323_v26, 5  ;;  %v5458_v43 = vrot.slane %v329_v28, 5  ;;  %v2154_v51 = vunpack.c.l.b16 %v698_v36  ;;  %v4194_v28 = vld [vmem:[%s5178_s6 + $0x4c] sm:$0xf] }
  0x73   : > { %v934_v48 = vrot.slane %v932_v30, 4  ;;  %v937_v49 = vrot.slane %v935_v31, 5  ;;  %v2298_v55 = vunpack.c.l.b16 %v920_v38  ;;  %v948_v2 = vor.u32 %v947_v54, %v943_v53 }
  0x74   : > { %v2326_v5 = vpack.c.b16 %v2297_v57, %v2296_v56  ;;  %v4219_v57 = vld [vmem:[%s5178_s6 + $0x44] sm:$0x1]  ;;  %v707_v14 = vrot.slane %v208_v47, 5  ;;  %v344_v17 = vshrl.u32 %v182_v6, 16  ;;  %v347_v18 = vshll.u32 %v182_v6, 16 }
  0x75   : > { %v951_v3 = vshll.u32 %v4219_v57, 16  ;;  %v959_v36 = vshll.u32 %v4193_v21, 16  ;;  %v965_v38 = vshll.u32 %v4194_v28, 16 }
  0x76   : > { %v346_v31 = vrot.slane %v344_v17, 4 }
  0x77   : > { %v953_v16 = vrot.slane %v951_v3, 5 }
  0x7b   : > { %3309 = vmatmul.bf16.gmra.mxu1 %v2117_v7  ;;  %3398 = vmatmul.bf16.gmra.mxu2 %v2181_v8  ;;  %v924_v7 = vor.u32 %v923_v59, %v5419_v58  ;;  %v927_v8 = vshll.u32 %v4218_v61, 16  ;;  %v326_v58 = vor.u32 %v325_v42, %v322_v41  ;;  %v336_v59 = vor.u32 %v335_v44, %v5458_v43 }
  0x7c   : > { %3487 = vmatmul.bf16.gmra.mxu3 %v4843_v9  ;;  %v317_v9 = vrot.slane %v315_v60, 5  ;;  %v339_v60 = vshll.u32 %v208_v47, 16  ;;  %v704_v61 = vrot.slane %v5429_v13, 5  ;;  %v949_v13 = vrot.slane %v948_v2, 4  ;;  %v184_v2 = vld [vmem:[%s5178_s6 + $0x48] sm:$0xf] }
  0x7d   : > { %3576 = vmatmul.bf16.gmra.mxu0 %v2325_v10  ;;  %v303_v10 = vrot.slane %v302_v62, 4  ;;  %v925_v19 = vrot.slane %v924_v7, 4  ;;  %v929_v20 = vrot.slane %v927_v8, 5  ;;  %v938_v62 = vor.u32 %v937_v49, %v934_v48 }
  0x7e   : > { %v318_v33 = vsel %vm5318_vm4, %v313_v11, %v317_v9  ;;  %v327_v7 = vrot.slane %v326_v58, 4  ;;  %v337_v8 = vrot.slane %v336_v59, 4  ;;  %v341_v9 = vrot.slane %v339_v60, 5  ;;  %v612_v59 = vld [vmem:[%s5178_s6 + $0x3c] sm:$0xe] }
  0x7f   : > { %v308_v32 = vsel %vm5318_vm4, %v303_v10, %v5417_v50  ;;  %v930_v39 = vsel %vm5318_vm4, %v925_v19, %v929_v20  ;;  %v2091_v46 = vunpack.c.l.b16 %v318_v33  ;;  %v4943_v50 = vld [vmem:[%s6672_s1 + $0x228] sm:$0xff]  ;;  %v5471_v10 = vld [vmem:[%s5178_s6 + $0x40] sm:$0xf]  ;;  %v706_v12 = vrot.slane %v704_v61, 4 }
  0x80   : > { %v2090_v45 = vunpack.c.l.b16 %v308_v32  ;;  %v2299_v56 = vunpack.c.l.b16 %v930_v39  ;;  %3921 = vmatpush.bf16.msra.mxu0 %v4943_v50  ;;  %v939_v15 = vrot.slane %v938_v62, 4  ;;  %v353_v19 = vshll.u32 %v5471_v10, 16 }
  0x81   : > { %v357_v20 = vshrl.u32 %v5471_v10, 16  ;;  %v332_v24 = vsel %vm5318_vm4, %v327_v7, %v5458_v43  ;;  %v342_v25 = vsel %vm5318_vm4, %v337_v8, %v341_v9  ;;  %v708_v26 = vsel %vm5322_vm5, %v706_v12, %v707_v14  ;;  %v5516_v9 = vld [vmem:[%s5178_s6 + $0x4c] sm:$0xf]  ;;  %v4195_v12 = vld [vmem:[%s5178_s6 + $0x54] sm:$0xf] }
  0x82   : > { %v2119_v63 = vpack.c.b16 %v2091_v46, %v2090_v45  ;;  %v944_v29 = vsel %vm5318_vm4, %v939_v15, %v943_v53  ;;  %v954_v30 = vsel %vm5318_vm4, %v949_v13, %v953_v16  ;;  %v349_v32 = vrot.slane %v347_v18, 5  ;;  %v4196_v14 = vld [vmem:[%s5178_s6 + $0x58] sm:$0xf]  ;;  %v4926_v18 = vld [vmem:[%s6672_s1 + $0x1a0] sm:$0xff] }
  0x83   : > { %v5490_v33 = vrot.slane %v353_v19, 5  ;;  %v359_v34 = vrot.slane %v357_v20, 4  ;;  %v969_v39 = vshrl.u32 %v4194_v28, 16  ;;  %v2092_v40 = vunpack.c.l.b16 %v332_v24  ;;  %v4934_v19 = vld [vmem:[%s6672_s1 + $0x1e0] sm:$0xff]  ;;  %3744 = vmatpush.bf16.msra.mxu2 %v4926_v18  ;;  %v5576_v18 = vld [vmem:[%s5178_s6 + $0x58] sm:$0xf] }
  0x84   : > { %v2093_v41 = vunpack.c.l.b16 %v342_v25  ;;  %v2157_v43 = vunpack.c.l.b16 %v708_v26  ;;  %v2300_v44 = vunpack.c.l.b16 %v944_v29  ;;  %v2301_v45 = vunpack.c.l.b16 %v954_v30  ;;  %3833 = vmatpush.bf16.msra.mxu3 %v4934_v19 }
  0x85   : > { %v350_v46 = vor.u32 %v349_v32, %v346_v31  ;;  %v360_v47 = vor.u32 %v359_v34, %v5490_v33  ;;  %v363_v48 = vshll.u32 %v5493_v37, 16  ;;  %v958_v49 = vrot.slane %v956_v35, 4 }
  0x86   : > { %v961_v50 = vrot.slane %v959_v36, 5  ;;  %v971_v53 = vrot.slane %v969_v39, 4  ;;  %v711_v54 = vrot.slane %v5471_v10, 5  ;;  %v2328_v58 = vpack.c.b16 %v2301_v45, %v2300_v44  ;;  %v210_v45 = vld [vmem:[%s5178_s6 + $0x50] sm:$0x1] }
  0x87   : > { %v351_v62 = vrot.slane %v350_v46, 4  ;;  %v4172_v7 = vrot.slane %v612_v59, 9  ;;  %v368_v10 = vshrl.u32 %v184_v2, 16  ;;  %v714_v16 = vrot.slane %v5493_v37, 5 }
  0x88   : > { %v713_v8 = vrot.slane %v711_v54, 4  ;;  %v377_v24 = vshll.u32 %v5516_v9, 16  ;;  %v381_v25 = vshrl.u32 %v5516_v9, 16  ;;  %v980_v26 = vshrl.u32 %v4195_v12, 16 }
  0x89   : > { %v356_v15 = vsel %vm5318_vm4, %v351_v62, %v5490_v33  ;;  %v983_v28 = vshll.u32 %v4195_v12, 16  ;;  %v989_v29 = vshll.u32 %v4196_v14, 16  ;;  %v993_v30 = vshrl.u32 %v4196_v14, 16 }
  0x8a   : > { %v712_v33 = vsel %vm5322_vm5, %v4172_v7, %v711_v54  ;;  %v370_v34 = vrot.slane %v368_v10, 4  ;;  %v715_v39 = vsel %vm5322_vm5, %v713_v8, %v714_v16  ;;  %v379_v46 = vrot.slane %v377_v24, 5 }
  0x8b   : > { %3314 = vmatmul.bf16.gmra.mxu1 %v2118_v0  ;;  %3403 = vmatmul.bf16.gmra.mxu2 %v2182_v1  ;;  %v2183_v0 = vpack.c.b16 %v2155_v52, %v2154_v51  ;;  %v611_v1 = vld [vmem:[%s5178_s6 + $0x30] sm:$0xe]  ;;  %v5500_v51 = vld [vmem:[%s6673_s2] ss:$0 sm:$0xff]  ;;  %v5502_v52 = vrot.slane %v965_v38, 5  ;;  %v2094_v38 = vunpack.c.l.b16 %v356_v15 }
  0x8c   : > { %3492 = vmatmul.bf16.gmra.mxu3 %v4844_v4  ;;  %v4845_v4 = vld [vmem:[%s5178_s6 + $0x30] sm:$0xff]  ;;  %v4171_v11 = vrot.slane %v611_v1, 9  ;;  %v962_v1 = vor.u32 %v961_v50, %v958_v49  ;;  %v985_v49 = vrot.slane %v983_v28, 5  ;;  %v5558_v50 = vrot.slane %v989_v29, 5 }
  0x8d   : > { %3581 = vmatmul.bf16.gmra.mxu0 %v2326_v5  ;;  %v2327_v5 = vpack.c.b16 %v2299_v56, %v2298_v55  ;;  %v4220_v55 = vld [vmem:[%s5178_s6 + $0x50] sm:$0x1]  ;;  %v2120_v56 = vpack.c.b16 %v2093_v41, %v2092_v40  ;;  %v4918_v41 = vld [vmem:[%s6672_s1 + $0x160] sm:$0xff] }
  0x8e   : > { %v705_v22 = vsel %vm5322_vm5, %v4171_v11, %v704_v61  ;;  %v4846_v61 = vld [vmem:[%s5178_s6 + $0x3c] sm:$0xff]  ;;  %v975_v6 = vshll.u32 %v4220_v55, 16  ;;  %v371_v11 = vshll.u32 %v184_v2, 16  ;;  %v963_v17 = vrot.slane %v962_v1, 4  ;;  %3655 = vmatpush.bf16.msra.mxu1 %v4918_v41  ;;  %v613_v1 = vld [vmem:[%s5178_s6 + $0x48] sm:$0xe] }
  0x8f   : > { %v2156_v42 = vunpack.c.l.b16 %v705_v22  ;;  %v2158_v55 = vunpack.c.l.b16 %v712_v33  ;;  %v4173_v24 = vrot.slane %v613_v1, 9 }
  0x90   : > { %v977_v21 = vrot.slane %v975_v6, 5  ;;  %v373_v35 = vrot.slane %v371_v11, 5  ;;  %v968_v40 = vsel %vm5318_vm4, %v963_v17, %v5502_v52  ;;  %v186_v17 = vld [vmem:[%s5178_s6 + $0x54] sm:$0xf] }
  0x91   : > { %v2184_v57 = vpack.c.b16 %v2157_v43, %v2156_v42  ;;  %v2302_v59 = vunpack.c.l.b16 %v968_v40  ;;  %v395_v33 = vshll.u32 %v186_v17, 16 }
  0x9b   : > { %3319 = vmatmul.bf16.gmra.mxu1 %v2119_v63  ;;  %3408 = vmatmul.bf16.gmra.mxu2 %v2183_v0  ;;  %v361_v63 = vrot.slane %v360_v47, 4  ;;  %v365_v0 = vrot.slane %v363_v48, 5  ;;  %v383_v47 = vrot.slane %v381_v25, 4  ;;  %v982_v48 = vrot.slane %v980_v26, 4 }
  0x9c   : > { %3497 = vmatmul.bf16.gmra.mxu3 %v4845_v4 }
  0x9d   : > { %3586 = vmatmul.bf16.gmra.mxu0 %v2327_v5  ;;  %v972_v5 = vor.u32 %v971_v53, %v5502_v52  ;;  %v366_v13 = vsel %vm5318_vm4, %v361_v63, %v365_v0  ;;  %v995_v52 = vrot.slane %v993_v30, 4  ;;  %v4942_v53 = vld [vmem:[%s6672_s1 + $0x220] sm:$0xff]  ;;  %v384_v62 = vor.u32 %v383_v47, %v379_v46 }
  0x9e   : > { %v2095_v54 = vunpack.c.l.b16 %v366_v13  ;;  %3922 = vmatpush.bf16.msra.mxu0 %v4942_v53  ;;  %v718_v63 = vrot.slane %v5516_v9, 5  ;;  %v986_v2 = vor.u32 %v985_v49, %v982_v48  ;;  %v4847_v9 = vld [vmem:[%s5178_s6 + $0x48] sm:$0xff]  ;;  %v4198_v47 = vld [vmem:[%s5178_s6 + $0x64] sm:$0xf]  ;;  %v397_v53 = vrot.slane %v395_v33, 5 }
  0x9f   : > { %v973_v20 = vrot.slane %v972_v5, 4  ;;  %v996_v5 = vor.u32 %v995_v52, %v5558_v50 }
  0xa0   : > { %v2121_v10 = vpack.c.b16 %v2095_v54, %v2094_v38  ;;  %v720_v25 = vrot.slane %v718_v63, 4  ;;  %v987_v26 = vrot.slane %v986_v2, 4  ;;  %v719_v38 = vsel %vm5322_vm5, %v4173_v24, %v718_v63 }
  0xa1   : > { %v978_v44 = vsel %vm5318_vm4, %v973_v20, %v977_v21  ;;  %v385_v21 = vrot.slane %v384_v62, 4  ;;  %v997_v28 = vrot.slane %v996_v5, 4  ;;  %v2160_v62 = vunpack.c.l.b16 %v719_v38 }
  0xa2   : > { %v1013_v63 = vshll.u32 %v4198_v47, 16 }
  0xa8   : > { %v3236_v60 = vpop.f32.mrf.mxu1 }
  0xa9   : > { %v5510_v3 = vadd.f32 %v5500_v51, %v3236_v60  ;;  %v2303_v60 = vunpack.c.l.b16 %v978_v44 }
  0xaa   : > { %v5512_v4 = vpop.f32.mrf.mxu0 }
  0xab   : > { %3324 = vmatmul.bf16.gmra.mxu1 %v2120_v56  ;;  %3413 = vmatmul.bf16.gmra.mxu2 %v2184_v57  ;;  %v2159_v56 = vunpack.c.l.b16 %v715_v39  ;;  %v374_v57 = vor.u32 %v373_v35, %v370_v34  ;;  %v2329_v13 = vpack.c.b16 %v2303_v60, %v2302_v59  ;;  %v401_v34 = vshll.u32 %v5576_v18, 16  ;;  %v4197_v39 = vld [vmem:[%s5178_s6 + $0x60] sm:$0xf] }
  0xac   : > { %3502 = vmatmul.bf16.gmra.mxu3 %v4846_v61  ;;  %v387_v61 = vshll.u32 %v210_v45, 16  ;;  %v405_v35 = vshrl.u32 %v5576_v18, 16  ;;  %v1007_v59 = vshll.u32 %v4197_v39, 16 }
  0xad   : > { %3591 = vmatmul.bf16.gmra.mxu0 %v2328_v58  ;;  %v4221_v58 = vld [vmem:[%s5178_s6 + $0x5c] sm:$0x1]  ;;  %v2185_v11 = vpack.c.b16 %v2159_v56, %v2158_v55  ;;  %v375_v12 = vrot.slane %v374_v57, 4  ;;  %v5603_v54 = vrot.slane %v401_v34, 5 }
  0xae   : > { %v3256_v22 = vpop.f32.mrf.mxu2  ;;  %v999_v6 = vshll.u32 %v4221_v58, 16  ;;  %v389_v16 = vrot.slane %v387_v61, 5  ;;  %v5609_v57 = vld [vmem:[%s5178_s6 + $0x5c] sm:$0x1]  ;;  %v407_v58 = vrot.slane %v405_v35, 4  ;;  %v4848_v35 = vld [vmem:[%s5178_s6 + $0x54] sm:$0xff] }
  0xaf   : > { %v5535_v31 = vadd.f32 %v5500_v51, %v3256_v22  ;;  %v3276_v32 = vpop.f32.mrf.mxu3  ;;  %v721_v22 = vrot.slane %v210_v45, 5  ;;  %v380_v30 = vsel %vm5318_vm4, %v375_v12, %v379_v46  ;;  %v992_v45 = vsel %vm5318_vm4, %v987_v26, %v5558_v50 }
  0xb0   : > { %v5540_v36 = vadd.f32 %v5500_v51, %v3276_v32  ;;  %v3238_v37 = vpop.f32.mrf.mxu1  ;;  %v1001_v29 = vrot.slane %v999_v6, 5  ;;  %v392_v32 = vshrl.u32 %v186_v17, 16  ;;  %v2096_v41 = vunpack.c.l.b16 %v380_v30 }
  0xb1   : > { %v5551_v42 = vadd.f32 %v5500_v51, %v3238_v37  ;;  %v390_v37 = vsel %vm5318_vm4, %v385_v21, %v389_v16  ;;  %v722_v44 = vsel %vm5322_vm5, %v720_v25, %v721_v22  ;;  %v1004_v50 = vshrl.u32 %v4197_v39, 16  ;;  %v4222_v22 = vld [vmem:[%s5178_s6 + $0x68] sm:$0x1] }
  0xb2   : > { %v5553_v43 = vpop.f32.mrf.mxu0  ;;  %v1002_v46 = vsel %vm5318_vm4, %v997_v28, %v1001_v29  ;;  %v394_v52 = vrot.slane %v392_v32, 4  ;;  %v2097_v1 = vunpack.c.l.b16 %v390_v37  ;;  %v2161_v2 = vunpack.c.l.b16 %v722_v44 }
  0xb3   : > { %v2304_v5 = vunpack.c.l.b16 %v992_v45  ;;  %v2305_v6 = vunpack.c.l.b16 %v1002_v46  ;;  %v1006_v12 = vrot.slane %v1004_v50, 4  ;;  %v725_v32 = vrot.slane %v5576_v18, 5  ;;  %v188_v18 = vld [vmem:[%s5178_s6 + $0x60] sm:$0xf] }
  0xb4   : > { %v2122_v21 = vpack.c.b16 %v2097_v1, %v2096_v41  ;;  %v2186_v24 = vpack.c.b16 %v2161_v2, %v2160_v62  ;;  %v1023_v45 = vshll.u32 %v4222_v22, 16  ;;  %v4933_v62 = vld [vmem:[%s6672_s1 + $0x1d8] sm:$0xff]  ;;  %v416_v1 = vshrl.u32 %v188_v18, 16 }
  0xb5   : > { %v2330_v25 = vpack.c.b16 %v2305_v6, %v2304_v5  ;;  %v727_v46 = vrot.slane %v725_v32, 4  ;;  %3834 = vmatpush.bf16.msra.mxu3 %v4933_v62 }
  0xb6   : > { %v3258_v0 = vpop.f32.mrf.mxu2 }
  0xb7   : > { %v5568_v7 = vadd.f32 %v5500_v51, %v3258_v0  ;;  %v3278_v8 = vpop.f32.mrf.mxu3  ;;  %v1017_v0 = vshrl.u32 %v4198_v47, 16  ;;  %v728_v47 = vrot.slane %v5609_v57, 5 }
  0xb8   : > { %v5571_v14 = vadd.f32 %v5500_v51, %v3278_v8  ;;  %v3241_v15 = vpop.f32.mrf.mxu1  ;;  %v398_v8 = vor.u32 %v397_v53, %v394_v52  ;;  %v4199_v52 = vld [vmem:[%s5178_s6 + $0x6c] sm:$0xf] }
  0xb9   : > { %v5579_v19 = vadd.f32 %v5500_v51, %v3241_v15  ;;  %v1009_v15 = vrot.slane %v1007_v59, 5  ;;  %v1019_v16 = vrot.slane %v1017_v0, 4  ;;  %v4200_v59 = vld [vmem:[%s5178_s6 + $0x70] sm:$0xf]  ;;  %v1025_v0 = vrot.slane %v1023_v45, 5 }
  0xba   : > { %6679 = vst [vmem:[#allocation2_spill] sm:$0xff] %v5571_v14  ;;  %v5581_v20 = vpop.f32.mrf.mxu0  ;;  %v399_v29 = vrot.slane %v398_v8, 4  ;;  %v1028_v8 = vshrl.u32 %v4199_v52, 16 }
  0xbb   : > { %3329 = vmatmul.bf16.gmra.mxu1 %v2121_v10  ;;  %3418 = vmatmul.bf16.gmra.mxu2 %v2185_v11  ;;  %v411_v10 = vshll.u32 %v5609_v57, 16  ;;  %v408_v11 = vor.u32 %v407_v58, %v5603_v54  ;;  %v1010_v39 = vor.u32 %v1009_v15, %v1006_v12  ;;  %v4925_v57 = vld [vmem:[%s6672_s1 + $0x198] sm:$0xff] }
  0xbc   : > { %3507 = vmatmul.bf16.gmra.mxu3 %v4847_v9  ;;  %v614_v9 = vld [vmem:[%s5178_s6 + $0x54] sm:$0xe]  ;;  %v404_v53 = vsel %vm5318_vm4, %v399_v29, %v5603_v54  ;;  %v419_v54 = vshll.u32 %v188_v18, 16  ;;  %3745 = vmatpush.bf16.msra.mxu2 %v4925_v57 }
  0xbd   : > { %3596 = vmatmul.bf16.gmra.mxu0 %v2329_v13  ;;  %v5619_v13 = vrot.slane %v1013_v63, 5  ;;  %v413_v30 = vrot.slane %v411_v10, 5  ;;  %v409_v37 = vrot.slane %v408_v11, 4  ;;  %v4174_v38 = vrot.slane %v614_v9, 9 }
  0xbe   : > { %v3261_v40 = vpop.f32.mrf.mxu2  ;;  %v1011_v50 = vrot.slane %v1010_v39, 4  ;;  %v1031_v10 = vshll.u32 %v4199_v52, 16  ;;  %v2098_v15 = vunpack.c.l.b16 %v404_v53  ;;  %v1037_v9 = vshll.u32 %v4200_v59, 16 }
  0xbf   : > { %v5601_v48 = vadd.f32 %v5500_v51, %v3261_v40  ;;  %v3281_v49 = vpop.f32.mrf.mxu3  ;;  %v1020_v44 = vor.u32 %v1019_v16, %v5619_v13  ;;  %v726_v58 = vsel %vm5322_vm5, %v4174_v38, %v725_v32  ;;  %v1041_v16 = vshrl.u32 %v4200_v59, 16 }
  0xc0   : > { %v5606_v55 = vadd.f32 %v5500_v51, %v3281_v49  ;;  %v3243_v56 = vpop.f32.mrf.mxu1  ;;  %v5639_v49 = vld [vmem:[%s5178_s6 + $0x64] sm:$0xf]  ;;  %v1016_v22 = vsel %vm5318_vm4, %v1011_v50, %v5619_v13  ;;  %v418_v32 = vrot.slane %v416_v1, 4  ;;  %v212_v13 = vld [vmem:[%s5178_s6 + $0x68] sm:$0x1]  ;;  %v1033_v45 = vrot.slane %v1031_v10, 5 }
  0xc1   : > { %v5612_v60 = vadd.f32 %v5500_v51, %v3243_v56  ;;  %v414_v56 = vsel %vm5318_vm4, %v409_v37, %v413_v30  ;;  %v1021_v63 = vrot.slane %v1020_v44, 4  ;;  %v425_v5 = vshll.u32 %v5639_v49, 16  ;;  %v4941_v37 = vld [vmem:[%s6672_s1 + $0x218] sm:$0xff]  ;;  %v4223_v50 = vld [vmem:[%s5178_s6 + $0x74] sm:$0x1] }
  0xc2   : > { %6680 = vst [vmem:[#allocation3_spill] sm:$0xff] %v5606_v55  ;;  %v5614_v61 = vpop.f32.mrf.mxu0  ;;  %v429_v6 = vshrl.u32 %v5639_v49, 16  ;;  %v1030_v44 = vrot.slane %v1028_v8, 4  ;;  %v2162_v18 = vunpack.c.l.b16 %v726_v58  ;;  %v1043_v52 = vrot.slane %v1041_v16, 4  ;;  %3923 = vmatpush.bf16.msra.mxu0 %v4941_v37  ;;  %v615_v1 = vld [vmem:[%s5178_s6 + $0x60] sm:$0xe] }
  0xc3   : > { %v1026_v30 = vsel %vm5318_vm4, %v1021_v63, %v1025_v0  ;;  %v5683_v38 = vrot.slane %v425_v5, 5  ;;  %v2306_v53 = vunpack.c.l.b16 %v1016_v22  ;;  %v435_v59 = vshll.u32 %v212_v13, 16 }
  0xc4   : > { %v431_v39 = vrot.slane %v429_v6, 4  ;;  %v732_v58 = vrot.slane %v5639_v49, 5  ;;  %v1047_v10 = vshll.u32 %v4223_v50, 16  ;;  %v735_v37 = vrot.slane %v212_v13, 5  ;;  %v4201_v13 = vld [vmem:[%s5178_s6 + $0x78] sm:$0xf] }
  0xc5   : > { %v437_v22 = vrot.slane %v435_v59, 5 }
  0xc6   : > { %v3263_v17 = vpop.f32.mrf.mxu2  ;;  %v432_v0 = vor.u32 %v431_v39, %v5683_v38 }
  0xc7   : > { %v5623_v26 = vadd.f32 %v5500_v51, %v3263_v17  ;;  %v3283_v28 = vpop.f32.mrf.mxu3 }
  0xc8   : > { %v5627_v33 = vadd.f32 %v5500_v51, %v3283_v28  ;;  %v3246_v34 = vpop.f32.mrf.mxu1 }
  0xc9   : > { %v5631_v40 = vadd.f32 %v5500_v51, %v3246_v34  ;;  %v421_v34 = vrot.slane %v419_v54, 5  ;;  %v1034_v54 = vor.u32 %v1033_v45, %v1030_v44  ;;  %v1049_v45 = vrot.slane %v1047_v10, 5  ;;  %v5733_v10 = vld [vmem:[%s5178_s6 + $0x74] sm:$0x1] }
  0xca   : > { %6681 = vst [vmem:[#allocation4_spill] sm:$0xff] %v5627_v33  ;;  %v5633_v41 = vpop.f32.mrf.mxu0 }
  0xcb   : > { %3334 = vmatmul.bf16.gmra.mxu1 %v2122_v21  ;;  %3423 = vmatmul.bf16.gmra.mxu2 %v2186_v24  ;;  %v2099_v24 = vunpack.c.l.b16 %v414_v56  ;;  %v2307_v56 = vunpack.c.l.b16 %v1026_v30  ;;  %v422_v57 = vor.u32 %v421_v34, %v418_v32  ;;  %v4175_v30 = vrot.slane %v615_v1, 9  ;;  %v5706_v32 = vld [vmem:[%s5178_s6 + $0x70] sm:$0xf] }
  0xcc   : > { %3512 = vmatmul.bf16.gmra.mxu3 %v4848_v35  ;;  %v4917_v35 = vld [vmem:[%s6672_s1 + $0x158] sm:$0xff]  ;;  %v433_v34 = vrot.slane %v432_v0, 4  ;;  %v1035_v39 = vrot.slane %v1034_v54, 4 }
  0xcd   : > { %3601 = vmatmul.bf16.gmra.mxu0 %v2330_v25  ;;  %v729_v25 = vsel %vm5322_vm5, %v727_v46, %v728_v47  ;;  %v5685_v47 = vrot.slane %v1037_v9, 5  ;;  %3656 = vmatpush.bf16.msra.mxu1 %v4917_v35  ;;  %v2123_v63 = vpack.c.b16 %v2099_v24, %v2098_v15  ;;  %v4849_v15 = vld [vmem:[%s5178_s6 + $0x60] sm:$0xff]  ;;  %v2331_v16 = vpack.c.b16 %v2307_v56, %v2306_v53  ;;  %v4202_v0 = vld [vmem:[%s5178_s6 + $0x7c] sm:$0xf] }
  0xce   : > { %v3266_v2 = vpop.f32.mrf.mxu2  ;;  %v2163_v46 = vunpack.c.l.b16 %v729_v25  ;;  %v423_v25 = vrot.slane %v422_v57, 4  ;;  %v734_v35 = vrot.slane %v732_v58, 4  ;;  %v453_v53 = vshrl.u32 %v5706_v32, 16 }
  0xcf   : > { %v5659_v11 = vadd.f32 %v5500_v51, %v3266_v2  ;;  %v3286_v12 = vpop.f32.mrf.mxu3  ;;  %v1044_v8 = vor.u32 %v1043_v52, %v5685_v47  ;;  %v449_v52 = vshll.u32 %v5706_v32, 16  ;;  %v438_v57 = vsel %vm5318_vm4, %v433_v34, %v437_v22 }
  0xd0   : > { %v5662_v17 = vadd.f32 %v5500_v51, %v3286_v12  ;;  %v3248_v21 = vpop.f32.mrf.mxu1  ;;  %v2187_v6 = vpack.c.b16 %v2163_v46, %v2162_v18  ;;  %v428_v56 = vsel %vm5318_vm4, %v423_v25, %v5683_v38  ;;  %v733_v59 = vsel %vm5322_vm5, %v4175_v30, %v732_v58 }
  0xd1   : > { %v5670_v28 = vadd.f32 %v5500_v51, %v3248_v21  ;;  %v190_v21 = vld [vmem:[%s5178_s6 + $0x6c] sm:$0xf]  ;;  %v1045_v44 = vrot.slane %v1044_v8, 4  ;;  %v1055_v25 = vshll.u32 %v4201_v13, 16  ;;  %v1061_v22 = vshll.u32 %v4202_v0, 16 }
  0xd2   : > { %6682 = vst [vmem:[#allocation5_spill] sm:$0xff] %v5662_v17  ;;  %v5672_v29 = vpop.f32.mrf.mxu0  ;;  %v440_v18 = vshrl.u32 %v190_v21, 16  ;;  %v443_v46 = vshll.u32 %v190_v21, 16  ;;  %v1065_v30 = vshrl.u32 %v4202_v0, 16  ;;  %v2100_v34 = vunpack.c.l.b16 %v428_v56 }
  0xd3   : > { %v1050_v54 = vsel %vm5318_vm4, %v1045_v44, %v1049_v45  ;;  %v5746_v0 = vrot.slane %v1061_v22, 5 }
  0xd4   : > { %v2309_v45 = vunpack.c.l.b16 %v1050_v54  ;;  %v1067_v56 = vrot.slane %v1065_v30, 4  ;;  %v4224_v54 = vld [vmem:[%s5178_s6 + $0x80] sm:$0x1] }
  0xd6   : > { %v3268_v62 = vpop.f32.mrf.mxu2 }
  0xd7   : > { %v5692_v2 = vadd.f32 %v5500_v51, %v3268_v62  ;;  %v3288_v5 = vpop.f32.mrf.mxu3  ;;  %v736_v62 = vsel %vm5322_vm5, %v734_v35, %v735_v37  ;;  %v2101_v35 = vunpack.c.l.b16 %v438_v57  ;;  %v2164_v37 = vunpack.c.l.b16 %v733_v59 }
  0xd8   : > { %v5696_v12 = vadd.f32 %v5500_v51, %v3288_v5  ;;  %v3251_v9 = vpop.f32.mrf.mxu1  ;;  %v442_v5 = vrot.slane %v440_v18, 4  ;;  %v3217_v57 = vadd.f32 %v5500_v51, %v5512_v4 }
  0xd9   : > { %v5701_v24 = vadd.f32 %v5500_v51, %v3251_v9  ;;  %v5735_v9 = vrot.slane %v449_v52, 5 }
  0xda   : > { %6683 = vst [vmem:[#allocation6_spill] sm:$0xff] %v5696_v12  ;;  %v5703_v49 = vpop.f32.mrf.mxu0 }
  0xdb   : > { %3339 = vmatmul.bf16.gmra.mxu1 %v2123_v63  ;;  %3428 = vmatmul.bf16.gmra.mxu2 %v2187_v6  ;;  %v1040_v63 = vsel %vm5318_vm4, %v1035_v39, %v5685_v47  ;;  %v445_v6 = vrot.slane %v443_v46, 5  ;;  %v1052_v47 = vshrl.u32 %v4201_v13, 16  ;;  %v2165_v39 = vunpack.c.l.b16 %v736_v62 }
  0xdc   : > { %3517 = vmatmul.bf16.gmra.mxu3 %v4849_v15  ;;  %v455_v15 = vrot.slane %v453_v53, 4  ;;  %v2308_v44 = vunpack.c.l.b16 %v1040_v63  ;;  %v459_v46 = vshll.u32 %v5733_v10, 16  ;;  %v739_v53 = vrot.slane %v5706_v32, 5 }
  0xdd   : > { %3606 = vmatmul.bf16.gmra.mxu0 %v2331_v16  ;;  %v446_v18 = vor.u32 %v445_v6, %v442_v5  ;;  %v1054_v13 = vrot.slane %v1052_v47, 4  ;;  %v2124_v62 = vpack.c.b16 %v2101_v35, %v2100_v34  ;;  %v2188_v63 = vpack.c.b16 %v2165_v39, %v2164_v37  ;;  %v192_v47 = vld [vmem:[%s5178_s6 + $0x78] sm:$0xf] }
  0xde   : > { %v3271_v50 = vpop.f32.mrf.mxu2  ;;  %v456_v52 = vor.u32 %v455_v15, %v5735_v9  ;;  %v2332_v6 = vpack.c.b16 %v2309_v45, %v2308_v44  ;;  %v461_v15 = vrot.slane %v459_v46, 5  ;;  %v741_v34 = vrot.slane %v739_v53, 4 }
  0xdf   : > { %v5725_v1 = vadd.f32 %v5500_v51, %v3271_v50  ;;  %v3291_v38 = vpop.f32.mrf.mxu3  ;;  %v616_v50 = vld [vmem:[%s5178_s6 + $0x6c] sm:$0xe]  ;;  %v1068_v44 = vor.u32 %v1067_v56, %v5746_v0  ;;  %v1071_v45 = vshll.u32 %v4224_v54, 16  ;;  %v464_v46 = vshrl.u32 %v192_v47, 16  ;;  %v4203_v56 = vld [vmem:[%s5178_s6 + $0x84] sm:$0xf] }
  0xe0   : > { %v5730_v8 = vadd.f32 %v5500_v51, %v3291_v38  ;;  %v3253_v58 = vpop.f32.mrf.mxu1  ;;  %v1057_v38 = vrot.slane %v1055_v25, 5  ;;  %v5756_v25 = vld [vmem:[%s5178_s6 + $0x7c] sm:$0xf]  ;;  %v457_v4 = vrot.slane %v456_v52, 4  ;;  %v4176_v12 = vrot.slane %v616_v50, 9 }
  0xe1   : > { %v5738_v16 = vadd.f32 %v5500_v51, %v3253_v58  ;;  %v447_v58 = vrot.slane %v446_v18, 4  ;;  %v742_v18 = vrot.slane %v5733_v10, 5  ;;  %v477_v52 = vshrl.u32 %v5756_v25, 16 }
  0xe2   : > { %6684 = vst [vmem:[#allocation7_spill] sm:$0xff] %v5730_v8  ;;  %v5740_v21 = vpop.f32.mrf.mxu0  ;;  %v4850_v8 = vld [vmem:[%s5178_s6 + $0x6c] sm:$0xff]  ;;  %v1058_v39 = vor.u32 %v1057_v38, %v1054_v13  ;;  %v3219_v50 = vadd.f32 %v5500_v51, %v5553_v43  ;;  %v740_v10 = vsel %vm5322_vm5, %v4176_v12, %v739_v53  ;;  %v462_v43 = vsel %vm5318_vm4, %v457_v4, %v461_v15 }
  0xe3   : > { %v452_v13 = vsel %vm5318_vm4, %v447_v58, %v5735_v9  ;;  %v4924_v38 = vld [vmem:[%s6672_s1 + $0x190] sm:$0xff]  ;;  %v4204_v9 = vld [vmem:[%s5178_s6 + $0x88] sm:$0xf]  ;;  %v743_v12 = vsel %vm5322_vm5, %v741_v34, %v742_v18  ;;  %v466_v53 = vrot.slane %v464_v46, 4  ;;  %v1076_v17 = vshrl.u32 %v4203_v56, 16 }
  0xe4   : > { %3746 = vmatpush.bf16.msra.mxu2 %v4924_v38  ;;  %v1079_v15 = vshll.u32 %v4203_v56, 16  ;;  %v1089_v33 = vshrl.u32 %v4204_v9, 16  ;;  %v4916_v46 = vld [vmem:[%s6672_s1 + $0x150] sm:$0xff] }
  0xe5   : > { %v1078_v56 = vrot.slane %v1076_v17, 4  ;;  %3657 = vmatpush.bf16.msra.mxu1 %v4916_v46  ;;  %v746_v17 = vrot.slane %v5756_v25, 5 }
  0xe6   : > { %v3273_v59 = vpop.f32.mrf.mxu2 }
  0xe7   : > { %v5752_v5 = vadd.f32 %v5500_v51, %v3273_v59  ;;  %v3293_v32 = vpop.f32.mrf.mxu3  ;;  %v467_v59 = vshll.u32 %v192_v47, 16 }
  0xe8   : > { %v5759_v22 = vadd.f32 %v5500_v51, %v3293_v32  ;;  %v3305_v30 = vpop.f32.mrf.mxu1  ;;  %v473_v32 = vshll.u32 %v5756_v25, 16  ;;  %v748_v25 = vrot.slane %v746_v17, 4 }
  0xe9   : > { %v3306_v35 = vadd.f32 %v3305_v30, %v3217_v57  ;;  %v4932_v57 = vld [vmem:[%s6672_s1 + $0x1d0] sm:$0xff] }
  0xea   : > { %6685 = vst [vmem:[#allocation8_spill] sm:$0xff] %v5759_v22  ;;  %v5762_v37 = vpop.f32.mrf.mxu0  ;;  %v5787_v58 = vrot.slane %v473_v32, 5  ;;  %3835 = vmatpush.bf16.msra.mxu3 %v4932_v57  ;;  %v479_v22 = vrot.slane %v477_v52, 4  ;;  %v2103_v32 = vunpack.c.l.b16 %v462_v43  ;;  %v2166_v52 = vunpack.c.l.b16 %v740_v10  ;;  %v4225_v43 = vld [vmem:[%s5178_s6 + $0x8c] sm:$0x1] }
  0xeb   : > { %3344 = vmatmul.bf16.gmra.mxu1 %v2124_v62  ;;  %3433 = vmatmul.bf16.gmra.mxu2 %v2188_v63  ;;  %v1069_v62 = vrot.slane %v1068_v44, 4  ;;  %v1073_v63 = vrot.slane %v1071_v45, 5  ;;  %v5790_v44 = vld [vmem:[%s5178_s6 + $0x80] sm:$0x1]  ;;  %v1085_v45 = vshll.u32 %v4204_v9, 16  ;;  %v1081_v57 = vrot.slane %v1079_v15, 5 }
  0xec   : > { %3522 = vmatmul.bf16.gmra.mxu3 %v4850_v8  ;;  %v1059_v8 = vrot.slane %v1058_v39, 4  ;;  %v2102_v39 = vunpack.c.l.b16 %v452_v13  ;;  %v480_v38 = vor.u32 %v479_v22, %v5787_v58  ;;  %v1091_v9 = vrot.slane %v1089_v33, 4  ;;  %v4851_v33 = vld [vmem:[%s5178_s6 + $0x78] sm:$0xff] }
  0xed   : > { %3611 = vmatmul.bf16.gmra.mxu0 %v2332_v6  ;;  %v469_v6 = vrot.slane %v467_v59, 5  ;;  %v4940_v59 = vld [vmem:[%s6672_s1 + $0x210] sm:$0xff]  ;;  %v3222_v10 = vadd.f32 %v5500_v51, %v5581_v20  ;;  %v1095_v46 = vshll.u32 %v4225_v43, 16 }
  0xee   : > { %v3394_v54 = vpop.f32.mrf.mxu2  ;;  %v1064_v18 = vsel %vm5318_vm4, %v1059_v8, %v5746_v0  ;;  %v483_v0 = vshll.u32 %v5790_v44, 16  ;;  %3924 = vmatpush.bf16.msra.mxu0 %v4940_v59  ;;  %v481_v15 = vrot.slane %v480_v38, 4  ;;  %v5822_v38 = vld [vmem:[%s5178_s6 + $0x88] sm:$0xf]  ;;  %v4206_v43 = vld [vmem:[%s5178_s6 + $0x94] sm:$0xf] }
  0xef   : > { %v3395_v47 = vadd.f32 %v3394_v54, %v3306_v35  ;;  %v3483_v30 = vpop.f32.mrf.mxu3  ;;  %v1074_v35 = vsel %vm5318_vm4, %v1069_v62, %v1073_v63  ;;  %v470_v13 = vor.u32 %v469_v6, %v466_v53  ;;  %v2310_v8 = vunpack.c.l.b16 %v1064_v18  ;;  %v617_v6 = vld [vmem:[%s5178_s6 + $0x78] sm:$0xe] }
  0xf0   : > { %v3307_v4 = vpop.f32.mrf.mxu1  ;;  %v2311_v62 = vunpack.c.l.b16 %v1074_v35  ;;  %v5805_v63 = vrot.slane %v1085_v45, 5  ;;  %v1082_v45 = vor.u32 %v1081_v57, %v1078_v56  ;;  %v4205_v57 = vld [vmem:[%s5178_s6 + $0x90] sm:$0xf] }
  0xf1   : > { %v3484_v55 = vadd.f32 %v3483_v30, %v3395_v47  ;;  %v3308_v14 = vadd.f32 %v3307_v4, %v3219_v50  ;;  %v2167_v50 = vunpack.c.l.b16 %v743_v12  ;;  %v2125_v12 = vpack.c.b16 %v2103_v32, %v2102_v39 }
  0xf2   : > { %v3574_v34 = vpop.f32.mrf.mxu0  ;;  %v471_v53 = vrot.slane %v470_v13, 4  ;;  %v485_v4 = vrot.slane %v483_v0, 5  ;;  %v2333_v35 = vpack.c.b16 %v2311_v62, %v2310_v8  ;;  %v1092_v20 = vor.u32 %v1091_v9, %v5805_v63 }
  0xf3   : > { %v2189_v22 = vpack.c.b16 %v2167_v50, %v2166_v52  ;;  %v4177_v52 = vrot.slane %v617_v6, 9  ;;  %v194_v50 = vld [vmem:[%s5178_s6 + $0x84] sm:$0xf]  ;;  %v749_v13 = vrot.slane %v5790_v44, 5  ;;  %v1083_v56 = vrot.slane %v1082_v45, 4 }
  0xf4   : > { %v486_v0 = vsel %vm5318_vm4, %v481_v15, %v485_v4  ;;  %v5828_v8 = vadd.f32 %v5762_v37, %v3484_v55  ;;  %v1097_v9 = vrot.slane %v1095_v46, 5  ;;  %v491_v44 = vshll.u32 %v194_v50, 16 }
  0xf5   : > { %v501_v55 = vshrl.u32 %v5822_v38, 16  ;;  %v1100_v6 = vshrl.u32 %v4205_v57, 16  ;;  %v2105_v4 = vunpack.c.l.b16 %v486_v0  ;;  %v1109_v45 = vshll.u32 %v4206_v43, 16 }
  0xf6   : > { %v3396_v54 = vpop.f32.mrf.mxu2 }
  0xf7   : > { %v3397_v47 = vadd.f32 %v3396_v54, %v3308_v14  ;;  %v3485_v30 = vpop.f32.mrf.mxu3  ;;  %v476_v14 = vsel %vm5318_vm4, %v471_v53, %v5787_v58  ;;  %v1093_v58 = vrot.slane %v1092_v20, 4  ;;  %v3224_v54 = vadd.f32 %v5500_v51, %v5614_v61 }
  0xf8   : > { %v3310_v18 = vpop.f32.mrf.mxu1  ;;  %v750_v53 = vsel %vm5322_vm5, %v748_v25, %v749_v13  ;;  %v1113_v61 = vshrl.u32 %v4206_v43, 16  ;;  %v493_v20 = vrot.slane %v491_v44, 5  ;;  %v753_v25 = vrot.slane %v5822_v38, 5 }
  0xf9   : > { %v3486_v39 = vadd.f32 %v3485_v30, %v3397_v47  ;;  %v3311_v59 = vadd.f32 %v3310_v18, %v3222_v10  ;;  %v488_v10 = vshrl.u32 %v194_v50, 16  ;;  %v1103_v47 = vshll.u32 %v4205_v57, 16 }
  0xfa   : > { %v5814_v32 = vpop.f32.mrf.mxu0  ;;  %v503_v50 = vrot.slane %v501_v55, 4  ;;  %v1102_v13 = vrot.slane %v1100_v6, 4  ;;  %v2169_v43 = vunpack.c.l.b16 %v750_v53 }
  0xfb   : > { %3349 = vmatmul.bf16.gmra.mxu1 %v2125_v12  ;;  %3438 = vmatmul.bf16.gmra.mxu2 %v2189_v22  ;;  %v5830_v62 = vadd.f32 %v3574_v34, %v3486_v39  ;;  %v747_v12 = vsel %vm5322_vm5, %v4177_v52, %v746_v17  ;;  %v497_v22 = vshll.u32 %v5822_v38, 16  ;;  %v2104_v34 = vunpack.c.l.b16 %v476_v14  ;;  %v215_v14 = vld [vmem:[%s5178_s6 + $0x8c] sm:$0x1] }
  0xfc   : > { %3527 = vmatmul.bf16.gmra.mxu3 %v4851_v33  ;;  %v1088_v17 = vsel %vm5318_vm4, %v1083_v56, %v5805_v63  ;;  %v1098_v33 = vsel %vm5318_vm4, %v1093_v58, %v1097_v9  ;;  %v1105_v0 = vrot.slane %v1103_v47, 5  ;;  %v2168_v57 = vunpack.c.l.b16 %v747_v12  ;;  %v618_v63 = vld [vmem:[%s5178_s6 + $0x84] sm:$0xe] }
  0xfd   : > { %6686 = vst [vmem:[#allocation9_spill] sm:$0xff] %v5830_v62  ;;  %3616 = vmatmul.bf16.gmra.mxu0 %v2333_v35  ;;  %v490_v35 = vrot.slane %v488_v10, 4  ;;  %v5851_v56 = vrot.slane %v1109_v45, 5  ;;  %v1115_v58 = vrot.slane %v1113_v61, 4  ;;  %v3227_v9 = vadd.f32 %v5500_v51, %v5633_v41 }
  0xfe   : > { %v3399_v37 = vpop.f32.mrf.mxu2  ;;  %v2312_v10 = vunpack.c.l.b16 %v1088_v17  ;;  %v2313_v44 = vunpack.c.l.b16 %v1098_v33  ;;  %v507_v38 = vshll.u32 %v215_v14, 16  ;;  %v4178_v47 = vrot.slane %v618_v63, 9  ;;  %v4852_v33 = vld [vmem:[%s5178_s6 + $0x84] sm:$0xff] }
  0xff   : > { %v3400_v30 = vadd.f32 %v3399_v37, %v3311_v59  ;;  %v3488_v15 = vpop.f32.mrf.mxu3  ;;  %v5846_v59 = vrot.slane %v497_v22, 5  ;;  %v2126_v22 = vpack.c.b16 %v2105_v4, %v2104_v34  ;;  %v494_v55 = vor.u32 %v493_v20, %v490_v35 }
 0x100   : > { %v3312_v18 = vpop.f32.mrf.mxu1  ;;  %v755_v12 = vrot.slane %v753_v25, 4  ;;  %v756_v53 = vrot.slane %v215_v14, 5  ;;  %v2190_v61 = vpack.c.b16 %v2169_v43, %v2168_v57  ;;  %v1116_v41 = vor.u32 %v1115_v58, %v5851_v56 }
 0x101   : > { %v3489_v46 = vadd.f32 %v3488_v15, %v3400_v30  ;;  %v3313_v39 = vadd.f32 %v3312_v18, %v3224_v54  ;;  %v4226_v54 = vld [vmem:[%s5178_s6 + $0x98] sm:$0x1]  ;;  %v504_v37 = vor.u32 %v503_v50, %v5846_v59  ;;  %v1106_v30 = vor.u32 %v1105_v0, %v1102_v13  ;;  %v196_v0 = vld [vmem:[%s5178_s6 + $0x90] sm:$0xf] }
 0x102   : > { %v3579_v52 = vpop.f32.mrf.mxu0  ;;  %v1119_v18 = vshll.u32 %v4226_v54, 16  ;;  %v2334_v62 = vpack.c.b16 %v2313_v44, %v2312_v10  ;;  %v495_v20 = vrot.slane %v494_v55, 4  ;;  %v509_v50 = vrot.slane %v507_v38, 5  ;;  %v4923_v10 = vld [vmem:[%s6672_s1 + $0x188] sm:$0xff] }
 0x103   : > { %v505_v63 = vrot.slane %v504_v37, 4  ;;  %v5867_v14 = vsel %vm5322_vm5, %v755_v12, %v756_v53  ;;  %v1107_v13 = vrot.slane %v1106_v30, 4  ;;  %v1117_v57 = vrot.slane %v1116_v41, 4  ;;  %v4931_v44 = vld [vmem:[%s6672_s1 + $0x1c8] sm:$0xff]  ;;  %3747 = vmatpush.bf16.msra.mxu2 %v4923_v10  ;;  %v619_v10 = vld [vmem:[%s5178_s6 + $0x90] sm:$0xe] }
 0x104   : > { %v1121_v43 = vrot.slane %v1119_v18, 5  ;;  %v5871_v58 = vadd.f32 %v5814_v32, %v3489_v46  ;;  %v3229_v54 = vadd.f32 %v5500_v51, %v5672_v29  ;;  %v500_v32 = vsel %vm5318_vm4, %v495_v20, %v5846_v59  ;;  %3836 = vmatpush.bf16.msra.mxu3 %v4931_v44  ;;  %v4939_v20 = vld [vmem:[%s6672_s1 + $0x208] sm:$0xff] }
 0x105   : > { %v512_v46 = vshrl.u32 %v196_v0, 16  ;;  %v510_v37 = vsel %vm5318_vm4, %v505_v63, %v509_v50  ;;  %v1112_v51 = vsel %vm5318_vm4, %v1107_v13, %v5851_v56  ;;  %v2106_v50 = vunpack.c.l.b16 %v500_v32  ;;  %v216_v13 = vld [vmem:[%s5178_s6 + $0x98] sm:$0x1]  ;;  %3925 = vmatpush.bf16.msra.mxu0 %v4939_v20 }
 0x106   : > { %v3401_v6 = vpop.f32.mrf.mxu2  ;;  %v2107_v63 = vunpack.c.l.b16 %v510_v37 }
 0x107   : > { %v3402_v15 = vadd.f32 %v3401_v6, %v3313_v39  ;;  %v3490_v45 = vpop.f32.mrf.mxu3  ;;  %v5863_v39 = vsel %vm5322_vm5, %v4178_v47, %v753_v25  ;;  %v5876_v25 = vld [vmem:[%s5178_s6 + $0x94] sm:$0xf]  ;;  %v2171_v6 = vunpack.c.l.b16 %v5867_v14  ;;  %v1122_v47 = vsel %vm5318_vm4, %v1117_v57, %v1121_v43 }
 0x108   : > { %v3315_v17 = vpop.f32.mrf.mxu1  ;;  %v2170_v38 = vunpack.c.l.b16 %v5863_v39  ;;  %v521_v12 = vshll.u32 %v5876_v25, 16  ;;  %v525_v53 = vshrl.u32 %v5876_v25, 16  ;;  %v2314_v39 = vunpack.c.l.b16 %v1112_v51 }
 0x109   : > { %v3491_v34 = vadd.f32 %v3490_v45, %v3402_v15  ;;  %v3316_v4 = vadd.f32 %v3315_v17, %v3227_v9  ;;  %v2315_v14 = vunpack.c.l.b16 %v1122_v47  ;;  %v760_v43 = vrot.slane %v5876_v25, 5 }
 0x10a   : > { %v5859_v35 = vpop.f32.mrf.mxu0  ;;  %v527_v57 = vrot.slane %v525_v53, 4  ;;  %v2127_v51 = vpack.c.b16 %v2107_v63, %v2106_v50  ;;  %v2191_v25 = vpack.c.b16 %v2171_v6, %v2170_v38  ;;  %v531_v53 = vshll.u32 %v216_v13, 16  ;;  %v198_v50 = vld [vmem:[%s5178_s6 + $0x9c] sm:$0xf] }
 0x10b   : > { %3354 = vmatmul.bf16.gmra.mxu1 %v2126_v22  ;;  %3443 = vmatmul.bf16.gmra.mxu2 %v2190_v61  ;;  %v5873_v9 = vadd.f32 %v3579_v52, %v3491_v34  ;;  %v515_v52 = vshll.u32 %v196_v0, 16  ;;  %v4208_v22 = vld [vmem:[%s5178_s6 + $0xa0] sm:$0xf]  ;;  %v5909_v0 = vrot.slane %v521_v12, 5 }
 0x10c   : > { %3532 = vmatmul.bf16.gmra.mxu3 %v4852_v33  ;;  %v1133_v61 = vshll.u32 %v4208_v22, 16  ;;  %v1137_v41 = vshrl.u32 %v4208_v22, 16  ;;  %v514_v33 = vrot.slane %v512_v46, 4  ;;  %v5075_v22 = vld [vmem:[%s6673_s2] ss:$0 sm:$0xff] }
 0x10d   : > { %3621 = vmatmul.bf16.gmra.mxu0 %v2334_v62  ;;  %v4207_v62 = vld [vmem:[%s5178_s6 + $0x9c] sm:$0xf]  ;;  %v517_v34 = vrot.slane %v515_v52, 5  ;;  %v528_v12 = vor.u32 %v527_v57, %v5909_v0  ;;  %v3234_v20 = vadd.f32 %v5075_v22, %v5740_v21  ;;  %v4209_v57 = vld [vmem:[%s5178_s6 + $0xa8] sm:$0xf] }
 0x10e   : > { %v3404_v55 = vpop.f32.mrf.mxu2  ;;  %v1124_v15 = vshrl.u32 %v4207_v62, 16  ;;  %v1127_v45 = vshll.u32 %v4207_v62, 16  ;;  %v5913_v46 = vrot.slane %v1133_v61, 5  ;;  %v1139_v52 = vrot.slane %v1137_v41, 4  ;;  %v4227_v62 = vld [vmem:[%s5178_s6 + $0xa4] sm:$0x1] }
 0x10f   : > { %v3405_v29 = vadd.f32 %v3404_v55, %v3316_v4  ;;  %v3493_v59 = vpop.f32.mrf.mxu3  ;;  %v4915_v4 = vld [vmem:[%s6672_s1 + $0x148] sm:$0xff]  ;;  %v518_v32 = vor.u32 %v517_v34, %v514_v33  ;;  %v3232_v55 = vadd.f32 %v5075_v22, %v5703_v49  ;;  %v762_v61 = vrot.slane %v760_v43, 4 }
 0x110   : > { %v3317_v30 = vpop.f32.mrf.mxu1  ;;  %3658 = vmatpush.bf16.msra.mxu1 %v4915_v4  ;;  %v1126_v44 = vrot.slane %v1124_v15, 4  ;;  %v1140_v33 = vor.u32 %v1139_v52, %v5913_v46  ;;  %v1143_v49 = vshll.u32 %v4227_v62, 16  ;;  %v529_v63 = vrot.slane %v528_v12, 4 }
 0x111   : > { %v3494_v18 = vadd.f32 %v3493_v59, %v3405_v29  ;;  %v3318_v17 = vadd.f32 %v3317_v30, %v3229_v54  ;;  %v1129_v54 = vrot.slane %v1127_v45, 5  ;;  %v2335_v29 = vpack.c.b16 %v2315_v14, %v2314_v39  ;;  %v4853_v45 = vld [vmem:[%s5178_s6 + $0x90] sm:$0xff]  ;;  %v5928_v14 = vld [vmem:[%s5178_s6 + $0xa0] sm:$0xf] }
 0x112   : > { %v3584_v56 = vpop.f32.mrf.mxu0  ;;  %v4179_v30 = vrot.slane %v619_v10, 9  ;;  %v519_v6 = vrot.slane %v518_v32, 4  ;;  %v533_v39 = vrot.slane %v531_v53, 5  ;;  %v1145_v52 = vrot.slane %v1143_v49, 5  ;;  %v4210_v32 = vld [vmem:[%s5178_s6 + $0xac] sm:$0xf] }
 0x113   : > { %v1130_v41 = vor.u32 %v1129_v54, %v1126_v44  ;;  %v5932_v10 = vadd.f32 %v5859_v35, %v3494_v18  ;;  %v1141_v54 = vrot.slane %v1140_v33, 4  ;;  %v536_v35 = vshrl.u32 %v198_v50, 16 }
 0x114   : > { %v524_v62 = vsel %vm5318_vm4, %v519_v6, %v5909_v0  ;;  %v539_v18 = vshll.u32 %v198_v50, 16  ;;  %v1161_v12 = vshrl.u32 %v4210_v32, 16 }
 0x115   : > { %v1131_v21 = vrot.slane %v1130_v41, 4  ;;  %v538_v49 = vrot.slane %v536_v35, 4 }
 0x116   : > { %v3406_v37 = vpop.f32.mrf.mxu2 }
 0x117   : > { %v3407_v59 = vadd.f32 %v3406_v37, %v3318_v17  ;;  %v3495_v47 = vpop.f32.mrf.mxu3  ;;  %v763_v17 = vrot.slane %v216_v13, 5  ;;  %v761_v13 = vsel %vm5322_vm5, %v4179_v30, %v760_v43  ;;  %v549_v37 = vshrl.u32 %v5928_v14, 16 }
 0x118   : > { %v3320_v15 = vpop.f32.mrf.mxu1  ;;  %v1151_v43 = vshll.u32 %v4209_v57, 16  ;;  %v2172_v53 = vunpack.c.l.b16 %v761_v13  ;;  %v620_v13 = vld [vmem:[%s5178_s6 + $0x9c] sm:$0xe] }
 0x119   : > { %v3496_v34 = vadd.f32 %v3495_v47, %v3407_v59  ;;  %v3321_v4 = vadd.f32 %v3320_v15, %v3232_v55  ;;  %v764_v22 = vsel %vm5322_vm5, %v762_v61, %v763_v17  ;;  %v545_v55 = vshll.u32 %v5928_v14, 16 }
 0x11a   : > { %v5923_v38 = vpop.f32.mrf.mxu0  ;;  %v534_v59 = vsel %vm5318_vm4, %v529_v63, %v533_v39  ;;  %v1157_v47 = vshll.u32 %v4210_v32, 16  ;;  %v2173_v30 = vunpack.c.l.b16 %v764_v22  ;;  %v1136_v15 = vsel %vm5318_vm4, %v1131_v21, %v5913_v46 }
 0x11b   : > { %3359 = vmatmul.bf16.gmra.mxu1 %v2127_v51  ;;  %3448 = vmatmul.bf16.gmra.mxu2 %v2191_v25  ;;  %v5934_v44 = vadd.f32 %v3584_v56, %v3496_v34  ;;  %v1148_v51 = vshrl.u32 %v4209_v57, 16  ;;  %v541_v34 = vrot.slane %v539_v18, 5  ;;  %v551_v6 = vrot.slane %v549_v37, 4  ;;  %v217_v57 = vld [vmem:[%s5178_s6 + $0xa4] sm:$0x1] }
 0x11c   : > { %3537 = vmatmul.bf16.gmra.mxu3 %v4853_v45  ;;  %v1146_v45 = vsel %vm5318_vm4, %v1141_v54, %v1145_v52  ;;  %v1153_v50 = vrot.slane %v1151_v43, 5  ;;  %v2108_v63 = vunpack.c.l.b16 %v524_v62  ;;  %v2109_v39 = vunpack.c.l.b16 %v534_v59  ;;  %v4228_v52 = vld [vmem:[%s5178_s6 + $0xb0] sm:$0x1] }
 0x11d   : > { %3626 = vmatmul.bf16.gmra.mxu0 %v2335_v29  ;;  %v1150_v17 = vrot.slane %v1148_v51, 4  ;;  %v5957_v32 = vrot.slane %v1157_v47, 5  ;;  %v1163_v46 = vrot.slane %v1161_v12, 4  ;;  %v2316_v21 = vunpack.c.l.b16 %v1136_v15  ;;  %v4854_v12 = vld [vmem:[%s5178_s6 + $0x9c] sm:$0xff] }
 0x11e   : > { %v3409_v56 = vpop.f32.mrf.mxu2  ;;  %v2317_v54 = vunpack.c.l.b16 %v1146_v45  ;;  %v2192_v22 = vpack.c.b16 %v2173_v30, %v2172_v53  ;;  %v542_v35 = vor.u32 %v541_v34, %v538_v49  ;;  %v4180_v37 = vrot.slane %v620_v13, 9  ;;  %v200_v34 = vld [vmem:[%s5178_s6 + $0xa8] sm:$0xf]  ;;  %v4211_v13 = vld [vmem:[%s5178_s6 + $0xb4] sm:$0xf] }
 0x11f   : > { %v3410_v25 = vadd.f32 %v3409_v56, %v3321_v4  ;;  %v3498_v29 = vpop.f32.mrf.mxu3  ;;  %v5953_v4 = vrot.slane %v545_v55, 5  ;;  %v555_v55 = vshll.u32 %v217_v57, 16  ;;  %v1154_v62 = vor.u32 %v1153_v50, %v1150_v17 }
 0x120   : > { %v3322_v0 = vpop.f32.mrf.mxu1  ;;  %v1167_v59 = vshll.u32 %v4228_v52, 16  ;;  %v770_v53 = vrot.slane %v217_v57, 5  ;;  %v543_v49 = vrot.slane %v542_v35, 4  ;;  %v4922_v52 = vld [vmem:[%s6672_s1 + $0x180] sm:$0xff] }
 0x121   : > { %v3499_v61 = vadd.f32 %v3498_v29, %v3410_v25  ;;  %v3323_v41 = vadd.f32 %v3322_v0, %v3234_v20  ;;  %v767_v20 = vrot.slane %v5928_v14, 5  ;;  %v552_v56 = vor.u32 %v551_v6, %v5953_v4  ;;  %v4930_v35 = vld [vmem:[%s6672_s1 + $0x1c0] sm:$0xff]  ;;  %3748 = vmatpush.bf16.msra.mxu2 %v4922_v52 }
 0x122   : > { %v3589_v33 = vpop.f32.mrf.mxu0  ;;  %v2128_v25 = vpack.c.b16 %v2109_v39, %v2108_v63  ;;  %v1164_v29 = vor.u32 %v1163_v46, %v5957_v32  ;;  %v2336_v14 = vpack.c.b16 %v2317_v54, %v2316_v21  ;;  %v557_v6 = vrot.slane %v555_v55, 5  ;;  %v5971_v63 = vld [vmem:[%s5178_s6 + $0xac] sm:$0xf]  ;;  %3837 = vmatpush.bf16.msra.mxu3 %v4930_v35  ;;  %v4229_v35 = vld [vmem:[%s5178_s6 + $0xbc] sm:$0x1] }
 0x123   : > { %v769_v0 = vrot.slane %v767_v20, 4  ;;  %v768_v17 = vsel %vm5322_vm5, %v4180_v37, %v767_v20  ;;  %v1155_v50 = vrot.slane %v1154_v62, 4  ;;  %v1169_v57 = vrot.slane %v1167_v59, 5 }
 0x124   : > { %v1165_v39 = vrot.slane %v1164_v29, 4  ;;  %v560_v54 = vshrl.u32 %v200_v34, 16  ;;  %v563_v20 = vshll.u32 %v200_v34, 16  ;;  %v2174_v55 = vunpack.c.l.b16 %v768_v17 }
 0x125   : > { %v771_v21 = vsel %vm5322_vm5, %v769_v0, %v770_v53  ;;  %v1172_v37 = vshrl.u32 %v4211_v13, 16  ;;  %v1175_v62 = vshll.u32 %v4211_v13, 16  ;;  %v774_v17 = vrot.slane %v5971_v63, 5  ;;  %v621_v13 = vld [vmem:[%s5178_s6 + $0xa8] sm:$0xe] }
 0x126   : > { %v3411_v18 = vpop.f32.mrf.mxu2  ;;  %v565_v0 = vrot.slane %v563_v20, 5 }
 0x127   : > { %v3412_v51 = vadd.f32 %v3411_v18, %v3323_v41  ;;  %v3500_v43 = vpop.f32.mrf.mxu3  ;;  %v553_v41 = vrot.slane %v552_v56, 4 }
 0x128   : > { %v3325_v47 = vpop.f32.mrf.mxu1 }
 0x129   : > { %v3501_v30 = vadd.f32 %v3500_v43, %v3412_v51  ;;  %v3326_v15 = vadd.f32 %v3325_v47, %v5510_v3  ;;  %v5975_v3 = vadd.f32 %v5923_v38, %v3499_v61  ;;  %v548_v38 = vsel %vm5318_vm4, %v543_v49, %v5953_v4 }
 0x12a   : > { %v5965_v45 = vpop.f32.mrf.mxu0  ;;  %v569_v61 = vshll.u32 %v5971_v63, 16  ;;  %v558_v56 = vsel %vm5318_vm4, %v553_v41, %v557_v6  ;;  %v1160_v47 = vsel %vm5318_vm4, %v1155_v50, %v5957_v32  ;;  %v4914_v6 = vld [vmem:[%s6672_s1 + $0x140] sm:$0xff]  ;;  %v1174_v50 = vrot.slane %v1172_v37, 4 }
 0x12b   : > { %3364 = vmatmul.bf16.gmra.mxu1 %v2128_v25  ;;  %3453 = vmatmul.bf16.gmra.mxu2 %v2192_v22  ;;  %v5977_v46 = vadd.f32 %v3589_v33, %v3501_v30  ;;  %v4212_v22 = vld [vmem:[%s5178_s6 + $0xb8] sm:$0xf]  ;;  %v573_v33 = vshrl.u32 %v5971_v63, 16  ;;  %v2175_v25 = vunpack.c.l.b16 %v771_v21  ;;  %v4938_v32 = vld [vmem:[%s6672_s1 + $0x200] sm:$0xff]  ;;  %v2318_v20 = vunpack.c.l.b16 %v1160_v47 }
 0x12c   : > { %3542 = vmatmul.bf16.gmra.mxu3 %v4854_v12  ;;  %v1181_v29 = vshll.u32 %v4212_v22, 16  ;;  %v1185_v59 = vshrl.u32 %v4212_v22, 16  ;;  %v1170_v12 = vsel %vm5318_vm4, %v1165_v39, %v1169_v57  ;;  %v6002_v34 = vrot.slane %v569_v61, 5  ;;  %3659 = vmatpush.bf16.msra.mxu1 %v4914_v6 }
 0x12d   : > { %3631 = vmatmul.bf16.gmra.mxu0 %v2336_v14  ;;  %v562_v14 = vrot.slane %v560_v54, 4  ;;  %v575_v41 = vrot.slane %v573_v33, 4  ;;  %v1177_v39 = vrot.slane %v1175_v62, 5  ;;  %v2110_v57 = vunpack.c.l.b16 %v548_v38 }
 0x12e   : > { %v3414_v18 = vpop.f32.mrf.mxu2  ;;  %v6012_v21 = vrot.slane %v1181_v29, 5  ;;  %v1187_v54 = vrot.slane %v1185_v59, 4  ;;  %3926 = vmatpush.bf16.msra.mxu0 %v4938_v32  ;;  %v2319_v52 = vunpack.c.l.b16 %v1170_v12  ;;  %v2193_v61 = vpack.c.b16 %v2175_v25, %v2174_v55  ;;  %v4855_v12 = vld [vmem:[%s5178_s6 + $0xa8] sm:$0xff] }
 0x12f   : > { %v3415_v51 = vadd.f32 %v3414_v18, %v3326_v15  ;;  %v3503_v43 = vpop.f32.mrf.mxu3  ;;  %v218_v15 = vld [vmem:[%s5178_s6 + $0xb0] sm:$0x1]  ;;  %v566_v33 = vor.u32 %v565_v0, %v562_v14  ;;  %v576_v18 = vor.u32 %v575_v41, %v6002_v34  ;;  %v4181_v37 = vrot.slane %v621_v13, 9 }
 0x130   : > { %v3327_v4 = vpop.f32.mrf.mxu1  ;;  %v579_v22 = vshll.u32 %v218_v15, 16  ;;  %v776_v62 = vrot.slane %v774_v17, 4  ;;  %v777_v38 = vrot.slane %v218_v15, 5  ;;  %v1188_v59 = vor.u32 %v1187_v54, %v6012_v21  ;;  %v5076_v54 = vld [vmem:[%s5178_s6 + $0x10] sm:$0xf] }
 0x131   : > { %v3504_v53 = vadd.f32 %v3503_v43, %v3415_v51  ;;  %v3328_v30 = vadd.f32 %v3327_v4, %v5551_v42  ;;  %v2111_v42 = vunpack.c.l.b16 %v558_v56  ;;  %v1178_v56 = vor.u32 %v1177_v39, %v1174_v50 }
 0x132   : > { %v3594_v49 = vpop.f32.mrf.mxu0  ;;  %v1191_v4 = vshll.u32 %v4229_v35, 16  ;;  %v2337_v6 = vpack.c.b16 %v2319_v52, %v2318_v20  ;;  %v581_v32 = vrot.slane %v579_v22, 5  ;;  %v567_v0 = vrot.slane %v566_v33, 4  ;;  %v5077_v52 = vld [vmem:[%s5178_s6 + $0x14] sm:$0x1] }
 0x133   : > { %v2129_v29 = vpack.c.b16 %v2111_v42, %v2110_v57  ;;  %v577_v15 = vrot.slane %v576_v18, 4  ;;  %v778_v41 = vsel %vm5322_vm5, %v776_v62, %v777_v38  ;;  %v1179_v50 = vrot.slane %v1178_v56, 4  ;;  %v202_v42 = vld [vmem:[%s5178_s6 + $0xb4] sm:$0xf]  ;;  %v4214_v62 = vld [vmem:[%s5178_s6 + $0xc4] sm:$0xf] }
 0x134   : > { %v1189_v39 = vrot.slane %v1188_v59, 4  ;;  %v1193_v57 = vrot.slane %v1191_v4, 5  ;;  %v1285_v20 = vrot.slane %v5076_v54, 5  ;;  %v1288_v22 = vrot.slane %v5077_v52, 5 }
 0x135   : > { %v572_v35 = vsel %vm5318_vm4, %v567_v0, %v6002_v34  ;;  %v2177_v33 = vunpack.c.l.b16 %v778_v41  ;;  %v1184_v18 = vsel %vm5318_vm4, %v1179_v50, %v6012_v21 }
 0x136   : > { %v3416_v63 = vpop.f32.mrf.mxu2  ;;  %v2112_v59 = vunpack.c.l.b16 %v572_v35  ;;  %v2320_v0 = vunpack.c.l.b16 %v1184_v18  ;;  %v1287_v50 = vrot.slane %v1285_v20, 4 }
 0x137   : > { %v3417_v51 = vadd.f32 %v3416_v63, %v3328_v30  ;;  %v3505_v43 = vpop.f32.mrf.mxu3  ;;  %v775_v30 = vsel %vm5322_vm5, %v4181_v37, %v774_v17  ;;  %v6031_v17 = vld [vmem:[%s5178_s6 + $0xb8] sm:$0xf]  ;;  %v584_v63 = vshrl.u32 %v202_v42, 16  ;;  %v587_v37 = vshll.u32 %v202_v42, 16 }
 0x138   : > { %v3330_v47 = vpop.f32.mrf.mxu1  ;;  %v593_v34 = vshll.u32 %v6031_v17, 16 }
 0x139   : > { %v3506_v55 = vadd.f32 %v3505_v43, %v3417_v51  ;;  %v3331_v25 = vadd.f32 %v3330_v47, %v5579_v19  ;;  %v6025_v19 = vadd.f32 %v5965_v45, %v3504_v53  ;;  %v2176_v45 = vunpack.c.l.b16 %v775_v30  ;;  %v4213_v53 = vld [vmem:[%s5178_s6 + $0xc0] sm:$0xf] }
 0x13a   : > { %v3597_v14 = vpop.f32.mrf.mxu0  ;;  %v1194_v51 = vsel %vm5318_vm4, %v1189_v39, %v1193_v57  ;;  %v597_v43 = vshrl.u32 %v6031_v17, 16  ;;  %v1196_v47 = vshrl.u32 %v4213_v53, 16  ;;  %v586_v30 = vrot.slane %v584_v63, 4  ;;  %v6050_v39 = vld [vmem:[%s5178_s6 + $0xbc] sm:$0x1] }
 0x13b   : > { %3369 = vmatmul.bf16.gmra.mxu1 %v2129_v29  ;;  %3458 = vmatmul.bf16.gmra.mxu2 %v2193_v61  ;;  %v6027_v13 = vadd.f32 %v3594_v49, %v3506_v55  ;;  %v582_v61 = vsel %vm5318_vm4, %v577_v15, %v581_v32  ;;  %v1205_v55 = vshll.u32 %v4214_v62, 16  ;;  %v2321_v15 = vunpack.c.l.b16 %v1194_v51 }
 0x13c   : > { %3547 = vmatmul.bf16.gmra.mxu3 %v4855_v12  ;;  %v2113_v4 = vunpack.c.l.b16 %v582_v61  ;;  %v1199_v12 = vshll.u32 %v4213_v53, 16  ;;  %v589_v41 = vrot.slane %v587_v37, 5  ;;  %v6052_v57 = vrot.slane %v593_v34, 5  ;;  %v4231_v61 = vld [vmem:[%s5178_s6 + $0xc] sm:$0xe] }
 0x13d   : > { %3636 = vmatmul.bf16.gmra.mxu0 %v2337_v6  ;;  %v599_v42 = vrot.slane %v597_v43, 4  ;;  %v2194_v52 = vpack.c.b16 %v2177_v33, %v2176_v45  ;;  %v6058_v18 = vrot.slane %v1205_v55, 5  ;;  %v4247_v37 = vrot.slane %v4231_v61, 9 }
 0x13e   : > { %v3419_v49 = vpop.f32.mrf.mxu2  ;;  %v1201_v35 = vrot.slane %v1199_v12, 5  ;;  %v2130_v53 = vpack.c.b16 %v2113_v4, %v2112_v59  ;;  %v603_v51 = vshll.u32 %v6050_v39, 16  ;;  %v781_v34 = vrot.slane %v6031_v17, 5 }
 0x13f   : > { %v3420_v38 = vadd.f32 %v3419_v49, %v3331_v25  ;;  %v3508_v56 = vpop.f32.mrf.mxu3  ;;  %v1209_v25 = vshrl.u32 %v4214_v62, 16  ;;  %v622_v49 = vld [vmem:[%s5178_s6 + $0xb4] sm:$0xe]  ;;  %v600_v33 = vor.u32 %v599_v42, %v6052_v57  ;;  %v1289_v59 = vsel %vm5322_vm5, %v1287_v50, %v1288_v22  ;;  %v4263_v22 = vld [vmem:[%s5178_s6 + $0x18] sm:$0xf] }
 0x140   : > { %v3332_v29 = vpop.f32.mrf.mxu1  ;;  %v4182_v12 = vrot.slane %v622_v49, 9  ;;  %v6075_v50 = vld [vmem:[%s5178_s6 + $0x1c] sm:$0xf]  ;;  %v783_v61 = vrot.slane %v781_v34, 4 }
 0x141   : > { %v3509_v6 = vadd.f32 %v3508_v56, %v3420_v38  ;;  %v3333_v21 = vadd.f32 %v3332_v29, %v5612_v60  ;;  %v1198_v60 = vrot.slane %v1196_v47, 4  ;;  %v1211_v63 = vrot.slane %v1209_v25, 4  ;;  %v4856_v47 = vld [vmem:[%s5178_s6 + $0xb4] sm:$0xff] }
 0x142   : > { %v3599_v32 = vpop.f32.mrf.mxu0  ;;  %v2338_v38 = vpack.c.b16 %v2321_v15, %v2320_v0  ;;  %v590_v56 = vor.u32 %v589_v41, %v586_v30  ;;  %v1286_v29 = vsel %vm5322_vm5, %v4247_v37, %v1285_v20  ;;  %v2357_v25 = vunpack.c.l.b16 %v1289_v59 }
 0x143   : > { %v6054_v54 = vadd.f32 %v3597_v14, %v3509_v6  ;;  %v4230_v14 = vld [vmem:[%s5178_s6 + $0xc8] sm:$0x1]  ;;  %v1202_v6 = vor.u32 %v1201_v35, %v1198_v60  ;;  %v2356_v55 = vunpack.c.l.b16 %v1286_v29  ;;  %v1212_v15 = vor.u32 %v1211_v63, %v6058_v18 }
 0x144   : > { %v1215_v30 = vshll.u32 %v4230_v14, 16  ;;  %v605_v20 = vrot.slane %v603_v51, 5  ;;  %v591_v60 = vrot.slane %v590_v56, 4  ;;  %v601_v35 = vrot.slane %v600_v33, 4 }
 0x145   : > { %v6071_v41 = vpack.c.b16 %v2357_v25, %v2356_v55  ;;  %v782_v49 = vsel %vm5322_vm5, %v4182_v12, %v781_v34  ;;  %v1203_v63 = vrot.slane %v1202_v6, 4  ;;  %v1213_v37 = vrot.slane %v1212_v15, 4 }
 0x146   : > { %v3421_v62 = vpop.f32.mrf.mxu2  ;;  %v1448_v51 = vshll.u32 %v4263_v22, 16  ;;  %v1454_v14 = vshll.u32 %v6075_v50, 16  ;;  %v606_v34 = vsel %vm5318_vm4, %v601_v35, %v605_v20  ;;  %v2178_v33 = vunpack.c.l.b16 %v782_v49 }
 0x147   : > { %v3422_v43 = vadd.f32 %v3421_v62, %v3333_v21  ;;  %v3510_v45 = vpop.f32.mrf.mxu3  ;;  %v1445_v62 = vshrl.u32 %v4263_v22, 16 }
 0x148   : > { %v3335_v4 = vpop.f32.mrf.mxu1  ;;  %v1450_v6 = vrot.slane %v1448_v51, 5  ;;  %v1456_v55 = vrot.slane %v1454_v14, 5  ;;  %v4311_v14 = vld [vmem:[%s5178_s6 + $0x18] sm:$0xe] }
 0x149   : > { %v3511_v17 = vadd.f32 %v3510_v45, %v3422_v43  ;;  %v3336_v21 = vadd.f32 %v3335_v4, %v5631_v40  ;;  %v784_v40 = vrot.slane %v6050_v39, 5  ;;  %v596_v39 = vsel %vm5318_vm4, %v591_v60, %v6052_v57 }
 0x14a   : > { %v3602_v0 = vpop.f32.mrf.mxu0  ;;  %v1447_v57 = vrot.slane %v1445_v62, 4  ;;  %v4857_v62 = vld [vmem:[%s5178_s6 + $0xc0] sm:$0xff] }
 0x14b   : > { %3374 = vmatmul.bf16.gmra.mxu1 %v2130_v53  ;;  %3463 = vmatmul.bf16.gmra.mxu2 %v2194_v52  ;;  %v6077_v42 = vadd.f32 %v3599_v32, %v3511_v17  ;;  %v1217_v53 = vrot.slane %v1215_v30, 5  ;;  %v1458_v32 = vshrl.u32 %v6075_v50, 16  ;;  %v785_v45 = vsel %vm5322_vm5, %v783_v61, %v784_v40  ;;  %v4295_v30 = vld [vmem:[%s5178_s6 + $0x20] sm:$0x1] }
 0x14c   : > { %3552 = vmatmul.bf16.gmra.mxu3 %v4856_v47  ;;  %v1208_v47 = vsel %vm5318_vm4, %v1203_v63, %v6058_v18  ;;  %v2114_v17 = vunpack.c.l.b16 %v596_v39  ;;  %v2179_v15 = vunpack.c.l.b16 %v785_v45  ;;  %v1451_v35 = vor.u32 %v1450_v6, %v1447_v57 }
 0x14d   : > { %3641 = vmatmul.bf16.gmra.mxu0 %v2338_v38  ;;  %v1218_v12 = vsel %vm5318_vm4, %v1213_v37, %v1217_v53  ;;  %v1460_v25 = vrot.slane %v1458_v32, 4  ;;  %v1464_v61 = vshll.u32 %v4295_v30, 16  ;;  %v1894_v53 = vrot.slane %v6075_v50, 5  ;;  %v4265_v50 = vld [vmem:[%s5178_s6 + $0x24] sm:$0xf] }
 0x14e   : > { %v3424_v52 = vpop.f32.mrf.mxu2  ;;  %v2323_v22 = vunpack.c.l.b16 %v1218_v12  ;;  %v2195_v37 = vpack.c.b16 %v2179_v15, %v2178_v33  ;;  %v1897_v33 = vrot.slane %v4295_v30, 5  ;;  %v1472_v15 = vshll.u32 %v4265_v50, 16 }
 0x14f   : > { %v3425_v43 = vadd.f32 %v3424_v52, %v3336_v21  ;;  %v3513_v38 = vpop.f32.mrf.mxu3  ;;  %v2115_v21 = vunpack.c.l.b16 %v606_v34  ;;  %v1461_v18 = vor.u32 %v1460_v25, %v1456_v55  ;;  %v1466_v39 = vrot.slane %v1464_v61, 5 }
 0x150   : > { %v3337_v56 = vpop.f32.mrf.mxu1  ;;  %v4327_v34 = vrot.slane %v4311_v14, 9  ;;  %v1896_v45 = vrot.slane %v1894_v53, 4 }
 0x151   : > { %v3514_v29 = vadd.f32 %v3513_v38, %v3425_v43  ;;  %v3338_v59 = vadd.f32 %v3337_v56, %v5670_v28  ;;  %v2322_v28 = vunpack.c.l.b16 %v1208_v47  ;;  %v2131_v63 = vpack.c.b16 %v2115_v21, %v2114_v17 }
 0x152   : > { %v3604_v4 = vpop.f32.mrf.mxu0  ;;  %v1452_v38 = vrot.slane %v1451_v35, 4  ;;  %v1462_v56 = vrot.slane %v1461_v18, 4  ;;  %v1895_v25 = vsel %vm5322_vm5, %v4327_v34, %v1894_v53  ;;  %v1469_v21 = vshrl.u32 %v4265_v50, 16 }
 0x153   : > { %v6098_v20 = vadd.f32 %v3602_v0, %v3514_v29  ;;  %v2339_v51 = vpack.c.b16 %v2323_v22, %v2322_v28  ;;  %v2564_v61 = vunpack.c.l.b16 %v1895_v25 }
 0x154   : > { %v1467_v6 = vsel %vm5318_vm4, %v1462_v56, %v1466_v39 }
 0x155   : > { %v2501_v18 = vunpack.c.l.b16 %v1467_v6  ;;  %v4312_v6 = vld [vmem:[%s5178_s6 + $0x24] sm:$0xe] }
 0x156   : > { %v3426_v60 = vpop.f32.mrf.mxu2 }
 0x157   : > { %v3427_v40 = vadd.f32 %v3426_v60, %v3338_v59  ;;  %v3515_v49 = vpop.f32.mrf.mxu3  ;;  %v6108_v59 = vld [vmem:[%s5178_s6 + $0x28] sm:$0xf] }
 0x158   : > { %v3340_v52 = vpop.f32.mrf.mxu1  ;;  %v1478_v30 = vshll.u32 %v6108_v59, 16  ;;  %v1482_v28 = vshrl.u32 %v6108_v59, 16 }
 0x159   : > { %v3516_v0 = vadd.f32 %v3515_v49, %v3427_v40  ;;  %v3341_v32 = vadd.f32 %v3340_v52, %v5701_v24  ;;  %v1457_v24 = vsel %vm5318_vm4, %v1452_v38, %v1456_v55  ;;  %v5078_v38 = vld [vmem:[%s5178_s6 + $0x1c] sm:$0xf] }
 0x15a   : > { %v3607_v43 = vpop.f32.mrf.mxu0  ;;  %v2500_v35 = vunpack.c.l.b16 %v1457_v24  ;;  %v6123_v53 = vrot.slane %v1478_v30, 5  ;;  %v1484_v52 = vrot.slane %v1482_v28, 4  ;;  %v1292_v56 = vrot.slane %v5078_v38, 5  ;;  %v5079_v30 = vld [vmem:[%s5178_s6 + $0x20] sm:$0x1] }
 0x15b   : > { %3379 = vmatmul.bf16.gmra.mxu1 %v2131_v63  ;;  %3468 = vmatmul.bf16.gmra.mxu2 %v2195_v37  ;;  %v6104_v29 = vadd.f32 %v3604_v4, %v3516_v0  ;;  %v1898_v4 = vsel %vm5322_vm5, %v1896_v45, %v1897_v33  ;;  %v1471_v63 = vrot.slane %v1469_v21, 4  ;;  %v1474_v37 = vrot.slane %v1472_v15, 5  ;;  %v6136_v21 = vld [vmem:[%s5178_s6 + $0x34] sm:$0xf] }
 0x15c   : > { %3557 = vmatmul.bf16.gmra.mxu3 %v4857_v62  ;;  %v2565_v40 = vunpack.c.l.b16 %v1898_v4  ;;  %v4296_v62 = vld [vmem:[%s5178_s6 + $0x2c] sm:$0x1]  ;;  %v1485_v33 = vor.u32 %v1484_v52, %v6123_v53  ;;  %v1294_v4 = vrot.slane %v1292_v56, 4  ;;  %v1295_v28 = vrot.slane %v5079_v30, 5 }
 0x15d   : > { %3646 = vmatmul.bf16.gmra.mxu0 %v2339_v51  ;;  %v1475_v45 = vor.u32 %v1474_v37, %v1471_v63  ;;  %v1488_v50 = vshll.u32 %v4296_v62, 16  ;;  %v1502_v63 = vshll.u32 %v6136_v21, 16  ;;  %v1506_v37 = vshrl.u32 %v6136_v21, 16 }
 0x15e   : > { %v3429_v47 = vpop.f32.mrf.mxu2  ;;  %v2596_v34 = vpack.c.b16 %v2565_v40, %v2564_v61 }
 0x15f   : > { %v3430_v12 = vadd.f32 %v3429_v47, %v3341_v32  ;;  %v3518_v57 = vpop.f32.mrf.mxu3  ;;  %v2532_v32 = vpack.c.b16 %v2501_v18, %v2500_v35  ;;  %v4328_v35 = vrot.slane %v4312_v6, 9  ;;  %v1904_v18 = vrot.slane %v4296_v62, 5 }
 0x160   : > { %v3342_v17 = vpop.f32.mrf.mxu1 }
 0x161   : > { %v3519_v55 = vadd.f32 %v3518_v57, %v3430_v12  ;;  %v3343_v22 = vadd.f32 %v3342_v17, %v5738_v16  ;;  %v4858_v16 = vld [vmem:[%s5178_s6 + $0x18] sm:$0xff]  ;;  %v1901_v57 = vrot.slane %v6108_v59, 5  ;;  %v4267_v17 = vld [vmem:[%s5178_s6 + $0x30] sm:$0xf] }
 0x162   : > { %v3609_v60 = vpop.f32.mrf.mxu0  ;;  %v1496_v40 = vshll.u32 %v4267_v17, 16 }
 0x163   : > { %v6121_v49 = vadd.f32 %v3607_v43, %v3519_v55  ;;  %v4232_v43 = vld [vmem:[%s5178_s6 + $0x18] sm:$0xe]  ;;  %v1476_v55 = vrot.slane %v1475_v45, 4  ;;  %v1903_v59 = vrot.slane %v1901_v57, 4 }
 0x164   : > { %v4248_v25 = vrot.slane %v4232_v43, 9  ;;  %v1498_v45 = vrot.slane %v1496_v40, 5 }
 0x165   : > { %v1481_v62 = vsel %vm5318_vm4, %v1476_v55, %v6123_v53  ;;  %v1508_v53 = vrot.slane %v1506_v37, 4  ;;  %v4233_v55 = vld [vmem:[%s5178_s6 + $0x24] sm:$0xe] }
 0x166   : > { %v3431_v51 = vpop.f32.mrf.mxu2 }
 0x167   : > { %v3432_v14 = vadd.f32 %v3431_v51, %v3343_v22  ;;  %v3520_v0 = vpop.f32.mrf.mxu3  ;;  %v1490_v22 = vrot.slane %v1488_v50, 5 }
 0x168   : > { %v3345_v39 = vpop.f32.mrf.mxu1 }
 0x169   : > { %v3521_v47 = vadd.f32 %v3520_v0, %v3432_v14  ;;  %v3346_v24 = vadd.f32 %v3345_v39, %v5535_v31  ;;  %v1486_v31 = vrot.slane %v1485_v33, 4  ;;  %v1293_v14 = vsel %vm5322_vm5, %v4248_v25, %v1292_v56 }
 0x16a   : > { %v3612_v12 = vpop.f32.mrf.mxu0  ;;  %v1296_v0 = vsel %vm5322_vm5, %v1294_v4, %v1295_v28  ;;  %v1905_v56 = vsel %vm5322_vm5, %v1903_v59, %v1904_v18  ;;  %v6157_v33 = vrot.slane %v1502_v63, 5  ;;  %v2358_v50 = vunpack.c.l.b16 %v1293_v14 }
 0x16b   : > { %3660 = vmatmul.bf16.vlgmr.msra.gmra.mxu1 %v6071_v41  ;;  %3749 = vmatmul.bf16.vlgmr.msra.gmra.mxu2 %v4858_v16  ;;  %v6138_v15 = vadd.f32 %v3609_v60, %v3521_v47  ;;  %v1493_v41 = vshrl.u32 %v4267_v17, 16  ;;  %v1491_v16 = vsel %vm5318_vm4, %v1486_v31, %v1490_v22  ;;  %v2359_v47 = vunpack.c.l.b16 %v1296_v0 }
 0x16c   : > { %3838 = vmatmul.bf16.vlgmr.msra.gmra.mxu3 %v2532_v32  ;;  %v2503_v25 = vunpack.c.l.b16 %v1491_v16  ;;  %v2567_v17 = vunpack.c.l.b16 %v1905_v56  ;;  %v1509_v22 = vor.u32 %v1508_v53, %v6157_v33  ;;  %v4249_v0 = vrot.slane %v4233_v55, 9  ;;  %v5081_v16 = vld [vmem:[%s5178_s6 + $0x2c] sm:$0x1] }
 0x16d   : > { %3927 = vmatmul.bf16.vlgmr.msra.gmra.mxu0 %v2596_v34  ;;  %v1902_v34 = vsel %vm5322_vm5, %v4328_v35, %v1901_v57  ;;  %v1495_v43 = vrot.slane %v1493_v41, 4  ;;  %v5080_v57 = vld [vmem:[%s5178_s6 + $0x28] sm:$0xf] }
 0x16e   : > { %v3434_v61 = vpop.f32.mrf.mxu2  ;;  %v2566_v4 = vunpack.c.l.b16 %v1902_v34  ;;  %v1299_v30 = vrot.slane %v5080_v57, 5  ;;  %v4859_v41 = vld [vmem:[%s5178_s6 + $0x24] sm:$0xff]  ;;  %v1510_v34 = vrot.slane %v1509_v22, 4 }
 0x16f   : > { %v3435_v52 = vadd.f32 %v3434_v61, %v3346_v24  ;;  %v3523_v60 = vpop.f32.mrf.mxu3  ;;  %v4297_v24 = vld [vmem:[%s5178_s6 + $0x38] sm:$0x1]  ;;  %v1499_v31 = vor.u32 %v1498_v45, %v1495_v43  ;;  %v2389_v61 = vpack.c.b16 %v2359_v47, %v2358_v50  ;;  %v6174_v50 = vld [vmem:[%s5178_s6 + $0x40] sm:$0xf] }
 0x170   : > { %v3347_v51 = vpop.f32.mrf.mxu1  ;;  %v1512_v35 = vshll.u32 %v4297_v24, 16  ;;  %v2597_v37 = vpack.c.b16 %v2567_v17, %v2566_v4  ;;  %v1911_v45 = vrot.slane %v4297_v24, 5  ;;  %v1526_v22 = vshll.u32 %v6174_v50, 16 }
 0x171   : > { %v3524_v32 = vadd.f32 %v3523_v60, %v3435_v52  ;;  %v3348_v38 = vadd.f32 %v3347_v51, %v5568_v7  ;;  %v2502_v7 = vunpack.c.l.b16 %v1481_v62  ;;  %v4313_v52 = vld [vmem:[%s5178_s6 + $0x30] sm:$0xe]  ;;  %v1301_v62 = vrot.slane %v1299_v30, 4 }
 0x172   : > { %v3614_v39 = vpop.f32.mrf.mxu0  ;;  %v1514_v56 = vrot.slane %v1512_v35, 5  ;;  %v1530_v35 = vshrl.u32 %v6174_v50, 16 }
 0x173   : > { %v6160_v6 = vadd.f32 %v3612_v12, %v3524_v32  ;;  %v1908_v12 = vrot.slane %v6136_v21, 5  ;;  %v2533_v63 = vpack.c.b16 %v2503_v25, %v2502_v7  ;;  %v1302_v32 = vrot.slane %v5081_v16, 5  ;;  %v4298_v16 = vld [vmem:[%s5178_s6 + $0x44] sm:$0x1] }
 0x174   : > { %v4329_v21 = vrot.slane %v4313_v52, 9  ;;  %v1300_v7 = vsel %vm5322_vm5, %v4249_v0, %v1299_v30  ;;  %v6194_v0 = vrot.slane %v1526_v22, 5  ;;  %v6206_v22 = vld [vmem:[%s5178_s6 + $0x4c] sm:$0xf] }
 0x175   : > { %v1910_v43 = vrot.slane %v1908_v12, 4  ;;  %v1303_v25 = vsel %vm5322_vm5, %v1301_v62, %v1302_v32  ;;  %v1532_v62 = vrot.slane %v1530_v35, 4 }
 0x176   : > { %v3436_v28 = vpop.f32.mrf.mxu2  ;;  %v1909_v57 = vsel %vm5322_vm5, %v4329_v21, %v1908_v12 }
 0x177   : > { %v3437_v59 = vadd.f32 %v3436_v28, %v3348_v38  ;;  %v3525_v18 = vpop.f32.mrf.mxu3  ;;  %v1500_v38 = vrot.slane %v1499_v31, 4  ;;  %v1912_v28 = vsel %vm5322_vm5, %v1910_v43, %v1911_v45  ;;  %v5082_v43 = vld [vmem:[%s5178_s6 + $0x34] sm:$0xf] }
 0x178   : > { %v3350_v40 = vpop.f32.mrf.mxu1  ;;  %v1306_v45 = vrot.slane %v5082_v43, 5 }
 0x179   : > { %v3526_v60 = vadd.f32 %v3525_v18, %v3437_v59  ;;  %v3351_v51 = vadd.f32 %v3350_v40, %v5601_v48  ;;  %v4269_v48 = vld [vmem:[%s5178_s6 + $0x3c] sm:$0xf]  ;;  %v1505_v4 = vsel %vm5318_vm4, %v1500_v38, %v6157_v33 }
 0x17a   : > { %v3617_v14 = vpop.f32.mrf.mxu0  ;;  %v1517_v30 = vshrl.u32 %v4269_v48, 16  ;;  %v1520_v31 = vshll.u32 %v4269_v48, 16  ;;  %v2504_v40 = vunpack.c.l.b16 %v1505_v4  ;;  %v1536_v4 = vshll.u32 %v4298_v16, 16 }
 0x17b   : > { %3665 = vmatmul.bf16.gmra.mxu1 %v2389_v61  ;;  %3754 = vmatmul.bf16.gmra.mxu2 %v4859_v41  ;;  %v6170_v53 = vadd.f32 %v3614_v39, %v3526_v60  ;;  %v1515_v39 = vsel %vm5318_vm4, %v1510_v34, %v1514_v56  ;;  %v2360_v61 = vunpack.c.l.b16 %v1300_v7  ;;  %v2361_v41 = vunpack.c.l.b16 %v1303_v25  ;;  %v4860_v56 = vld [vmem:[%s5178_s6 + $0x30] sm:$0xff] }
 0x17c   : > { %3843 = vmatmul.bf16.gmra.mxu3 %v2533_v63  ;;  %v2505_v12 = vunpack.c.l.b16 %v1515_v39  ;;  %v2568_v63 = vunpack.c.l.b16 %v1909_v57  ;;  %v1519_v60 = vrot.slane %v1517_v30, 4  ;;  %v1533_v25 = vor.u32 %v1532_v62, %v6194_v0 }
 0x17d   : > { %3932 = vmatmul.bf16.gmra.mxu0 %v2597_v37  ;;  %v2569_v37 = vunpack.c.l.b16 %v1912_v28  ;;  %v2390_v34 = vpack.c.b16 %v2361_v41, %v2360_v61  ;;  %v1915_v57 = vrot.slane %v6174_v50, 5  ;;  %v4314_v28 = vld [vmem:[%s5178_s6 + $0x3c] sm:$0xe]  ;;  %v1308_v30 = vrot.slane %v1306_v45, 4 }
 0x17e   : > { %v3439_v47 = vpop.f32.mrf.mxu2  ;;  %v2534_v21 = vpack.c.b16 %v2505_v12, %v2504_v40  ;;  %v1534_v41 = vrot.slane %v1533_v25, 4  ;;  %v4330_v40 = vrot.slane %v4314_v28, 9  ;;  %v1918_v50 = vrot.slane %v4298_v16, 5 }
 0x17f   : > { %v3440_v17 = vadd.f32 %v3439_v47, %v3351_v51  ;;  %v3528_v24 = vpop.f32.mrf.mxu3  ;;  %v1522_v51 = vrot.slane %v1520_v31, 5  ;;  %v4234_v47 = vld [vmem:[%s5178_s6 + $0x30] sm:$0xe]  ;;  %v4271_v31 = vld [vmem:[%s5178_s6 + $0x48] sm:$0xf]  ;;  %v1917_v12 = vrot.slane %v1915_v57, 4 }
 0x180   : > { %v3352_v55 = vpop.f32.mrf.mxu1  ;;  %v1554_v62 = vshrl.u32 %v6206_v22, 16 }
 0x181   : > { %v3529_v33 = vadd.f32 %v3528_v24, %v3440_v17  ;;  %v3353_v59 = vadd.f32 %v3352_v55, %v5623_v26  ;;  %v1523_v7 = vor.u32 %v1522_v51, %v1519_v60  ;;  %v4250_v55 = vrot.slane %v4234_v47, 9 }
 0x182   : > { %v3619_v18 = vpop.f32.mrf.mxu0  ;;  %v1544_v60 = vshll.u32 %v4271_v31, 16  ;;  %v1550_v51 = vshll.u32 %v6206_v22, 16 }
 0x183   : > { %v6192_v52 = vadd.f32 %v3617_v14, %v3529_v33  ;;  %v2598_v14 = vpack.c.b16 %v2569_v37, %v2568_v63  ;;  %v5083_v33 = vld [vmem:[%s5178_s6 + $0x38] sm:$0x1]  ;;  %v1524_v61 = vrot.slane %v1523_v7, 4  ;;  %v1541_v37 = vshrl.u32 %v4271_v31, 16 }
 0x184   : > { %v1546_v7 = vrot.slane %v1544_v60, 5  ;;  %v6227_v25 = vrot.slane %v1550_v51, 5 }
 0x185   : > { %v1529_v16 = vsel %vm5318_vm4, %v1524_v61, %v6194_v0  ;;  %v1543_v47 = vrot.slane %v1541_v37, 4  ;;  %v1556_v0 = vrot.slane %v1554_v62, 4  ;;  %v4235_v61 = vld [vmem:[%s5178_s6 + $0x3c] sm:$0xe] }
 0x186   : > { %v3441_v32 = vpop.f32.mrf.mxu2  ;;  %v4861_v37 = vld [vmem:[%s5178_s6 + $0x3c] sm:$0xff] }
 0x187   : > { %v3442_v26 = vadd.f32 %v3441_v32, %v3353_v59  ;;  %v3530_v38 = vpop.f32.mrf.mxu3  ;;  %v1309_v59 = vrot.slane %v5083_v33, 5 }
 0x188   : > { %v3355_v48 = vpop.f32.mrf.mxu1 }
 0x189   : > { %v3531_v17 = vadd.f32 %v3530_v38, %v3442_v26  ;;  %v3356_v24 = vadd.f32 %v3355_v48, %v5659_v11  ;;  %v1538_v11 = vrot.slane %v1536_v4, 5  ;;  %v1307_v38 = vsel %vm5322_vm5, %v4250_v55, %v1306_v45 }
 0x18a   : > { %v3622_v39 = vpop.f32.mrf.mxu0  ;;  %v1919_v45 = vsel %vm5322_vm5, %v1917_v12, %v1918_v50  ;;  %v2362_v4 = vunpack.c.l.b16 %v1307_v38 }
 0x18b   : > { %3670 = vmatmul.bf16.gmra.mxu1 %v2390_v34  ;;  %3759 = vmatmul.bf16.gmra.mxu2 %v4860_v56  ;;  %v6208_v35 = vadd.f32 %v3619_v18, %v3531_v17  ;;  %v1310_v34 = vsel %vm5322_vm5, %v1308_v30, %v1309_v59  ;;  %v1539_v56 = vsel %vm5318_vm4, %v1534_v41, %v1538_v11  ;;  %v2571_v31 = vunpack.c.l.b16 %v1919_v45 }
 0x18c   : > { %3848 = vmatmul.bf16.gmra.mxu3 %v2534_v21  ;;  %v2363_v17 = vunpack.c.l.b16 %v1310_v34  ;;  %v2507_v55 = vunpack.c.l.b16 %v1539_v56  ;;  %v1547_v41 = vor.u32 %v1546_v7, %v1543_v47  ;;  %v1557_v11 = vor.u32 %v1556_v0, %v6227_v25  ;;  %v5085_v56 = vld [vmem:[%s5178_s6 + $0x44] sm:$0x1] }
 0x18d   : > { %3937 = vmatmul.bf16.gmra.mxu0 %v2598_v14  ;;  %v1916_v14 = vsel %vm5322_vm5, %v4330_v40, %v1915_v57  ;;  %v5084_v57 = vld [vmem:[%s5178_s6 + $0x40] sm:$0xf]  ;;  %v4251_v34 = vrot.slane %v4235_v61, 9 }
 0x18e   : > { %v3444_v63 = vpop.f32.mrf.mxu2  ;;  %v2570_v30 = vunpack.c.l.b16 %v1916_v14  ;;  %v1313_v33 = vrot.slane %v5084_v57, 5  ;;  %v1558_v14 = vrot.slane %v1557_v11, 4 }
 0x18f   : > { %v3445_v32 = vadd.f32 %v3444_v63, %v3356_v24  ;;  %v3533_v18 = vpop.f32.mrf.mxu3  ;;  %v4299_v24 = vld [vmem:[%s5178_s6 + $0x50] sm:$0x1]  ;;  %v2391_v63 = vpack.c.b16 %v2363_v17, %v2362_v4  ;;  %v6244_v4 = vld [vmem:[%s5178_s6 + $0x58] sm:$0xf] }
 0x190   : > { %v3357_v26 = vpop.f32.mrf.mxu1  ;;  %v1560_v40 = vshll.u32 %v4299_v24, 16  ;;  %v2599_v62 = vpack.c.b16 %v2571_v31, %v2570_v30  ;;  %v1925_v7 = vrot.slane %v4299_v24, 5  ;;  %v1574_v11 = vshll.u32 %v6244_v4, 16 }
 0x191   : > { %v3534_v21 = vadd.f32 %v3533_v18, %v3445_v32  ;;  %v3358_v43 = vadd.f32 %v3357_v26, %v5692_v2  ;;  %v2506_v2 = vunpack.c.l.b16 %v1529_v16  ;;  %v4315_v32 = vld [vmem:[%s5178_s6 + $0x48] sm:$0xe]  ;;  %v1315_v16 = vrot.slane %v1313_v33, 4 }
 0x192   : > { %v3624_v48 = vpop.f32.mrf.mxu0  ;;  %v1562_v45 = vrot.slane %v1560_v40, 5  ;;  %v1578_v40 = vshrl.u32 %v6244_v4, 16 }
 0x193   : > { %v6230_v28 = vadd.f32 %v3622_v39, %v3534_v21  ;;  %v1922_v39 = vrot.slane %v6206_v22, 5  ;;  %v2535_v51 = vpack.c.b16 %v2507_v55, %v2506_v2  ;;  %v1316_v21 = vrot.slane %v5085_v56, 5  ;;  %v4300_v56 = vld [vmem:[%s5178_s6 + $0x5c] sm:$0x1] }
 0x194   : > { %v4331_v22 = vrot.slane %v4315_v32, 9  ;;  %v1314_v2 = vsel %vm5322_vm5, %v4251_v34, %v1313_v33  ;;  %v6264_v34 = vrot.slane %v1574_v11, 5  ;;  %v6276_v11 = vld [vmem:[%s5178_s6 + $0x64] sm:$0xf] }
 0x195   : > { %v1924_v47 = vrot.slane %v1922_v39, 4  ;;  %v1317_v55 = vsel %vm5322_vm5, %v1315_v16, %v1316_v21  ;;  %v1580_v16 = vrot.slane %v1578_v40, 4 }
 0x196   : > { %v3446_v59 = vpop.f32.mrf.mxu2  ;;  %v1923_v57 = vsel %vm5322_vm5, %v4331_v22, %v1922_v39 }
 0x197   : > { %v3447_v12 = vadd.f32 %v3446_v59, %v3358_v43  ;;  %v3535_v50 = vpop.f32.mrf.mxu3  ;;  %v1548_v43 = vrot.slane %v1547_v41, 4  ;;  %v1926_v59 = vsel %vm5322_vm5, %v1924_v47, %v1925_v7  ;;  %v5086_v47 = vld [vmem:[%s5178_s6 + $0x4c] sm:$0xf] }
 0x198   : > { %v3360_v60 = vpop.f32.mrf.mxu1  ;;  %v1320_v7 = vrot.slane %v5086_v47, 5  ;;  %v6687_v47 = vld [vmem:[#allocation2_spill] sm:$0xff] }
 0x199   : > { %v3536_v18 = vadd.f32 %v3535_v50, %v3447_v12  ;;  %v3361_v26 = vadd.f32 %v3360_v60, %v5725_v1  ;;  %v4273_v1 = vld [vmem:[%s5178_s6 + $0x54] sm:$0xf]  ;;  %v1553_v30 = vsel %vm5318_vm4, %v1548_v43, %v6227_v25 }
 0x19a   : > { %v3627_v38 = vpop.f32.mrf.mxu0  ;;  %v1565_v33 = vshrl.u32 %v4273_v1, 16  ;;  %v1568_v41 = vshll.u32 %v4273_v1, 16  ;;  %v2508_v60 = vunpack.c.l.b16 %v1553_v30  ;;  %v1584_v30 = vshll.u32 %v4300_v56, 16 }
 0x19b   : > { %3675 = vmatmul.bf16.gmra.mxu1 %v2391_v63  ;;  %3764 = vmatmul.bf16.gmra.mxu2 %v4861_v37  ;;  %v6240_v0 = vadd.f32 %v3624_v48, %v3536_v18  ;;  %v1563_v48 = vsel %vm5318_vm4, %v1558_v14, %v1562_v45  ;;  %v2364_v63 = vunpack.c.l.b16 %v1314_v2  ;;  %v2365_v37 = vunpack.c.l.b16 %v1317_v55  ;;  %v4862_v45 = vld [vmem:[%s5178_s6 + $0x48] sm:$0xff] }
 0x19c   : > { %3853 = vmatmul.bf16.gmra.mxu3 %v2535_v51  ;;  %v2509_v39 = vunpack.c.l.b16 %v1563_v48  ;;  %v2572_v51 = vunpack.c.l.b16 %v1923_v57  ;;  %v1567_v18 = vrot.slane %v1565_v33, 4  ;;  %v1581_v55 = vor.u32 %v1580_v16, %v6264_v34 }
 0x19d   : > { %3942 = vmatmul.bf16.gmra.mxu0 %v2599_v62  ;;  %v2573_v62 = vunpack.c.l.b16 %v1926_v59  ;;  %v2392_v14 = vpack.c.b16 %v2365_v37, %v2364_v63  ;;  %v1929_v57 = vrot.slane %v6244_v4, 5  ;;  %v4316_v59 = vld [vmem:[%s5178_s6 + $0x54] sm:$0xe]  ;;  %v1322_v33 = vrot.slane %v1320_v7, 4 }
 0x19e   : > { %v3449_v17 = vpop.f32.mrf.mxu2  ;;  %v2536_v22 = vpack.c.b16 %v2509_v39, %v2508_v60  ;;  %v1582_v37 = vrot.slane %v1581_v55, 4  ;;  %v4332_v60 = vrot.slane %v4316_v59, 9  ;;  %v1932_v4 = vrot.slane %v4300_v56, 5  ;;  %v4301_v59 = vld [vmem:[%s5178_s6 + $0x68] sm:$0x1] }
 0x19f   : > { %v3450_v31 = vadd.f32 %v3449_v17, %v3361_v26  ;;  %v3538_v24 = vpop.f32.mrf.mxu3  ;;  %v1570_v26 = vrot.slane %v1568_v41, 5  ;;  %v4236_v17 = vld [vmem:[%s5178_s6 + $0x48] sm:$0xe]  ;;  %v4275_v41 = vld [vmem:[%s5178_s6 + $0x60] sm:$0xf]  ;;  %v1931_v39 = vrot.slane %v1929_v57, 4 }
 0x1a0   : > { %v3362_v61 = vpop.f32.mrf.mxu1  ;;  %v1602_v16 = vshrl.u32 %v6276_v11, 16 }
 0x1a1   : > { %v3539_v25 = vadd.f32 %v3538_v24, %v3450_v31  ;;  %v3363_v12 = vadd.f32 %v3362_v61, %v5752_v5  ;;  %v1571_v2 = vor.u32 %v1570_v26, %v1567_v18  ;;  %v4252_v61 = vrot.slane %v4236_v17, 9 }
 0x1a2   : > { %v3629_v50 = vpop.f32.mrf.mxu0  ;;  %v1592_v18 = vshll.u32 %v4275_v41, 16  ;;  %v1598_v26 = vshll.u32 %v6276_v11, 16  ;;  %v1930_v17 = vsel %vm5322_vm5, %v4332_v60, %v1929_v57  ;;  %v5088_v57 = vld [vmem:[%s5178_s6 + $0x58] sm:$0xf] }
 0x1a3   : > { %v6262_v32 = vadd.f32 %v3627_v38, %v3539_v25  ;;  %v2600_v38 = vpack.c.b16 %v2573_v62, %v2572_v51  ;;  %v5087_v25 = vld [vmem:[%s5178_s6 + $0x50] sm:$0x1]  ;;  %v1572_v63 = vrot.slane %v1571_v2, 4  ;;  %v1589_v62 = vshrl.u32 %v4275_v41, 16 }
 0x1a4   : > { %v1594_v55 = vrot.slane %v1592_v18, 5 }
 0x1a5   : > { %v1577_v56 = vsel %vm5318_vm4, %v1572_v63, %v6264_v34  ;;  %v1591_v2 = vrot.slane %v1589_v62, 4  ;;  %v1604_v34 = vrot.slane %v1602_v16, 4  ;;  %v1327_v63 = vrot.slane %v5088_v57, 5 }
 0x1a6   : > { %v3451_v21 = vpop.f32.mrf.mxu2 }
 0x1a7   : > { %v3452_v5 = vadd.f32 %v3451_v21, %v3363_v12  ;;  %v3540_v43 = vpop.f32.mrf.mxu3  ;;  %v1323_v12 = vrot.slane %v5087_v25, 5  ;;  %v2574_v25 = vunpack.c.l.b16 %v1930_v17  ;;  %v1595_v60 = vor.u32 %v1594_v55, %v1591_v2  ;;  %v5089_v17 = vld [vmem:[%s5178_s6 + $0x5c] sm:$0x1] }
 0x1a8   : > { %v3365_v1 = vpop.f32.mrf.mxu1 }
 0x1a9   : > { %v3541_v31 = vadd.f32 %v3540_v43, %v3452_v5  ;;  %v3366_v24 = vadd.f32 %v3365_v1, %v5540_v36  ;;  %v1586_v36 = vrot.slane %v1584_v30, 5  ;;  %v1321_v43 = vsel %vm5322_vm5, %v4252_v61, %v1320_v7 }
 0x1aa   : > { %v3632_v48 = vpop.f32.mrf.mxu0  ;;  %v1933_v7 = vsel %vm5322_vm5, %v1931_v39, %v1932_v4  ;;  %v6297_v30 = vrot.slane %v1598_v26, 5  ;;  %v1608_v4 = vshll.u32 %v4301_v59, 16  ;;  %v4863_v26 = vld [vmem:[%s5178_s6 + $0x54] sm:$0xff] }
 0x1ab   : > { %3680 = vmatmul.bf16.gmra.mxu1 %v2392_v14  ;;  %3769 = vmatmul.bf16.gmra.mxu2 %v4862_v45  ;;  %v6278_v40 = vadd.f32 %v3629_v50, %v3541_v31  ;;  %v1324_v14 = vsel %vm5322_vm5, %v1322_v33, %v1323_v12  ;;  %v1587_v45 = vsel %vm5318_vm4, %v1582_v37, %v1586_v36  ;;  %v2366_v31 = vunpack.c.l.b16 %v1321_v43  ;;  %v4237_v36 = vld [vmem:[%s5178_s6 + $0x54] sm:$0xe] }
 0x1ac   : > { %3858 = vmatmul.bf16.gmra.mxu3 %v2536_v22  ;;  %v2510_v33 = vunpack.c.l.b16 %v1577_v56  ;;  %v2511_v41 = vunpack.c.l.b16 %v1587_v45  ;;  %v2575_v12 = vunpack.c.l.b16 %v1933_v7  ;;  %v1605_v39 = vor.u32 %v1604_v34, %v6297_v30 }
 0x1ad   : > { %3947 = vmatmul.bf16.gmra.mxu0 %v2600_v38  ;;  %v1330_v7 = vrot.slane %v5089_v17, 5  ;;  %v1610_v55 = vrot.slane %v1608_v4, 5 }
 0x1ae   : > { %v3454_v51 = vpop.f32.mrf.mxu2  ;;  %v1606_v2 = vrot.slane %v1605_v39, 4 }
 0x1af   : > { %v3455_v21 = vadd.f32 %v3454_v51, %v3366_v24  ;;  %v3543_v50 = vpop.f32.mrf.mxu3  ;;  %v2367_v24 = vunpack.c.l.b16 %v1324_v14  ;;  %v6688_v14 = vld [vmem:[#allocation3_spill] sm:$0xff] }
 0x1b0   : > { %v3367_v5 = vpop.f32.mrf.mxu1 }
 0x1b1   : > { %v3544_v22 = vadd.f32 %v3543_v50, %v3455_v21  ;;  %v3368_v1 = vadd.f32 %v3367_v5, %v6687_v47  ;;  %v2393_v18 = vpack.c.b16 %v2367_v24, %v2366_v31  ;;  %v2537_v21 = vpack.c.b16 %v2511_v41, %v2510_v33  ;;  %v4317_v5 = vld [vmem:[%s5178_s6 + $0x60] sm:$0xe]  ;;  %v4277_v33 = vld [vmem:[%s5178_s6 + $0x6c] sm:$0xf]  ;;  %v6314_v41 = vld [vmem:[%s5178_s6 + $0x70] sm:$0xf] }
 0x1b2   : > { %v3634_v38 = vpop.f32.mrf.mxu0  ;;  %v2601_v50 = vpack.c.b16 %v2575_v12, %v2574_v25  ;;  %v1329_v47 = vrot.slane %v1327_v63, 4  ;;  %v1939_v31 = vrot.slane %v4301_v59, 5 }
 0x1b3   : > { %v6300_v61 = vadd.f32 %v3632_v48, %v3544_v22  ;;  %v1936_v48 = vrot.slane %v6276_v11, 5  ;;  %v4253_v22 = vrot.slane %v4237_v36, 9  ;;  %v4333_v11 = vrot.slane %v4317_v5, 9 }
 0x1b4   : > { %v1331_v57 = vsel %vm5322_vm5, %v1329_v47, %v1330_v7 }
 0x1b5   : > { %v1938_v34 = vrot.slane %v1936_v48, 4  ;;  %v1328_v12 = vsel %vm5322_vm5, %v4253_v22, %v1327_v63  ;;  %v1613_v63 = vshrl.u32 %v4277_v33, 16  ;;  %v2369_v5 = vunpack.c.l.b16 %v1331_v57 }
 0x1b6   : > { %v3456_v37 = vpop.f32.mrf.mxu2 }
 0x1b7   : > { %v3457_v51 = vadd.f32 %v3456_v37, %v3368_v1  ;;  %v3545_v62 = vpop.f32.mrf.mxu3  ;;  %v1596_v1 = vrot.slane %v1595_v60, 4  ;;  %v1937_v60 = vsel %vm5322_vm5, %v4333_v11, %v1936_v48  ;;  %v1940_v39 = vsel %vm5322_vm5, %v1938_v34, %v1939_v31 }
 0x1b8   : > { %v3370_v16 = vpop.f32.mrf.mxu1  ;;  %v1615_v47 = vrot.slane %v1613_v63, 4 }
 0x1b9   : > { %v3546_v43 = vadd.f32 %v3545_v62, %v3457_v51  ;;  %v3371_v56 = vadd.f32 %v3370_v16, %v6688_v14  ;;  %v1601_v37 = vsel %vm5318_vm4, %v1596_v1, %v6297_v30  ;;  %v1616_v51 = vshll.u32 %v4277_v33, 16  ;;  %v4864_v33 = vld [vmem:[%s5178_s6 + $0x60] sm:$0xff] }
 0x1ba   : > { %v3637_v45 = vpop.f32.mrf.mxu0  ;;  %v1622_v62 = vshll.u32 %v6314_v41, 16  ;;  %v2576_v14 = vunpack.c.l.b16 %v1937_v60 }
 0x1bb   : > { %3685 = vmatmul.bf16.gmra.mxu1 %v2393_v18  ;;  %3774 = vmatmul.bf16.gmra.mxu2 %v4863_v26  ;;  %v6310_v24 = vadd.f32 %v3634_v38, %v3546_v43  ;;  %v1611_v38 = vsel %vm5318_vm4, %v1606_v2, %v1610_v55  ;;  %v1626_v18 = vshrl.u32 %v6314_v41, 16  ;;  %v6689_v26 = vld [vmem:[#allocation4_spill] sm:$0xff]  ;;  %v2512_v43 = vunpack.c.l.b16 %v1601_v37 }
 0x1bc   : > { %3863 = vmatmul.bf16.gmra.mxu3 %v2537_v21  ;;  %v2513_v48 = vunpack.c.l.b16 %v1611_v38  ;;  %v1618_v17 = vrot.slane %v1616_v51, 5  ;;  %v6334_v7 = vrot.slane %v1622_v62, 5  ;;  %v4302_v2 = vld [vmem:[%s5178_s6 + $0x74] sm:$0x1]  ;;  %v1943_v62 = vrot.slane %v6314_v41, 5 }
 0x1bd   : > { %3952 = vmatmul.bf16.gmra.mxu0 %v2601_v50  ;;  %v2368_v50 = vunpack.c.l.b16 %v1328_v12  ;;  %v1628_v1 = vrot.slane %v1626_v18, 4  ;;  %v5090_v12 = vld [vmem:[%s5178_s6 + $0x64] sm:$0xf]  ;;  %v1632_v60 = vshll.u32 %v4302_v2, 16  ;;  %v4318_v18 = vld [vmem:[%s5178_s6 + $0x6c] sm:$0xe] }
 0x1be   : > { %v3459_v25 = vpop.f32.mrf.mxu2  ;;  %v1334_v57 = vrot.slane %v5090_v12, 5  ;;  %v1946_v41 = vrot.slane %v4302_v2, 5 }
 0x1bf   : > { %v3460_v36 = vadd.f32 %v3459_v25, %v3371_v56  ;;  %v3548_v59 = vpop.f32.mrf.mxu3  ;;  %v2577_v56 = vunpack.c.l.b16 %v1940_v39  ;;  %v2394_v31 = vpack.c.b16 %v2369_v5, %v2368_v50  ;;  %v2538_v25 = vpack.c.b16 %v2513_v48, %v2512_v43  ;;  %v6346_v50 = vld [vmem:[%s5178_s6 + $0x7c] sm:$0xf]  ;;  %v5091_v43 = vld [vmem:[%s5178_s6 + $0x68] sm:$0x1] }
 0x1c0   : > { %v3372_v4 = vpop.f32.mrf.mxu1  ;;  %v1629_v38 = vor.u32 %v1628_v1, %v6334_v7  ;;  %v1337_v48 = vrot.slane %v5091_v43, 5  ;;  %v1945_v1 = vrot.slane %v1943_v62, 4  ;;  %v4303_v43 = vld [vmem:[%s5178_s6 + $0x80] sm:$0x1] }
 0x1c1   : > { %v3549_v30 = vadd.f32 %v3548_v59, %v3460_v36  ;;  %v3373_v16 = vadd.f32 %v3372_v4, %v6689_v26  ;;  %v4238_v36 = vld [vmem:[%s5178_s6 + $0x60] sm:$0xe]  ;;  %v1619_v59 = vor.u32 %v1618_v17, %v1615_v47  ;;  %v6690_v4 = vld [vmem:[#allocation5_spill] sm:$0xff]  ;;  %v1336_v26 = vrot.slane %v1334_v57, 4 }
 0x1c2   : > { %v3639_v21 = vpop.f32.mrf.mxu0  ;;  %v1634_v47 = vrot.slane %v1632_v60, 5  ;;  %v4334_v17 = vrot.slane %v4318_v18, 9 }
 0x1c3   : > { %v6332_v22 = vadd.f32 %v3637_v45, %v3549_v30  ;;  %v2602_v45 = vpack.c.b16 %v2577_v56, %v2576_v14  ;;  %v4254_v30 = vrot.slane %v4238_v36, 9  ;;  %v1620_v14 = vrot.slane %v1619_v59, 4 }
 0x1c4   : > { %v1630_v56 = vrot.slane %v1629_v38, 4  ;;  %v6691_v38 = vld [vmem:[#allocation6_spill] sm:$0xff] }
 0x1c5   : > { %v1625_v2 = vsel %vm5318_vm4, %v1620_v14, %v6334_v7 }
 0x1c6   : > { %v3461_v55 = vpop.f32.mrf.mxu2  ;;  %v1635_v36 = vsel %vm5318_vm4, %v1630_v56, %v1634_v47  ;;  %v2514_v14 = vunpack.c.l.b16 %v1625_v2 }
 0x1c7   : > { %v3462_v11 = vadd.f32 %v3461_v55, %v3373_v16  ;;  %v3550_v34 = vpop.f32.mrf.mxu3  ;;  %v4279_v16 = vld [vmem:[%s5178_s6 + $0x78] sm:$0xf]  ;;  %v2515_v56 = vunpack.c.l.b16 %v1635_v36 }
 0x1c8   : > { %v3375_v37 = vpop.f32.mrf.mxu1  ;;  %v4319_v36 = vld [vmem:[%s5178_s6 + $0x78] sm:$0xe] }
 0x1c9   : > { %v3551_v39 = vadd.f32 %v3550_v34, %v3462_v11  ;;  %v3376_v63 = vadd.f32 %v3375_v37, %v6690_v4  ;;  %v1637_v11 = vshrl.u32 %v4279_v16, 16  ;;  %v1640_v34 = vshll.u32 %v4279_v16, 16 }
 0x1ca   : > { %v3642_v51 = vpop.f32.mrf.mxu0  ;;  %v1944_v4 = vsel %vm5322_vm5, %v4334_v17, %v1943_v62  ;;  %v4239_v17 = vld [vmem:[%s5178_s6 + $0x6c] sm:$0xe] }
 0x1cb   : > { %3690 = vmatmul.bf16.gmra.mxu1 %v2394_v31  ;;  %3779 = vmatmul.bf16.gmra.mxu2 %v4864_v33  ;;  %v6348_v5 = vadd.f32 %v3639_v21, %v3551_v39  ;;  %v1646_v31 = vshll.u32 %v6346_v50, 16  ;;  %v1650_v33 = vshrl.u32 %v6346_v50, 16  ;;  %v1642_v18 = vrot.slane %v1640_v34, 5 }
 0x1cc   : > { %3868 = vmatmul.bf16.gmra.mxu3 %v2538_v25  ;;  %v1335_v25 = vsel %vm5322_vm5, %v4254_v30, %v1334_v57  ;;  %v1947_v57 = vsel %vm5322_vm5, %v1945_v1, %v1946_v41  ;;  %v2578_v47 = vunpack.c.l.b16 %v1944_v4  ;;  %v1656_v34 = vshll.u32 %v4303_v43, 16 }
 0x1cd   : > { %3957 = vmatmul.bf16.gmra.mxu0 %v2602_v45  ;;  %v1338_v45 = vsel %vm5322_vm5, %v1336_v26, %v1337_v48  ;;  %v6367_v30 = vrot.slane %v1646_v31, 5  ;;  %v1652_v7 = vrot.slane %v1650_v33, 4  ;;  %v2370_v26 = vunpack.c.l.b16 %v1335_v25 }
 0x1ce   : > { %v3464_v55 = vpop.f32.mrf.mxu2  ;;  %v2371_v16 = vunpack.c.l.b16 %v1338_v45  ;;  %v2539_v45 = vpack.c.b16 %v2515_v56, %v2514_v14  ;;  %v1953_v14 = vrot.slane %v4303_v43, 5 }
 0x1cf   : > { %v3465_v12 = vadd.f32 %v3464_v55, %v3376_v63  ;;  %v3553_v21 = vpop.f32.mrf.mxu3  ;;  %v1639_v63 = vrot.slane %v1637_v11, 4  ;;  %v2579_v55 = vunpack.c.l.b16 %v1947_v57  ;;  %v1653_v11 = vor.u32 %v1652_v7, %v6367_v30 }
 0x1d0   : > { %v3377_v37 = vpop.f32.mrf.mxu1 }
 0x1d1   : > { %v3554_v59 = vadd.f32 %v3553_v21, %v3465_v12  ;;  %v3378_v60 = vadd.f32 %v3377_v37, %v6691_v38  ;;  %v5092_v12 = vld [vmem:[%s5178_s6 + $0x70] sm:$0xf]  ;;  %v1643_v41 = vor.u32 %v1642_v18, %v1639_v63  ;;  %v2395_v21 = vpack.c.b16 %v2371_v16, %v2370_v26  ;;  %v6692_v38 = vld [vmem:[#allocation7_spill] sm:$0xff]  ;;  %v5093_v18 = vld [vmem:[%s5178_s6 + $0x74] sm:$0x1] }
 0x1d2   : > { %v3644_v39 = vpop.f32.mrf.mxu0  ;;  %v1341_v1 = vrot.slane %v5092_v12, 5  ;;  %v4865_v37 = vld [vmem:[%s5178_s6 + $0x6c] sm:$0xff]  ;;  %v2603_v2 = vpack.c.b16 %v2579_v55, %v2578_v47  ;;  %v4255_v63 = vrot.slane %v4239_v17, 9  ;;  %v1344_v7 = vrot.slane %v5093_v18, 5  ;;  %v4281_v47 = vld [vmem:[%s5178_s6 + $0x84] sm:$0xf] }
 0x1d3   : > { %v6370_v48 = vadd.f32 %v3642_v51, %v3554_v59  ;;  %v1950_v51 = vrot.slane %v6346_v50, 5  ;;  %v1658_v26 = vrot.slane %v1656_v34, 5  ;;  %v4335_v50 = vrot.slane %v4319_v36, 9  ;;  %v6384_v55 = vld [vmem:[%s5178_s6 + $0x88] sm:$0xf]  ;;  %v6693_v36 = vld [vmem:[#allocation8_spill] sm:$0xff] }
 0x1d4   : > { %v1343_v12 = vrot.slane %v1341_v1, 4 }
 0x1d5   : > { %v1952_v16 = vrot.slane %v1950_v51, 4 }
 0x1d6   : > { %v3466_v62 = vpop.f32.mrf.mxu2 }
 0x1d7   : > { %v3467_v31 = vadd.f32 %v3466_v62, %v3378_v60  ;;  %v3555_v33 = vpop.f32.mrf.mxu3  ;;  %v1644_v60 = vrot.slane %v1643_v41, 4  ;;  %v1654_v62 = vrot.slane %v1653_v11, 4  ;;  %v1345_v41 = vsel %vm5322_vm5, %v1343_v12, %v1344_v7 }
 0x1d8   : > { %v3380_v25 = vpop.f32.mrf.mxu1 }
 0x1d9   : > { %v3556_v59 = vadd.f32 %v3555_v33, %v3467_v31  ;;  %v3381_v4 = vadd.f32 %v3380_v25, %v6692_v38  ;;  %v1342_v31 = vsel %vm5322_vm5, %v4255_v63, %v1341_v1  ;;  %v1649_v11 = vsel %vm5318_vm4, %v1644_v60, %v6367_v30 }
 0x1da   : > { %v3647_v57 = vpop.f32.mrf.mxu0  ;;  %v1951_v33 = vsel %vm5322_vm5, %v4335_v50, %v1950_v51  ;;  %v1661_v1 = vshrl.u32 %v4281_v47, 16  ;;  %v1664_v25 = vshll.u32 %v4281_v47, 16  ;;  %v2373_v63 = vunpack.c.l.b16 %v1345_v41  ;;  %v4304_v47 = vld [vmem:[%s5178_s6 + $0x8c] sm:$0x1] }
 0x1db   : > { %3695 = vmatmul.bf16.gmra.mxu1 %v2395_v21  ;;  %3784 = vmatmul.bf16.gmra.mxu2 %v4865_v37  ;;  %v6380_v56 = vadd.f32 %v3644_v39, %v3556_v59  ;;  %v1659_v39 = vsel %vm5318_vm4, %v1654_v62, %v1658_v26  ;;  %v1954_v21 = vsel %vm5322_vm5, %v1952_v16, %v1953_v14  ;;  %v2516_v18 = vunpack.c.l.b16 %v1649_v11 }
 0x1dc   : > { %3873 = vmatmul.bf16.gmra.mxu3 %v2539_v45  ;;  %v1670_v45 = vshll.u32 %v6384_v55, 16  ;;  %v2517_v51 = vunpack.c.l.b16 %v1659_v39  ;;  %v2580_v7 = vunpack.c.l.b16 %v1951_v33  ;;  %v2581_v12 = vunpack.c.l.b16 %v1954_v21  ;;  %v4240_v33 = vld [vmem:[%s5178_s6 + $0x78] sm:$0xe]  ;;  %v5094_v21 = vld [vmem:[%s5178_s6 + $0x7c] sm:$0xf] }
 0x1dd   : > { %3962 = vmatmul.bf16.gmra.mxu0 %v2603_v2  ;;  %v1674_v2 = vshrl.u32 %v6384_v55, 16  ;;  %v1663_v62 = vrot.slane %v1661_v1, 4  ;;  %v1666_v26 = vrot.slane %v1664_v25, 5 }
 0x1de   : > { %v3469_v17 = vpop.f32.mrf.mxu2  ;;  %v1672_v50 = vrot.slane %v1670_v45, 5  ;;  %v2540_v41 = vpack.c.b16 %v2517_v51, %v2516_v18  ;;  %v2604_v39 = vpack.c.b16 %v2581_v12, %v2580_v7  ;;  %v5095_v7 = vld [vmem:[%s5178_s6 + $0x80] sm:$0x1] }
 0x1df   : > { %v3470_v34 = vadd.f32 %v3469_v17, %v3381_v4  ;;  %v3558_v43 = vpop.f32.mrf.mxu3  ;;  %v2372_v4 = vunpack.c.l.b16 %v1342_v31  ;;  %v1676_v16 = vrot.slane %v1674_v2, 4  ;;  %v1680_v2 = vshll.u32 %v4304_v47, 16 }
 0x1e0   : > { %v3382_v37 = vpop.f32.mrf.mxu1  ;;  %v1351_v12 = vrot.slane %v5095_v7, 5 }
 0x1e1   : > { %v3559_v30 = vadd.f32 %v3558_v43, %v3470_v34  ;;  %v3383_v59 = vadd.f32 %v3382_v37, %v6693_v36  ;;  %v2396_v31 = vpack.c.b16 %v2373_v63, %v2372_v4  ;;  %v4866_v43 = vld [vmem:[%s5178_s6 + $0x78] sm:$0xff]  ;;  %v1667_v37 = vor.u32 %v1666_v26, %v1663_v62  ;;  %v4320_v36 = vld [vmem:[%s5178_s6 + $0x84] sm:$0xe]  ;;  %v4283_v4 = vld [vmem:[%s5178_s6 + $0x90] sm:$0xf] }
 0x1e2   : > { %v3649_v38 = vpop.f32.mrf.mxu0  ;;  %v1677_v1 = vor.u32 %v1676_v16, %v1672_v50  ;;  %v6414_v63 = vld [vmem:[%s5178_s6 + $0x94] sm:$0xf]  ;;  %v1682_v16 = vrot.slane %v1680_v2, 5 }
 0x1e3   : > { %v6402_v60 = vadd.f32 %v3647_v57, %v3559_v30  ;;  %v1348_v57 = vrot.slane %v5094_v21, 5  ;;  %v1957_v30 = vrot.slane %v6384_v55, 5  ;;  %v1668_v62 = vrot.slane %v1667_v37, 4 }
 0x1e4   : > { %v1678_v26 = vrot.slane %v1677_v1, 4  ;;  %v1960_v55 = vrot.slane %v4304_v47, 5  ;;  %v1698_v21 = vshrl.u32 %v6414_v63, 16 }
 0x1e5   : > { %6694 = vst [vmem:[#allocation2_spill] sm:$0xff] %v6402_v60  ;;  %v1350_v51 = vrot.slane %v1348_v57, 4  ;;  %v1673_v47 = vsel %vm5318_vm4, %v1668_v62, %v1672_v50  ;;  %v4867_v60 = vld [vmem:[%s5178_s6 + $0x84] sm:$0xff] }
 0x1e6   : > { %v3471_v14 = vpop.f32.mrf.mxu2  ;;  %v2518_v62 = vunpack.c.l.b16 %v1673_v47 }
 0x1e7   : > { %v3472_v17 = vadd.f32 %v3471_v14, %v3383_v59  ;;  %v3560_v34 = vpop.f32.mrf.mxu3  ;;  %v4256_v59 = vrot.slane %v4240_v33, 9  ;;  %v4336_v14 = vrot.slane %v4320_v36, 9  ;;  %v1694_v33 = vshll.u32 %v6414_v63, 16 }
 0x1e8   : > { %v3661_v11 = vpop.f32.mrf.mxu1  ;;  %v1352_v1 = vsel %vm5322_vm5, %v1350_v51, %v1351_v12  ;;  %v1683_v36 = vsel %vm5318_vm4, %v1678_v26, %v1682_v16  ;;  %v1700_v51 = vrot.slane %v1698_v21, 4  ;;  %v4305_v12 = vld [vmem:[%s5178_s6 + $0x98] sm:$0x1] }
 0x1e9   : > { %v3561_v25 = vadd.f32 %v3560_v34, %v3472_v17  ;;  %v1959_v17 = vrot.slane %v1957_v30, 4  ;;  %v1349_v37 = vsel %vm5322_vm5, %v4256_v59, %v1348_v57  ;;  %v6434_v59 = vrot.slane %v1694_v33, 5 }
 0x1ea   : > { %v6408_v45 = vpop.f32.mrf.mxu0  ;;  %v2374_v7 = vunpack.c.l.b16 %v1349_v37  ;;  %v2375_v50 = vunpack.c.l.b16 %v1352_v1  ;;  %v1704_v21 = vshll.u32 %v4305_v12, 16 }
 0x1eb   : > { %3700 = vmatmul.bf16.gmra.mxu1 %v2396_v31  ;;  %3789 = vmatmul.bf16.gmra.mxu2 %v4866_v43  ;;  %v6416_v18 = vadd.f32 %v3649_v38, %v3561_v25  ;;  %v1685_v31 = vshrl.u32 %v4283_v4, 16  ;;  %v1688_v43 = vshll.u32 %v4283_v4, 16  ;;  %v3662_v38 = vadd.f32 %v3661_v11, %v5828_v8 }
 0x1ec   : > { %3878 = vmatmul.bf16.gmra.mxu3 %v2540_v41  ;;  %v1958_v8 = vsel %vm5322_vm5, %v4336_v14, %v1957_v30  ;;  %v1961_v11 = vsel %vm5322_vm5, %v1959_v17, %v1960_v55  ;;  %v5096_v14 = vld [vmem:[%s5178_s6 + $0x88] sm:$0xf]  ;;  %v1701_v33 = vor.u32 %v1700_v51, %v6434_v59  ;;  %v2397_v47 = vpack.c.b16 %v2375_v50, %v2374_v7  ;;  %v5097_v51 = vld [vmem:[%s5178_s6 + $0x8c] sm:$0x1] }
 0x1ed   : > { %6695 = vst [vmem:[#allocation3_spill] sm:$0xff] %v6416_v18  ;;  %3967 = vmatmul.bf16.gmra.mxu0 %v2604_v39  ;;  %v1687_v4 = vrot.slane %v1685_v31, 4  ;;  %v1690_v57 = vrot.slane %v1688_v43, 5  ;;  %v2582_v26 = vunpack.c.l.b16 %v1958_v8  ;;  %v2583_v16 = vunpack.c.l.b16 %v1961_v11  ;;  %v6696_v18 = vld [vmem:[#allocation9_spill] sm:$0xff]  ;;  %v4241_v31 = vld [vmem:[%s5178_s6 + $0x84] sm:$0xe] }
 0x1ee   : > { %v3750_v34 = vpop.f32.mrf.mxu2  ;;  %v1355_v17 = vrot.slane %v5096_v14, 5  ;;  %v1702_v50 = vrot.slane %v1701_v33, 4 }
 0x1ef   : > { %v3839_v41 = vpop.f32.mrf.mxu3  ;;  %v3751_v25 = vadd.f32 %v3750_v34, %v3662_v38  ;;  %v2519_v34 = vunpack.c.l.b16 %v1683_v36  ;;  %v1691_v43 = vor.u32 %v1690_v57, %v1687_v4  ;;  %v1964_v36 = vrot.slane %v6414_v63, 5 }
 0x1f0   : > { %v3663_v39 = vpop.f32.mrf.mxu1  ;;  %v4257_v4 = vrot.slane %v4241_v31, 9  ;;  %v1357_v57 = vrot.slane %v1355_v17, 4  ;;  %v6451_v31 = vld [vmem:[%s5178_s6 + $0xa0] sm:$0xf] }
 0x1f1   : > { %v3840_v38 = vadd.f32 %v3839_v41, %v3751_v25  ;;  %v3664_v30 = vadd.f32 %v3663_v39, %v6696_v18  ;;  %v2541_v25 = vpack.c.b16 %v2519_v34, %v2518_v62  ;;  %v2605_v18 = vpack.c.b16 %v2583_v16, %v2582_v26  ;;  %v4321_v39 = vld [vmem:[%s5178_s6 + $0x90] sm:$0xe] }
 0x1f2   : > { %v3930_v2 = vpop.f32.mrf.mxu0  ;;  %v1692_v7 = vrot.slane %v1691_v43, 4  ;;  %v4337_v62 = vrot.slane %v4321_v39, 9  ;;  %v1966_v34 = vrot.slane %v1964_v36, 4  ;;  %v1967_v26 = vrot.slane %v4305_v12, 5 }
 0x1f3   : > { %v3929_v8 = vadd.f32 %v6408_v45, %v3840_v38  ;;  %v4285_v38 = vld [vmem:[%s5178_s6 + $0x9c] sm:$0xf] }
 0x1f4   : > { %v1697_v12 = vsel %vm5318_vm4, %v1692_v7, %v6434_v59  ;;  %v1712_v39 = vshll.u32 %v4285_v38, 16  ;;  %v1722_v59 = vshrl.u32 %v6451_v31, 16 }
 0x1f5   : > { %v4008_v45 = vmax.f32 %v3929_v8, 0.0  ;;  %v1718_v8 = vshll.u32 %v6451_v31, 16 }
 0x1f6   : > { %v3752_v55 = vpop.f32.mrf.mxu2 }
 0x1f7   : > { %v3753_v37 = vadd.f32 %v3752_v55, %v3664_v30  ;;  %v3841_v1 = vpop.f32.mrf.mxu3  ;;  %v1358_v30 = vrot.slane %v5097_v51, 5  ;;  %v1706_v55 = vrot.slane %v1704_v21, 5 }
 0x1f8   : > { %v3666_v41 = vpop.f32.mrf.mxu1 }
 0x1f9   : > { %v3842_v11 = vadd.f32 %v3841_v1, %v3753_v37  ;;  %v1707_v33 = vsel %vm5318_vm4, %v1702_v50, %v1706_v55  ;;  %v3667_v37 = vadd.f32 %v3666_v41, %v5871_v58  ;;  %v2520_v41 = vunpack.c.l.b16 %v1697_v12  ;;  %v4242_v12 = vld [vmem:[%s5178_s6 + $0x90] sm:$0xe] }
 0x1fa   : > { %v6445_v14 = vpop.f32.mrf.mxu0  ;;  %v2521_v51 = vunpack.c.l.b16 %v1707_v33  ;;  %v1714_v50 = vrot.slane %v1712_v39, 5  ;;  %v6475_v55 = vrot.slane %v1718_v8, 5  ;;  %v5098_v33 = vld [vmem:[%s5178_s6 + $0x94] sm:$0xf]  ;;  %v4322_v8 = vld [vmem:[%s5178_s6 + $0x9c] sm:$0xe] }
 0x1fb   : > { %v3931_v63 = vadd.f32 %v3930_v2, %v3842_v11  ;;  %3705 = vmatmul.bf16.gmra.mxu1 %v2397_v47  ;;  %3794 = vmatmul.bf16.gmra.mxu2 %v4867_v60  ;;  %v1356_v60 = vsel %vm5322_vm5, %v4257_v4, %v1355_v17  ;;  %v1359_v2 = vsel %vm5322_vm5, %v1357_v57, %v1358_v30 }
 0x1fc   : > { %3883 = vmatmul.bf16.gmra.mxu3 %v2541_v25  ;;  %v1965_v47 = vsel %vm5322_vm5, %v4337_v62, %v1964_v36  ;;  %v1968_v17 = vsel %vm5322_vm5, %v1966_v34, %v1967_v26  ;;  %v2376_v57 = vunpack.c.l.b16 %v1356_v60  ;;  %v2377_v58 = vunpack.c.l.b16 %v1359_v2  ;;  %v4306_v26 = vld [vmem:[%s5178_s6 + $0xa4] sm:$0x1]  ;;  %v4868_v60 = vld [vmem:[%s5178_s6 + $0x90] sm:$0xff] }
 0x1fd   : > { %3972 = vmatmul.bf16.gmra.mxu0 %v2605_v18  ;;  %v4009_v16 = vmax.f32 %v3931_v63, 0.0  ;;  %v1709_v18 = vshrl.u32 %v4285_v38, 16  ;;  %v2584_v36 = vunpack.c.l.b16 %v1965_v47  ;;  %v2585_v30 = vunpack.c.l.b16 %v1968_v17 }
 0x1fe   : > { %v3755_v43 = vpop.f32.mrf.mxu2  ;;  %v1724_v63 = vrot.slane %v1722_v59, 4  ;;  %v2542_v2 = vpack.c.b16 %v2521_v51, %v2520_v41  ;;  %v1971_v59 = vrot.slane %v6451_v31, 5  ;;  %v5099_v41 = vld [vmem:[%s5178_s6 + $0x98] sm:$0x1] }
 0x1ff   : > { %v4949_v21 = vpack.c.bf16 %v4009_v16, %v4008_v45  ;;  %v3844_v1 = vpop.f32.mrf.mxu3  ;;  %v3756_v11 = vadd.f32 %v3755_v43, %v3667_v37  ;;  %v1711_v7 = vrot.slane %v1709_v18, 4  ;;  %v2398_v43 = vpack.c.b16 %v2377_v58, %v2376_v57 }
 0x200   : > { %v3668_v25 = vpop.f32.mrf.mxu1  ;;  %v2606_v47 = vpack.c.b16 %v2585_v30, %v2584_v36  ;;  %v1365_v51 = vrot.slane %v5099_v41, 5  ;;  %v4287_v36 = vld [vmem:[%s5178_s6 + $0xa8] sm:$0xf]  ;;  %v6491_v30 = vld [vmem:[%s5178_s6 + $0xac] sm:$0xf]  ;;  %v1973_v31 = vrot.slane %v1971_v59, 4 }
 0x201   : > { %4950 = vst [vmem:[%s6456_s24] sm:$0xff] %v4949_v21   ;;  %v3845_v62 = vadd.f32 %v3844_v1, %v3756_v11  ;;  %v3669_v34 = vadd.f32 %v3668_v25, %v5873_v9  ;;  %v1362_v21 = vrot.slane %v5098_v33, 5  ;;  %v1715_v17 = vor.u32 %v1714_v50, %v1711_v7  ;;  %v4307_v41 = vld [vmem:[%s5178_s6 + $0xb0] sm:$0x1] }
 0x202   : > { %v3935_v4 = vpop.f32.mrf.mxu0  ;;  %v1725_v1 = vor.u32 %v1724_v63, %v6475_v55  ;;  %v1728_v9 = vshll.u32 %v4306_v26, 16  ;;  %v4258_v11 = vrot.slane %v4242_v12, 9  ;;  %v4338_v63 = vrot.slane %v4322_v8, 9 }
 0x203   : > { %v3934_v25 = vadd.f32 %v6445_v14, %v3845_v62  ;;  %v1364_v58 = vrot.slane %v1362_v21, 4  ;;  %v1716_v7 = vrot.slane %v1715_v17, 4 }
 0x204   : > { %v1726_v14 = vrot.slane %v1725_v1, 4  ;;  %v1730_v50 = vrot.slane %v1728_v9, 5  ;;  %v1363_v17 = vsel %vm5322_vm5, %v4258_v11, %v1362_v21 }
 0x205   : > { %v4010_v62 = vmax.f32 %v3934_v25, 0.0  ;;  %v1366_v1 = vsel %vm5322_vm5, %v1364_v58, %v1365_v51 }
 0x206   : > { %v3757_v45 = vpop.f32.mrf.mxu2  ;;  %v2379_v58 = vunpack.c.l.b16 %v1366_v1 }
 0x207   : > { %v3758_v16 = vadd.f32 %v3757_v45, %v3669_v34  ;;  %v3846_v38 = vpop.f32.mrf.mxu3  ;;  %v1974_v45 = vrot.slane %v4306_v26, 5  ;;  %v1721_v26 = vsel %vm5318_vm4, %v1716_v7, %v6475_v55  ;;  %v2378_v55 = vunpack.c.l.b16 %v1363_v17 }
 0x208   : > { %v3671_v37 = vpop.f32.mrf.mxu1  ;;  %v2522_v51 = vunpack.c.l.b16 %v1721_v26 }
 0x209   : > { %v3847_v18 = vadd.f32 %v3846_v38, %v3758_v16  ;;  %v1733_v16 = vshrl.u32 %v4287_v36, 16  ;;  %v1736_v38 = vshll.u32 %v4287_v36, 16  ;;  %v1975_v21 = vsel %vm5322_vm5, %v1973_v31, %v1974_v45  ;;  %v4243_v31 = vld [vmem:[%s5178_s6 + $0x9c] sm:$0xe] }
 0x20a   : > { %v6484_v39 = vpop.f32.mrf.mxu0 }
 0x20b   : > { %v3936_v57 = vadd.f32 %v3935_v4, %v3847_v18  ;;  %3710 = vmatmul.bf16.gmra.mxu1 %v2398_v43  ;;  %3799 = vmatmul.bf16.gmra.mxu2 %v4868_v60  ;;  %v1742_v43 = vshll.u32 %v6491_v30, 16  ;;  %v1746_v60 = vshrl.u32 %v6491_v30, 16  ;;  %v1731_v18 = vsel %vm5318_vm4, %v1726_v14, %v1730_v50 }
 0x20c   : > { %3888 = vmatmul.bf16.gmra.mxu3 %v2542_v2  ;;  %v3672_v2 = vadd.f32 %v3671_v37, %v5932_v10  ;;  %v1972_v10 = vsel %vm5322_vm5, %v4338_v63, %v1971_v59  ;;  %v1735_v37 = vrot.slane %v1733_v16, 4  ;;  %v1738_v8 = vrot.slane %v1736_v38, 5  ;;  %v5100_v63 = vld [vmem:[%s5178_s6 + $0xa0] sm:$0xf] }
 0x20d   : > { %3977 = vmatmul.bf16.gmra.mxu0 %v2606_v47  ;;  %v4011_v34 = vmax.f32 %v3936_v57, 0.0  ;;  %v6510_v11 = vrot.slane %v1742_v43, 5  ;;  %v1748_v57 = vrot.slane %v1746_v60, 4  ;;  %v2523_v36 = vunpack.c.l.b16 %v1731_v18 }
 0x20e   : > { %v3760_v4 = vpop.f32.mrf.mxu2  ;;  %v2586_v7 = vunpack.c.l.b16 %v1972_v10  ;;  %v2587_v14 = vunpack.c.l.b16 %v1975_v21  ;;  %v1739_v45 = vor.u32 %v1738_v8, %v1735_v37  ;;  %v1752_v16 = vshll.u32 %v4307_v41, 16  ;;  %v5101_v21 = vld [vmem:[%s5178_s6 + $0xa4] sm:$0x1] }
 0x20f   : > { %v4954_v12 = vpack.c.bf16 %v4011_v34, %v4010_v62  ;;  %v3849_v33 = vpop.f32.mrf.mxu3  ;;  %v3761_v9 = vadd.f32 %v3760_v4, %v3672_v2  ;;  %v1369_v62 = vrot.slane %v5100_v63, 5  ;;  %v1749_v4 = vor.u32 %v1748_v57, %v6510_v11 }
 0x210   : > { %v3673_v47 = vpop.f32.mrf.mxu1  ;;  %v2399_v60 = vpack.c.b16 %v2379_v58, %v2378_v55  ;;  %v1978_v2 = vrot.slane %v6491_v30, 5  ;;  %v2607_v1 = vpack.c.b16 %v2587_v14, %v2586_v7  ;;  %v4259_v18 = vrot.slane %v4243_v31, 9  ;;  %v4289_v14 = vld [vmem:[%s5178_s6 + $0xb4] sm:$0xf] }
 0x211   : > { %5026 = vst [vmem:[%s6456_s24 + $0x8] sm:$0xff] %v4954_v12   ;;  %v3850_v50 = vadd.f32 %v3849_v33, %v3761_v9  ;;  %v3674_v59 = vadd.f32 %v3673_v47, %v5934_v44  ;;  %v4869_v12 = vld [vmem:[%s5178_s6 + $0x9c] sm:$0xff]  ;;  %v2543_v33 = vpack.c.b16 %v2523_v36, %v2522_v51  ;;  %v4323_v44 = vld [vmem:[%s5178_s6 + $0xa8] sm:$0xe]  ;;  %v1371_v10 = vrot.slane %v1369_v62, 4 }
 0x212   : > { %v3940_v25 = vpop.f32.mrf.mxu0  ;;  %v1372_v37 = vrot.slane %v5101_v21, 5  ;;  %v1740_v8 = vrot.slane %v1739_v45, 4  ;;  %v1750_v57 = vrot.slane %v1749_v4, 4  ;;  %v1754_v55 = vrot.slane %v1752_v16, 5 }
 0x213   : > { %v3939_v47 = vadd.f32 %v6484_v39, %v3850_v50  ;;  %v4339_v30 = vrot.slane %v4323_v44, 9  ;;  %v1980_v51 = vrot.slane %v1978_v2, 4  ;;  %v1981_v36 = vrot.slane %v4307_v41, 5  ;;  %v6526_v50 = vld [vmem:[%s5178_s6 + $0xb8] sm:$0xf] }
 0x214   : > { %v1370_v63 = vsel %vm5322_vm5, %v4259_v18, %v1369_v62  ;;  %v1755_v41 = vsel %vm5318_vm4, %v1750_v57, %v1754_v55  ;;  %v4308_v55 = vld [vmem:[%s5178_s6 + $0xbc] sm:$0x1] }
 0x215   : > { %v4012_v39 = vmax.f32 %v3939_v47, 0.0  ;;  %v1979_v16 = vsel %vm5322_vm5, %v4339_v30, %v1978_v2  ;;  %v1982_v62 = vsel %vm5322_vm5, %v1980_v51, %v1981_v36  ;;  %v2380_v44 = vunpack.c.l.b16 %v1370_v63 }
 0x216   : > { %v3762_v34 = vpop.f32.mrf.mxu2  ;;  %v2525_v47 = vunpack.c.l.b16 %v1755_v41  ;;  %v2588_v2 = vunpack.c.l.b16 %v1979_v16 }
 0x217   : > { %v3763_v38 = vadd.f32 %v3762_v34, %v3674_v59  ;;  %v3851_v43 = vpop.f32.mrf.mxu3  ;;  %v1745_v34 = vsel %vm5318_vm4, %v1740_v8, %v6510_v11  ;;  %v1770_v11 = vshrl.u32 %v6526_v50, 16 }
 0x218   : > { %v3676_v17 = vpop.f32.mrf.mxu1 }
 0x219   : > { %v3852_v26 = vadd.f32 %v3851_v43, %v3763_v38  ;;  %v3677_v45 = vadd.f32 %v3676_v17, %v5975_v3  ;;  %v1757_v43 = vshrl.u32 %v4289_v14, 16  ;;  %v2524_v17 = vunpack.c.l.b16 %v1745_v34 }
 0x21a   : > { %v6521_v9 = vpop.f32.mrf.mxu0 }
 0x21b   : > { %v3941_v58 = vadd.f32 %v3940_v25, %v3852_v26  ;;  %3715 = vmatmul.bf16.gmra.mxu1 %v2399_v60  ;;  %3804 = vmatmul.bf16.gmra.mxu2 %v4869_v12  ;;  %v1373_v25 = vsel %vm5322_vm5, %v1371_v10, %v1372_v37  ;;  %v1760_v60 = vshll.u32 %v4289_v14, 16  ;;  %v1766_v12 = vshll.u32 %v6526_v50, 16  ;;  %v4244_v14 = vld [vmem:[%s5178_s6 + $0xa8] sm:$0xe] }
 0x21c   : > { %3893 = vmatmul.bf16.gmra.mxu3 %v2543_v33  ;;  %v2381_v3 = vunpack.c.l.b16 %v1373_v25  ;;  %v2589_v26 = vunpack.c.l.b16 %v1982_v62  ;;  %v1759_v18 = vrot.slane %v1757_v43, 4  ;;  %v1772_v37 = vrot.slane %v1770_v11, 4  ;;  %v4324_v62 = vld [vmem:[%s5178_s6 + $0xb4] sm:$0xe]  ;;  %v5103_v11 = vld [vmem:[%s5178_s6 + $0xb0] sm:$0x1] }
 0x21d   : > { %3982 = vmatmul.bf16.gmra.mxu0 %v2607_v1  ;;  %v4013_v7 = vmax.f32 %v3941_v58, 0.0  ;;  %v1762_v10 = vrot.slane %v1760_v60, 5  ;;  %v6545_v21 = vrot.slane %v1766_v12, 5  ;;  %v4260_v43 = vrot.slane %v4244_v14, 9 }
 0x21e   : > { %v3765_v59 = vpop.f32.mrf.mxu2  ;;  %v2400_v36 = vpack.c.b16 %v2381_v3, %v2380_v44  ;;  %v2608_v34 = vpack.c.b16 %v2589_v26, %v2588_v2  ;;  %v4291_v44 = vld [vmem:[%s5178_s6 + $0xc0] sm:$0xf]  ;;  %v6561_v3 = vld [vmem:[%s5178_s6 + $0xc4] sm:$0xf]  ;;  %v4340_v2 = vrot.slane %v4324_v62, 9 }
 0x21f   : > { %v4959_v31 = vpack.c.bf16 %v4013_v7, %v4012_v39  ;;  %v3854_v4 = vpop.f32.mrf.mxu3  ;;  %v3766_v33 = vadd.f32 %v3765_v59, %v3677_v45  ;;  %v4870_v39 = vld [vmem:[%s5178_s6 + $0xa8] sm:$0xff]  ;;  %v2544_v7 = vpack.c.b16 %v2525_v47, %v2524_v17  ;;  %v1763_v41 = vor.u32 %v1762_v10, %v1759_v18 }
 0x220   : > { %v3678_v38 = vpop.f32.mrf.mxu1  ;;  %v5102_v59 = vld [vmem:[%s5178_s6 + $0xac] sm:$0xf]  ;;  %v1988_v10 = vrot.slane %v4308_v55, 5  ;;  %v4309_v62 = vld [vmem:[%s5178_s6 + $0xc8] sm:$0x1] }
 0x221   : > { %5027 = vst [vmem:[%s6456_s24 + $0x10] sm:$0xff] %v4959_v31   ;;  %v3855_v8 = vadd.f32 %v3854_v4, %v3766_v33  ;;  %v3679_v57 = vadd.f32 %v3678_v38, %v5977_v46  ;;  %v1376_v63 = vrot.slane %v5102_v59, 5  ;;  %v1773_v31 = vor.u32 %v1772_v37, %v6545_v21 }
 0x222   : > { %v3945_v1 = vpop.f32.mrf.mxu0  ;;  %v1776_v46 = vshll.u32 %v4308_v55, 16  ;;  %v1985_v38 = vrot.slane %v6526_v50, 5  ;;  %v1379_v33 = vrot.slane %v5103_v11, 5  ;;  %v1764_v17 = vrot.slane %v1763_v41, 4 }
 0x223   : > { %v3944_v45 = vadd.f32 %v6521_v9, %v3855_v8  ;;  %v1378_v12 = vrot.slane %v1376_v63, 4  ;;  %v1774_v9 = vrot.slane %v1773_v31, 4  ;;  %v1781_v37 = vshrl.u32 %v4291_v44, 16 }
 0x224   : > { %v1778_v47 = vrot.slane %v1776_v46, 5  ;;  %v1987_v50 = vrot.slane %v1985_v38, 4  ;;  %v1784_v8 = vshll.u32 %v4291_v44, 16  ;;  %v1769_v55 = vsel %vm5318_vm4, %v1764_v17, %v6545_v21  ;;  %v5104_v44 = vld [vmem:[%s5178_s6 + $0xb8] sm:$0xf] }
 0x225   : > { %v4014_v26 = vmax.f32 %v3944_v45, 0.0  ;;  %v1380_v14 = vsel %vm5322_vm5, %v1378_v12, %v1379_v33  ;;  %v1383_v17 = vrot.slane %v5104_v44, 5 }
 0x226   : > { %v3767_v58 = vpop.f32.mrf.mxu2  ;;  %v1779_v41 = vsel %vm5318_vm4, %v1774_v9, %v1778_v47  ;;  %v1786_v31 = vrot.slane %v1784_v8, 5  ;;  %v4245_v47 = vld [vmem:[%s5178_s6 + $0xb4] sm:$0xe]  ;;  %v1992_v8 = vrot.slane %v6561_v3, 5 }
 0x227   : > { %v3768_v30 = vadd.f32 %v3767_v58, %v3679_v57  ;;  %v3856_v51 = vpop.f32.mrf.mxu3  ;;  %v1790_v57 = vshll.u32 %v6561_v3, 16  ;;  %v1794_v58 = vshrl.u32 %v6561_v3, 16 }
 0x228   : > { %v3681_v25 = vpop.f32.mrf.mxu1 }
 0x229   : > { %v3857_v4 = vadd.f32 %v3856_v51, %v3768_v30  ;;  %v3682_v51 = vadd.f32 %v3681_v25, %v6025_v19  ;;  %v1986_v19 = vsel %vm5322_vm5, %v4340_v2, %v1985_v38  ;;  %v1783_v25 = vrot.slane %v1781_v37, 4  ;;  %v4871_v37 = vld [vmem:[%s5178_s6 + $0xb4] sm:$0xff] }
 0x22a   : > { %v6554_v16 = vpop.f32.mrf.mxu0  ;;  %v6580_v46 = vrot.slane %v1790_v57, 5  ;;  %v1796_v45 = vrot.slane %v1794_v58, 4  ;;  %v2590_v12 = vunpack.c.l.b16 %v1986_v19 }
 0x22b   : > { %v3946_v60 = vadd.f32 %v3945_v1, %v3857_v4  ;;  %3720 = vmatmul.bf16.gmra.mxu1 %v2400_v36  ;;  %3809 = vmatmul.bf16.gmra.mxu2 %v4870_v39  ;;  %v2383_v4 = vunpack.c.l.b16 %v1380_v14  ;;  %v1787_v2 = vor.u32 %v1786_v31, %v1783_v25  ;;  %v1385_v14 = vrot.slane %v1383_v17, 4 }
 0x22c   : > { %3898 = vmatmul.bf16.gmra.mxu3 %v2544_v7  ;;  %v1377_v7 = vsel %vm5322_vm5, %v4260_v43, %v1376_v63  ;;  %v1989_v63 = vsel %vm5322_vm5, %v1987_v50, %v1988_v10  ;;  %v2526_v43 = vunpack.c.l.b16 %v1769_v55  ;;  %v5105_v55 = vld [vmem:[%s5178_s6 + $0xbc] sm:$0x1]  ;;  %v1994_v31 = vrot.slane %v1992_v8, 4 }
 0x22d   : > { %3987 = vmatmul.bf16.gmra.mxu0 %v2608_v34  ;;  %v4015_v18 = vmax.f32 %v3946_v60, 0.0  ;;  %v2382_v21 = vunpack.c.l.b16 %v1377_v7  ;;  %v2527_v60 = vunpack.c.l.b16 %v1779_v41  ;;  %v2591_v11 = vunpack.c.l.b16 %v1989_v63 }
 0x22e   : > { %v3770_v1 = vpop.f32.mrf.mxu2  ;;  %v4261_v7 = vrot.slane %v4245_v47, 9  ;;  %v1788_v41 = vrot.slane %v1787_v2, 4 }
 0x22f   : > { %v4964_v30 = vpack.c.bf16 %v4015_v18, %v4014_v26  ;;  %v3859_v36 = vpop.f32.mrf.mxu3  ;;  %v3771_v59 = vadd.f32 %v3770_v1, %v3682_v51  ;;  %v1797_v26 = vor.u32 %v1796_v45, %v6580_v46  ;;  %v1800_v18 = vshll.u32 %v4309_v62, 16 }
 0x230   : > { %v3683_v39 = vpop.f32.mrf.mxu1  ;;  %v2401_v1 = vpack.c.b16 %v2383_v4, %v2382_v21  ;;  %v2545_v58 = vpack.c.b16 %v2527_v60, %v2526_v43  ;;  %v1995_v45 = vrot.slane %v4309_v62, 5  ;;  %v4293_v4 = vld [vmem:[%s5178_s6 + $0xcc] sm:$0xf]  ;;  %v6596_v43 = vld [vmem:[%s5178_s6 + $0xd0] sm:$0xf] }
 0x231   : > { %5028 = vst [vmem:[%s6456_s24 + $0x18] sm:$0xff] %v4964_v30   ;;  %v3860_v33 = vadd.f32 %v3859_v36, %v3771_v59  ;;  %v3684_v38 = vadd.f32 %v3683_v39, %v6027_v13  ;;  %v2609_v30 = vpack.c.b16 %v2591_v11, %v2590_v12  ;;  %v4325_v13 = vld [vmem:[%s5178_s6 + $0xc0] sm:$0xe]  ;;  %v1386_v59 = vrot.slane %v5105_v55, 5  ;;  %v4310_v55 = vld [vmem:[%s5178_s6 + $0xd4] sm:$0x1] }
 0x232   : > { %v3950_v34 = vpop.f32.mrf.mxu0  ;;  %v1798_v19 = vrot.slane %v1797_v26, 4  ;;  %v1802_v63 = vrot.slane %v1800_v18, 5  ;;  %v4341_v3 = vrot.slane %v4325_v13, 9  ;;  %v1384_v12 = vsel %vm5322_vm5, %v4261_v7, %v1383_v17 }
 0x233   : > { %v3949_v51 = vadd.f32 %v6554_v16, %v3860_v33  ;;  %v1793_v11 = vsel %vm5318_vm4, %v1788_v41, %v6580_v46  ;;  %v1996_v17 = vsel %vm5322_vm5, %v1994_v31, %v1995_v45  ;;  %v1805_v2 = vshrl.u32 %v4293_v4, 16  ;;  %v5106_v31 = vld [vmem:[%s5178_s6 + $0xc4] sm:$0xf] }
 0x234   : > { %v1803_v62 = vsel %vm5318_vm4, %v1798_v19, %v1802_v63  ;;  %v1808_v26 = vshll.u32 %v4293_v4, 16  ;;  %v1814_v18 = vshll.u32 %v6596_v43, 16  ;;  %v1818_v46 = vshrl.u32 %v6596_v43, 16  ;;  %v4246_v4 = vld [vmem:[%s5178_s6 + $0xc0] sm:$0xe] }
 0x235   : > { %v4016_v16 = vmax.f32 %v3949_v51, 0.0  ;;  %v1390_v45 = vrot.slane %v5106_v31, 5 }
 0x236   : > { %v3772_v9 = vpop.f32.mrf.mxu2  ;;  %v1810_v13 = vrot.slane %v1808_v26, 5  ;;  %v1816_v51 = vrot.slane %v1814_v18, 5 }
 0x237   : > { %v3773_v50 = vadd.f32 %v3772_v9, %v3684_v38  ;;  %v3861_v10 = vpop.f32.mrf.mxu3  ;;  %v1993_v9 = vsel %vm5322_vm5, %v4341_v3, %v1992_v8 }
 0x238   : > { %v3686_v57 = vpop.f32.mrf.mxu1  ;;  %v2592_v8 = vunpack.c.l.b16 %v1993_v9  ;;  %v4262_v9 = vrot.slane %v4246_v4, 9 }
 0x239   : > { %v3862_v36 = vadd.f32 %v3861_v10, %v3773_v50  ;;  %v3687_v38 = vadd.f32 %v3686_v57, %v6054_v54  ;;  %v2529_v57 = vunpack.c.l.b16 %v1803_v62 }
 0x23a   : > { %v6591_v39 = vpop.f32.mrf.mxu0 }
 0x23b   : > { %v3951_v25 = vadd.f32 %v3950_v34, %v3862_v36  ;;  %3725 = vmatmul.bf16.gmra.mxu1 %v2401_v1  ;;  %3814 = vmatmul.bf16.gmra.mxu2 %v4871_v37  ;;  %v1387_v34 = vsel %vm5322_vm5, %v1385_v14, %v1386_v59  ;;  %v2384_v1 = vunpack.c.l.b16 %v1384_v12  ;;  %v2528_v37 = vunpack.c.l.b16 %v1793_v11 }
 0x23c   : > { %3903 = vmatmul.bf16.gmra.mxu3 %v2545_v58  ;;  %v2385_v54 = vunpack.c.l.b16 %v1387_v34  ;;  %v2593_v58 = vunpack.c.l.b16 %v1996_v17  ;;  %v1820_v36 = vrot.slane %v1818_v46, 4  ;;  %v1824_v34 = vshll.u32 %v4310_v55, 16 }
 0x23d   : > { %3992 = vmatmul.bf16.gmra.mxu0 %v2609_v30  ;;  %v4017_v21 = vmax.f32 %v3951_v25, 0.0  ;;  %v1807_v30 = vrot.slane %v1805_v2, 4  ;;  %v4872_v25 = vld [vmem:[%s5178_s6 + $0xc0] sm:$0xff]  ;;  %v2546_v3 = vpack.c.b16 %v2529_v57, %v2528_v37  ;;  %v1392_v17 = vrot.slane %v1390_v45, 4 }
 0x23e   : > { %v3775_v60 = vpop.f32.mrf.mxu2  ;;  %v2402_v63 = vpack.c.b16 %v2385_v54, %v2384_v1  ;;  %v1821_v12 = vor.u32 %v1820_v36, %v1816_v51  ;;  %v1826_v46 = vrot.slane %v1824_v34, 5  ;;  %v2002_v37 = vrot.slane %v4310_v55, 5 }
 0x23f   : > { %v4969_v33 = vpack.c.bf16 %v4017_v21, %v4016_v16  ;;  %v3864_v44 = vpop.f32.mrf.mxu3  ;;  %v3776_v50 = vadd.f32 %v3775_v60, %v3687_v38  ;;  %v2610_v21 = vpack.c.b16 %v2593_v58, %v2592_v8  ;;  %v1811_v60 = vor.u32 %v1810_v13, %v1807_v30 }
 0x240   : > { %v3688_v47 = vpop.f32.mrf.mxu1  ;;  %v1999_v38 = vrot.slane %v6596_v43, 5  ;;  %v1822_v18 = vrot.slane %v1821_v12, 4  ;;  %v1391_v30 = vsel %vm5322_vm5, %v4262_v9, %v1390_v45 }
 0x241   : > { %5029 = vst [vmem:[%s6456_s24 + $0x20] sm:$0xff] %v4969_v33   ;;  %v3865_v7 = vadd.f32 %v3864_v44, %v3776_v50  ;;  %v3689_v14 = vadd.f32 %v3688_v47, %v6077_v42  ;;  %v4326_v33 = vld [vmem:[%s5178_s6 + $0xcc] sm:$0xe]  ;;  %v5107_v47 = vld [vmem:[%s5178_s6 + $0xc8] sm:$0x1]  ;;  %v1812_v26 = vrot.slane %v1811_v60, 4 }
 0x242   : > { %v3955_v10 = vpop.f32.mrf.mxu0  ;;  %v1393_v2 = vrot.slane %v5107_v47, 5  ;;  %v4342_v50 = vrot.slane %v4326_v33, 9  ;;  %v2001_v54 = vrot.slane %v1999_v38, 4  ;;  %v1827_v55 = vsel %vm5318_vm4, %v1822_v18, %v1826_v46  ;;  %v4873_v60 = vld [vmem:[%s5178_s6 + $0xcc] sm:$0xff] }
 0x243   : > { %v3954_v11 = vadd.f32 %v6591_v39, %v3865_v7  ;;  %v1817_v36 = vsel %vm5318_vm4, %v1812_v26, %v1816_v51 }
 0x244   : > { %v1394_v13 = vsel %vm5322_vm5, %v1392_v17, %v1393_v2 }
 0x245   : > { %v4018_v39 = vmax.f32 %v3954_v11, 0.0 }
 0x246   : > { %v3777_v59 = vpop.f32.mrf.mxu2 }
 0x247   : > { %v3778_v41 = vadd.f32 %v3777_v59, %v3689_v14  ;;  %v3866_v19 = vpop.f32.mrf.mxu3  ;;  %v2003_v59 = vsel %vm5322_vm5, %v2001_v54, %v2002_v37 }
 0x248   : > { %v3691_v16 = vpop.f32.mrf.mxu1  ;;  %v2595_v31 = vunpack.c.l.b16 %v2003_v59 }
 0x249   : > { %v3867_v42 = vadd.f32 %v3866_v19, %v3778_v41  ;;  %v2386_v41 = vunpack.c.l.b16 %v1391_v30  ;;  %v2387_v19 = vunpack.c.l.b16 %v1394_v13 }
 0x24a   : > { %v3958_v62 = vpop.f32.mrf.mxu0 }
 0x24b   : > { %v3956_v44 = vadd.f32 %v3955_v10, %v3867_v42  ;;  %3730 = vmatmul.bf16.gmra.mxu1 %v2402_v63  ;;  %3819 = vmatmul.bf16.gmra.mxu2 %v4872_v25  ;;  %v3692_v10 = vadd.f32 %v3691_v16, %v6098_v20  ;;  %v2000_v20 = vsel %vm5322_vm5, %v4342_v50, %v1999_v38  ;;  %v2530_v63 = vunpack.c.l.b16 %v1817_v36 }
 0x24c   : > { %3908 = vmatmul.bf16.gmra.mxu3 %v2546_v3  ;;  %v2531_v25 = vunpack.c.l.b16 %v1827_v55  ;;  %v2594_v3 = vunpack.c.l.b16 %v2000_v20  ;;  %v2403_v4 = vpack.c.b16 %v2387_v19, %v2386_v41 }
 0x24d   : > { %3997 = vmatmul.bf16.gmra.mxu0 %v2610_v21  ;;  %v4019_v1 = vmax.f32 %v3956_v44, 0.0 }
 0x24e   : > { %v3780_v57 = vpop.f32.mrf.mxu2  ;;  %v2547_v34 = vpack.c.b16 %v2531_v25, %v2530_v63  ;;  %v2611_v11 = vpack.c.b16 %v2595_v31, %v2594_v3 }
 0x24f   : > { %v4974_v43 = vpack.c.bf16 %v4019_v1, %v4018_v39  ;;  %v3869_v8 = vpop.f32.mrf.mxu3  ;;  %v3781_v7 = vadd.f32 %v3780_v57, %v3692_v10 }
 0x250   : > { %v3693_v58 = vpop.f32.mrf.mxu1 }
 0x251   : > { %5030 = vst [vmem:[%s6456_s24 + $0x28] sm:$0xff] %v4974_v43   ;;  %v3870_v51 = vadd.f32 %v3869_v8, %v3781_v7  ;;  %v3694_v45 = vadd.f32 %v3693_v58, %v6104_v29 }
 0x252   : > { %v3960_v14 = vpop.f32.mrf.mxu0 }
 0x253   : > { %v3959_v27 = vadd.f32 %v3958_v62, %v3870_v51 }
 0x255   : > { %v4020_v44 = vmax.f32 %v3959_v27, 0.0 }
 0x256   : > { %v3782_v16 = vpop.f32.mrf.mxu2 }
 0x257   : > { %v3783_v21 = vadd.f32 %v3782_v16, %v3694_v45  ;;  %v3871_v23 = vpop.f32.mrf.mxu3 }
 0x258   : > { %v3696_v12 = vpop.f32.mrf.mxu1 }
 0x259   : > { %v3872_v42 = vadd.f32 %v3871_v23, %v3783_v21  ;;  %v3697_v47 = vadd.f32 %v3696_v12, %v6121_v49 }
 0x25a   : > { %v3963_v33 = vpop.f32.mrf.mxu0 }
 0x25b   : > { %v3961_v38 = vadd.f32 %v3960_v14, %v3872_v42  ;;  %3735 = vmatmul.bf16.gmra.mxu1 %v2403_v4  ;;  %3824 = vmatmul.bf16.gmra.mxu2 %v4873_v60 }
 0x25c   : > { %3913 = vmatmul.bf16.gmra.mxu3 %v2547_v34 }
 0x25d   : > { %4002 = vmatmul.bf16.gmra.mxu0 %v2611_v11  ;;  %v4021_v9 = vmax.f32 %v3961_v38, 0.0 }
 0x25e   : > { %v3785_v29 = vpop.f32.mrf.mxu2 }
 0x25f   : > { %v4979_v17 = vpack.c.bf16 %v4021_v9, %v4020_v44  ;;  %v3874_v2 = vpop.f32.mrf.mxu3  ;;  %v3786_v18 = vadd.f32 %v3785_v29, %v3697_v47 }
 0x260   : > { %v3698_v26 = vpop.f32.mrf.mxu1 }
 0x261   : > { %5031 = vst [vmem:[%s6456_s24 + $0x30] sm:$0xff] %v4979_v17   ;;  %v3875_v50 = vadd.f32 %v3874_v2, %v3786_v18  ;;  %v3699_v62 = vadd.f32 %v3698_v26, %v6138_v15 }
 0x262   : > { %v3965_v46 = vpop.f32.mrf.mxu0 }
 0x263   : > { %v3964_v57 = vadd.f32 %v3963_v33, %v3875_v50 }
 0x265   : > { %v4022_v58 = vmax.f32 %v3964_v57, 0.0 }
 0x266   : > { %v3787_v39 = vpop.f32.mrf.mxu2 }
 0x267   : > { %v3788_v1 = vadd.f32 %v3787_v39, %v3699_v62  ;;  %v3876_v54 = vpop.f32.mrf.mxu3 }
 0x268   : > { %v3701_v37 = vpop.f32.mrf.mxu1 }
 0x269   : > { %v3877_v43 = vadd.f32 %v3876_v54, %v3788_v1  ;;  %v3702_v36 = vadd.f32 %v3701_v37, %v6160_v6 }
 0x26a   : > { %v3968_v10 = vpop.f32.mrf.mxu0 }
 0x26b   : > { %v3966_v8 = vadd.f32 %v3965_v46, %v3877_v43 }
 0x26d   : > { %v4023_v30 = vmax.f32 %v3966_v8, 0.0 }
 0x26e   : > { %v3790_v49 = vpop.f32.mrf.mxu2 }
 0x26f   : > { %v4984_v13 = vpack.c.bf16 %v4023_v30, %v4022_v58  ;;  %v3879_v7 = vpop.f32.mrf.mxu3  ;;  %v3791_v55 = vadd.f32 %v3790_v49, %v3702_v36 }
 0x270   : > { %v3703_v14 = vpop.f32.mrf.mxu1 }
 0x271   : > { %5032 = vst [vmem:[%s6456_s24 + $0x38] sm:$0xff] %v4984_v13   ;;  %v3880_v20 = vadd.f32 %v3879_v7, %v3791_v55  ;;  %v3704_v59 = vadd.f32 %v3703_v14, %v6170_v53 }
 0x272   : > { %v3970_v15 = vpop.f32.mrf.mxu0 }
 0x273   : > { %v3969_v3 = vadd.f32 %v3968_v10, %v3880_v20 }
 0x275   : > { %v4024_v16 = vmax.f32 %v3969_v3, 0.0 }
 0x276   : > { %v3792_v41 = vpop.f32.mrf.mxu2 }
 0x277   : > { %v3793_v19 = vadd.f32 %v3792_v41, %v3704_v59  ;;  %v3881_v63 = vpop.f32.mrf.mxu3 }
 0x278   : > { %v3706_v25 = vpop.f32.mrf.mxu1 }
 0x279   : > { %v3882_v31 = vadd.f32 %v3881_v63, %v3793_v19  ;;  %v3707_v4 = vadd.f32 %v3706_v25, %v6192_v52 }
 0x27a   : > { %v3973_v51 = vpop.f32.mrf.mxu0 }
 0x27b   : > { %v3971_v45 = vadd.f32 %v3970_v15, %v3882_v31 }
 0x27d   : > { %v4025_v21 = vmax.f32 %v3971_v45, 0.0 }
 0x27e   : > { %v3795_v6 = vpop.f32.mrf.mxu2 }
 0x27f   : > { %v4989_v23 = vpack.c.bf16 %v4025_v21, %v4024_v16  ;;  %v3884_v60 = vpop.f32.mrf.mxu3  ;;  %v3796_v34 = vadd.f32 %v3795_v6, %v3707_v4 }
 0x280   : > { %v3708_v12 = vpop.f32.mrf.mxu1 }
 0x281   : > { %5033 = vst [vmem:[%s6456_s24 + $0x40] sm:$0xff] %v4989_v23   ;;  %v3885_v11 = vadd.f32 %v3884_v60, %v3796_v34  ;;  %v3709_v27 = vadd.f32 %v3708_v12, %v6208_v35 }
 0x282   : > { %v3975_v53 = vpop.f32.mrf.mxu0 }
 0x283   : > { %v3974_v9 = vadd.f32 %v3973_v51, %v3885_v11 }
 0x285   : > { %v4026_v2 = vmax.f32 %v3974_v9, 0.0 }
 0x286   : > { %v3797_v42 = vpop.f32.mrf.mxu2 }
 0x287   : > { %v3798_v33 = vadd.f32 %v3797_v42, %v3709_v27  ;;  %v3886_v38 = vpop.f32.mrf.mxu3 }
 0x288   : > { %v3711_v44 = vpop.f32.mrf.mxu1 }
 0x289   : > { %v3887_v29 = vadd.f32 %v3886_v38, %v3798_v33  ;;  %v3712_v46 = vadd.f32 %v3711_v44, %v6230_v28 }
 0x28a   : > { %v3978_v17 = vpop.f32.mrf.mxu0 }
 0x28b   : > { %v3976_v47 = vadd.f32 %v3975_v53, %v3887_v29 }
 0x28d   : > { %v4027_v26 = vmax.f32 %v3976_v47, 0.0 }
 0x28e   : > { %v3800_v52 = vpop.f32.mrf.mxu2 }
 0x28f   : > { %v4994_v18 = vpack.c.bf16 %v4027_v26, %v4026_v2  ;;  %v3889_v50 = vpop.f32.mrf.mxu3  ;;  %v3801_v39 = vadd.f32 %v3800_v52, %v3712_v46 }
 0x290   : > { %v3713_v62 = vpop.f32.mrf.mxu1 }
 0x291   : > { %5034 = vst [vmem:[%s6456_s24 + $0x48] sm:$0xff] %v4994_v18   ;;  %v3890_v1 = vadd.f32 %v3889_v50, %v3801_v39  ;;  %v3714_v54 = vadd.f32 %v3713_v62, %v6240_v0 }
 0x292   : > { %v3980_v35 = vpop.f32.mrf.mxu0 }
 0x293   : > { %v3979_v8 = vadd.f32 %v3978_v17, %v3890_v1 }
 0x295   : > { %v4028_v13 = vmax.f32 %v3979_v8, 0.0 }
 0x296   : > { %v3802_v37 = vpop.f32.mrf.mxu2 }
 0x297   : > { %v3803_v57 = vadd.f32 %v3802_v37, %v3714_v54  ;;  %v3891_v43 = vpop.f32.mrf.mxu3 }
 0x298   : > { %v3716_v10 = vpop.f32.mrf.mxu1 }
 0x299   : > { %v3892_v58 = vadd.f32 %v3891_v43, %v3803_v57  ;;  %v3717_v14 = vadd.f32 %v3716_v10, %v6262_v32 }
 0x29a   : > { %v3983_v30 = vpop.f32.mrf.mxu0 }
 0x29b   : > { %v3981_v49 = vadd.f32 %v3980_v35, %v3892_v58 }
 0x29d   : > { %v4029_v36 = vmax.f32 %v3981_v49, 0.0 }
 0x29e   : > { %v3805_v28 = vpop.f32.mrf.mxu2 }
 0x29f   : > { %v4999_v7 = vpack.c.bf16 %v4029_v36, %v4028_v13  ;;  %v3894_v55 = vpop.f32.mrf.mxu3  ;;  %v3806_v20 = vadd.f32 %v3805_v28, %v3717_v14 }
 0x2a0   : > { %v3718_v15 = vpop.f32.mrf.mxu1 }
 0x2a1   : > { %5035 = vst [vmem:[%s6456_s24 + $0x50] sm:$0xff] %v4999_v7   ;;  %v3895_v59 = vadd.f32 %v3894_v55, %v3806_v20  ;;  %v3719_v41 = vadd.f32 %v3718_v15, %v6278_v40 }
 0x2a2   : > { %v3985_v0 = vpop.f32.mrf.mxu0 }
 0x2a3   : > { %v3984_v31 = vadd.f32 %v3983_v30, %v3895_v59 }
 0x2a5   : > { %v4030_v21 = vmax.f32 %v3984_v31, 0.0 }
 0x2a6   : > { %v3807_v19 = vpop.f32.mrf.mxu2 }
 0x2a7   : > { %v3808_v63 = vadd.f32 %v3807_v19, %v3719_v41  ;;  %v3896_v25 = vpop.f32.mrf.mxu3 }
 0x2a8   : > { %v3721_v3 = vpop.f32.mrf.mxu1 }
 0x2a9   : > { %v3897_v51 = vadd.f32 %v3896_v25, %v3808_v63  ;;  %v3722_v4 = vadd.f32 %v3721_v3, %v6300_v61 }
 0x2aa   : > { %v3988_v45 = vpop.f32.mrf.mxu0 }
 0x2ab   : > { %v3986_v16 = vadd.f32 %v3985_v0, %v3897_v51  ;;  %v6697_v51 = vld [vmem:[#allocation2_spill] sm:$0xff] }
 0x2ad   : > { %v4031_v6 = vmax.f32 %v3986_v16, 0.0 }
 0x2ae   : > { %v3810_v32 = vpop.f32.mrf.mxu2 }
 0x2af   : > { %v5004_v23 = vpack.c.bf16 %v4031_v6, %v4030_v21  ;;  %v3899_v60 = vpop.f32.mrf.mxu3  ;;  %v3811_v34 = vadd.f32 %v3810_v32, %v3722_v4 }
 0x2b0   : > { %v3723_v12 = vpop.f32.mrf.mxu1 }
 0x2b1   : > { %5036 = vst [vmem:[%s6456_s24 + $0x58] sm:$0xff] %v5004_v23   ;;  %v3900_v53 = vadd.f32 %v3899_v60, %v3811_v34  ;;  %v3724_v11 = vadd.f32 %v3723_v12, %v6310_v24  ;;  %v6698_v23 = vld [vmem:[#allocation3_spill] sm:$0xff] }
 0x2b2   : > { %v3990_v40 = vpop.f32.mrf.mxu0 }
 0x2b3   : > { %v3989_v44 = vadd.f32 %v3988_v45, %v3900_v53 }
 0x2b5   : > { %v4032_v47 = vmax.f32 %v3989_v44, 0.0 }
 0x2b6   : > { %v3812_v27 = vpop.f32.mrf.mxu2 }
 0x2b7   : > { %v3813_v42 = vadd.f32 %v3812_v27, %v3724_v11  ;;  %v3901_v33 = vpop.f32.mrf.mxu3 }
 0x2b8   : > { %v3726_v38 = vpop.f32.mrf.mxu1 }
 0x2b9   : > { %v3902_v9 = vadd.f32 %v3901_v33, %v3813_v42  ;;  %v3727_v52 = vadd.f32 %v3726_v38, %v6332_v22 }
 0x2ba   : > { %v3993_v29 = vpop.f32.mrf.mxu0 }
 0x2bb   : > { %v3991_v17 = vadd.f32 %v3990_v40, %v3902_v9 }
 0x2bd   : > { %v4033_v2 = vmax.f32 %v3991_v17, 0.0 }
 0x2be   : > { %v3815_v61 = vpop.f32.mrf.mxu2 }
 0x2bf   : > { %v5009_v26 = vpack.c.bf16 %v4033_v2, %v4032_v47  ;;  %v3904_v18 = vpop.f32.mrf.mxu3  ;;  %v3816_v50 = vadd.f32 %v3815_v61, %v3727_v52 }
 0x2c0   : > { %v3728_v46 = vpop.f32.mrf.mxu1 }
 0x2c1   : > { %5037 = vst [vmem:[%s6456_s24 + $0x60] sm:$0xff] %v5009_v26   ;;  %v3905_v62 = vadd.f32 %v3904_v18, %v3816_v50  ;;  %v3729_v39 = vadd.f32 %v3728_v46, %v6348_v5 }
 0x2c2   : > { %v3995_v24 = vpop.f32.mrf.mxu0 }
 0x2c3   : > { %v3994_v57 = vadd.f32 %v3993_v29, %v3905_v62 }
 0x2c5   : > { %v4034_v58 = vmax.f32 %v3994_v57, 0.0 }
 0x2c6   : > { %v3817_v35 = vpop.f32.mrf.mxu2 }
 0x2c7   : > { %v3818_v1 = vadd.f32 %v3817_v35, %v3729_v39  ;;  %v3906_v54 = vpop.f32.mrf.mxu3 }
 0x2c8   : > { %v3731_v37 = vpop.f32.mrf.mxu1 }
 0x2c9   : > { %v3907_v43 = vadd.f32 %v3906_v54, %v3818_v1  ;;  %v3732_v13 = vadd.f32 %v3731_v37, %v6370_v48 }
 0x2ca   : > { %v3998_v8 = vpop.f32.mrf.mxu0 }
 0x2cb   : > { %v3996_v10 = vadd.f32 %v3995_v24, %v3907_v43 }
 0x2cd   : > { %v4035_v30 = vmax.f32 %v3996_v10, 0.0 }
 0x2ce   : > { %v3820_v22 = vpop.f32.mrf.mxu2 }
 0x2cf   : > { %v5014_v49 = vpack.c.bf16 %v4035_v30, %v4034_v58  ;;  %v3909_v36 = vpop.f32.mrf.mxu3  ;;  %v3821_v7 = vadd.f32 %v3820_v22, %v3732_v13 }
 0x2d0   : > { %v3733_v28 = vpop.f32.mrf.mxu1 }
 0x2d1   : > { %5038 = vst [vmem:[%s6456_s24 + $0x68] sm:$0xff] %v5014_v49   ;;  %v3910_v5 = vadd.f32 %v3909_v36, %v3821_v7  ;;  %v3734_v14 = vadd.f32 %v3733_v28, %v6380_v56 }
 0x2d2   : > { %v4000_v55 = vpop.f32.mrf.mxu0 }
 0x2d3   : > { %v3999_v41 = vadd.f32 %v3998_v8, %v3910_v5 }
 0x2d5   : > { %v4036_v25 = vmax.f32 %v3999_v41, 0.0 }
 0x2d6   : > { %v3822_v15 = vpop.f32.mrf.mxu2 }
 0x2d7   : > { %v3823_v20 = vadd.f32 %v3822_v15, %v3734_v14  ;;  %v3911_v0 = vpop.f32.mrf.mxu3 }
 0x2d8   : > { %v3736_v59 = vpop.f32.mrf.mxu1 }
 0x2d9   : > { %v3912_v19 = vadd.f32 %v3911_v0, %v3823_v20  ;;  %v3737_v45 = vadd.f32 %v3736_v59, %v6697_v51 }
 0x2da   : > { %v4003_v21 = vpop.f32.mrf.mxu0 }
 0x2db   : > { %v4001_v63 = vadd.f32 %v4000_v55, %v3912_v19 }
 0x2dd   : > { %v4037_v3 = vmax.f32 %v4001_v63, 0.0 }
 0x2de   : > { %v3825_v31 = vpop.f32.mrf.mxu2 }
 0x2df   : > { %v5019_v48 = vpack.c.bf16 %v4037_v3, %v4036_v25  ;;  %v3914_v16 = vpop.f32.mrf.mxu3  ;;  %v3826_v56 = vadd.f32 %v3825_v31, %v3737_v45 }
 0x2e0   : > { %v3738_v6 = vpop.f32.mrf.mxu1 }
 0x2e1   : > { %5039 = vst [vmem:[%s6456_s24 + $0x70] sm:$0xff] %v5019_v48   ;;  %v3915_v32 = vadd.f32 %v3914_v16, %v3826_v56  ;;  %v3739_v4 = vadd.f32 %v3738_v6, %v6698_v23 }
 0x2e2   : > { %v4005_v11 = vpop.f32.mrf.mxu0 }
 0x2e3   : > { %v4004_v40 = vadd.f32 %v4003_v21, %v3915_v32 }
 0x2e5   : > { %v4038_v42 = vmax.f32 %v4004_v40, 0.0 }
 0x2e6   : > { %v3827_v60 = vpop.f32.mrf.mxu2 }
 0x2e7   : > { %v3828_v12 = vadd.f32 %v3827_v60, %v3739_v4  ;;  %v3916_v34 = vpop.f32.mrf.mxu3 }
 0x2e9   : > { %v3917_v53 = vadd.f32 %v3916_v34, %v3828_v12 }
 0x2eb   : > { %v4006_v27 = vadd.f32 %v4005_v11, %v3917_v53 }
 0x2ed   : > { %v4039_v33 = vmax.f32 %v4006_v27, 0.0 }
 0x2ef   : > { %v5024_v38 = vpack.c.bf16 %v4039_v33, %v4038_v42 }
 0x2f1   : > { %5040 = vst [vmem:[%s6456_s24 + $0x78] sm:$0xff] %v5024_v38  }
 0x2f2 PF: > { %s13_s12 = sadd.s32 1, %s5114_s12  }
 0x2f3   : > { %p10_p4 = scmp.ge.s32.totalorder %s13_s12, 6  }
 0x2f5   :  { %12 = sbr.rel (!%p10_p4) target bundleno = 1 (0x1), region = 64 }

// kernel: _lambda_.10
= control target key start
LH: loop header
LB: loop body
LE: loop exit
PB: predicated region body
PF: predicated region fallthrough
CT: control target
= control target key end

     0   :  { %s320_s0 = inlined_call_operand.vmem [shape: bf16[128,128], index: 0, kind: input, shape index: {}]   ;;  %s321_s1 = inlined_call_operand.vmem [shape: bf16[128,128], index: 1, kind: input, shape index: {}]   ;;  %s322_s2 = inlined_call_operand.hbm [shape: f32[1], index: 2, kind: output, shape index: {}]  }
   0x1   :  { %v158_v0 = vld [vmem:[%s320_s0] sm:$0xff]   ;;  %v221_v2 = vld [vmem:[%s320_s0 + $0x8] sm:$0xff]  }
   0x2   :  { %v190_v1 = vld [vmem:[%s321_s1] sm:$0xff]   ;;  %v228_v3 = vld [vmem:[%s321_s1 + $0x8] sm:$0xff]   ;;  %v159_v4 = vunpack.c.l.bf16 %v158_v0  ;;  %v160_v5 = vunpack.c.h.bf16 %v158_v0 }
   0x3   :  { %v191_v6 = vunpack.c.l.bf16 %v190_v1  ;;  %v192_v7 = vunpack.c.h.bf16 %v190_v1 }
   0x4   :  { %7 = vsyncpa [#allocation3], 0  ;;  %v163_v8 = vunpack.c.l.bf16 %v221_v2  ;;  %v195_v9 = vunpack.c.l.bf16 %v228_v3  ;;  %v222_v10 = vld [vmem:[%s320_s0 + $0x10] sm:$0xff]   ;;  %v164_v12 = vunpack.c.h.bf16 %v221_v2  ;;  %v196_v13 = vunpack.c.h.bf16 %v228_v3  ;;  %v223_v20 = vld [vmem:[%s320_s0 + $0x18] sm:$0xff]   ;;  %s147_s13 = sshll.u32 %s322_s2, 4  ;;  %s253_s15 = smov [#allocation2]   ;;  %s148_s13 = int_to_ptr.hbm [resolvable:$true] %s147_s13 }
   0x5   :  { %v229_v11 = vld [vmem:[%s321_s1 + $0x10] sm:$0xff]   ;;  %v82_v14 = vsub.f32 %v159_v4, %v191_v6  ;;  %v83_v15 = vsub.f32 %v160_v5, %v192_v7  ;;  %v167_v16 = vunpack.c.l.bf16 %v222_v10  ;;  %v168_v19 = vunpack.c.h.bf16 %v222_v10  ;;  %v230_v21 = vld [vmem:[%s321_s1 + $0x18] sm:$0xff]   ;;  %v224_v27 = vld [vmem:[%s320_s0 + $0x20] sm:$0xff]  }
   0x6   :  { %v199_v17 = vunpack.c.l.bf16 %v229_v11  ;;  %v84_v18 = vsub.f32 %v163_v8, %v195_v9  ;;  %v200_v22 = vunpack.c.h.bf16 %v229_v11  ;;  %v85_v23 = vsub.f32 %v164_v12, %v196_v13  ;;  %v231_v32 = vld [vmem:[%s321_s1 + $0x20] sm:$0xff]   ;;  %v225_v38 = vld [vmem:[%s320_s0 + $0x28] sm:$0xff]   ;;  %v226_v50 = vld [vmem:[%s320_s0 + $0x30] sm:$0xff]  }
   0x7   :  { %v99_v24 = vmul.f32 %v82_v14, %v82_v14  ;;  %v100_v25 = vmul.f32 %v83_v15, %v83_v15  ;;  %v171_v26 = vunpack.c.l.bf16 %v223_v20  ;;  %v203_v28 = vunpack.c.l.bf16 %v230_v21  ;;  %v232_v44 = vld [vmem:[%s321_s1 + $0x28] sm:$0xff]   ;;  %v233_v56 = vld [vmem:[%s321_s1 + $0x30] sm:$0xff]   ;;  %v227_v62 = vld [vmem:[%s320_s0 + $0x38] sm:$0xff]  }
   0x8   :  { %v86_v29 = vsub.f32 %v167_v16, %v199_v17  ;;  %v101_v30 = vmul.f32 %v84_v18, %v84_v18  ;;  %v172_v31 = vunpack.c.h.bf16 %v223_v20  ;;  %v204_v33 = vunpack.c.h.bf16 %v230_v21  ;;  %v234_v4 = vld [vmem:[%s321_s1 + $0x38] sm:$0xff]  }
   0x9   :  { %v87_v34 = vsub.f32 %v168_v19, %v200_v22  ;;  %v102_v35 = vmul.f32 %v85_v23, %v85_v23  ;;  %v115_v36 = vadd.f32 %v100_v25, %v99_v24  ;;  %v175_v37 = vunpack.c.l.bf16 %v224_v27 }
   0xa   :  { %v207_v39 = vunpack.c.l.bf16 %v231_v32  ;;  %v88_v40 = vsub.f32 %v171_v26, %v203_v28  ;;  %v103_v41 = vmul.f32 %v86_v29, %v86_v29  ;;  %v176_v43 = vunpack.c.h.bf16 %v224_v27 }
   0xb   :  { %v116_v42 = vadd.f32 %v115_v36, %v101_v30  ;;  %v208_v45 = vunpack.c.h.bf16 %v231_v32  ;;  %v89_v46 = vsub.f32 %v172_v31, %v204_v33  ;;  %v104_v47 = vmul.f32 %v87_v34, %v87_v34 }
   0xc   :  { %v179_v49 = vunpack.c.l.bf16 %v225_v38  ;;  %v211_v51 = vunpack.c.l.bf16 %v232_v44  ;;  %v90_v52 = vsub.f32 %v175_v37, %v207_v39  ;;  %v105_v53 = vmul.f32 %v88_v40, %v88_v40 }
   0xd   :  { %v117_v48 = vadd.f32 %v116_v42, %v102_v35  ;;  %v180_v55 = vunpack.c.h.bf16 %v225_v38  ;;  %v212_v57 = vunpack.c.h.bf16 %v232_v44  ;;  %v91_v58 = vsub.f32 %v176_v43, %v208_v45 }
   0xe   :  { %v106_v59 = vmul.f32 %v89_v46, %v89_v46  ;;  %v183_v61 = vunpack.c.l.bf16 %v226_v50  ;;  %v215_v63 = vunpack.c.l.bf16 %v233_v56  ;;  %v92_v0 = vsub.f32 %v179_v49, %v211_v51 }
   0xf   :  { %v118_v54 = vadd.f32 %v117_v48, %v103_v41  ;;  %v107_v1 = vmul.f32 %v90_v52, %v90_v52  ;;  %v184_v3 = vunpack.c.h.bf16 %v226_v50  ;;  %v216_v5 = vunpack.c.h.bf16 %v233_v56 }
  0x10   :  { %v93_v6 = vsub.f32 %v180_v55, %v212_v57  ;;  %v108_v7 = vmul.f32 %v91_v58, %v91_v58  ;;  %v187_v9 = vunpack.c.l.bf16 %v227_v62  ;;  %v219_v10 = vunpack.c.l.bf16 %v234_v4 }
  0x11   :  { %v119_v60 = vadd.f32 %v118_v54, %v104_v47  ;;  %v94_v11 = vsub.f32 %v183_v61, %v215_v63  ;;  %v109_v12 = vmul.f32 %v92_v0, %v92_v0  ;;  %v188_v14 = vunpack.c.h.bf16 %v227_v62 }
  0x12   :  { %v220_v15 = vunpack.c.h.bf16 %v234_v4  ;;  %v95_v16 = vsub.f32 %v184_v3, %v216_v5  ;;  %v110_v17 = vmul.f32 %v93_v6, %v93_v6  ;;  %v96_v19 = vsub.f32 %v187_v9, %v219_v10 }
  0x13   :  { %v120_v2 = vadd.f32 %v119_v60, %v105_v53  ;;  %v111_v20 = vmul.f32 %v94_v11, %v94_v11 }
  0x14   :  { %v97_v22 = vsub.f32 %v188_v14, %v220_v15  ;;  %v112_v23 = vmul.f32 %v95_v16, %v95_v16  ;;  %v113_v25 = vmul.f32 %v96_v19, %v96_v19 }
  0x15   :  { %v121_v8 = vadd.f32 %v120_v2, %v106_v59 }
  0x16   :  { %v114_v27 = vmul.f32 %v97_v22, %v97_v22 }
  0x17   :  { %v122_v13 = vadd.f32 %v121_v8, %v107_v1 }
  0x19   :  { %v123_v18 = vadd.f32 %v122_v13, %v108_v7 }
  0x1b   :  { %v124_v21 = vadd.f32 %v123_v18, %v109_v12 }
  0x1d   :  { %v125_v24 = vadd.f32 %v124_v21, %v110_v17 }
  0x1f   :  { %v126_v26 = vadd.f32 %v125_v24, %v111_v20 }
  0x21   :  { %v127_v28 = vadd.f32 %v126_v26, %v112_v23 }
  0x23   :  { %v128_v29 = vadd.f32 %v127_v28, %v113_v25 }
  0x25   :  { %v129_v30 = vadd.f32 %v128_v29, %v114_v27 }
  0x27   :  { %130 = vadd.xlane.f32.xlu0 %v129_v30 }
  0x9a   :  { %v131_v31 = vpop.xlane.xlu0 %130 }
  0x9b   :  { %v132_v32 = vrot.slane %v131_v31, 4 }
  0x9d   :  { %v133_v33 = vadd.f32 %v132_v32, %v131_v31 }
  0x9f   :  { %v134_v34 = vrot.slane %v133_v33, 2 }
  0xa1   :  { %v135_v35 = vadd.f32 %v134_v34, %v133_v33 }
  0xa3   :  { %v136_v36 = vrot.slane %v135_v35, 1 }
  0xa5   :  { %v137_v37 = vadd.f32 %v136_v36, %v135_v35 }
  0xa7   :  { %235 = vpush %v137_v37 }
  0xd8   :  { %s236_s14 = spop %235 }
  0xd9   :  { %141 = sst [smem:[#allocation2]] %s236_s14 }
  0xda   :  { %150 = dma.smem_to_hbm %s253_s15, 16, %s148_s13, [#allocation3]  }
  0xdb   :  { %251 = dma.done.wait [#allocation3], 16  }
  0xdc   :  { %252 = vsyncadd [#allocation3], 4294967280 }
  0xdd   :  { %155 = sfence }
  0xde   :  { %156 = vsyncpa [#allocation3], 1 }

// kernel: _lambda_.11
= control target key start
LH: loop header
LB: loop body
LE: loop exit
PB: predicated region body
PF: predicated region fallthrough
CT: control target
= control target key end

     0   :  { %6 = vsyncpa [#allocation3], 0  ;;  %s403_s6 = smov 0   ;;  %s432_s0 = inlined_call_operand.vmem [shape: f32[2,3,16,16], index: 0, kind: input, shape index: {}]   ;;  %s433_s1 = inlined_call_operand.vmem [shape: f32[2], index: 1, kind: output, shape index: {}]  }
   0x1 LB: > { %s409_s7 = sadd.s32 4294967295, %s387_s6   ;;  %p328_p0 = scmp.ge.s32.totalorder %s387_s6, 1  ;;  %s387_s6 = sphi %s403_s6, %s12_s6  }
   0x2   : > { %p83_p1 = scmp.lt.s32.totalorder %s387_s6, 3 }
   0x4   : > { %p84_p2 = pnand %p328_p0, %p83_p1 }
   0x5   : > { %p98_p3 = scmp.lt.s32.totalorder (!%p84_p2), %s409_s7, 1  ;;  %s389_s13 = smov (!%p84_p2), 1  }
   0x6   : > { %87 = sbr.rel (%p84_p2) target bundleno = 457 (0x1c9), region = 24  ;;  %s390_s14 = smov (!%p84_p2), 127  }
   0x7   : > { %p348_p4 = scmp.eq.s32.totalorder (!%p84_p2), %s409_s7, 0  ;;  %s391_s15 = smov (!%p84_p2), 0.0  }
   0x8   : > { %s284_s22 = sshll.u32 (!%p84_p2), %s433_s1, 4  ;;  %p349_p5 = scmp.eq.s32.totalorder (!%p84_p2), %s409_s7, 1  ;;  %s285_s22 = int_to_ptr.vmem [resolvable:$true] %s284_s22 }
   0x9   : > { %s392_s25 = smov (!%p84_p2), [#allocation2]  }
   0xb   : > { %s99_s8 = scalar_select %p98_p3, %s409_s7, 1  ;;  %vm123_vm0 = vcmask 1040384   ;;  %vm182_vm1 = vcmask 1046528   ;;  %vm198_vm2 = vcmask 130048   ;;  %vm200_vm3 = vcmask 129024  }
   0xc   : > { %vm254_vm4 = vcmask 121856   ;;  %342 = sst [smem:[#allocation2]] (%p348_p4), %s391_s15 }
   0xd   : > { %s336_s9 = smul.u32 48, %s99_s8  ;;  %343 = sst [smem:[#allocation2 + $0x1]] (%p348_p4), %s391_s15 }
   0xe   : > { %s169_s16 = sld [smem:[#allocation2]] }
   0xf   : > { %s102_s12 = scalar_lea.vmem %s432_s0, %s336_s9  ;;  %s331_s19 = sld [smem:[#allocation2 + $0x1]] }
  0x10   : > { %v111_v0 = vld [vmem:[%s102_s12] sm:$0xff]  ;;  %v113_v1 = vld [vmem:[%s102_s12 + $0x10] sm:$0xff]  ;;  %v112_v3 = vld [vmem:[%s102_s12 + $0x8] sm:$0xff] }
  0x11   : > { %145 = vrot.lane.b32.xlu0 %v111_v0, %s389_s13  ;;  %149 = vrot.lane.b32.xlu1 %v113_v1, %s389_s13  ;;  %v115_v2 = vld [vmem:[%s102_s12 + $0x20] sm:$0xff]  ;;  %v114_v4 = vld [vmem:[%s102_s12 + $0x18] sm:$0xff]  ;;  %v124_v24 = vrot.slane %v111_v0, 7  ;;  %v125_v25 = vrot.slane %v112_v3, 7  ;;  %v127_v26 = vrot.slane %v113_v1, 7 }
  0x12   : > { %153 = vrot.lane.b32.xlu2 %v115_v2, %s389_s13  ;;  %v116_v5 = vld [vmem:[%s102_s12 + $0x28] sm:$0xff]  ;;  %v128_v28 = vrot.slane %v114_v4, 7  ;;  %v130_v33 = vrot.slane %v115_v2, 7 }
  0x13   : > { %v126_v27 = vsel %vm123_vm0, %v124_v24, %v125_v25  ;;  %v139_v29 = vsub.f32 %v111_v0, %v124_v24  ;;  %v141_v32 = vsub.f32 %v113_v1, %v127_v26  ;;  %v131_v39 = vrot.slane %v116_v5, 7 }
  0x14   : > { %v140_v30 = vsub.f32 %v112_v3, %v126_v27  ;;  %v129_v31 = vsel %vm123_vm0, %v127_v26, %v128_v28  ;;  %v143_v38 = vsub.f32 %v115_v2, %v130_v33 }
  0x15   : > { %v170_v34 = vmul.f32 %v139_v29, %v139_v29  ;;  %v142_v36 = vsub.f32 %v114_v4, %v129_v31  ;;  %v172_v37 = vmul.f32 %v141_v32, %v141_v32  ;;  %v132_v45 = vsel %vm123_vm0, %v130_v33, %v131_v39 }
  0x16   : > { %v171_v35 = vmul.f32 %v140_v30, %v140_v30  ;;  %v174_v44 = vmul.f32 %v143_v38, %v143_v38  ;;  %v144_v46 = vsub.f32 %v116_v5, %v132_v45 }
  0x17   : > { %v183_v40 = vrot.slane %v170_v34, 1  ;;  %v173_v42 = vmul.f32 %v142_v36, %v142_v36  ;;  %v186_v43 = vrot.slane %v172_v37, 1 }
  0x18   : > { %v184_v41 = vrot.slane %v171_v35, 1  ;;  %v189_v50 = vrot.slane %v174_v44, 1  ;;  %v175_v51 = vmul.f32 %v144_v46, %v144_v46 }
  0x19   : > { %147 = vrot.lane.b32.xlu0 %v112_v3, %s389_s13  ;;  %151 = vrot.lane.b32.xlu1 %v114_v4, %s389_s13  ;;  %v187_v48 = vrot.slane %v173_v42, 1 }
  0x1a   : > { %155 = vrot.lane.b32.xlu2 %v116_v5, %s389_s13  ;;  %v185_v47 = vsel %vm182_vm1, %v183_v40, %v184_v41  ;;  %v201_v53 = vsel %vm200_vm3, %v184_v41, 0.0  ;;  %v190_v56 = vrot.slane %v175_v51, 1 }
  0x1b   : > { %v199_v49 = vsel %vm198_vm2, %v185_v47, 0.0  ;;  %v188_v52 = vsel %vm182_vm1, %v186_v43, %v187_v48  ;;  %v205_v58 = vsel %vm200_vm3, %v187_v48, 0.0 }
  0x1c   : > { %v202_v54 = vadd.f32 %v201_v53, %v199_v49  ;;  %v203_v55 = vsel %vm198_vm2, %v188_v52, 0.0  ;;  %v191_v59 = vsel %vm182_vm1, %v189_v50, %v190_v56  ;;  %v209_v63 = vsel %vm200_vm3, %v190_v56, 0.0 }
  0x1d   : > { %v207_v61 = vsel %vm198_vm2, %v191_v59, 0.0 }
  0x1e   : > { %v204_v57 = vadd.f32 %v203_v55, %v202_v54 }
  0x20   : > { %v206_v60 = vadd.f32 %v205_v58, %v204_v57 }
  0x22   : > { %v208_v62 = vadd.f32 %v207_v61, %v206_v60 }
  0x6c   : > { %v154_v6 = vpop.permute.xlu2 %153 }
  0x6d   : > { %v167_v22 = vsub.f32 %v115_v2, %v154_v6 }
  0x6f   : > { %v228_v23 = vmul.f32 %v167_v22, %v167_v22 }
  0x74   : > { %v156_v13 = vpop.permute.xlu2 %155 }
  0x75   : > { %v168_v14 = vsub.f32 %v116_v5, %v156_v13 }
  0x77   : > { %v229_v19 = vmul.f32 %v168_v14, %v168_v14 }
  0x83   : > { %v146_v7 = vpop.permute.xlu0 %145  ;;  %v150_v8 = vpop.permute.xlu1 %149 }
  0x84   : > { %v163_v9 = vsub.f32 %v111_v0, %v146_v7  ;;  %v165_v10 = vsub.f32 %v113_v1, %v150_v8  ;;  %v210_v0 = vadd.f32 %v209_v63, %v208_v62 }
  0x86   : > { %v224_v11 = vmul.f32 %v163_v9, %v163_v9  ;;  %v226_v12 = vmul.f32 %v165_v10, %v165_v10 }
  0x88   : > { %236 = vrot.lane.b32.xlu0 %v224_v11, %s390_s14  ;;  %240 = vrot.lane.b32.xlu2 %v226_v12, %s390_s14 }
  0x8b   : > { %v148_v15 = vpop.permute.xlu0 %147  ;;  %v152_v16 = vpop.permute.xlu1 %151 }
  0x8c   : > { %v164_v17 = vsub.f32 %v112_v3, %v148_v15  ;;  %v166_v18 = vsub.f32 %v114_v4, %v152_v16 }
  0x8e   : > { %v225_v20 = vmul.f32 %v164_v17, %v164_v17  ;;  %v227_v21 = vmul.f32 %v166_v18, %v166_v18 }
  0x90   : > { %238 = vrot.lane.b32.xlu1 %v225_v20, %s390_s14  ;;  %242 = vrot.lane.b32.xlu0 %v227_v21, %s390_s14 }
  0x91   : > { %246 = vrot.lane.b32.xlu2 %v229_v19, %s390_s14 }
  0x98   : > { %244 = vrot.lane.b32.xlu1 %v228_v23, %s390_s14 }
  0xba   : > { %211 = vadd.xlane.f32.xlu0 %v210_v0 }
  0xe2   : > { %v241_v2 = vpop.permute.xlu2 %240 }
  0xe3   : > { %v258_v8 = vsel %vm254_vm4, %v241_v2, 0.0 }
  0xeb   : > { %v247_v11 = vpop.permute.xlu2 %246 }
  0xec   : > { %v264_v15 = vsel %vm254_vm4, %v247_v11, 0.0 }
  0xfa   : > { %v237_v1 = vpop.permute.xlu0 %236 }
  0xfb   : > { %v255_v4 = vsel %vm254_vm4, %v237_v1, 0.0 }
 0x102   : > { %v239_v3 = vpop.permute.xlu1 %238  ;;  %v243_v7 = vpop.permute.xlu0 %242 }
 0x103   : > { %v256_v5 = vsel %vm254_vm4, %v239_v3, 0.0  ;;  %v260_v10 = vsel %vm254_vm4, %v243_v7, 0.0 }
 0x104   : > { %v257_v6 = vadd.f32 %v256_v5, %v255_v4 }
 0x106   : > { %v259_v9 = vadd.f32 %v258_v8, %v257_v6 }
 0x108   : > { %v261_v12 = vadd.f32 %v260_v10, %v259_v9 }
 0x10a   : > { %v245_v13 = vpop.permute.xlu1 %244 }
 0x10b   : > { %v262_v14 = vsel %vm254_vm4, %v245_v13, 0.0 }
 0x10c   : > { %v263_v16 = vadd.f32 %v262_v14, %v261_v12 }
 0x10e   : > { %v265_v17 = vadd.f32 %v264_v15, %v263_v16 }
 0x110   : > { %266 = vadd.xlane.f32.xlu1 %v265_v17 }
 0x12d   : > { %v212_v18 = vpop.xlane.xlu0 %211 }
 0x12e   : > { %v213_v19 = vrot.slane %v212_v18, 4 }
 0x130   : > { %v214_v20 = vadd.f32 %v213_v19, %v212_v18 }
 0x132   : > { %v215_v21 = vrot.slane %v214_v20, 2 }
 0x134   : > { %v216_v22 = vadd.f32 %v215_v21, %v214_v20 }
 0x136   : > { %v217_v23 = vrot.slane %v216_v22, 1 }
 0x138   : > { %v218_v24 = vadd.f32 %v217_v23, %v216_v22 }
 0x13a   : > { %337 = vpush %v218_v24 }
 0x16b   : > { %s338_s17 = spop %337 }
 0x16c   : > { %s220_s18 = sadd.f32 %s338_s17, %s169_s16 }
 0x16e   : > { %222 = sst [smem:[#allocation2]] %s220_s18 }
 0x183   : > { %v267_v25 = vpop.xlane.xlu1 %266 }
 0x184   : > { %v268_v26 = vrot.slane %v267_v25, 4 }
 0x186   : > { %v269_v27 = vadd.f32 %v268_v26, %v267_v25 }
 0x188   : > { %v270_v28 = vrot.slane %v269_v27, 2 }
 0x18a   : > { %v271_v29 = vadd.f32 %v270_v28, %v269_v27 }
 0x18c   : > { %v272_v30 = vrot.slane %v271_v29, 1 }
 0x18e   : > { %v273_v31 = vadd.f32 %v272_v30, %v271_v29 }
 0x190   : > { %339 = vpush %v273_v31 }
 0x1c1   : > { %s340_s23 = spop %339 }
 0x1c2   : > { %s275_s24 = sadd.f32 %s340_s23, %s331_s19 }
 0x1c4   : > { %277 = sst [smem:[#allocation2 + $0x1]] %s275_s24 }
 0x1c5   : > { %345 = dma.smem_to_vmem (%p349_p5), %s392_s25, 16, %s285_s22, [#allocation3]  }
 0x1c6   : > { %382 = dma.done.wait (%p349_p5), [#allocation3], 16  }
 0x1c7   : > { %384 = vsyncadd (%p349_p5), [#allocation3], 4294967280 }
 0x1c8   : > { %293 = sfence }
 0x1c9 PF: > { %s12_s6 = sadd.s32 1, %s387_s6  }
 0x1ca   : > { %p9_p6 = scmp.ge.s32.totalorder %s12_s6, 4  }
 0x1cc   :  { %11 = sbr.rel (!%p9_p6) target bundleno = 1 (0x1), region = 59 }
 0x1d1   :  { %299 = vsyncpa [#allocation3], 1 }
 0x1d2   :  { %301 = vsyncpa [#allocation3 + $0x1], 1 }

</bundles_post_ra>
